<compile_context>
chip_gen: v7x
topology: tpu7x:2x2x1
jax: 0.10.0
libtpu: 0.0.40
codegen_flags: <defaults>
</compile_context>

<pallas_src>
import math

import jax
import jax.numpy as jnp
from jax import lax
from jax.experimental import pallas as pl
from jax.experimental.pallas import tpu as pltpu

UPSCALE = 4
LVLS = 16
ACT_RANGE = 8.0
STEPS = 2.0 * ACT_RANGE / LVLS  # = 1.0
TM = 512  # pixels per grid step (lane axis); multiple of 128


# ----------------------------- in-kernel math -----------------------------

def _gelu(x):
    # exact GELU (matches torch nn.GELU() default, approximate='none')
    return 0.5 * x * (1.0 + lax.erf(x * (1.0 / math.sqrt(2.0))))


def _quant(x):
    # BASEQ: clamp to [-8, 8] via the abs trick, cap at 8 - 0.1*step, floor-quantize
    x = (jnp.abs(-x - ACT_RANGE) - jnp.abs(x - ACT_RANGE)) * 0.5
    cap = ACT_RANGE - 0.1 * STEPS
    x = jnp.where(x > cap, cap, x)
    return jnp.floor(x / STEPS) * STEPS


# ------------------------------- kernels -----------------------------------

def lut122_kernel(f_ref, r_ref, w1, b1, w2, b2, w3, b3, o_ref):
    # lut122 + residual: (4,TM) -> 64 -> GELU -> 64 -> GELU -> 8, then + x_in crop
    h = f_ref[...]
    h = _gelu(jnp.dot(w1[...], h, preferred_element_type=jnp.float32) + b1[...])
    h = _gelu(jnp.dot(w2[...], h, preferred_element_type=jnp.float32) + b2[...])
    y = jnp.dot(w3[...], h, preferred_element_type=jnp.float32) + b3[...]
    o_ref[...] = y + r_ref[...]  # r_ref (1,TM) broadcasts over 8 channels


def fused_lut_kernel(f_ref, r_ref, w1, b1, w2, b2, w3, b3, w4, b4, o_ref):
    # Two parallel 4-layer LUT branches fused via block-diagonal weights:
    # quant -> (8,TM) -> 128 -> GELU -> 128 -> GELU -> 128 -> GELU -> 2*Cout,
    # then (branchA + branchB)/2 + residual, all inside the kernel.
    h = _quant(f_ref[...])
    h = _gelu(jnp.dot(w1[...], h, preferred_element_type=jnp.float32) + b1[...])
    h = _gelu(jnp.dot(w2[...], h, preferred_element_type=jnp.float32) + b2[...])
    h = _gelu(jnp.dot(w3[...], h, preferred_element_type=jnp.float32) + b3[...])
    y = jnp.dot(w4[...], h, preferred_element_type=jnp.float32) + b4[...]
    c = o_ref.shape[0]  # 8 (stage 2) or 16 (stage 3)
    o_ref[...] = (y[:c, :] + y[c:, :]) * 0.5 + r_ref[...]


# ------------------------------ kernel driver ------------------------------

def run_stage(kernel, inputs, params, out_dim, tm=TM):
    """inputs: list of (F_i, P) f32 arrays tiled over the pixel/lane axis.
    params: flat list [w1,b1,w2,b2,...] passed as full-array blocks.
    Returns (out_dim, P) f32."""
    P = inputs[0].shape[1]
    Pp = pl.cdiv(P, tm) * tm
    padded = [jnp.pad(a, ((0, 0), (0, Pp - P))) for a in inputs]

    in_specs = [pl.BlockSpec((a.shape[0], tm), lambda i: (0, i)) for a in padded]
    in_specs += [pl.BlockSpec(p.shape, lambda i: (0, 0)) for p in params]

    out = pl.pallas_call(
        kernel,
        out_shape=jax.ShapeDtypeStruct((out_dim, Pp), jnp.float32),
        grid=(Pp // tm,),
        in_specs=in_specs,
        out_specs=pl.BlockSpec((out_dim, tm), lambda i: (0, i)),
        compiler_params=pltpu.CompilerParams(dimension_semantics=("parallel",)),
    )(*padded, *params)
    return out[:, :P]


# ------------------------------ SRNet forward ------------------------------

def srnet_forward(x_in, params):
    B, C, H, W = x_in.shape
    assert H >= 3 and W >= 3, "reflect padding needs H,W >= 3"
    N = B * C
    Hp, Wp = H - 1, W - 1
    P = N * Hp * Wp

    x0 = x_in.reshape(N, H, W).astype(jnp.float32)      # (B*C, H, W)
    x0c = x0[:, :Hp, :Wp].reshape(1, P)                  # cropped input residual

    # ---- stage 1: lut122 (2x2 gather -> 3-layer MLP) + residual ----
    f122 = jnp.stack(
        [x0[:, :Hp, :Wp], x0[:, :Hp, 1:], x0[:, 1:, :Wp], x0[:, 1:, 1:]], axis=0
    ).reshape(4, P)
    x = run_stage(lut122_kernel, [f122, x0c], params["lut122"], 8)  # (8, P)

    # feature builder for the fused [2,1]+[1,2] stages (XLA glue)
    def make_feat(xflat):
        xc = xflat.reshape(8, N, Hp, Wp)
        # 221 branch: pad H (bottom-reflect ch0:2, top-reflect ch2:4), sum, stack rows h,h+1
        xa = jnp.pad(xc[0:2], ((0, 0), (0, 0), (0, 1), (0, 0)), mode="reflect")
        xb = jnp.pad(xc[2:4], ((0, 0), (0, 0), (1, 0), (0, 0)), mode="reflect")
        t = xa + xb  # (2, N, Hp+1, Wp)
        f221 = jnp.stack(
            [t[0, :, :-1], t[0, :, 1:], t[1, :, :-1], t[1, :, 1:]], axis=0)
        # 212 branch: pad W (right-reflect ch4:6, left-reflect ch6:8), sum, stack cols w,w+1
        xa = jnp.pad(xc[4:6], ((0, 0), (0, 0), (0, 0), (0, 1)), mode="reflect")
        xb = jnp.pad(xc[6:8], ((0, 0), (0, 0), (0, 0), (1, 0)), mode="reflect")
        t = xa + xb  # (2, N, Hp, Wp+1)
        f212 = jnp.stack(
            [t[0, :, :, :-1], t[0, :, :, 1:], t[1, :, :, :-1], t[1, :, :, 1:]], axis=0)
        return jnp.concatenate([f221, f212], axis=0).reshape(8, P)

    # ---- stage 2: fused lut221 + lut212 (quant + combine in-kernel) ----
    x = run_stage(fused_lut_kernel, [make_feat(x), x], params["stage2"], 8)

    # ---- stage 3: fused lut221_c12 + lut212_c34 -> 16 channels ----
    y = run_stage(fused_lut_kernel, [make_feat(x), x0c], params["stage3"], 16)  # (16, P)

    # ---- pixel shuffle (r=4): channel c = i*4 + j -> spatial offset (i, j) ----
    y = y.reshape(UPSCALE, UPSCALE, N, Hp, Wp)        # (i, j, n, h, w)
    y = jnp.transpose(y, (2, 3, 0, 4, 1))             # (n, h, i, w, j)
    y = y.reshape(N, Hp * UPSCALE, Wp * UPSCALE)
    return y.reshape(B, C, Hp * UPSCALE, Wp * UPSCALE)


# ----------------------------- parameter setup -----------------------------

def make_mlp_params(key, dims):
    """Weights in (dout, din) matmul form, kaiming-normal std sqrt(2/fan_in); biases zero."""
    params = []
    for din, dout in zip(dims[:-1], dims[1:]):
        key, sub = jax.random.split(key)
        std = math.sqrt(2.0 / din)
        w = jax.random.normal(sub, (dout, din), jnp.float32) * std
        b = jnp.zeros((dout, 1), jnp.float32)
        params += [w, b]
    return params


def fuse_branch_params(pa, pb):
    """Combine two independent branches into block-diagonal weights + concatenated biases."""
    fused = []
    for i in range(0, len(pa), 2):
        wa, ba = pa[i], pa[i + 1]
        wb, bb = pb[i], pb[i + 1]
        w = jnp.block([
            [wa, jnp.zeros((wa.shape[0], wb.shape[1]), jnp.float32)],
            [jnp.zeros((wb.shape[0], wa.shape[1]), jnp.float32), wb],
        ])
        b = jnp.concatenate([ba, bb], axis=0)
        fused += [w, b]
    return fused


def make_params(key):
    ks = jax.random.split(key, 5)
    lut122 = make_mlp_params(ks[0], [4, 64, 64, 8])
    lut221 = make_mlp_params(ks[1], [4, 64, 64, 64, 8])
    lut212 = make_mlp_params(ks[2], [4, 64, 64, 64, 8])
    lut221_c12 = make_mlp_params(ks[3], [4, 64, 64, 64, 16])
    lut212_c34 = make_mlp_params(ks[4], [4, 64, 64, 64, 16])
    return {
        "lut122": lut122,
        "stage2": fuse_branch_params(lut221, lut212),
        "stage3": fuse_branch_params(lut221_c12, lut212_c34),
    }


# ---------------------------------- main -----------------------------------

if __name__ == "__main__":
    key = jax.random.PRNGKey(0)
    kx, kp = jax.random.split(key)

    B, C, H, W = 2, 4, 16, 16
    x_in = jax.random.uniform(kx, (B, C, H, W), jnp.float32, minval=0.0, maxval=1.0)
    params = make_params(kp)

    fwd = jax.jit(srnet_forward)
    out = jax.block_until_ready(fwd(x_in, params))

    expected = (B, C, UPSCALE * (H - 1), UPSCALE * (W - 1))
    assert out.shape == expected, (out.shape, expected)
    assert bool(jnp.all(jnp.isfinite(out)))
    print("KERNEL_OK")
</pallas_src>

<mosaic_0001>
module attributes {stable_mosaic.version = 11 : i64} {
  func.func @lut122_kernel(%arg0: i32, %arg1: memref<4x512xf32, #tpu.memory_space<vmem>>, %arg2: memref<1x512xf32, #tpu.memory_space<vmem>>, %arg3: memref<64x4xf32, #tpu.memory_space<vmem>>, %arg4: memref<64x1xf32, #tpu.memory_space<vmem>>, %arg5: memref<64x64xf32, #tpu.memory_space<vmem>>, %arg6: memref<64x1xf32, #tpu.memory_space<vmem>>, %arg7: memref<8x64xf32, #tpu.memory_space<vmem>>, %arg8: memref<8x1xf32, #tpu.memory_space<vmem>>, %arg9: memref<8x512xf32, #tpu.memory_space<vmem>>) attributes {dimension_semantics = [#tpu.dimension_semantics<parallel>], iteration_bounds = array<i64: 4>, scalar_prefetch = 0 : i64, scratch_operands = 0 : i64, tpu.core_type = #tpu.core_type<tc>, window_params = [{transform_indices = @transform_0, window_bounds = array<i64: 4, 512>}, {transform_indices = @transform_1, window_bounds = array<i64: 1, 512>}, {pipeline_mode = #tpu.pipeline_mode<synchronous>, transform_indices = @transform_2, window_bounds = array<i64: 64, 4>}, {pipeline_mode = #tpu.pipeline_mode<synchronous>, transform_indices = @transform_3, window_bounds = array<i64: 64, 1>}, {pipeline_mode = #tpu.pipeline_mode<synchronous>, transform_indices = @transform_4, window_bounds = array<i64: 64, 64>}, {pipeline_mode = #tpu.pipeline_mode<synchronous>, transform_indices = @transform_5, window_bounds = array<i64: 64, 1>}, {pipeline_mode = #tpu.pipeline_mode<synchronous>, transform_indices = @transform_6, window_bounds = array<i64: 8, 64>}, {pipeline_mode = #tpu.pipeline_mode<synchronous>, transform_indices = @transform_7, window_bounds = array<i64: 8, 1>}, {transform_indices = @transform_8, window_bounds = array<i64: 8, 512>}]} {
    %c0 = arith.constant 0 : index
    %c0_0 = arith.constant 0 : index
    %0 = vector.load %arg1[%c0, %c0_0] : memref<4x512xf32, #tpu.memory_space<vmem>>, vector<4x512xf32>
    %c0_1 = arith.constant 0 : index
    %c0_2 = arith.constant 0 : index
    %1 = vector.load %arg3[%c0_1, %c0_2] : memref<64x4xf32, #tpu.memory_space<vmem>>, vector<64x4xf32>
    %cst = arith.constant dense<0.000000e+00> : vector<64x512xf32>
    %2 = tpu.matmul %1, %0, %cst {dimension_numbers = #tpu.dot_dimension_numbers<[1], [0], [0], [1], [0, 0, 1, 1], [], []>} : vector<64x4xf32>, vector<4x512xf32>, vector<64x512xf32> -> vector<64x512xf32>
    %c0_3 = arith.constant 0 : index
    %c0_4 = arith.constant 0 : index
    %3 = vector.load %arg4[%c0_3, %c0_4] : memref<64x1xf32, #tpu.memory_space<vmem>>, vector<64x1xf32>
    %4 = vector.broadcast %3 : vector<64x1xf32> to vector<64x512xf32>
    %5 = arith.addf %2, %4 : vector<64x512xf32>
    %cst_5 = arith.constant 5.000000e-01 : f32
    %6 = vector.broadcast %cst_5 : f32 to vector<64x512xf32>
    %7 = arith.mulf %6, %5 : vector<64x512xf32>
    %cst_6 = arith.constant 0.707106769 : f32
    %8 = vector.broadcast %cst_6 : f32 to vector<64x512xf32>
    %9 = arith.mulf %5, %8 : vector<64x512xf32>
    %10 = math.erf %9 : vector<64x512xf32>
    %cst_7 = arith.constant 1.000000e+00 : f32
    %11 = vector.broadcast %cst_7 : f32 to vector<64x512xf32>
    %12 = arith.addf %11, %10 : vector<64x512xf32>
    %13 = arith.mulf %7, %12 : vector<64x512xf32>
    %c0_8 = arith.constant 0 : index
    %c0_9 = arith.constant 0 : index
    %14 = vector.load %arg5[%c0_8, %c0_9] : memref<64x64xf32, #tpu.memory_space<vmem>>, vector<64x64xf32>
    %cst_10 = arith.constant dense<0.000000e+00> : vector<64x512xf32>
    %15 = tpu.matmul %14, %13, %cst_10 {dimension_numbers = #tpu.dot_dimension_numbers<[1], [0], [0], [1], [0, 0, 1, 1], [], []>} : vector<64x64xf32>, vector<64x512xf32>, vector<64x512xf32> -> vector<64x512xf32>
    %c0_11 = arith.constant 0 : index
    %c0_12 = arith.constant 0 : index
    %16 = vector.load %arg6[%c0_11, %c0_12] : memref<64x1xf32, #tpu.memory_space<vmem>>, vector<64x1xf32>
    %17 = vector.broadcast %16 : vector<64x1xf32> to vector<64x512xf32>
    %18 = arith.addf %15, %17 : vector<64x512xf32>
    %cst_13 = arith.constant 5.000000e-01 : f32
    %19 = vector.broadcast %cst_13 : f32 to vector<64x512xf32>
    %20 = arith.mulf %19, %18 : vector<64x512xf32>
    %cst_14 = arith.constant 0.707106769 : f32
    %21 = vector.broadcast %cst_14 : f32 to vector<64x512xf32>
    %22 = arith.mulf %18, %21 : vector<64x512xf32>
    %23 = math.erf %22 : vector<64x512xf32>
    %cst_15 = arith.constant 1.000000e+00 : f32
    %24 = vector.broadcast %cst_15 : f32 to vector<64x512xf32>
    %25 = arith.addf %24, %23 : vector<64x512xf32>
    %26 = arith.mulf %20, %25 : vector<64x512xf32>
    %c0_16 = arith.constant 0 : index
    %c0_17 = arith.constant 0 : index
    %27 = vector.load %arg7[%c0_16, %c0_17] : memref<8x64xf32, #tpu.memory_space<vmem>>, vector<8x64xf32>
    %cst_18 = arith.constant dense<0.000000e+00> : vector<8x512xf32>
    %28 = tpu.matmul %27, %26, %cst_18 {dimension_numbers = #tpu.dot_dimension_numbers<[1], [0], [0], [1], [0, 0, 1, 1], [], []>} : vector<8x64xf32>, vector<64x512xf32>, vector<8x512xf32> -> vector<8x512xf32>
    %c0_19 = arith.constant 0 : index
    %c0_20 = arith.constant 0 : index
    %29 = vector.load %arg8[%c0_19, %c0_20] : memref<8x1xf32, #tpu.memory_space<vmem>>, vector<8x1xf32>
    %30 = vector.broadcast %29 : vector<8x1xf32> to vector<8x512xf32>
    %31 = arith.addf %28, %30 : vector<8x512xf32>
    %c0_21 = arith.constant 0 : index
    %c0_22 = arith.constant 0 : index
    %32 = vector.load %arg2[%c0_21, %c0_22] : memref<1x512xf32, #tpu.memory_space<vmem>>, vector<1x512xf32>
    %33 = vector.broadcast %32 : vector<1x512xf32> to vector<8x512xf32>
    %34 = arith.addf %31, %33 : vector<8x512xf32>
    %c0_23 = arith.constant 0 : index
    %c0_24 = arith.constant 0 : index
    %35 = vector.load %arg9[%c0_23, %c0_24] : memref<8x512xf32, #tpu.memory_space<vmem>>, vector<8x512xf32>
    tpu.vector_store %arg9[%c0_23, %c0_24], %34 {strides = array<i32>} : memref<8x512xf32, #tpu.memory_space<vmem>>, vector<8x512xf32>,
    return
  }
  func.func @transform_0(%arg0: i32) -> (i32, i32) {
    %c0_i32 = arith.constant 0 : i32
    %c0_i32_0 = arith.constant 0 : i32
    return %c0_i32, %arg0 : i32, i32
  }
  func.func @transform_1(%arg0: i32) -> (i32, i32) {
    %c0_i32 = arith.constant 0 : i32
    %c0_i32_0 = arith.constant 0 : i32
    return %c0_i32, %arg0 : i32, i32
  }
  func.func @transform_2(%arg0: i32) -> (i32, i32) {
    %c0_i32 = arith.constant 0 : i32
    %c0_i32_0 = arith.constant 0 : i32
    %c0_i32_1 = arith.constant 0 : i32
    return %c0_i32, %c0_i32_0 : i32, i32
  }
  func.func @transform_3(%arg0: i32) -> (i32, i32) {
    %c0_i32 = arith.constant 0 : i32
    %c0_i32_0 = arith.constant 0 : i32
    %c0_i32_1 = arith.constant 0 : i32
    return %c0_i32, %c0_i32_0 : i32, i32
  }
  func.func @transform_4(%arg0: i32) -> (i32, i32) {
    %c0_i32 = arith.constant 0 : i32
    %c0_i32_0 = arith.constant 0 : i32
    %c0_i32_1 = arith.constant 0 : i32
    return %c0_i32, %c0_i32_0 : i32, i32
  }
  func.func @transform_5(%arg0: i32) -> (i32, i32) {
    %c0_i32 = arith.constant 0 : i32
    %c0_i32_0 = arith.constant 0 : i32
    %c0_i32_1 = arith.constant 0 : i32
    return %c0_i32, %c0_i32_0 : i32, i32
  }
  func.func @transform_6(%arg0: i32) -> (i32, i32) {
    %c0_i32 = arith.constant 0 : i32
    %c0_i32_0 = arith.constant 0 : i32
    %c0_i32_1 = arith.constant 0 : i32
    return %c0_i32, %c0_i32_0 : i32, i32
  }
  func.func @transform_7(%arg0: i32) -> (i32, i32) {
    %c0_i32 = arith.constant 0 : i32
    %c0_i32_0 = arith.constant 0 : i32
    %c0_i32_1 = arith.constant 0 : i32
    return %c0_i32, %c0_i32_0 : i32, i32
  }
  func.func @transform_8(%arg0: i32) -> (i32, i32) {
    %c0_i32 = arith.constant 0 : i32
    %c0_i32_0 = arith.constant 0 : i32
    return %c0_i32, %arg0 : i32, i32
  }
}

module attributes {stable_mosaic.version = 11 : i64} {
  func.func @fused_lut_kernel(%arg0: i32, %arg1: memref<8x512xf32, #tpu.memory_space<vmem>>, %arg2: memref<1x512xf32, #tpu.memory_space<vmem>>, %arg3: memref<128x8xf32, #tpu.memory_space<vmem>>, %arg4: memref<128x1xf32, #tpu.memory_space<vmem>>, %arg5: memref<128x128xf32, #tpu.memory_space<vmem>>, %arg6: memref<128x1xf32, #tpu.memory_space<vmem>>, %arg7: memref<128x128xf32, #tpu.memory_space<vmem>>, %arg8: memref<128x1xf32, #tpu.memory_space<vmem>>, %arg9: memref<32x128xf32, #tpu.memory_space<vmem>>, %arg10: memref<32x1xf32, #tpu.memory_space<vmem>>, %arg11: memref<16x512xf32, #tpu.memory_space<vmem>>) attributes {dimension_semantics = [#tpu.dimension_semantics<parallel>], iteration_bounds = array<i64: 4>, scalar_prefetch = 0 : i64, scratch_operands = 0 : i64, tpu.core_type = #tpu.core_type<tc>, window_params = [{transform_indices = @transform_0, window_bounds = array<i64: 8, 512>}, {transform_indices = @transform_1, window_bounds = array<i64: 1, 512>}, {pipeline_mode = #tpu.pipeline_mode<synchronous>, transform_indices = @transform_2, window_bounds = array<i64: 128, 8>}, {pipeline_mode = #tpu.pipeline_mode<synchronous>, transform_indices = @transform_3, window_bounds = array<i64: 128, 1>}, {pipeline_mode = #tpu.pipeline_mode<synchronous>, transform_indices = @transform_4, window_bounds = array<i64: 128, 128>}, {pipeline_mode = #tpu.pipeline_mode<synchronous>, transform_indices = @transform_5, window_bounds = array<i64: 128, 1>}, {pipeline_mode = #tpu.pipeline_mode<synchronous>, transform_indices = @transform_6, window_bounds = array<i64: 128, 128>}, {pipeline_mode = #tpu.pipeline_mode<synchronous>, transform_indices = @transform_7, window_bounds = array<i64: 128, 1>}, {pipeline_mode = #tpu.pipeline_mode<synchronous>, transform_indices = @transform_8, window_bounds = array<i64: 32, 128>}, {pipeline_mode = #tpu.pipeline_mode<synchronous>, transform_indices = @transform_9, window_bounds = array<i64: 32, 1>}, {transform_indices = @transform_10, window_bounds = array<i64: 16, 512>}]} {
    %c0 = arith.constant 0 : index
    %c0_0 = arith.constant 0 : index
    %0 = vector.load %arg1[%c0, %c0_0] : memref<8x512xf32, #tpu.memory_space<vmem>>, vector<8x512xf32>
    %cst = arith.constant 0.000000e+00 : f32
    %1 = vector.broadcast %cst : f32 to vector<8x512xf32>
    %2 = arith.subf %1, %0 : vector<8x512xf32>
    %cst_1 = arith.constant 8.000000e+00 : f32
    %3 = vector.broadcast %cst_1 : f32 to vector<8x512xf32>
    %4 = arith.subf %2, %3 : vector<8x512xf32>
    %5 = math.absf %4 : vector<8x512xf32>
    %cst_2 = arith.constant 8.000000e+00 : f32
    %6 = vector.broadcast %cst_2 : f32 to vector<8x512xf32>
    %7 = arith.subf %0, %6 : vector<8x512xf32>
    %8 = math.absf %7 : vector<8x512xf32>
    %9 = arith.subf %5, %8 : vector<8x512xf32>
    %cst_3 = arith.constant 5.000000e-01 : f32
    %10 = vector.broadcast %cst_3 : f32 to vector<8x512xf32>
    %11 = arith.mulf %9, %10 : vector<8x512xf32>
    %cst_4 = arith.constant 7.900000e+00 : f32
    %12 = vector.broadcast %cst_4 : f32 to vector<8x512xf32>
    %13 = arith.cmpf ogt, %11, %12 : vector<8x512xf32>
    %cst_5 = arith.constant 7.900000e+00 : f32
    %14 = vector.broadcast %cst_5 : f32 to vector<8x512xf32>
    %15 = arith.select %13, %14, %11 : vector<8x512xi1>, vector<8x512xf32>
    %cst_6 = arith.constant 1.000000e+00 : f32
    %16 = vector.broadcast %cst_6 : f32 to vector<8x512xf32>
    %17 = arith.divf %15, %16 : vector<8x512xf32>
    %18 = math.floor %17 : vector<8x512xf32>
    %cst_7 = arith.constant 1.000000e+00 : f32
    %19 = vector.broadcast %cst_7 : f32 to vector<8x512xf32>
    %20 = arith.mulf %18, %19 : vector<8x512xf32>
    %c0_8 = arith.constant 0 : index
    %c0_9 = arith.constant 0 : index
    %21 = vector.load %arg3[%c0_8, %c0_9] : memref<128x8xf32, #tpu.memory_space<vmem>>, vector<128x8xf32>
    %cst_10 = arith.constant dense<0.000000e+00> : vector<128x512xf32>
    %22 = tpu.matmul %21, %20, %cst_10 {dimension_numbers = #tpu.dot_dimension_numbers<[1], [0], [0], [1], [0, 0, 1, 1], [], []>} : vector<128x8xf32>, vector<8x512xf32>, vector<128x512xf32> -> vector<128x512xf32>
    %c0_11 = arith.constant 0 : index
    %c0_12 = arith.constant 0 : index
    %23 = vector.load %arg4[%c0_11, %c0_12] : memref<128x1xf32, #tpu.memory_space<vmem>>, vector<128x1xf32>
    %24 = vector.broadcast %23 : vector<128x1xf32> to vector<128x512xf32>
    %25 = arith.addf %22, %24 : vector<128x512xf32>
    %cst_13 = arith.constant 5.000000e-01 : f32
    %26 = vector.broadcast %cst_13 : f32 to vector<128x512xf32>
    %27 = arith.mulf %26, %25 : vector<128x512xf32>
    %cst_14 = arith.constant 0.707106769 : f32
    %28 = vector.broadcast %cst_14 : f32 to vector<128x512xf32>
    %29 = arith.mulf %25, %28 : vector<128x512xf32>
    %30 = math.erf %29 : vector<128x512xf32>
    %cst_15 = arith.constant 1.000000e+00 : f32
    %31 = vector.broadcast %cst_15 : f32 to vector<128x512xf32>
    %32 = arith.addf %31, %30 : vector<128x512xf32>
    %33 = arith.mulf %27, %32 : vector<128x512xf32>
    %c0_16 = arith.constant 0 : index
    %c0_17 = arith.constant 0 : index
    %34 = vector.load %arg5[%c0_16, %c0_17] : memref<128x128xf32, #tpu.memory_space<vmem>>, vector<128x128xf32>
    %cst_18 = arith.constant dense<0.000000e+00> : vector<128x512xf32>
    %35 = tpu.matmul %34, %33, %cst_18 {dimension_numbers = #tpu.dot_dimension_numbers<[1], [0], [0], [1], [0, 0, 1, 1], [], []>} : vector<128x128xf32>, vector<128x512xf32>, vector<128x512xf32> -> vector<128x512xf32>
    %c0_19 = arith.constant 0 : index
    %c0_20 = arith.constant 0 : index
    %36 = vector.load %arg6[%c0_19, %c0_20] : memref<128x1xf32, #tpu.memory_space<vmem>>, vector<128x1xf32>
    %37 = vector.broadcast %36 : vector<128x1xf32> to vector<128x512xf32>
    %38 = arith.addf %35, %37 : vector<128x512xf32>
    %cst_21 = arith.constant 5.000000e-01 : f32
    %39 = vector.broadcast %cst_21 : f32 to vector<128x512xf32>
    %40 = arith.mulf %39, %38 : vector<128x512xf32>
    %cst_22 = arith.constant 0.707106769 : f32
    %41 = vector.broadcast %cst_22 : f32 to vector<128x512xf32>
    %42 = arith.mulf %38, %41 : vector<128x512xf32>
    %43 = math.erf %42 : vector<128x512xf32>
    %cst_23 = arith.constant 1.000000e+00 : f32
    %44 = vector.broadcast %cst_23 : f32 to vector<128x512xf32>
    %45 = arith.addf %44, %43 : vector<128x512xf32>
    %46 = arith.mulf %40, %45 : vector<128x512xf32>
    %c0_24 = arith.constant 0 : index
    %c0_25 = arith.constant 0 : index
    %47 = vector.load %arg7[%c0_24, %c0_25] : memref<128x128xf32, #tpu.memory_space<vmem>>, vector<128x128xf32>
    %cst_26 = arith.constant dense<0.000000e+00> : vector<128x512xf32>
    %48 = tpu.matmul %47, %46, %cst_26 {dimension_numbers = #tpu.dot_dimension_numbers<[1], [0], [0], [1], [0, 0, 1, 1], [], []>} : vector<128x128xf32>, vector<128x512xf32>, vector<128x512xf32> -> vector<128x512xf32>
    %c0_27 = arith.constant 0 : index
    %c0_28 = arith.constant 0 : index
    %49 = vector.load %arg8[%c0_27, %c0_28] : memref<128x1xf32, #tpu.memory_space<vmem>>, vector<128x1xf32>
    %50 = vector.broadcast %49 : vector<128x1xf32> to vector<128x512xf32>
    %51 = arith.addf %48, %50 : vector<128x512xf32>
    %cst_29 = arith.constant 5.000000e-01 : f32
    %52 = vector.broadcast %cst_29 : f32 to vector<128x512xf32>
    %53 = arith.mulf %52, %51 : vector<128x512xf32>
    %cst_30 = arith.constant 0.707106769 : f32
    %54 = vector.broadcast %cst_30 : f32 to vector<128x512xf32>
    %55 = arith.mulf %51, %54 : vector<128x512xf32>
    %56 = math.erf %55 : vector<128x512xf32>
    %cst_31 = arith.constant 1.000000e+00 : f32
    %57 = vector.broadcast %cst_31 : f32 to vector<128x512xf32>
    %58 = arith.addf %57, %56 : vector<128x512xf32>
    %59 = arith.mulf %53, %58 : vector<128x512xf32>
    %c0_32 = arith.constant 0 : index
    %c0_33 = arith.constant 0 : index
    %60 = vector.load %arg9[%c0_32, %c0_33] : memref<32x128xf32, #tpu.memory_space<vmem>>, vector<32x128xf32>
    %cst_34 = arith.constant dense<0.000000e+00> : vector<32x512xf32>
    %61 = tpu.matmul %60, %59, %cst_34 {dimension_numbers = #tpu.dot_dimension_numbers<[1], [0], [0], [1], [0, 0, 1, 1], [], []>} : vector<32x128xf32>, vector<128x512xf32>, vector<32x512xf32> -> vector<32x512xf32>
    %c0_35 = arith.constant 0 : index
    %c0_36 = arith.constant 0 : index
    %62 = vector.load %arg10[%c0_35, %c0_36] : memref<32x1xf32, #tpu.memory_space<vmem>>, vector<32x1xf32>
    %63 = vector.broadcast %62 : vector<32x1xf32> to vector<32x512xf32>
    %64 = arith.addf %61, %63 : vector<32x512xf32>
    %65 = vector.extract_strided_slice %64 {offsets = [0, 0], sizes = [16, 512], strides = [1, 1]} : vector<32x512xf32> to vector<16x512xf32>
    %66 = vector.extract_strided_slice %64 {offsets = [16, 0], sizes = [16, 512], strides = [1, 1]} : vector<32x512xf32> to vector<16x512xf32>
    %67 = arith.addf %65, %66 : vector<16x512xf32>
    %cst_37 = arith.constant 5.000000e-01 : f32
    %68 = vector.broadcast %cst_37 : f32 to vector<16x512xf32>
    %69 = arith.mulf %67, %68 : vector<16x512xf32>
    %c0_38 = arith.constant 0 : index
    %c0_39 = arith.constant 0 : index
    %70 = vector.load %arg2[%c0_38, %c0_39] : memref<1x512xf32, #tpu.memory_space<vmem>>, vector<1x512xf32>
    %71 = vector.broadcast %70 : vector<1x512xf32> to vector<16x512xf32>
    %72 = arith.addf %69, %71 : vector<16x512xf32>
    %c0_40 = arith.constant 0 : index
    %c0_41 = arith.constant 0 : index
    %73 = vector.load %arg11[%c0_40, %c0_41] : memref<16x512xf32, #tpu.memory_space<vmem>>, vector<16x512xf32>
    tpu.vector_store %arg11[%c0_40, %c0_41], %72 {strides = array<i32>} : memref<16x512xf32, #tpu.memory_space<vmem>>, vector<16x512xf32>,
    return
  }
  func.func @transform_0(%arg0: i32) -> (i32, i32) {
    %c0_i32 = arith.constant 0 : i32
    %c0_i32_0 = arith.constant 0 : i32
    return %c0_i32, %arg0 : i32, i32
  }
  func.func @transform_1(%arg0: i32) -> (i32, i32) {
    %c0_i32 = arith.constant 0 : i32
    %c0_i32_0 = arith.constant 0 : i32
    return %c0_i32, %arg0 : i32, i32
  }
  func.func @transform_2(%arg0: i32) -> (i32, i32) {
    %c0_i32 = arith.constant 0 : i32
    %c0_i32_0 = arith.constant 0 : i32
    %c0_i32_1 = arith.constant 0 : i32
    return %c0_i32, %c0_i32_0 : i32, i32
  }
  func.func @transform_3(%arg0: i32) -> (i32, i32) {
    %c0_i32 = arith.constant 0 : i32
    %c0_i32_0 = arith.constant 0 : i32
    %c0_i32_1 = arith.constant 0 : i32
    return %c0_i32, %c0_i32_0 : i32, i32
  }
  func.func @transform_4(%arg0: i32) -> (i32, i32) {
    %c0_i32 = arith.constant 0 : i32
    %c0_i32_0 = arith.constant 0 : i32
    %c0_i32_1 = arith.constant 0 : i32
    return %c0_i32, %c0_i32_0 : i32, i32
  }
  func.func @transform_5(%arg0: i32) -> (i32, i32) {
    %c0_i32 = arith.constant 0 : i32
    %c0_i32_0 = arith.constant 0 : i32
    %c0_i32_1 = arith.constant 0 : i32
    return %c0_i32, %c0_i32_0 : i32, i32
  }
  func.func @transform_6(%arg0: i32) -> (i32, i32) {
    %c0_i32 = arith.constant 0 : i32
    %c0_i32_0 = arith.constant 0 : i32
    %c0_i32_1 = arith.constant 0 : i32
    return %c0_i32, %c0_i32_0 : i32, i32
  }
  func.func @transform_7(%arg0: i32) -> (i32, i32) {
    %c0_i32 = arith.constant 0 : i32
    %c0_i32_0 = arith.constant 0 : i32
    %c0_i32_1 = arith.constant 0 : i32
    return %c0_i32, %c0_i32_0 : i32, i32
  }
  func.func @transform_8(%arg0: i32) -> (i32, i32) {
    %c0_i32 = arith.constant 0 : i32
    %c0_i32_0 = arith.constant 0 : i32
    %c0_i32_1 = arith.constant 0 : i32
    return %c0_i32, %c0_i32_0 : i32, i32
  }
  func.func @transform_9(%arg0: i32) -> (i32, i32) {
    %c0_i32 = arith.constant 0 : i32
    %c0_i32_0 = arith.constant 0 : i32
    %c0_i32_1 = arith.constant 0 : i32
    return %c0_i32, %c0_i32_0 : i32, i32
  }
  func.func @transform_10(%arg0: i32) -> (i32, i32) {
    %c0_i32 = arith.constant 0 : i32
    %c0_i32_0 = arith.constant 0 : i32
    return %c0_i32, %arg0 : i32, i32
  }
}

module attributes {stable_mosaic.version = 11 : i64} {
  func.func @fused_lut_kernel(%arg0: i32, %arg1: memref<8x512xf32, #tpu.memory_space<vmem>>, %arg2: memref<8x512xf32, #tpu.memory_space<vmem>>, %arg3: memref<128x8xf32, #tpu.memory_space<vmem>>, %arg4: memref<128x1xf32, #tpu.memory_space<vmem>>, %arg5: memref<128x128xf32, #tpu.memory_space<vmem>>, %arg6: memref<128x1xf32, #tpu.memory_space<vmem>>, %arg7: memref<128x128xf32, #tpu.memory_space<vmem>>, %arg8: memref<128x1xf32, #tpu.memory_space<vmem>>, %arg9: memref<16x128xf32, #tpu.memory_space<vmem>>, %arg10: memref<16x1xf32, #tpu.memory_space<vmem>>, %arg11: memref<8x512xf32, #tpu.memory_space<vmem>>) attributes {dimension_semantics = [#tpu.dimension_semantics<parallel>], iteration_bounds = array<i64: 4>, scalar_prefetch = 0 : i64, scratch_operands = 0 : i64, tpu.core_type = #tpu.core_type<tc>, window_params = [{transform_indices = @transform_0, window_bounds = array<i64: 8, 512>}, {transform_indices = @transform_1, window_bounds = array<i64: 8, 512>}, {pipeline_mode = #tpu.pipeline_mode<synchronous>, transform_indices = @transform_2, window_bounds = array<i64: 128, 8>}, {pipeline_mode = #tpu.pipeline_mode<synchronous>, transform_indices = @transform_3, window_bounds = array<i64: 128, 1>}, {pipeline_mode = #tpu.pipeline_mode<synchronous>, transform_indices = @transform_4, window_bounds = array<i64: 128, 128>}, {pipeline_mode = #tpu.pipeline_mode<synchronous>, transform_indices = @transform_5, window_bounds = array<i64: 128, 1>}, {pipeline_mode = #tpu.pipeline_mode<synchronous>, transform_indices = @transform_6, window_bounds = array<i64: 128, 128>}, {pipeline_mode = #tpu.pipeline_mode<synchronous>, transform_indices = @transform_7, window_bounds = array<i64: 128, 1>}, {pipeline_mode = #tpu.pipeline_mode<synchronous>, transform_indices = @transform_8, window_bounds = array<i64: 16, 128>}, {pipeline_mode = #tpu.pipeline_mode<synchronous>, transform_indices = @transform_9, window_bounds = array<i64: 16, 1>}, {transform_indices = @transform_10, window_bounds = array<i64: 8, 512>}]} {
    %c0 = arith.constant 0 : index
    %c0_0 = arith.constant 0 : index
    %0 = vector.load %arg1[%c0, %c0_0] : memref<8x512xf32, #tpu.memory_space<vmem>>, vector<8x512xf32>
    %cst = arith.constant 0.000000e+00 : f32
    %1 = vector.broadcast %cst : f32 to vector<8x512xf32>
    %2 = arith.subf %1, %0 : vector<8x512xf32>
    %cst_1 = arith.constant 8.000000e+00 : f32
    %3 = vector.broadcast %cst_1 : f32 to vector<8x512xf32>
    %4 = arith.subf %2, %3 : vector<8x512xf32>
    %5 = math.absf %4 : vector<8x512xf32>
    %cst_2 = arith.constant 8.000000e+00 : f32
    %6 = vector.broadcast %cst_2 : f32 to vector<8x512xf32>
    %7 = arith.subf %0, %6 : vector<8x512xf32>
    %8 = math.absf %7 : vector<8x512xf32>
    %9 = arith.subf %5, %8 : vector<8x512xf32>
    %cst_3 = arith.constant 5.000000e-01 : f32
    %10 = vector.broadcast %cst_3 : f32 to vector<8x512xf32>
    %11 = arith.mulf %9, %10 : vector<8x512xf32>
    %cst_4 = arith.constant 7.900000e+00 : f32
    %12 = vector.broadcast %cst_4 : f32 to vector<8x512xf32>
    %13 = arith.cmpf ogt, %11, %12 : vector<8x512xf32>
    %cst_5 = arith.constant 7.900000e+00 : f32
    %14 = vector.broadcast %cst_5 : f32 to vector<8x512xf32>
    %15 = arith.select %13, %14, %11 : vector<8x512xi1>, vector<8x512xf32>
    %cst_6 = arith.constant 1.000000e+00 : f32
    %16 = vector.broadcast %cst_6 : f32 to vector<8x512xf32>
    %17 = arith.divf %15, %16 : vector<8x512xf32>
    %18 = math.floor %17 : vector<8x512xf32>
    %cst_7 = arith.constant 1.000000e+00 : f32
    %19 = vector.broadcast %cst_7 : f32 to vector<8x512xf32>
    %20 = arith.mulf %18, %19 : vector<8x512xf32>
    %c0_8 = arith.constant 0 : index
    %c0_9 = arith.constant 0 : index
    %21 = vector.load %arg3[%c0_8, %c0_9] : memref<128x8xf32, #tpu.memory_space<vmem>>, vector<128x8xf32>
    %cst_10 = arith.constant dense<0.000000e+00> : vector<128x512xf32>
    %22 = tpu.matmul %21, %20, %cst_10 {dimension_numbers = #tpu.dot_dimension_numbers<[1], [0], [0], [1], [0, 0, 1, 1], [], []>} : vector<128x8xf32>, vector<8x512xf32>, vector<128x512xf32> -> vector<128x512xf32>
    %c0_11 = arith.constant 0 : index
    %c0_12 = arith.constant 0 : index
    %23 = vector.load %arg4[%c0_11, %c0_12] : memref<128x1xf32, #tpu.memory_space<vmem>>, vector<128x1xf32>
    %24 = vector.broadcast %23 : vector<128x1xf32> to vector<128x512xf32>
    %25 = arith.addf %22, %24 : vector<128x512xf32>
    %cst_13 = arith.constant 5.000000e-01 : f32
    %26 = vector.broadcast %cst_13 : f32 to vector<128x512xf32>
    %27 = arith.mulf %26, %25 : vector<128x512xf32>
    %cst_14 = arith.constant 0.707106769 : f32
    %28 = vector.broadcast %cst_14 : f32 to vector<128x512xf32>
    %29 = arith.mulf %25, %28 : vector<128x512xf32>
    %30 = math.erf %29 : vector<128x512xf32>
    %cst_15 = arith.constant 1.000000e+00 : f32
    %31 = vector.broadcast %cst_15 : f32 to vector<128x512xf32>
    %32 = arith.addf %31, %30 : vector<128x512xf32>
    %33 = arith.mulf %27, %32 : vector<128x512xf32>
    %c0_16 = arith.constant 0 : index
    %c0_17 = arith.constant 0 : index
    %34 = vector.load %arg5[%c0_16, %c0_17] : memref<128x128xf32, #tpu.memory_space<vmem>>, vector<128x128xf32>
    %cst_18 = arith.constant dense<0.000000e+00> : vector<128x512xf32>
    %35 = tpu.matmul %34, %33, %cst_18 {dimension_numbers = #tpu.dot_dimension_numbers<[1], [0], [0], [1], [0, 0, 1, 1], [], []>} : vector<128x128xf32>, vector<128x512xf32>, vector<128x512xf32> -> vector<128x512xf32>
    %c0_19 = arith.constant 0 : index
    %c0_20 = arith.constant 0 : index
    %36 = vector.load %arg6[%c0_19, %c0_20] : memref<128x1xf32, #tpu.memory_space<vmem>>, vector<128x1xf32>
    %37 = vector.broadcast %36 : vector<128x1xf32> to vector<128x512xf32>
    %38 = arith.addf %35, %37 : vector<128x512xf32>
    %cst_21 = arith.constant 5.000000e-01 : f32
    %39 = vector.broadcast %cst_21 : f32 to vector<128x512xf32>
    %40 = arith.mulf %39, %38 : vector<128x512xf32>
    %cst_22 = arith.constant 0.707106769 : f32
    %41 = vector.broadcast %cst_22 : f32 to vector<128x512xf32>
    %42 = arith.mulf %38, %41 : vector<128x512xf32>
    %43 = math.erf %42 : vector<128x512xf32>
    %cst_23 = arith.constant 1.000000e+00 : f32
    %44 = vector.broadcast %cst_23 : f32 to vector<128x512xf32>
    %45 = arith.addf %44, %43 : vector<128x512xf32>
    %46 = arith.mulf %40, %45 : vector<128x512xf32>
    %c0_24 = arith.constant 0 : index
    %c0_25 = arith.constant 0 : index
    %47 = vector.load %arg7[%c0_24, %c0_25] : memref<128x128xf32, #tpu.memory_space<vmem>>, vector<128x128xf32>
    %cst_26 = arith.constant dense<0.000000e+00> : vector<128x512xf32>
    %48 = tpu.matmul %47, %46, %cst_26 {dimension_numbers = #tpu.dot_dimension_numbers<[1], [0], [0], [1], [0, 0, 1, 1], [], []>} : vector<128x128xf32>, vector<128x512xf32>, vector<128x512xf32> -> vector<128x512xf32>
    %c0_27 = arith.constant 0 : index
    %c0_28 = arith.constant 0 : index
    %49 = vector.load %arg8[%c0_27, %c0_28] : memref<128x1xf32, #tpu.memory_space<vmem>>, vector<128x1xf32>
    %50 = vector.broadcast %49 : vector<128x1xf32> to vector<128x512xf32>
    %51 = arith.addf %48, %50 : vector<128x512xf32>
    %cst_29 = arith.constant 5.000000e-01 : f32
    %52 = vector.broadcast %cst_29 : f32 to vector<128x512xf32>
    %53 = arith.mulf %52, %51 : vector<128x512xf32>
    %cst_30 = arith.constant 0.707106769 : f32
    %54 = vector.broadcast %cst_30 : f32 to vector<128x512xf32>
    %55 = arith.mulf %51, %54 : vector<128x512xf32>
    %56 = math.erf %55 : vector<128x512xf32>
    %cst_31 = arith.constant 1.000000e+00 : f32
    %57 = vector.broadcast %cst_31 : f32 to vector<128x512xf32>
    %58 = arith.addf %57, %56 : vector<128x512xf32>
    %59 = arith.mulf %53, %58 : vector<128x512xf32>
    %c0_32 = arith.constant 0 : index
    %c0_33 = arith.constant 0 : index
    %60 = vector.load %arg9[%c0_32, %c0_33] : memref<16x128xf32, #tpu.memory_space<vmem>>, vector<16x128xf32>
    %cst_34 = arith.constant dense<0.000000e+00> : vector<16x512xf32>
    %61 = tpu.matmul %60, %59, %cst_34 {dimension_numbers = #tpu.dot_dimension_numbers<[1], [0], [0], [1], [0, 0, 1, 1], [], []>} : vector<16x128xf32>, vector<128x512xf32>, vector<16x512xf32> -> vector<16x512xf32>
    %c0_35 = arith.constant 0 : index
    %c0_36 = arith.constant 0 : index
    %62 = vector.load %arg10[%c0_35, %c0_36] : memref<16x1xf32, #tpu.memory_space<vmem>>, vector<16x1xf32>
    %63 = vector.broadcast %62 : vector<16x1xf32> to vector<16x512xf32>
    %64 = arith.addf %61, %63 : vector<16x512xf32>
    %65 = vector.extract_strided_slice %64 {offsets = [0, 0], sizes = [8, 512], strides = [1, 1]} : vector<16x512xf32> to vector<8x512xf32>
    %66 = vector.extract_strided_slice %64 {offsets = [8, 0], sizes = [8, 512], strides = [1, 1]} : vector<16x512xf32> to vector<8x512xf32>
    %67 = arith.addf %65, %66 : vector<8x512xf32>
    %cst_37 = arith.constant 5.000000e-01 : f32
    %68 = vector.broadcast %cst_37 : f32 to vector<8x512xf32>
    %69 = arith.mulf %67, %68 : vector<8x512xf32>
    %c0_38 = arith.constant 0 : index
    %c0_39 = arith.constant 0 : index
    %70 = vector.load %arg2[%c0_38, %c0_39] : memref<8x512xf32, #tpu.memory_space<vmem>>, vector<8x512xf32>
    %71 = arith.addf %69, %70 : vector<8x512xf32>
    %c0_40 = arith.constant 0 : index
    %c0_41 = arith.constant 0 : index
    %72 = vector.load %arg11[%c0_40, %c0_41] : memref<8x512xf32, #tpu.memory_space<vmem>>, vector<8x512xf32>
    tpu.vector_store %arg11[%c0_40, %c0_41], %71 {strides = array<i32>} : memref<8x512xf32, #tpu.memory_space<vmem>>, vector<8x512xf32>,
    return
  }
  func.func @transform_0(%arg0: i32) -> (i32, i32) {
    %c0_i32 = arith.constant 0 : i32
    %c0_i32_0 = arith.constant 0 : i32
    return %c0_i32, %arg0 : i32, i32
  }
  func.func @transform_1(%arg0: i32) -> (i32, i32) {
    %c0_i32 = arith.constant 0 : i32
    %c0_i32_0 = arith.constant 0 : i32
    return %c0_i32, %arg0 : i32, i32
  }
  func.func @transform_2(%arg0: i32) -> (i32, i32) {
    %c0_i32 = arith.constant 0 : i32
    %c0_i32_0 = arith.constant 0 : i32
    %c0_i32_1 = arith.constant 0 : i32
    return %c0_i32, %c0_i32_0 : i32, i32
  }
  func.func @transform_3(%arg0: i32) -> (i32, i32) {
    %c0_i32 = arith.constant 0 : i32
    %c0_i32_0 = arith.constant 0 : i32
    %c0_i32_1 = arith.constant 0 : i32
    return %c0_i32, %c0_i32_0 : i32, i32
  }
  func.func @transform_4(%arg0: i32) -> (i32, i32) {
    %c0_i32 = arith.constant 0 : i32
    %c0_i32_0 = arith.constant 0 : i32
    %c0_i32_1 = arith.constant 0 : i32
    return %c0_i32, %c0_i32_0 : i32, i32
  }
  func.func @transform_5(%arg0: i32) -> (i32, i32) {
    %c0_i32 = arith.constant 0 : i32
    %c0_i32_0 = arith.constant 0 : i32
    %c0_i32_1 = arith.constant 0 : i32
    return %c0_i32, %c0_i32_0 : i32, i32
  }
  func.func @transform_6(%arg0: i32) -> (i32, i32) {
    %c0_i32 = arith.constant 0 : i32
    %c0_i32_0 = arith.constant 0 : i32
    %c0_i32_1 = arith.constant 0 : i32
    return %c0_i32, %c0_i32_0 : i32, i32
  }
  func.func @transform_7(%arg0: i32) -> (i32, i32) {
    %c0_i32 = arith.constant 0 : i32
    %c0_i32_0 = arith.constant 0 : i32
    %c0_i32_1 = arith.constant 0 : i32
    return %c0_i32, %c0_i32_0 : i32, i32
  }
  func.func @transform_8(%arg0: i32) -> (i32, i32) {
    %c0_i32 = arith.constant 0 : i32
    %c0_i32_0 = arith.constant 0 : i32
    %c0_i32_1 = arith.constant 0 : i32
    return %c0_i32, %c0_i32_0 : i32, i32
  }
  func.func @transform_9(%arg0: i32) -> (i32, i32) {
    %c0_i32 = arith.constant 0 : i32
    %c0_i32_0 = arith.constant 0 : i32
    %c0_i32_1 = arith.constant 0 : i32
    return %c0_i32, %c0_i32_0 : i32, i32
  }
  func.func @transform_10(%arg0: i32) -> (i32, i32) {
    %c0_i32 = arith.constant 0 : i32
    %c0_i32_0 = arith.constant 0 : i32
    return %c0_i32, %arg0 : i32, i32
  }
}

</mosaic_0001>

<bundles_post_ra>
// kernel: srnet_forward.3
= control target key start
LH: loop header
LB: loop body
LE: loop exit
PB: predicated region body
PF: predicated region fallthrough
CT: control target
= control target key end

     0   :  { %13 = vsyncpa [#allocation3], 0  ;;  %s2548_s0 = inlined_call_operand.vmem [shape: f32[4,2048], index: 0, kind: input, shape index: {}]   ;;  %s2549_s1 = inlined_call_operand.vmem [shape: f32[1,2048], index: 1, kind: input, shape index: {}]   ;;  %s2550_s2 = inlined_call_operand.vmem [shape: f32[64,4], index: 2, kind: input, shape index: {}]   ;;  %s2551_s3 = inlined_call_operand.vmem [shape: f32[64,1], index: 3, kind: input, shape index: {}]   ;;  %s2552_s4 = inlined_call_operand.hbm [shape: f32[64,64], index: 4, kind: input, shape index: {}]   ;;  %s2553_s5 = inlined_call_operand.vmem [shape: f32[64,1], index: 5, kind: input, shape index: {}]   ;;  %s2554_s6 = inlined_call_operand.hbm [shape: f32[8,64], index: 6, kind: input, shape index: {}]   ;;  %s2555_s7 = inlined_call_operand.vmem [shape: f32[8,1], index: 7, kind: input, shape index: {}]   ;;  %s2556_s8 = inlined_call_operand.vmem [shape: f32[8,2048], index: 8, kind: output, shape index: {}]  }
   0x1   :  { %14 = vsyncpa [#allocation5], 0  ;;  %s1980_s27 = smov 0  }
   0x2 LB: > { %s1574_s28 = sadd.s32 4294967295, %s1927_s27   ;;  %p1576_p0 = scmp.ge.s32.totalorder %s1927_s27, 1  ;;  %s1927_s27 = sphi %s1980_s27, %s20_s27  }
   0x3   : > { %p229_p1 = scmp.lt.s32.totalorder %s1927_s27, 5  ;;  %s1929_s29 = smov [#allocation2]  }
   0x4   : > { %s247_s30 = sshll.u32 %s1929_s29, 4  ;;  %p1994_p3 = scmp.eq.s32.totalorder %s1574_s28, 0  ;;  %s248_s30 = int_to_ptr.vmem [resolvable:$true] %s247_s30 }
   0x5   : > { %p1988_p2 = pnand %p1576_p0, %p229_p1  ;;  %s1930_s11 = smov [#allocation4]  }
   0x6   : > { %s2561_s10 = scalar_select %p1994_p3, 1, 0 }
   0x7   : > { %s2560_s9 = scalar_select %p1988_p2, 1, 0 }
   0x8   : > { %p1700_p4 = pneg %p1988_p2  ;;  %s264_s12 = sshll.u32 %s1930_s11, 4  ;;  %s2006_s12 = int_to_ptr.vmem [resolvable:$true] %s264_s12 }
   0x9   : > { %s1857_s16 = scalar_lea.hbm %s2552_s4, 1024 }
   0xa   : > { %p2002_p5 = pnand %p1994_p3, %p1700_p4  ;;  %p1858_p6 = scmp.ne.s32.totalorder %s2552_s4, %s1857_s16 }
   0xb   : > { %p1864_p10 = scmp.lt.u32.totalorder %s1857_s16, %s2552_s4 }
   0xc   : > { %p1859_p7 = pneg %p2002_p5 }
   0xe   : > { %p1860_p8 = pnand %p1859_p7, %p1858_p6 }
  0x10   : > { %p1861_p9 = pneg %p1860_p8 }
  0x12   : > { %p1866_p11 = pnand %p1864_p10, %p1861_p9 }
  0x14   : > { %1869 = shalt.err (!%p1866_p11)
}
  0x15   : > { %s1870_s21 = scalar_lea.vmem %s248_s30, 1024  ;;  %p1878_p1 = scmp.lt.s32.totalorder %s248_s30, %s248_s30 }
  0x16   : > { %p1871_p12 = scmp.ne.s32.totalorder %s248_s30, %s1870_s21  ;;  %p1879_p4 = scmp.lt.s32.totalorder %s1870_s21, %s1870_s21 }
  0x18   : > { %p1873_p13 = pnand %p1871_p12, %p1859_p7  ;;  %p1880_p3 = por %p1879_p4, %p1878_p1 }
  0x1a   : > { %p1874_p0 = pneg %p1873_p13 }
  0x1c   : > { %p1881_p2 = pnand %p1880_p3, %p1874_p0 }
  0x1e   : > { %1884 = shalt.err (!%p1881_p2)
}
  0x1f   : > { %s1931_s22 = smov 128   ;;  %s1932_s23 = smov 8  }
  0x20   : > { %1703 = dma.hbm_to_vmem [thread:$0]  (!%p2002_p5), %s2552_s4, 1024, %s248_s30, [#allocation3], %s1931_s22, %s1931_s22, %s1932_s23  }
  0x21   : > { %s1885_s11 = scalar_lea.hbm %s2554_s6, 128 }
  0x22   : > { %p1886_p6 = scmp.ne.s32.totalorder %s2554_s6, %s1885_s11  ;;  %p1892_p8 = scmp.lt.u32.totalorder %s1885_s11, %s2554_s6 }
  0x24   : > { %p1888_p2 = pnand %p1886_p6, %p1859_p7 }
  0x26   : > { %p1889_p3 = pneg %p1888_p2 }
  0x28   : > { %p1894_p9 = pnand %p1892_p8, %p1889_p3 }
  0x2a   : > { %1897 = shalt.err (!%p1894_p9)
}
  0x2b   : > { %s1898_s30 = scalar_lea.vmem %s2006_s12, 128  ;;  %p1906_p13 = scmp.lt.s32.totalorder %s2006_s12, %s2006_s12 }
  0x2c   : > { %p1899_p10 = scmp.ne.s32.totalorder %s2006_s12, %s1898_s30  ;;  %p1907_p0 = scmp.lt.s32.totalorder %s1898_s30, %s1898_s30 }
  0x2e   : > { %p1901_p11 = pnand %p1899_p10, %p1859_p7  ;;  %p1908_p1 = por %p1907_p0, %p1906_p13 }
  0x30   : > { %p1902_p12 = pneg %p1901_p11 }
  0x32   : > { %p1909_p4 = pnand %p1908_p1, %p1902_p12 }
  0x34   : > { %1912 = shalt.err (!%p1909_p4)
}
  0x35   : > { %1706 = dma.hbm_to_vmem [thread:$0]  (!%p2002_p5), %s2554_s6, 128, %s2006_s12, [#allocation5]  }
  0x36   : > { %p2563_p6 = scmp.ne.s32.totalorder %s2560_s9, 0 }
  0x37   : > { %p2564_p2 = scmp.ne.s32.totalorder (!%p2563_p6), %s2561_s10, 0 }
  0x38   : > { %297 = sbr.rel (%p2563_p6) target bundleno = 851 (0x353), region = 52 }
  0x3f   : > { %1918 = dma.done.wait (%p2564_p2), [#allocation3], 1024  }
  0x40   : > { %1920 = vsyncadd (%p2564_p2), [#allocation3], 4294966272 }
  0x41   : > { %1922 = dma.done.wait (%p2564_p2), [#allocation5], 128  }
  0x42   : > { %1924 = vsyncadd (%p2564_p2), [#allocation5], 4294967168  ;;  %s1583_s13 = sshll.u32 %s1574_s28, 2  ;;  %v1933_v0 = vmov 0.0   ;;  %v1934_v1 = vmov 0   ;;  %vm443_vm0 = vcmask 1043456  }
  0x43   : > { %p340_p7 = scmp.lt.s32.totalorder %s1583_s13, 15  ;;  %516 = vmatprep.mubr.f32.mxu0 %v1933_v0  ;;  %629 = vmatprep.mubr.f32.mxu1 %v1933_v0  ;;  %v358_v6 = vld [vmem:[%s2550_s2] sm:$0xff]  ;;  %vm418_vm1 = vcmask 31744   ;;  %v368_v8 = vld [vmem:[%s2551_s3 + $0x10] sm:$0xff]  ;;  %v359_v9 = vld [vmem:[%s2550_s2 + $0x8] sm:$0xff]  ;;  %vm894_vm2 = vcmask 523264  }
  0x44   : > { %1725 = vset.pattern.permute.xlu0 %v1934_v1  ;;  %1726 = vset.pattern.permute.xlu1 %v1934_v1  ;;  %v366_v7 = vld [vmem:[%s2551_s3] sm:$0xff]  ;;  %v367_v10 = vld [vmem:[%s2551_s3 + $0x8] sm:$0xff]  ;;  %v369_v11 = vld [vmem:[%s2551_s3 + $0x18] sm:$0xff] }
  0x45   : > { %s2566_s13 = smov (!%p340_p7, %s1583_s13), 15  ;;  %376 = vperm.xlu0 %1725, %v366_v7   ;;  %386 = vperm.xlu1 %1726, %v368_v8   ;;  %v360_v12 = vld [vmem:[%s2550_s2 + $0x10] sm:$0xff]  ;;  %v370_v13 = vld [vmem:[%s2551_s3 + $0x20] sm:$0xff]  ;;  %v371_v14 = vld [vmem:[%s2551_s3 + $0x28] sm:$0xff] }
  0x46   : > { %s1584_s9 = sshll.u32 %s2566_s13, 2  ;;  %v361_v15 = vld [vmem:[%s2550_s2 + $0x18] sm:$0xff]  ;;  %v372_v16 = vld [vmem:[%s2551_s3 + $0x30] sm:$0xff]  ;;  %v362_v18 = vld [vmem:[%s2550_s2 + $0x20] sm:$0xff]  ;;  %s348_s17 = scalar_lea.vmem %s2549_s1, %s2566_s13 }
  0x47   : > { %s343_s10 = scalar_lea.vmem %s2548_s0, %s1584_s9  ;;  %v373_v17 = vld [vmem:[%s2551_s3 + $0x38] sm:$0xff]  ;;  %v846_v19 = vld [vmem:[%s2553_s5] sm:$0xff]  ;;  %v847_v20 = vld [vmem:[%s2553_s5 + $0x8] sm:$0xff]  ;;  %s1587_s30 = sshll.u32 %s2566_s13, 3 }
  0x48   : > { %v356_v2 = vld [vmem:[%s343_s10] sm:$0xff]  ;;  %v357_v3 = vld [vmem:[%s343_s10 + $0x8] sm:$0xff]  ;;  %v848_v22 = vld [vmem:[%s2553_s5 + $0x10] sm:$0xff]  ;;  %s354_s9 = scalar_lea.vmem %s2556_s8, %s1587_s30 }
  0x49   : > { %v416_v4 = vcombine.high %v356_v2, %v356_v2  ;;  %v417_v5 = vcombine.high %v357_v3, %v357_v3  ;;  %381 = vperm.xlu0 %1725, %v367_v10   ;;  %391 = vperm.xlu1 %1726, %v369_v11   ;;  %v363_v21 = vld [vmem:[%s2550_s2 + $0x28] sm:$0xff]  ;;  %v849_v23 = vld [vmem:[%s2553_s5 + $0x18] sm:$0xff]  ;;  %v364_v24 = vld [vmem:[%s2550_s2 + $0x30] sm:$0xff] }
  0x4a   : > { %v850_v25 = vld [vmem:[%s2553_s5 + $0x20] sm:$0xff]  ;;  %v851_v26 = vld [vmem:[%s2553_s5 + $0x28] sm:$0xff]  ;;  %v365_v27 = vld [vmem:[%s2550_s2 + $0x38] sm:$0xff] }
  0x4b   : > { %1588 = vmatprep.subr.msk.mxu0 %vm443_vm0, %v416_v4  ;;  %1598 = vmatprep.subr.msk.mxu1 %vm443_vm0, %v417_v5  ;;  %v852_v28 = vld [vmem:[%s2553_s5 + $0x30] sm:$0xff]  ;;  %v853_v29 = vld [vmem:[%s2553_s5 + $0x38] sm:$0xff]  ;;  %v1306_v30 = vld [vmem:[%s2555_s7] sm:$0xff] }
  0x4c   : > { %1589 = vmatpush1.msk.msra.mxu0 %vm443_vm0, %v356_v2  ;;  %1599 = vmatpush1.msk.msra.mxu1 %vm443_vm0, %v357_v3 }
  0x4d   : > { %1590 = vmatmul.mubr.msk.f32.vlgmr.msra.gmra.mrb[0].mxu0 %vm418_vm1, %v358_v6  ;;  %1600 = vmatmul.mubr.msk.f32.vlgmr.msra.gmra.mrb[0].mxu1 %vm418_vm1, %v358_v6 }
  0x4e   : > { %522 = vmatprep.mubr.f32.mxu0 %v1933_v0  ;;  %635 = vmatprep.mubr.f32.mxu1 %v1933_v0 }
  0x4f   : > { %396 = vperm.xlu0 %1725, %v370_v13   ;;  %401 = vperm.xlu1 %1726, %v371_v14  }
  0x51   : > { %1591 = vmatmul.mubr.msk.f32.gmra.mrb[2].mxu0 %vm418_vm1, %v359_v9  ;;  %1601 = vmatmul.mubr.msk.f32.gmra.mrb[2].mxu1 %vm418_vm1, %v359_v9 }
  0x52   : > { %528 = vmatprep.mubr.f32.mxu0 %v1933_v0  ;;  %641 = vmatprep.mubr.f32.mxu1 %v1933_v0 }
  0x53   : > { %406 = vperm.xlu0 %1725, %v372_v16   ;;  %411 = vperm.xlu1 %1726, %v373_v17  }
  0x55   : > { %1592 = vmatmul.mubr.msk.f32.gmra.mrb[4].mxu0 %vm418_vm1, %v360_v12  ;;  %1602 = vmatmul.mubr.msk.f32.gmra.mrb[4].mxu1 %vm418_vm1, %v360_v12 }
  0x56   : > { %534 = vmatprep.mubr.f32.mxu0 %v1933_v0  ;;  %647 = vmatprep.mubr.f32.mxu1 %v1933_v0 }
  0x57   : > { %856 = vperm.xlu0 %1725, %v846_v19   ;;  %861 = vperm.xlu1 %1726, %v847_v20  }
  0x59   : > { %1593 = vmatmul.mubr.msk.f32.gmra.mrb[6].mxu0 %vm418_vm1, %v361_v15  ;;  %1603 = vmatmul.mubr.msk.f32.gmra.mrb[6].mxu1 %vm418_vm1, %v361_v15 }
  0x5a   : > { %540 = vmatprep.mubr.f32.mxu0 %v1933_v0  ;;  %653 = vmatprep.mubr.f32.mxu1 %v1933_v0 }
  0x5b   : > { %866 = vperm.xlu0 %1725, %v848_v22   ;;  %871 = vperm.xlu1 %1726, %v849_v23  }
  0x5d   : > { %1594 = vmatmul.mubr.msk.f32.gmra.mrb[8].mxu0 %vm418_vm1, %v362_v18  ;;  %1604 = vmatmul.mubr.msk.f32.gmra.mrb[8].mxu1 %vm418_vm1, %v362_v18 }
  0x5e   : > { %546 = vmatprep.mubr.f32.mxu0 %v1933_v0  ;;  %659 = vmatprep.mubr.f32.mxu1 %v1933_v0 }
  0x5f   : > { %876 = vperm.xlu0 %1725, %v850_v25   ;;  %881 = vperm.xlu1 %1726, %v851_v26  }
  0x61   : > { %1595 = vmatmul.mubr.msk.f32.gmra.mrb[10].mxu0 %vm418_vm1, %v363_v21  ;;  %1605 = vmatmul.mubr.msk.f32.gmra.mrb[10].mxu1 %vm418_vm1, %v363_v21 }
  0x62   : > { %552 = vmatprep.mubr.f32.mxu0 %v1933_v0  ;;  %665 = vmatprep.mubr.f32.mxu1 %v1933_v0 }
  0x63   : > { %886 = vperm.xlu0 %1725, %v852_v28   ;;  %891 = vperm.xlu1 %1726, %v853_v29  }
  0x65   : > { %1596 = vmatmul.mubr.msk.f32.gmra.mrb[12].mxu0 %vm418_vm1, %v364_v24  ;;  %1606 = vmatmul.mubr.msk.f32.gmra.mrb[12].mxu1 %vm418_vm1, %v364_v24 }
  0x66   : > { %558 = vmatprep.mubr.f32.mxu0 %v1933_v0  ;;  %671 = vmatprep.mubr.f32.mxu1 %v1933_v0 }
  0x67   : > { %1309 = vperm.xlu0 %1725, %v1306_v30  }
  0x69   : > { %1597 = vmatmul.mubr.msk.f32.gmra.mrb[14].mxu0 %vm418_vm1, %v365_v27  ;;  %1607 = vmatmul.mubr.msk.f32.gmra.mrb[14].mxu1 %vm418_vm1, %v365_v27 }
  0x6a   : > { %983 = vmatprep.mubr.f32.mxu0 %v1933_v0  ;;  %1096 = vmatprep.mubr.f32.mxu1 %v1933_v0 }
  0xc4   : > { %v377_v31 = vpop.permute.xlu0 %376  ;;  %v387_v50 = vpop.permute.xlu1 %386 }
  0xc8   : > { %v382_v41 = vpop.permute.xlu0 %381  ;;  %v392_v4 = vpop.permute.xlu1 %391 }
 0x120   : > { %v518_v32 = vpop.f32.mrb[0].mxu0  ;;  %v631_v33 = vpop.f32.mrb[0].mxu1 }
 0x121   : > { %v519_v34 = vadd.f32 %v518_v32, %v377_v31  ;;  %v632_v35 = vadd.f32 %v631_v33, %v377_v31  ;;  %v520_v36 = vpop.f32.mrb[1].mxu0  ;;  %v633_v37 = vpop.f32.mrb[1].mxu1 }
 0x122   : > { %v521_v38 = vadd.f32 %v520_v36, %v377_v31  ;;  %v634_v42 = vadd.f32 %v633_v37, %v377_v31  ;;  %v397_v33 = vpop.permute.xlu0 %396 }
 0x123   : > { %v710_v39 = vmul.f32 0.70710677, %v519_v34  ;;  %v712_v40 = vmul.f32 0.70710677, %v632_v35  ;;  %v678_v5 = vmul.f32 0.5, %v519_v34  ;;  %v680_v10 = vmul.f32 0.5, %v632_v35 }
 0x124   : > { %v711_v43 = vmul.f32 0.70710677, %v521_v38  ;;  %v524_v44 = vpop.f32.mrb[2].mxu0  ;;  %v637_v45 = vpop.f32.mrb[2].mxu1  ;;  %v713_v51 = vmul.f32 0.70710677, %v634_v42 }
 0x125   : > { %1729 = verf.f32 %v710_v39  ;;  %v525_v46 = vadd.f32 %v524_v44, %v382_v41  ;;  %v638_v47 = vadd.f32 %v637_v45, %v382_v41  ;;  %v526_v48 = vpop.f32.mrb[3].mxu0  ;;  %v639_v49 = vpop.f32.mrb[3].mxu1  ;;  %v2182_v11 = vmul.f32 0.5, %v521_v38 }
 0x126   : > { %1731 = verf.f32 %v712_v40  ;;  %v527_v53 = vadd.f32 %v526_v48, %v382_v41  ;;  %v640_v57 = vadd.f32 %v639_v49, %v382_v41  ;;  %v2186_v14 = vmul.f32 0.5, %v634_v42 }
 0x127   : > { %v714_v52 = vmul.f32 0.70710677, %v525_v46  ;;  %1733 = verf.f32 %v711_v43  ;;  %v716_v56 = vmul.f32 0.70710677, %v638_v47  ;;  %v682_v15 = vmul.f32 0.5, %v525_v46 }
 0x128   : > { %v530_v54 = vpop.f32.mrb[4].mxu0  ;;  %v643_v55 = vpop.f32.mrb[4].mxu1  ;;  %v715_v62 = vmul.f32 0.70710677, %v527_v53  ;;  %v717_v6 = vmul.f32 0.70710677, %v640_v57 }
 0x129   : > { %1735 = verf.f32 %v714_v52  ;;  %v531_v58 = vadd.f32 %v530_v54, %v387_v50  ;;  %v644_v59 = vadd.f32 %v643_v55, %v387_v50  ;;  %v532_v60 = vpop.f32.mrb[5].mxu0  ;;  %v645_v61 = vpop.f32.mrb[5].mxu1  ;;  %v684_v29 = vmul.f32 0.5, %v638_v47 }
 0x12a   : > { %1737 = verf.f32 %v716_v56  ;;  %v533_v1 = vadd.f32 %v532_v60, %v387_v50  ;;  %v646_v8 = vadd.f32 %v645_v61, %v387_v50  ;;  %v2196_v30 = vmul.f32 0.5, %v527_v53 }
 0x12b   : > { %1739 = verf.f32 %v713_v51  ;;  %v718_v63 = vmul.f32 0.70710677, %v531_v58  ;;  %v720_v7 = vmul.f32 0.70710677, %v644_v59  ;;  %v2198_v31 = vmul.f32 0.5, %v640_v57 }
 0x12c   : > { %v536_v2 = vpop.f32.mrb[6].mxu0  ;;  %v649_v3 = vpop.f32.mrb[6].mxu1  ;;  %v719_v18 = vmul.f32 0.70710677, %v533_v1  ;;  %v721_v24 = vmul.f32 0.70710677, %v646_v8 }
 0x12d   : > { %v538_v9 = vpop.f32.mrb[7].mxu0  ;;  %1741 = verf.f32 %v718_v63  ;;  %v2184_v12 = vadd.f32 %v536_v2, %v392_v4  ;;  %v651_v13 = vpop.f32.mrb[7].mxu1  ;;  %v2188_v16 = vadd.f32 %v649_v3, %v392_v4  ;;  %v2200_v35 = vmul.f32 0.5, %v531_v58 }
 0x12e   : > { %1743 = verf.f32 %v720_v7  ;;  %v2191_v20 = vadd.f32 %v538_v9, %v392_v4  ;;  %v2194_v26 = vadd.f32 %v651_v13, %v392_v4  ;;  %v2202_v36 = vmul.f32 0.5, %v644_v59 }
 0x12f   : > { %v1730_v17 = vpop.eup %1729  ;;  %1745 = verf.f32 %v715_v62  ;;  %v722_v19 = vmul.f32 0.70710677, %v2184_v12  ;;  %v724_v25 = vmul.f32 0.70710677, %v2188_v16  ;;  %v2214_v51 = vmul.f32 0.5, %v533_v1 }
 0x130   : > { %v542_v21 = vpop.f32.mrb[8].mxu0  ;;  %v655_v22 = vpop.f32.mrb[8].mxu1  ;;  %1747 = verf.f32 %v717_v6  ;;  %v774_v34 = vadd.f32 1.0, %v1730_v17  ;;  %v723_v39 = vmul.f32 0.70710677, %v2191_v20  ;;  %v2216_v52 = vmul.f32 0.5, %v646_v8 }
 0x131   : > { %v1732_v23 = vpop.eup %1731  ;;  %v544_v27 = vpop.f32.mrb[9].mxu0  ;;  %1749 = verf.f32 %v722_v19  ;;  %v2205_v40 = vadd.f32 %v542_v21, %v397_v33  ;;  %v725_v45 = vmul.f32 0.70710677, %v2194_v26  ;;  %v2208_v46 = vadd.f32 %v655_v22, %v397_v33 }
 0x132   : > { %v657_v28 = vpop.f32.mrb[9].mxu1  ;;  %v1734_v32 = vpop.eup %1733  ;;  %1751 = verf.f32 %v724_v25  ;;  %v776_v38 = vadd.f32 1.0, %v1732_v23  ;;  %v2219_v54 = vmul.f32 %v774_v34, %v678_v5  ;;  %v2228_v61 = vadd.f32 %v544_v27, %v397_v33 }
 0x133   : > { %v1736_v37 = vpop.eup %1735  ;;  %1753 = verf.f32 %v719_v18  ;;  %v726_v53 = vmul.f32 0.70710677, %v2205_v40  ;;  %v775_v55 = vadd.f32 1.0, %v1734_v32  ;;  %v728_v57 = vmul.f32 0.70710677, %v2208_v46 }
 0x134   : > { %v548_v41 = vpop.f32.mrb[10].mxu0  ;;  %v661_v42 = vpop.f32.mrb[10].mxu1  ;;  %v778_v44 = vadd.f32 1.0, %v1736_v37  ;;  %1755 = verf.f32 %v721_v24  ;;  %v2224_v59 = vmul.f32 %v776_v38, %v680_v10  ;;  %v690_v4 = vmul.f32 0.5, %v2184_v12 }
 0x135   : > { %v1738_v43 = vpop.eup %1737  ;;  %v2210_v47 = vpop.f32.mrb[11].mxu0  ;;  %1757 = verf.f32 %v723_v39  ;;  %v692_v10 = vmul.f32 0.5, %v2188_v16  ;;  %v2245_v17 = vmul.f32 0.5, %v2191_v20  ;;  %v727_v12 = vmul.f32 0.70710677, %v2228_v61 }
 0x136   : > { %v2212_v48 = vpop.f32.mrb[11].mxu1  ;;  %v1740_v49 = vpop.eup %1739  ;;  %v780_v50 = vadd.f32 1.0, %v1738_v43  ;;  %v2221_v56 = vmul.f32 %v778_v44, %v682_v15  ;;  %1759 = verf.f32 %v725_v45  ;;  %v2248_v18 = vadd.f32 %v657_v28, %v397_v33 }
 0x137   : > { %v1742_v58 = vpop.eup %1741  ;;  %v777_v2 = vadd.f32 1.0, %v1740_v49  ;;  %1761 = verf.f32 %v726_v53  ;;  %v402_v15 = vpop.permute.xlu1 %401  ;;  %v2251_v21 = vmul.f32 %v775_v55, %v2182_v11  ;;  %v2261_v28 = vmul.f32 0.5, %v2194_v26 }
 0x138   : > { %v2226_v60 = vmul.f32 %v780_v50, %v684_v29  ;;  %v2230_v62 = vpop.f32.mrb[12].mxu0  ;;  %v2232_v63 = vpop.f32.mrb[12].mxu1  ;;  %v1630_v3 = vpack.c.bf16 %v2221_v56, %v2219_v54  ;;  %v782_v9 = vadd.f32 1.0, %v1742_v58  ;;  %1763 = verf.f32 %v728_v57 }
 0x139   : > { %v1744_v1 = vpop.eup %1743  ;;  %v2237_v5 = vpop.f32.mrb[13].mxu0  ;;  %v549_v23 = vadd.f32 %v548_v41, %v402_v15  ;;  %v662_v24 = vadd.f32 %v661_v42, %v402_v15  ;;  %v2258_v20 = vmul.f32 %v777_v2, %v2186_v14  ;;  %v729_v41 = vmul.f32 0.70710677, %v2248_v18 }
 0x13a   : > { %v2239_v6 = vpop.f32.mrb[13].mxu1  ;;  %v1746_v7 = vpop.eup %1745  ;;  %v1646_v8 = vpack.c.bf16 %v2226_v60, %v2224_v59  ;;  %v784_v22 = vadd.f32 1.0, %v1744_v1  ;;  %v2268_v38 = vmul.f32 %v782_v9, %v2200_v35  ;;  %1765 = verf.f32 %v727_v12 }
 0x13b   : > { %v1748_v13 = vpop.eup %1747  ;;  %v779_v29 = vadd.f32 1.0, %v1746_v7  ;;  %v730_v43 = vmul.f32 0.70710677, %v549_v23  ;;  %v732_v44 = vmul.f32 0.70710677, %v662_v24  ;;  %1767 = verf.f32 %v729_v41  ;;  %v407_v2 = vpop.permute.xlu0 %406 }
 0x13c   : > { %v1750_v19 = vpop.eup %1749  ;;  %v2253_v25 = vpop.f32.mrb[14].mxu0  ;;  %v781_v37 = vadd.f32 1.0, %v1748_v13  ;;  %v2274_v26 = vmul.f32 %v784_v22, %v2202_v36  ;;  %v2279_v49 = vadd.f32 %v2210_v47, %v402_v15  ;;  %v2284_v53 = vadd.f32 %v2212_v48, %v402_v15 }
 0x13d   : > { %v2255_v16 = vpop.f32.mrb[14].mxu1  ;;  %v1752_v27 = vpop.eup %1751  ;;  %v786_v32 = vadd.f32 1.0, %v1750_v19  ;;  %1769 = verf.f32 %v730_v43  ;;  %v694_v58 = vmul.f32 0.5, %v2205_v40  ;;  %v811_v47 = vmul.f32 %v779_v29, %v2196_v30 }
 0x13e   : > { %v2263_v33 = vpop.f32.mrb[15].mxu0  ;;  %v2265_v11 = vpop.f32.mrb[15].mxu1  ;;  %v788_v39 = vadd.f32 1.0, %v1752_v27  ;;  %1771 = verf.f32 %v732_v44  ;;  %v696_v7 = vmul.f32 0.5, %v2208_v46  ;;  %v731_v9 = vmul.f32 0.70710677, %v2279_v49 }
 0x13f   : > { %v1754_v34 = vpop.eup %1753  ;;  %v2271_v14 = vmul.f32 %v786_v32, %v690_v4  ;;  %v813_v4 = vmul.f32 %v781_v37, %v2198_v31  ;;  %v733_v13 = vmul.f32 0.70710677, %v2284_v53  ;;  %v2298_v15 = vadd.f32 %v2230_v62, %v407_v2 }
 0x140   : > { %v1756_v42 = vpop.eup %1755  ;;  %v2276_v45 = vmul.f32 %v788_v39, %v692_v10  ;;  %v783_v35 = vadd.f32 1.0, %v1754_v34  ;;  %v2294_v10 = vmul.f32 0.5, %v2228_v61  ;;  %v2301_v40 = vadd.f32 %v2232_v63, %v407_v2 }
 0x141   : > { %v1634_v50 = vpack.c.bf16 %v2271_v14, %v2268_v38  ;;  %v1758_v55 = vpop.eup %1757  ;;  %v785_v57 = vadd.f32 1.0, %v1756_v42  ;;  %1773 = verf.f32 %v731_v9  ;;  %v2305_v31 = vadd.f32 %v2237_v5, %v407_v2 }
 0x142   : > { %v1650_v36 = vpack.c.bf16 %v2276_v45, %v2274_v26  ;;  %v1760_v1 = vpop.eup %1759  ;;  %v815_v30 = vmul.f32 %v783_v35, %v2214_v51  ;;  %v2308_v46 = vadd.f32 %v2239_v6, %v407_v2  ;;  %v787_v19 = vadd.f32 1.0, %v1758_v55  ;;  %v412_v51 = vpop.permute.xlu1 %411 }
 0x143   : > { %v1762_v48 = vpop.eup %1761  ;;  %v817_v61 = vmul.f32 %v785_v57, %v2216_v52  ;;  %1775 = verf.f32 %v733_v13  ;;  %v734_v62 = vmul.f32 0.70710677, %v2298_v15  ;;  %v789_v22 = vadd.f32 1.0, %v1760_v1 }
 0x144   : > { %v1764_v12 = vpop.eup %1763  ;;  %v790_v27 = vadd.f32 1.0, %v1762_v48  ;;  %v736_v63 = vmul.f32 0.70710677, %v2301_v40  ;;  %v735_v29 = vmul.f32 0.70710677, %v2305_v31  ;;  %v698_v34 = vmul.f32 0.5, %v549_v23 }
 0x145   : > { %v792_v32 = vadd.f32 1.0, %v1764_v12  ;;  %v700_v5 = vmul.f32 0.5, %v662_v24  ;;  %v737_v37 = vmul.f32 0.70710677, %v2308_v46  ;;  %v1766_v6 = vpop.eup %1765  ;;  %1777 = verf.f32 %v734_v62 }
 0x146   : > { %v1628_v52 = vpack.c.bf16 %v811_v47, %v2251_v21  ;;  %v1644_v39 = vpack.c.bf16 %v813_v4, %v2258_v20  ;;  %v2318_v41 = vadd.f32 %v2253_v25, %v412_v51  ;;  %v1768_v42 = vpop.eup %1767  ;;  %v819_v43 = vmul.f32 %v787_v19, %v2245_v17 }
 0x147   : > { %1779 = verf.f32 %v736_v63  ;;  %v2322_v44 = vadd.f32 %v2255_v16, %v412_v51  ;;  %v2325_v23 = vadd.f32 %v2263_v33, %v412_v51  ;;  %v1770_v24 = vpop.eup %1769  ;;  %v821_v35 = vmul.f32 %v789_v22, %v2261_v28 }
 0x148   : > { %v822_v55 = vmul.f32 %v790_v27, %v694_v58  ;;  %1781 = verf.f32 %v735_v29  ;;  %1629 = vmatprep.subr.bf16.mxu0 %v1628_v52  ;;  %1645 = vmatprep.subr.bf16.mxu1 %v1644_v39  ;;  %v738_v21 = vmul.f32 0.70710677, %v2318_v41  ;;  %v1772_v25 = vpop.eup %1771  ;;  %v824_v20 = vmul.f32 %v792_v32, %v696_v7 }
 0x149   : > { %v794_v57 = vadd.f32 1.0, %v1770_v24  ;;  %1783 = verf.f32 %v737_v37  ;;  %v740_v17 = vmul.f32 0.70710677, %v2322_v44  ;;  %1631 = vmatpush1.bf16.msra.mxu0 %v1630_v3  ;;  %1647 = vmatpush1.bf16.msra.mxu1 %v1646_v8  ;;  %v791_v16 = vadd.f32 1.0, %v1766_v6 }
 0x14a   : > { %v796_v28 = vadd.f32 1.0, %v1772_v25  ;;  %1785 = verf.f32 %v738_v21  ;;  %v739_v33 = vmul.f32 0.70710677, %v2325_v23  ;;  %v676_v1 = vadd.f32 %v2265_v11, %v412_v51 }
 0x14b   : > { %v826_v58 = vmul.f32 %v794_v57, %v698_v34  ;;  %1787 = verf.f32 %v740_v17  ;;  %v1632_v2 = vpack.c.bf16 %v819_v43, %v815_v30  ;;  %v1774_v47 = vpop.eup %1773  ;;  %v793_v4 = vadd.f32 1.0, %v1768_v42 }
 0x14c   : > { %v828_v7 = vmul.f32 %v796_v28, %v700_v5  ;;  %1789 = verf.f32 %v739_v33  ;;  %v1648_v54 = vpack.c.bf16 %v821_v35, %v817_v61  ;;  %v699_v59 = vmul.f32 0.5, %v2279_v49  ;;  %v841_v28 = vld [vmem:[#allocation2 + $0x18] sm:$0xff]  ;;  %v842_v33 = vld [vmem:[#allocation2 + $0x20] sm:$0xff] }
 0x14d   : > { %v1776_v56 = vpop.eup %1775  ;;  %v1638_v3 = vpack.c.bf16 %v826_v58, %v822_v55  ;;  %v795_v60 = vadd.f32 1.0, %v1774_v47  ;;  %v741_v8 = vmul.f32 0.70710677, %v676_v1  ;;  %1633 = vmatprep.subr.bf16.mxu0 %v1632_v2  ;;  %v697_v9 = vmul.f32 0.5, %v2248_v18  ;;  %v843_v58 = vld [vmem:[#allocation2 + $0x28] sm:$0xff]  ;;  %v845_v2 = vld [vmem:[#allocation2 + $0x38] sm:$0xff]  ;;  %v857_v47 = vpop.permute.xlu0 %856 }
 0x14e   : > { %v1654_v48 = vpack.c.bf16 %v828_v7, %v824_v20  ;;  %v701_v13 = vmul.f32 0.5, %v2284_v53  ;;  %v797_v12 = vadd.f32 1.0, %v1776_v56  ;;  %1649 = vmatprep.subr.bf16.mxu1 %v1648_v54  ;;  %1635 = vmatpush1.bf16.msra.mxu0 %v1634_v50  ;;  %v823_v11 = vmul.f32 %v791_v16, %v2294_v10  ;;  %v839_v16 = vld [vmem:[#allocation2 + $0x8] sm:$0xff] }
 0x14f   : > { %v827_v30 = vmul.f32 %v795_v60, %v699_v59  ;;  %1791 = verf.f32 %v741_v8  ;;  %1651 = vmatpush1.bf16.msra.mxu1 %v1650_v36  ;;  %v1778_v49 = vpop.eup %1777  ;;  %v825_v61 = vmul.f32 %v793_v4, %v697_v9  ;;  %v702_v10 = vmul.f32 0.5, %v2298_v15 }
 0x150   : > { %v829_v18 = vmul.f32 %v797_v12, %v701_v13  ;;  %v798_v63 = vadd.f32 1.0, %v1778_v49  ;;  %v706_v26 = vmul.f32 0.5, %v2318_v41  ;;  %v704_v51 = vmul.f32 0.5, %v2301_v40 }
 0x151   : > { %v1780_v19 = vpop.eup %1779  ;;  %v1636_v62 = vpack.c.bf16 %v827_v30, %v823_v11  ;;  %v703_v32 = vmul.f32 0.5, %v2305_v31  ;;  %v708_v34 = vmul.f32 0.5, %v2322_v44  ;;  %v707_v52 = vmul.f32 0.5, %v2325_v23  ;;  %v838_v23 = vld [vmem:[#allocation2] sm:$0xff] }
 0x152   : > { %v1782_v53 = vpop.eup %1781  ;;  %v1652_v22 = vpack.c.bf16 %v829_v18, %v825_v61  ;;  %v800_v14 = vadd.f32 1.0, %v1780_v19  ;;  %v830_v37 = vmul.f32 %v798_v63, %v702_v10  ;;  %v705_v21 = vmul.f32 0.5, %v2308_v46  ;;  %v840_v46 = vld [vmem:[#allocation2 + $0x10] sm:$0xff]  ;;  %v867_v18 = vpop.permute.xlu0 %866 }
 0x153   : > { %v1784_v27 = vpop.eup %1783  ;;  %1637 = vmatprep.subr.bf16.mxu0 %v1636_v62  ;;  %v799_v29 = vadd.f32 1.0, %v1782_v53  ;;  %v709_v25 = vmul.f32 0.5, %v676_v1  ;;  %v844_v1 = vld [vmem:[#allocation2 + $0x30] sm:$0xff] }
 0x154   : > { %v1786_v38 = vpop.eup %1785  ;;  %1653 = vmatprep.subr.bf16.mxu1 %v1652_v22  ;;  %1639 = vmatpush1.bf16.msra.mxu0 %v1638_v3  ;;  %v832_v42 = vmul.f32 %v800_v14, %v704_v51  ;;  %v801_v15 = vadd.f32 1.0, %v1784_v27  ;;  %v862_v3 = vpop.permute.xlu1 %861 }
 0x155   : > { %v1788_v50 = vpop.eup %1787  ;;  %v802_v45 = vadd.f32 1.0, %v1786_v38  ;;  %1655 = vmatpush1.bf16.msra.mxu1 %v1654_v48  ;;  %v831_v41 = vmul.f32 %v799_v29, %v703_v32 }
 0x156   : > { %v1790_v36 = vpop.eup %1789  ;;  %v804_v5 = vadd.f32 1.0, %v1788_v50  ;;  %v833_v44 = vmul.f32 %v801_v15, %v705_v21 }
 0x157   : > { %v834_v6 = vmul.f32 %v802_v45, %v706_v26  ;;  %v803_v39 = vadd.f32 1.0, %v1790_v36 }
 0x158   : > { %v836_v43 = vmul.f32 %v804_v5, %v708_v34  ;;  %v872_v32 = vpop.permute.xlu1 %871 }
 0x159   : > { %v1792_v24 = vpop.eup %1791  ;;  %v1642_v35 = vpack.c.bf16 %v834_v6, %v830_v37  ;;  %v835_v55 = vmul.f32 %v803_v39, %v707_v52 }
 0x15a   : > { %v1658_v40 = vpack.c.bf16 %v836_v43, %v832_v42  ;;  %v805_v31 = vadd.f32 1.0, %v1792_v24 }
 0x15b   : > { %v1640_v20 = vpack.c.bf16 %v835_v55, %v831_v41 }
 0x15c   : > { %v837_v57 = vmul.f32 %v805_v31, %v709_v25 }
 0x15d   : > { %1641 = vmatprep.subr.bf16.mxu0 %v1640_v20 }
 0x15e   : > { %v1656_v17 = vpack.c.bf16 %v837_v57, %v833_v44  ;;  %1643 = vmatpush1.bf16.msra.mxu0 %v1642_v35 }
 0x160   : > { %1657 = vmatprep.subr.bf16.mxu1 %v1656_v17 }
 0x161   : > { %1659 = vmatpush1.bf16.msra.mxu1 %v1658_v40  ;;  %1608 = vmatmul.mubr.msk.f32.vlgmr.msra.gmra.mrb[16].mxu0 %vm894_vm2, %v838_v23 }
 0x162   : > { %989 = vmatprep.mubr.f32.mxu0 %v1933_v0 }
 0x164   : > { %1616 = vmatmul.mubr.msk.f32.vlgmr.msra.gmra.mrb[16].mxu1 %vm894_vm2, %v838_v23 }
 0x165   : > { %1102 = vmatprep.mubr.f32.mxu1 %v1933_v0  ;;  %1609 = vmatmul.mubr.msk.f32.gmra.mrb[18].mxu0 %vm894_vm2, %v839_v16 }
 0x166   : > { %995 = vmatprep.mubr.f32.mxu0 %v1933_v0 }
 0x168   : > { %1617 = vmatmul.mubr.msk.f32.gmra.mrb[18].mxu1 %vm894_vm2, %v839_v16 }
 0x169   : > { %1108 = vmatprep.mubr.f32.mxu1 %v1933_v0  ;;  %1610 = vmatmul.mubr.msk.f32.gmra.mrb[20].mxu0 %vm894_vm2, %v840_v46 }
 0x16a   : > { %1001 = vmatprep.mubr.f32.mxu0 %v1933_v0 }
 0x16c   : > { %1618 = vmatmul.mubr.msk.f32.gmra.mrb[20].mxu1 %vm894_vm2, %v840_v46 }
 0x16d   : > { %1114 = vmatprep.mubr.f32.mxu1 %v1933_v0  ;;  %1611 = vmatmul.mubr.msk.f32.gmra.mrb[22].mxu0 %vm894_vm2, %v841_v28 }
 0x16e   : > { %1007 = vmatprep.mubr.f32.mxu0 %v1933_v0 }
 0x170   : > { %1619 = vmatmul.mubr.msk.f32.gmra.mrb[22].mxu1 %vm894_vm2, %v841_v28 }
 0x171   : > { %1120 = vmatprep.mubr.f32.mxu1 %v1933_v0  ;;  %1612 = vmatmul.mubr.msk.f32.gmra.mrb[24].mxu0 %vm894_vm2, %v842_v33 }
 0x172   : > { %1013 = vmatprep.mubr.f32.mxu0 %v1933_v0 }
 0x174   : > { %1620 = vmatmul.mubr.msk.f32.gmra.mrb[24].mxu1 %vm894_vm2, %v842_v33 }
 0x175   : > { %1126 = vmatprep.mubr.f32.mxu1 %v1933_v0  ;;  %1613 = vmatmul.mubr.msk.f32.gmra.mrb[26].mxu0 %vm894_vm2, %v843_v58 }
 0x176   : > { %1019 = vmatprep.mubr.f32.mxu0 %v1933_v0 }
 0x178   : > { %1621 = vmatmul.mubr.msk.f32.gmra.mrb[26].mxu1 %vm894_vm2, %v843_v58 }
 0x179   : > { %1132 = vmatprep.mubr.f32.mxu1 %v1933_v0  ;;  %1614 = vmatmul.mubr.msk.f32.gmra.mrb[28].mxu0 %vm894_vm2, %v844_v1 }
 0x17a   : > { %1025 = vmatprep.mubr.f32.mxu0 %v1933_v0 }
 0x17c   : > { %1622 = vmatmul.mubr.msk.f32.gmra.mrb[28].mxu1 %vm894_vm2, %v844_v1  ;;  %v877_v1 = vpop.permute.xlu0 %876 }
 0x17d   : > { %1138 = vmatprep.mubr.f32.mxu1 %v1933_v0  ;;  %1615 = vmatmul.mubr.msk.f32.gmra.mrb[30].mxu0 %vm894_vm2, %v845_v2 }
 0x17e   : > { %1379 = vmatprep.mubr.f32.mxu0 %v1933_v0 }
 0x180   : > { %1623 = vmatmul.mubr.msk.f32.gmra.mrb[30].mxu1 %vm894_vm2, %v845_v2 }
 0x181   : > { %1450 = vmatprep.mubr.f32.mxu1 %v1933_v0 }
 0x234   : > { %v985_v4 = vpop.f32.mrb[16].mxu0 }
 0x235   : > { %v986_v7 = vadd.f32 %v985_v4, %v857_v47  ;;  %v987_v54 = vpop.f32.mrb[17].mxu0 }
 0x236   : > { %v988_v56 = vadd.f32 %v987_v54, %v857_v47 }
 0x237   : > { %v1177_v59 = vmul.f32 0.70710677, %v986_v7  ;;  %v1098_v60 = vpop.f32.mrb[16].mxu1  ;;  %v1145_v34 = vmul.f32 0.5, %v986_v7 }
 0x238   : > { %v1099_v8 = vadd.f32 %v1098_v60, %v857_v47  ;;  %v1178_v9 = vmul.f32 0.70710677, %v988_v56  ;;  %v1100_v48 = vpop.f32.mrb[17].mxu1  ;;  %v991_v13 = vpop.f32.mrb[18].mxu0  ;;  %v2387_v52 = vmul.f32 0.5, %v988_v56 }
 0x239   : > { %v1101_v12 = vadd.f32 %v1100_v48, %v857_v47  ;;  %v992_v11 = vadd.f32 %v991_v13, %v862_v3  ;;  %v993_v30 = vpop.f32.mrb[19].mxu0  ;;  %1793 = verf.f32 %v1177_v59 }
 0x23a   : > { %v1179_v49 = vmul.f32 0.70710677, %v1099_v8  ;;  %v994_v61 = vadd.f32 %v993_v30, %v862_v3  ;;  %1795 = verf.f32 %v1178_v9  ;;  %v2389_v24 = vmul.f32 0.5, %v1099_v8 }
 0x23b   : > { %v1180_v0 = vmul.f32 0.70710677, %v1101_v12  ;;  %v1181_v19 = vmul.f32 0.70710677, %v992_v11  ;;  %v1104_v62 = vpop.f32.mrb[18].mxu1  ;;  %v2391_v41 = vmul.f32 0.5, %v1101_v12 }
 0x23c   : > { %v1182_v53 = vmul.f32 0.70710677, %v994_v61  ;;  %v997_v22 = vpop.f32.mrb[20].mxu0  ;;  %1797 = verf.f32 %v1179_v49  ;;  %v1105_v27 = vadd.f32 %v1104_v62, %v862_v3  ;;  %v1106_v63 = vpop.f32.mrb[19].mxu1  ;;  %v1149_v44 = vmul.f32 0.5, %v992_v11 }
 0x23d   : > { %v998_v38 = vadd.f32 %v997_v22, %v867_v18  ;;  %v999_v14 = vpop.f32.mrb[21].mxu0  ;;  %1799 = verf.f32 %v1181_v19  ;;  %v1107_v50 = vadd.f32 %v1106_v63, %v862_v3  ;;  %v2395_v57 = vmul.f32 0.5, %v994_v61 }
 0x23e   : > { %v1000_v10 = vadd.f32 %v999_v14, %v867_v18  ;;  %1801 = verf.f32 %v1180_v0  ;;  %v1183_v29 = vmul.f32 0.70710677, %v1105_v27  ;;  %v1151_v46 = vmul.f32 0.5, %v1105_v27 }
 0x23f   : > { %v1110_v26 = vpop.f32.mrb[20].mxu1  ;;  %1803 = verf.f32 %v1182_v53  ;;  %v1185_v45 = vmul.f32 0.70710677, %v998_v38  ;;  %v1184_v5 = vmul.f32 0.70710677, %v1107_v50  ;;  %v2402_v47 = vmul.f32 0.5, %v1107_v50 }
 0x240   : > { %v1111_v36 = vadd.f32 %v1110_v26, %v867_v18  ;;  %v1112_v51 = vpop.f32.mrb[21].mxu1  ;;  %1805 = verf.f32 %v1183_v29  ;;  %v1003_v6 = vpop.f32.mrb[22].mxu0  ;;  %v1186_v42 = vmul.f32 0.70710677, %v1000_v10  ;;  %v2404_v4 = vmul.f32 0.5, %v998_v38 }
 0x241   : > { %v1113_v37 = vadd.f32 %v1112_v51, %v867_v18  ;;  %v1004_v15 = vadd.f32 %v1003_v6, %v872_v32  ;;  %v1005_v43 = vpop.f32.mrb[23].mxu0  ;;  %1807 = verf.f32 %v1185_v45  ;;  %v2408_v3 = vmul.f32 0.5, %v1000_v10 }
 0x242   : > { %v1187_v39 = vmul.f32 0.70710677, %v1111_v36  ;;  %v2393_v55 = vadd.f32 %v1005_v43, %v872_v32  ;;  %v2406_v56 = vmul.f32 0.5, %v1111_v36 }
 0x243   : > { %v1116_v35 = vpop.f32.mrb[22].mxu1  ;;  %v1794_v21 = vpop.eup %1793  ;;  %v1188_v40 = vmul.f32 0.70710677, %v1113_v37  ;;  %v1189_v25 = vmul.f32 0.70710677, %v1004_v15  ;;  %v2412_v61 = vmul.f32 0.5, %v1113_v37 }
 0x244   : > { %1809 = verf.f32 %v1187_v39  ;;  %v1118_v31 = vpop.f32.mrb[23].mxu1  ;;  %v1009_v20 = vpop.f32.mrb[24].mxu0  ;;  %v2397_v17 = vadd.f32 %v1116_v35, %v872_v32  ;;  %v1190_v28 = vmul.f32 0.70710677, %v2393_v55  ;;  %v1241_v2 = vadd.f32 1.0, %v1794_v21 }
 0x245   : > { %1811 = verf.f32 %v1184_v5  ;;  %v1011_v23 = vpop.f32.mrb[25].mxu0  ;;  %v1796_v16 = vpop.eup %1795  ;;  %v2400_v33 = vadd.f32 %v1118_v31, %v872_v32  ;;  %v1010_v12 = vadd.f32 %v1009_v20, %v877_v1  ;;  %v1157_v38 = vmul.f32 0.5, %v1004_v15 }
 0x246   : > { %1813 = verf.f32 %v1186_v42  ;;  %v1798_v58 = vpop.eup %1797  ;;  %v1191_v59 = vmul.f32 0.70710677, %v2397_v17  ;;  %v2416_v19 = vmul.f32 %v1241_v2, %v1145_v34  ;;  %v1242_v62 = vadd.f32 1.0, %v1796_v16 }
 0x247   : > { %1815 = verf.f32 %v1189_v25  ;;  %v1122_v7 = vpop.f32.mrb[24].mxu1  ;;  %v1800_v54 = vpop.eup %1799  ;;  %v1192_v13 = vmul.f32 0.70710677, %v2400_v33  ;;  %v1243_v49 = vadd.f32 1.0, %v1798_v58  ;;  %v1193_v22 = vmul.f32 0.70710677, %v1010_v12 }
 0x248   : > { %1817 = verf.f32 %v1188_v40  ;;  %v1124_v60 = vpop.f32.mrb[25].mxu1  ;;  %v1015_v8 = vpop.f32.mrb[26].mxu0  ;;  %v1245_v48 = vadd.f32 1.0, %v1800_v54  ;;  %v2414_v18 = vadd.f32 %v1122_v7, %v877_v1  ;;  %v2427_v36 = vadd.f32 %v1011_v23, %v877_v1 }
 0x249   : > { %v1802_v9 = vpop.eup %1801  ;;  %1819 = verf.f32 %v1190_v28  ;;  %v1017_v11 = vpop.f32.mrb[27].mxu0  ;;  %v2432_v34 = vmul.f32 %v1243_v49, %v2389_v24  ;;  %v1125_v6 = vadd.f32 %v1124_v60, %v877_v1  ;;  %v2437_v42 = vmul.f32 %v1242_v62, %v2387_v52 }
 0x24a   : > { %v1804_v30 = vpop.eup %1803  ;;  %1821 = verf.f32 %v1191_v59  ;;  %v2418_v53 = vmul.f32 %v1245_v48, %v1149_v44  ;;  %v1195_v14 = vmul.f32 0.70710677, %v2414_v18  ;;  %v1244_v26 = vadd.f32 1.0, %v1802_v9  ;;  %v882_v52 = vpop.permute.xlu1 %881 }
 0x24b   : > { %v1806_v0 = vpop.eup %1805  ;;  %v1128_v27 = vpop.f32.mrb[26].mxu1  ;;  %1823 = verf.f32 %v1192_v13  ;;  %v1246_v37 = vadd.f32 1.0, %v1804_v30  ;;  %v1158_v43 = vmul.f32 0.5, %v2393_v55  ;;  %v1159_v24 = vmul.f32 0.5, %v2397_v17 }
 0x24c   : > { %v1247_v63 = vadd.f32 1.0, %v1806_v0  ;;  %v2421_v50 = vpop.f32.mrb[27].mxu1  ;;  %v2423_v10 = vpop.f32.mrb[28].mxu0  ;;  %v1662_v45 = vpack.c.bf16 %v2418_v53, %v2416_v19  ;;  %1825 = verf.f32 %v1193_v22  ;;  %v1194_v31 = vmul.f32 0.70710677, %v2427_v36 }
 0x24d   : > { %v1808_v29 = vpop.eup %1807  ;;  %v2429_v51 = vpop.f32.mrb[29].mxu0  ;;  %1827 = verf.f32 %v1195_v14  ;;  %v2447_v16 = vmul.f32 %v1244_v26, %v2391_v41  ;;  %v2450_v55 = vmul.f32 0.5, %v2400_v33  ;;  %v1196_v28 = vmul.f32 0.70710677, %v1125_v6 }
 0x24e   : > { %v1810_v32 = vpop.eup %1809  ;;  %v2434_v5 = vmul.f32 %v1247_v63, %v1151_v46  ;;  %v1249_v15 = vadd.f32 1.0, %v1808_v29  ;;  %v2452_v46 = vmul.f32 0.5, %v1010_v12  ;;  %v1278_v17 = vmul.f32 %v1246_v37, %v2395_v57 }
 0x24f   : > { %v1812_v39 = vpop.eup %1811  ;;  %v1134_v35 = vpop.f32.mrb[28].mxu1  ;;  %v1251_v25 = vadd.f32 1.0, %v1810_v32  ;;  %v1016_v7 = vadd.f32 %v1015_v8, %v882_v52  ;;  %v1129_v54 = vadd.f32 %v1128_v27, %v882_v52  ;;  %v1018_v48 = vadd.f32 %v1017_v11, %v882_v52 }
 0x250   : > { %v1814_v21 = vpop.eup %1813  ;;  %v1678_v40 = vpack.c.bf16 %v2434_v5, %v2432_v34  ;;  %v1136_v20 = vpop.f32.mrb[29].mxu1  ;;  %v1248_v60 = vadd.f32 1.0, %v1812_v39  ;;  %v2458_v9 = vmul.f32 %v1249_v15, %v2404_v4  ;;  %1829 = verf.f32 %v1194_v31 }
 0x251   : > { %v2444_v44 = vpop.f32.mrb[30].mxu0  ;;  %v1816_v23 = vpop.eup %1815  ;;  %v1250_v41 = vadd.f32 1.0, %v1814_v21  ;;  %v2461_v12 = vmul.f32 %v1251_v25, %v2406_v56  ;;  %v1197_v49 = vmul.f32 0.70710677, %v1016_v7  ;;  %1831 = verf.f32 %v1196_v28 }
 0x252   : > { %v2454_v58 = vpop.f32.mrb[31].mxu0  ;;  %v1818_v1 = vpop.eup %1817  ;;  %v1253_v2 = vadd.f32 1.0, %v1816_v23  ;;  %v1199_v62 = vmul.f32 0.70710677, %v1129_v54  ;;  %v1198_v63 = vmul.f32 0.70710677, %v1018_v48  ;;  %v1280_v26 = vmul.f32 %v1248_v60, %v2402_v47 }
 0x253   : > { %v1820_v59 = vpop.eup %1819  ;;  %v1140_v33 = vpop.f32.mrb[30].mxu1  ;;  %v1252_v0 = vadd.f32 1.0, %v1818_v1  ;;  %1833 = verf.f32 %v1197_v49  ;;  %v1163_v32 = vmul.f32 0.5, %v2414_v18  ;;  %v1162_v21 = vmul.f32 0.5, %v2427_v36 }
 0x254   : > { %v1822_v13 = vpop.eup %1821  ;;  %v2463_v30 = vmul.f32 %v1253_v2, %v1157_v38  ;;  %v1142_v57 = vpop.f32.mrb[31].mxu1  ;;  %v1254_v11 = vadd.f32 1.0, %v1820_v59  ;;  %1835 = verf.f32 %v1199_v62  ;;  %v2470_v38 = vadd.f32 %v2421_v50, %v882_v52 }
 0x255   : > { %v1255_v8 = vadd.f32 1.0, %v1822_v13  ;;  %v1824_v22 = vpop.eup %1823  ;;  %v887_v27 = vpop.permute.xlu0 %886  ;;  %1837 = verf.f32 %v1198_v63  ;;  %v2482_v25 = vmul.f32 0.5, %v1125_v6  ;;  %v1660_v28 = vpack.c.bf16 %v1278_v17, %v2437_v42 }
 0x256   : > { %v1666_v4 = vpack.c.bf16 %v2463_v30, %v2458_v9  ;;  %v1826_v14 = vpop.eup %1825  ;;  %v2473_v29 = vadd.f32 %v2423_v10, %v887_v27  ;;  %v2477_v37 = vadd.f32 %v1134_v35, %v887_v27  ;;  %v1200_v50 = vmul.f32 0.70710677, %v2470_v38  ;;  %v892_v59 = vpop.permute.xlu1 %891 }
 0x257   : > { %v2467_v56 = vmul.f32 %v1255_v8, %v1159_v24  ;;  %v1828_v39 = vpop.eup %1827  ;;  %v1282_v10 = vmul.f32 %v1250_v41, %v2408_v3  ;;  %v2487_v24 = vmul.f32 %v1252_v0, %v2412_v61  ;;  %v1256_v47 = vadd.f32 1.0, %v1824_v22  ;;  %1661 = vmatprep.subr.bf16.mxu0 %v1660_v28 }
 0x258   : > { %v1257_v18 = vadd.f32 1.0, %v1826_v14  ;;  %v1286_v31 = vmul.f32 %v1254_v11, %v1158_v43  ;;  %1839 = verf.f32 %v1200_v50  ;;  %v1201_v35 = vmul.f32 0.70710677, %v2473_v29  ;;  %1663 = vmatpush1.bf16.msra.mxu0 %v1662_v45 }
 0x259   : > { %v1682_v15 = vpack.c.bf16 %v2467_v56, %v2461_v12  ;;  %v2491_v23 = vadd.f32 %v2429_v51, %v887_v27  ;;  %v1259_v52 = vadd.f32 1.0, %v1828_v39  ;;  %v1203_v36 = vmul.f32 0.70710677, %v2477_v37 }
 0x25a   : > { %v2494_v6 = vadd.f32 %v1136_v20, %v887_v27  ;;  %v1165_v3 = vmul.f32 0.5, %v1016_v7  ;;  %v1167_v1 = vmul.f32 0.5, %v1129_v54  ;;  %v1676_v2 = vpack.c.bf16 %v1280_v26, %v2447_v16  ;;  %v1830_v43 = vpop.eup %1829 }
 0x25b   : > { %v1202_v61 = vmul.f32 0.70710677, %v2491_v23  ;;  %v1288_v60 = vmul.f32 %v1256_v47, %v2450_v55  ;;  %v1289_v51 = vmul.f32 %v1257_v18, %v2452_v46  ;;  %v1166_v41 = vmul.f32 0.5, %v1018_v48  ;;  %v1832_v20 = vpop.eup %1831 }
 0x25c   : > { %v1204_v13 = vmul.f32 0.70710677, %v2494_v6  ;;  %1841 = verf.f32 %v1201_v35  ;;  %1677 = vmatprep.subr.bf16.mxu1 %v1676_v2  ;;  %v1028_v42 = vadd.f32 %v2444_v44, %v892_v59  ;;  %v2503_v17 = vadd.f32 %v1140_v33, %v892_v59 }
 0x25d   : > { %v2509_v16 = vadd.f32 %v2454_v58, %v892_v59  ;;  %v1834_v55 = vpop.eup %1833  ;;  %v1291_v46 = vmul.f32 %v1259_v52, %v1163_v32  ;;  %1843 = verf.f32 %v1203_v36  ;;  %1679 = vmatpush1.bf16.msra.mxu1 %v1678_v40  ;;  %v2514_v7 = vadd.f32 %v1142_v57, %v892_v59 }
 0x25e   : > { %v1664_v54 = vpack.c.bf16 %v1286_v31, %v1282_v10  ;;  %v1836_v44 = vpop.eup %1835  ;;  %v1258_v48 = vadd.f32 1.0, %v1830_v43  ;;  %v1261_v33 = vadd.f32 1.0, %v1834_v55  ;;  %1845 = verf.f32 %v1202_v61 }
 0x25f   : > { %v1205_v49 = vmul.f32 0.70710677, %v1028_v42  ;;  %v1838_v19 = vpop.eup %1837  ;;  %v1263_v53 = vadd.f32 1.0, %v1836_v44  ;;  %1847 = verf.f32 %v1204_v13  ;;  %v1207_v45 = vmul.f32 0.70710677, %v2503_v17 }
 0x260   : > { %v1206_v58 = vmul.f32 0.70710677, %v2509_v16  ;;  %1665 = vmatprep.subr.bf16.mxu0 %v1664_v54  ;;  %v1260_v0 = vadd.f32 1.0, %v1832_v20  ;;  %v1293_v8 = vmul.f32 %v1261_v33, %v1165_v3  ;;  %v1262_v34 = vadd.f32 1.0, %v1838_v19 }
 0x261   : > { %1849 = verf.f32 %v1205_v49  ;;  %1667 = vmatpush1.bf16.msra.mxu0 %v1666_v4  ;;  %v1295_v5 = vmul.f32 %v1263_v53, %v1167_v1  ;;  %v1208_v40 = vmul.f32 0.70710677, %v2514_v7  ;;  %v1680_v57 = vpack.c.bf16 %v1288_v60, %v2487_v24 }
 0x262   : > { %1851 = verf.f32 %v1207_v45  ;;  %v1840_v62 = vpop.eup %1839  ;;  %v1290_v22 = vmul.f32 %v1258_v48, %v1162_v21  ;;  %v1670_v27 = vpack.c.bf16 %v1293_v8, %v1289_v51  ;;  %v1294_v11 = vmul.f32 %v1262_v34, %v1166_v41  ;;  %v1457_v48 = vld [vmem:[%s348_s17] sm:$0xf]  ;;  %v1310_v45 = vpop.permute.xlu0 %1309 }
 0x263   : > { %1853 = verf.f32 %v1206_v58  ;;  %v1686_v63 = vpack.c.bf16 %v1295_v5, %v1291_v46  ;;  %v1168_v14 = vmul.f32 0.5, %v2470_v38  ;;  %v1264_v26 = vadd.f32 1.0, %v1840_v62  ;;  %1681 = vmatprep.subr.bf16.mxu1 %v1680_v57 }
 0x264   : > { %1855 = verf.f32 %v1208_v40  ;;  %1683 = vmatpush1.bf16.msra.mxu1 %v1682_v15  ;;  %v1668_v9 = vpack.c.bf16 %v1294_v11, %v1290_v22  ;;  %v1292_v30 = vmul.f32 %v1260_v0, %v2482_v25  ;;  %v1169_v47 = vmul.f32 0.5, %v2473_v29 }
 0x265   : > { %v1296_v4 = vmul.f32 %v1264_v26, %v1168_v14  ;;  %v1171_v18 = vmul.f32 0.5, %v2477_v37  ;;  %v1170_v15 = vmul.f32 0.5, %v2491_v23  ;;  %v1173_v31 = vmul.f32 0.5, %v1028_v42 }
 0x266   : > { %v1842_v32 = vpop.eup %1841  ;;  %1669 = vmatprep.subr.bf16.mxu0 %v1668_v9  ;;  %v1172_v36 = vmul.f32 0.5, %v2494_v6  ;;  %v1175_v3 = vmul.f32 0.5, %v2503_v17  ;;  %v1174_v37 = vmul.f32 0.5, %v2509_v16  ;;  %v1176_v23 = vmul.f32 0.5, %v2514_v7  ;;  %v1305_v16 = vld [vmem:[#allocation4] sm:$0xff] }
 0x267   : > { %v1844_v39 = vpop.eup %1843  ;;  %v1684_v21 = vpack.c.bf16 %v1296_v4, %v1292_v30  ;;  %1671 = vmatpush1.bf16.msra.mxu0 %v1670_v27  ;;  %v1265_v24 = vadd.f32 1.0, %v1842_v32  ;;  %v1459_v7 = vlaneseq }
 0x268   : > { %v1846_v50 = vpop.eup %1845  ;;  %v1267_v12 = vadd.f32 1.0, %v1844_v39 }
 0x269   : > { %v1848_v10 = vpop.eup %1847  ;;  %1685 = vmatprep.subr.bf16.mxu1 %v1684_v21  ;;  %v1266_v25 = vadd.f32 1.0, %v1846_v50  ;;  %v1297_v2 = vmul.f32 %v1265_v24, %v1169_v47  ;;  %v1460_v54 = vshrl.u32 %v1459_v7, 7 }
 0x26a   : > { %1687 = vmatpush1.bf16.msra.mxu1 %v1686_v63  ;;  %v1268_v28 = vadd.f32 1.0, %v1848_v10  ;;  %v1299_v59 = vmul.f32 %v1267_v12, %v1171_v18 }
 0x26b   : > { %v1850_v38 = vpop.eup %1849  ;;  %v1298_v41 = vmul.f32 %v1266_v25, %v1170_v15  ;;  %v1461_v44 = vsub.s32 0, %v1460_v54  ;;  %v1469_v33 = vsub.s32 2, %v1460_v54  ;;  %v1465_v49 = vsub.s32 1, %v1460_v54 }
 0x26c   : > { %v1852_v56 = vpop.eup %1851  ;;  %v1269_v35 = vadd.f32 1.0, %v1850_v38  ;;  %v1300_v6 = vmul.f32 %v1268_v28, %v1172_v36  ;;  %v1473_v19 = vsub.s32 3, %v1460_v54 }
 0x26d   : > { %v1854_v52 = vpop.eup %1853  ;;  %v1271_v1 = vadd.f32 1.0, %v1852_v56  ;;  %v1462_v53 = vrot.slane %v1457_v48, %v1461_v44  ;;  %v1470_v0 = vrot.slane %v1457_v48, %v1469_v33  ;;  %v1466_v8 = vrot.slane %v1457_v48, %v1465_v49 }
 0x26e   : > { %v1856_v61 = vpop.eup %1855  ;;  %v1301_v29 = vmul.f32 %v1269_v35, %v1173_v31  ;;  %v1270_v43 = vadd.f32 1.0, %v1854_v52  ;;  %v1474_v57 = vrot.slane %v1457_v48, %v1473_v19 }
 0x26f   : > { %v1303_v60 = vmul.f32 %v1271_v1, %v1175_v3  ;;  %v1272_v51 = vadd.f32 1.0, %v1856_v61 }
 0x270   : > { %v1674_v13 = vpack.c.bf16 %v1301_v29, %v1297_v2  ;;  %v1302_v20 = vmul.f32 %v1270_v43, %v1174_v37 }
 0x271   : > { %v1690_v42 = vpack.c.bf16 %v1303_v60, %v1299_v59  ;;  %v1304_v55 = vmul.f32 %v1272_v51, %v1176_v23 }
 0x272   : > { %v1672_v17 = vpack.c.bf16 %v1302_v20, %v1298_v41 }
 0x273   : > { %v1688_v46 = vpack.c.bf16 %v1304_v55, %v1300_v6 }
 0x274   : > { %1673 = vmatprep.subr.bf16.mxu0 %v1672_v17 }
 0x275   : > { %1689 = vmatprep.subr.bf16.mxu1 %v1688_v46  ;;  %1675 = vmatpush1.bf16.msra.mxu0 %v1674_v13 }
 0x276   : > { %1691 = vmatpush1.bf16.msra.mxu1 %v1690_v42 }
 0x278   : > { %1624 = vmatmul.mubr.msk.f32.vlgmr.msra.gmra.mrb[32].mxu0 %vm894_vm2, %v1305_v16 }
 0x279   : > { %1625 = vmatmul.mubr.msk.f32.vlgmr.msra.gmra.mrb[32].mxu1 %vm894_vm2, %v1305_v16 }
 0x34b   : > { %v1381_v58 = vpop.f32.mrb[32].mxu0 }
 0x34c   : > { %v1382_v34 = vadd.f32 %v1381_v58, %v1310_v45  ;;  %v1452_v5 = vpop.f32.mrb[32].mxu1  ;;  %v1383_v40 = vpop.f32.mrb[33].mxu0 }
 0x34d   : > { %v1453_v62 = vadd.f32 %v1452_v5, %v1310_v45  ;;  %v1384_v22 = vadd.f32 %v1383_v40, %v1310_v45  ;;  %v1454_v27 = vpop.f32.mrb[33].mxu1 }
 0x34e   : > { %v1479_v11 = vadd.f32 %v1462_v53, %v1382_v34  ;;  %v1455_v63 = vadd.f32 %v1454_v27, %v1310_v45 }
 0x34f   : > { %v1481_v14 = vadd.f32 %v1470_v0, %v1453_v62  ;;  %v1480_v26 = vadd.f32 %v1466_v8, %v1384_v22 }
 0x350   : > { %1483 = vst [vmem:[%s354_s9] sm:$0xff] %v1479_v11  ;;  %v1482_v9 = vadd.f32 %v1474_v57, %v1455_v63 }
 0x351   : > { %1485 = vst [vmem:[%s354_s9 + $0x10] sm:$0xff] %v1481_v14  ;;  %1484 = vst [vmem:[%s354_s9 + $0x8] sm:$0xff] %v1480_v26 }
 0x352   : > { %1486 = vst [vmem:[%s354_s9 + $0x18] sm:$0xff] %v1482_v9 }
 0x353 PF: > { %s20_s27 = sadd.s32 1, %s1927_s27  }
 0x354   : > { %p17_p5 = scmp.ge.s32.totalorder %s20_s27, 6  }
 0x356   :  { %19 = sbr.rel (!%p17_p5) target bundleno = 2 (0x2), region = 94 }
 0x35d   :  { %1509 = vsyncpa [#allocation3], 1 }
 0x35e   :  { %1511 = vsyncpa [#allocation3 + $0x1], 1 }
 0x35f   :  { %1512 = vsyncpa [#allocation5], 1 }

// kernel: srnet_forward.4
= control target key start
LH: loop header
LB: loop body
LE: loop exit
PB: predicated region body
PF: predicated region fallthrough
CT: control target
= control target key end

     0   :  { %s3714_s13 = smov 0   ;;  %s5464_s0 = inlined_call_operand.vmem [shape: f32[8,2048], index: 0, kind: input, shape index: {}]   ;;  %s5465_s1 = inlined_call_operand.vmem [shape: f32[8,2048], index: 1, kind: input, shape index: {}]   ;;  %s5466_s2 = inlined_call_operand.vmem [shape: f32[128,8], index: 2, kind: input, shape index: {}]   ;;  %s5467_s3 = inlined_call_operand.vmem [shape: f32[128,1], index: 3, kind: input, shape index: {}]   ;;  %s5468_s4 = inlined_call_operand.vmem [shape: f32[128,128], index: 4, kind: input, shape index: {}]   ;;  %s5469_s5 = inlined_call_operand.vmem [shape: f32[128,1], index: 5, kind: input, shape index: {}]   ;;  %s5470_s6 = inlined_call_operand.vmem [shape: f32[128,128], index: 6, kind: input, shape index: {}]   ;;  %s5471_s7 = inlined_call_operand.vmem [shape: f32[128,1], index: 7, kind: input, shape index: {}]   ;;  %s5472_s8 = inlined_call_operand.vmem [shape: f32[16,128], index: 8, kind: input, shape index: {}]   ;;  %s5473_s9 = inlined_call_operand.vmem [shape: f32[16,1], index: 9, kind: input, shape index: {}]   ;;  %s5474_s10 = inlined_call_operand.vmem [shape: f32[8,2048], index: 10, kind: output, shape index: {}]  }
   0x1 LB: > { %s2996_s14 = sadd.s32 4294967295, %s3655_s13   ;;  %p3000_p0 = scmp.ge.s32.totalorder %s3655_s13, 1  ;;  %s3655_s13 = sphi %s3714_s13, %s20_s13  }
   0x2   : > { %p324_p1 = scmp.lt.s32.totalorder %s3655_s13, 5 }
   0x4   : > { %p325_p2 = pnand %p3000_p0, %p324_p1 }
   0x6   : > { %328 = sbr.rel (%p325_p2) target bundleno = 1258 (0x4ea), region = 60 }
   0xd   : > { %v447_v0 = vld [vmem:[%s5467_s3 + $0x10] sm:$0xff]  ;;  %v445_v1 = vld [vmem:[%s5467_s3] sm:$0xff]  ;;  %s3001_s19 = sshll.u32 %s2996_s14, 2  ;;  %v3657_v2 = vmov 0   ;;  %v448_v3 = vld [vmem:[%s5467_s3 + $0x18] sm:$0xff]  ;;  %v5475_v5 = vmov 0.0  }
   0xe   : > { %3264 = vset.pattern.permute.xlu1 %v3657_v2  ;;  %3263 = vset.pattern.permute.xlu0 %v3657_v2  ;;  %p368_p3 = scmp.lt.s32.totalorder %s3001_s19, 15  ;;  %v446_v4 = vld [vmem:[%s5467_s3 + $0x8] sm:$0xff]  ;;  %v449_v7 = vld [vmem:[%s5467_s3 + $0x20] sm:$0xff]  ;;  %v452_v20 = vld [vmem:[%s5467_s3 + $0x38] sm:$0xff]  ;;  %vm541_vm4 = vcmask 64512  }
   0xf   : > { %473 = vperm.xlu1 %3264, %v447_v0   ;;  %463 = vperm.xlu0 %3263, %v445_v1   ;;  %v450_v6 = vld [vmem:[%s5467_s3 + $0x28] sm:$0xff]  ;;  %v451_v21 = vld [vmem:[%s5467_s3 + $0x30] sm:$0xff]  ;;  %v453_v39 = vld [vmem:[%s5467_s3 + $0x40] sm:$0xff] }
  0x10   : > { %s5519_s19 = smov (!%p368_p3, %s3001_s19), 15  ;;  %654 = vmatprep.mubr.f32.mxu0 %v5475_v5  ;;  %815 = vmatprep.mubr.f32.mxu1 %v5475_v5  ;;  %v454_v38 = vld [vmem:[%s5467_s3 + $0x48] sm:$0xff]  ;;  %v456_v49 = vld [vmem:[%s5467_s3 + $0x58] sm:$0xff]  ;;  %v429_v52 = vld [vmem:[%s5466_s2] sm:$0xff] }
  0x11   : > { %s3736_s24 = sshll.u32 %s5519_s19, 3  ;;  %v455_v54 = vld [vmem:[%s5467_s3 + $0x50] sm:$0xff]  ;;  %v458_v55 = vld [vmem:[%s5467_s3 + $0x68] sm:$0xff]  ;;  %v457_v57 = vld [vmem:[%s5467_s3 + $0x60] sm:$0xff] }
  0x12   : > { %s371_s11 = scalar_lea.vmem %s5464_s0, %s3736_s24  ;;  %v430_v56 = vld [vmem:[%s5466_s2 + $0x8] sm:$0xff]  ;;  %v460_v58 = vld [vmem:[%s5467_s3 + $0x78] sm:$0xff]  ;;  %v431_v59 = vld [vmem:[%s5466_s2 + $0x10] sm:$0xff]  ;;  %s377_s23 = scalar_lea.vmem %s5465_s1, %s3736_s24 }
  0x13   : > { %478 = vperm.xlu1 %3264, %v448_v3   ;;  %468 = vperm.xlu0 %3263, %v446_v4   ;;  %v386_v8 = vld [vmem:[%s371_s11 + $0x8] sm:$0xff]  ;;  %v388_v9 = vld [vmem:[%s371_s11 + $0x18] sm:$0xff]  ;;  %v385_v10 = vld [vmem:[%s371_s11] sm:$0xff]  ;;  %s383_s27 = scalar_lea.vmem %s5474_s10, %s3736_s24 }
  0x14   : > { %v390_v11 = vsub.f32 0.0, %v386_v8  ;;  %v3012_v12 = vadd.f32 -8.0, %v386_v8  ;;  %v392_v13 = vsub.f32 0.0, %v388_v9  ;;  %v3014_v14 = vadd.f32 -8.0, %v388_v9  ;;  %v387_v15 = vld [vmem:[%s371_s11 + $0x10] sm:$0xff]  ;;  %v1249_v61 = vld [vmem:[%s5469_s5 + $0x8] sm:$0xff] }
  0x15   : > { %v389_v16 = vsub.f32 0.0, %v385_v10  ;;  %v3011_v17 = vadd.f32 -8.0, %v385_v10  ;;  %v391_v18 = vsub.f32 0.0, %v387_v15  ;;  %v3013_v19 = vadd.f32 -8.0, %v387_v15  ;;  %v459_v60 = vld [vmem:[%s5467_s3 + $0x70] sm:$0xff]  ;;  %v432_v62 = vld [vmem:[%s5466_s2 + $0x18] sm:$0xff] }
  0x16   : > { %v3008_v22 = vadd.f32 -8.0, %v390_v11  ;;  %v406_v23 = vand.u32 2147483647, %v3012_v12  ;;  %v3010_v24 = vadd.f32 -8.0, %v392_v13  ;;  %v408_v25 = vand.u32 2147483647, %v3014_v14 }
  0x17   : > { %488 = vperm.xlu1 %3264, %v450_v6   ;;  %483 = vperm.xlu0 %3263, %v449_v7   ;;  %v3007_v26 = vadd.f32 -8.0, %v389_v16  ;;  %v405_v27 = vand.u32 2147483647, %v3011_v17  ;;  %v3009_v28 = vadd.f32 -8.0, %v391_v18  ;;  %v407_v29 = vand.u32 2147483647, %v3013_v19 }
  0x18   : > { %v398_v30 = vand.u32 2147483647, %v3008_v22  ;;  %v400_v31 = vand.u32 2147483647, %v3010_v24  ;;  %v1248_v63 = vld [vmem:[%s5469_s5] sm:$0xff]  ;;  %v1251_v0 = vld [vmem:[%s5469_s5 + $0x18] sm:$0xff] }
  0x19   : > { %v397_v32 = vand.u32 2147483647, %v3007_v26  ;;  %v399_v33 = vand.u32 2147483647, %v3009_v28  ;;  %v433_v1 = vld [vmem:[%s5466_s2 + $0x20] sm:$0xff]  ;;  %v1250_v2 = vld [vmem:[%s5469_s5 + $0x10] sm:$0xff] }
  0x1a   : > { %v410_v34 = vsub.f32 %v398_v30, %v406_v23  ;;  %v412_v35 = vsub.f32 %v400_v31, %v408_v25  ;;  %v1253_v3 = vld [vmem:[%s5469_s5 + $0x28] sm:$0xff]  ;;  %v1252_v6 = vld [vmem:[%s5469_s5 + $0x20] sm:$0xff]  ;;  %v1255_v7 = vld [vmem:[%s5469_s5 + $0x38] sm:$0xff] }
  0x1b   : > { %498 = vperm.xlu1 %3264, %v452_v20   ;;  %493 = vperm.xlu0 %3263, %v451_v21   ;;  %v409_v36 = vsub.f32 %v397_v32, %v405_v27  ;;  %v411_v37 = vsub.f32 %v399_v33, %v407_v29  ;;  %v434_v4 = vld [vmem:[%s5466_s2 + $0x28] sm:$0xff]  ;;  %v435_v8 = vld [vmem:[%s5466_s2 + $0x30] sm:$0xff]  ;;  %v436_v11 = vld [vmem:[%s5466_s2 + $0x38] sm:$0xff] }
  0x1c   : > { %v414_v40 = vmul.f32 0.5, %v410_v34  ;;  %v416_v41 = vmul.f32 0.5, %v412_v35  ;;  %v1254_v9 = vld [vmem:[%s5469_s5 + $0x30] sm:$0xff]  ;;  %v1257_v10 = vld [vmem:[%s5469_s5 + $0x48] sm:$0xff]  ;;  %v1256_v12 = vld [vmem:[%s5469_s5 + $0x40] sm:$0xff] }
  0x1d   : > { %v413_v42 = vmul.f32 0.5, %v409_v36  ;;  %v415_v43 = vmul.f32 0.5, %v411_v37  ;;  %v1259_v13 = vld [vmem:[%s5469_s5 + $0x58] sm:$0xff]  ;;  %v437_v14 = vld [vmem:[%s5466_s2 + $0x40] sm:$0xff]  ;;  %v1258_v15 = vld [vmem:[%s5469_s5 + $0x50] sm:$0xff] }
  0x1e   : > { %vm418_vm0 = vcmp.gt.f32.partialorder %v414_v40, 7.9  ;;  %vm420_vm1 = vcmp.gt.f32.partialorder %v416_v41, 7.9  ;;  %v1261_v16 = vld [vmem:[%s5469_s5 + $0x68] sm:$0xff]  ;;  %v1260_v18 = vld [vmem:[%s5469_s5 + $0x60] sm:$0xff] }
  0x1f   : > { %508 = vperm.xlu1 %3264, %v454_v38   ;;  %503 = vperm.xlu0 %3263, %v453_v39   ;;  %v422_v44 = vsel %vm418_vm0, 7.9, %v414_v40  ;;  %v424_v45 = vsel %vm420_vm1, 7.9, %v416_v41  ;;  %vm417_vm2 = vcmp.gt.f32.partialorder %v413_v42, 7.9 }
  0x20   : > { %v426_v46 = vfloor.f32 %v422_v44  ;;  %v428_v47 = vfloor.f32 %v424_v45  ;;  %v421_v48 = vsel %vm417_vm2, 7.9, %v413_v42  ;;  %vm419_vm3 = vcmp.gt.f32.partialorder %v415_v43, 7.9  ;;  %v438_v17 = vld [vmem:[%s5466_s2 + $0x48] sm:$0xff]  ;;  %v1263_v19 = vld [vmem:[%s5469_s5 + $0x78] sm:$0xff] }
  0x21   : > { %v425_v50 = vfloor.f32 %v421_v48  ;;  %v423_v51 = vsel %vm419_vm3, 7.9, %v415_v43  ;;  %v439_v20 = vld [vmem:[%s5466_s2 + $0x50] sm:$0xff]  ;;  %v2003_v22 = vld [vmem:[%s5471_s7 + $0x8] sm:$0xff]  ;;  %v440_v23 = vld [vmem:[%s5466_s2 + $0x58] sm:$0xff] }
  0x22   : > { %590 = vmatprep.subr.mxu0 %v426_v46  ;;  %751 = vmatprep.subr.mxu1 %v428_v47  ;;  %v427_v53 = vfloor.f32 %v423_v51  ;;  %v1262_v21 = vld [vmem:[%s5469_s5 + $0x70] sm:$0xff]  ;;  %v2002_v24 = vld [vmem:[%s5471_s7] sm:$0xff]  ;;  %v2005_v25 = vld [vmem:[%s5471_s7 + $0x18] sm:$0xff] }
  0x23   : > { %591 = vmatpush1.msra.mxu0 %v425_v50  ;;  %518 = vperm.xlu1 %3264, %v456_v49   ;;  %v441_v26 = vld [vmem:[%s5466_s2 + $0x60] sm:$0xff]  ;;  %v2004_v27 = vld [vmem:[%s5471_s7 + $0x10] sm:$0xff]  ;;  %v2007_v28 = vld [vmem:[%s5471_s7 + $0x28] sm:$0xff] }
  0x24   : > { %752 = vmatpush1.msra.mxu1 %v427_v53  ;;  %3015 = vmatmul.mubr.msk.f32.vlgmr.msra.gmra.mrb[0].mxu0 %vm541_vm4, %v429_v52  ;;  %v442_v29 = vld [vmem:[%s5466_s2 + $0x68] sm:$0xff]  ;;  %v2006_v30 = vld [vmem:[%s5471_s7 + $0x20] sm:$0xff]  ;;  %v2009_v31 = vld [vmem:[%s5471_s7 + $0x38] sm:$0xff] }
  0x25   : > { %3031 = vmatmul.mubr.msk.f32.vlgmr.msra.gmra.mrb[0].mxu1 %vm541_vm4, %v429_v52  ;;  %660 = vmatprep.mubr.f32.mxu0 %v5475_v5  ;;  %v443_v32 = vld [vmem:[%s5466_s2 + $0x70] sm:$0xff]  ;;  %v2011_v34 = vld [vmem:[%s5471_s7 + $0x48] sm:$0xff]  ;;  %v444_v35 = vld [vmem:[%s5466_s2 + $0x78] sm:$0xff] }
  0x26   : > { %821 = vmatprep.mubr.f32.mxu1 %v5475_v5  ;;  %513 = vperm.xlu0 %3263, %v455_v54   ;;  %v2008_v33 = vld [vmem:[%s5471_s7 + $0x30] sm:$0xff]  ;;  %v2010_v36 = vld [vmem:[%s5471_s7 + $0x40] sm:$0xff]  ;;  %v2013_v37 = vld [vmem:[%s5471_s7 + $0x58] sm:$0xff] }
  0x27   : > { %528 = vperm.xlu1 %3264, %v458_v55   ;;  %v2012_v38 = vld [vmem:[%s5471_s7 + $0x50] sm:$0xff]  ;;  %v2015_v39 = vld [vmem:[%s5471_s7 + $0x68] sm:$0xff]  ;;  %v2014_v40 = vld [vmem:[%s5471_s7 + $0x60] sm:$0xff] }
  0x28   : > { %3016 = vmatmul.mubr.msk.f32.gmra.mrb[2].mxu0 %vm541_vm4, %v430_v56  ;;  %v2017_v41 = vld [vmem:[%s5471_s7 + $0x78] sm:$0xff]  ;;  %v2016_v42 = vld [vmem:[%s5471_s7 + $0x70] sm:$0xff]  ;;  %v2743_v43 = vld [vmem:[%s5473_s9 + $0x8] sm:$0xff] }
  0x29   : > { %3032 = vmatmul.mubr.msk.f32.gmra.mrb[2].mxu1 %vm541_vm4, %v430_v56  ;;  %666 = vmatprep.mubr.f32.mxu0 %v5475_v5  ;;  %v2742_v44 = vld [vmem:[%s5473_s9] sm:$0xff] }
  0x2a   : > { %827 = vmatprep.mubr.f32.mxu1 %v5475_v5  ;;  %523 = vperm.xlu0 %3263, %v457_v57  }
  0x2b   : > { %538 = vperm.xlu1 %3264, %v460_v58  }
  0x2c   : > { %3017 = vmatmul.mubr.msk.f32.gmra.mrb[4].mxu0 %vm541_vm4, %v431_v59 }
  0x2d   : > { %3033 = vmatmul.mubr.msk.f32.gmra.mrb[4].mxu1 %vm541_vm4, %v431_v59  ;;  %672 = vmatprep.mubr.f32.mxu0 %v5475_v5 }
  0x2e   : > { %833 = vmatprep.mubr.f32.mxu1 %v5475_v5  ;;  %533 = vperm.xlu0 %3263, %v459_v60  }
  0x2f   : > { %1271 = vperm.xlu1 %3264, %v1249_v61  }
  0x30   : > { %3018 = vmatmul.mubr.msk.f32.gmra.mrb[6].mxu0 %vm541_vm4, %v432_v62 }
  0x31   : > { %3034 = vmatmul.mubr.msk.f32.gmra.mrb[6].mxu1 %vm541_vm4, %v432_v62  ;;  %678 = vmatprep.mubr.f32.mxu0 %v5475_v5 }
  0x32   : > { %839 = vmatprep.mubr.f32.mxu1 %v5475_v5  ;;  %1266 = vperm.xlu0 %3263, %v1248_v63  }
  0x33   : > { %1281 = vperm.xlu1 %3264, %v1251_v0  }
  0x34   : > { %3019 = vmatmul.mubr.msk.f32.gmra.mrb[8].mxu0 %vm541_vm4, %v433_v1 }
  0x35   : > { %3035 = vmatmul.mubr.msk.f32.gmra.mrb[8].mxu1 %vm541_vm4, %v433_v1  ;;  %684 = vmatprep.mubr.f32.mxu0 %v5475_v5 }
  0x36   : > { %845 = vmatprep.mubr.f32.mxu1 %v5475_v5  ;;  %1276 = vperm.xlu0 %3263, %v1250_v2  }
  0x37   : > { %1291 = vperm.xlu1 %3264, %v1253_v3  }
  0x38   : > { %3020 = vmatmul.mubr.msk.f32.gmra.mrb[10].mxu0 %vm541_vm4, %v434_v4 }
  0x39   : > { %3036 = vmatmul.mubr.msk.f32.gmra.mrb[10].mxu1 %vm541_vm4, %v434_v4  ;;  %690 = vmatprep.mubr.f32.mxu0 %v5475_v5 }
  0x3a   : > { %851 = vmatprep.mubr.f32.mxu1 %v5475_v5  ;;  %1286 = vperm.xlu0 %3263, %v1252_v6  }
  0x3b   : > { %1301 = vperm.xlu1 %3264, %v1255_v7  }
  0x3c   : > { %3021 = vmatmul.mubr.msk.f32.gmra.mrb[12].mxu0 %vm541_vm4, %v435_v8 }
  0x3d   : > { %3037 = vmatmul.mubr.msk.f32.gmra.mrb[12].mxu1 %vm541_vm4, %v435_v8  ;;  %696 = vmatprep.mubr.f32.mxu0 %v5475_v5 }
  0x3e   : > { %857 = vmatprep.mubr.f32.mxu1 %v5475_v5  ;;  %1296 = vperm.xlu0 %3263, %v1254_v9  }
  0x3f   : > { %1311 = vperm.xlu1 %3264, %v1257_v10  }
  0x40   : > { %3022 = vmatmul.mubr.msk.f32.gmra.mrb[14].mxu0 %vm541_vm4, %v436_v11 }
  0x41   : > { %3038 = vmatmul.mubr.msk.f32.gmra.mrb[14].mxu1 %vm541_vm4, %v436_v11  ;;  %702 = vmatprep.mubr.f32.mxu0 %v5475_v5 }
  0x42   : > { %863 = vmatprep.mubr.f32.mxu1 %v5475_v5  ;;  %1306 = vperm.xlu0 %3263, %v1256_v12  }
  0x43   : > { %1321 = vperm.xlu1 %3264, %v1259_v13  }
  0x44   : > { %3023 = vmatmul.mubr.msk.f32.gmra.mrb[16].mxu0 %vm541_vm4, %v437_v14 }
  0x45   : > { %3039 = vmatmul.mubr.msk.f32.gmra.mrb[16].mxu1 %vm541_vm4, %v437_v14  ;;  %708 = vmatprep.mubr.f32.mxu0 %v5475_v5 }
  0x46   : > { %869 = vmatprep.mubr.f32.mxu1 %v5475_v5  ;;  %1316 = vperm.xlu0 %3263, %v1258_v15  }
  0x47   : > { %1331 = vperm.xlu1 %3264, %v1261_v16  }
  0x48   : > { %3024 = vmatmul.mubr.msk.f32.gmra.mrb[18].mxu0 %vm541_vm4, %v438_v17 }
  0x49   : > { %3040 = vmatmul.mubr.msk.f32.gmra.mrb[18].mxu1 %vm541_vm4, %v438_v17  ;;  %714 = vmatprep.mubr.f32.mxu0 %v5475_v5 }
  0x4a   : > { %875 = vmatprep.mubr.f32.mxu1 %v5475_v5  ;;  %1326 = vperm.xlu0 %3263, %v1260_v18  }
  0x4b   : > { %1341 = vperm.xlu1 %3264, %v1263_v19  }
  0x4c   : > { %3025 = vmatmul.mubr.msk.f32.gmra.mrb[20].mxu0 %vm541_vm4, %v439_v20 }
  0x4d   : > { %3041 = vmatmul.mubr.msk.f32.gmra.mrb[20].mxu1 %vm541_vm4, %v439_v20  ;;  %720 = vmatprep.mubr.f32.mxu0 %v5475_v5 }
  0x4e   : > { %881 = vmatprep.mubr.f32.mxu1 %v5475_v5  ;;  %1336 = vperm.xlu0 %3263, %v1262_v21  }
  0x4f   : > { %2025 = vperm.xlu1 %3264, %v2003_v22  }
  0x50   : > { %3026 = vmatmul.mubr.msk.f32.gmra.mrb[22].mxu0 %vm541_vm4, %v440_v23 }
  0x51   : > { %3042 = vmatmul.mubr.msk.f32.gmra.mrb[22].mxu1 %vm541_vm4, %v440_v23  ;;  %726 = vmatprep.mubr.f32.mxu0 %v5475_v5 }
  0x52   : > { %887 = vmatprep.mubr.f32.mxu1 %v5475_v5  ;;  %2020 = vperm.xlu0 %3263, %v2002_v24  }
  0x53   : > { %2035 = vperm.xlu1 %3264, %v2005_v25  }
  0x54   : > { %3027 = vmatmul.mubr.msk.f32.gmra.mrb[24].mxu0 %vm541_vm4, %v441_v26 }
  0x55   : > { %3043 = vmatmul.mubr.msk.f32.gmra.mrb[24].mxu1 %vm541_vm4, %v441_v26  ;;  %732 = vmatprep.mubr.f32.mxu0 %v5475_v5 }
  0x56   : > { %893 = vmatprep.mubr.f32.mxu1 %v5475_v5  ;;  %2030 = vperm.xlu0 %3263, %v2004_v27  }
  0x57   : > { %2045 = vperm.xlu1 %3264, %v2007_v28  }
  0x58   : > { %3028 = vmatmul.mubr.msk.f32.gmra.mrb[26].mxu0 %vm541_vm4, %v442_v29 }
  0x59   : > { %3044 = vmatmul.mubr.msk.f32.gmra.mrb[26].mxu1 %vm541_vm4, %v442_v29  ;;  %738 = vmatprep.mubr.f32.mxu0 %v5475_v5 }
  0x5a   : > { %899 = vmatprep.mubr.f32.mxu1 %v5475_v5  ;;  %2040 = vperm.xlu0 %3263, %v2006_v30  }
  0x5b   : > { %2055 = vperm.xlu1 %3264, %v2009_v31  }
  0x5c   : > { %3029 = vmatmul.mubr.msk.f32.gmra.mrb[28].mxu0 %vm541_vm4, %v443_v32 }
  0x5d   : > { %3045 = vmatmul.mubr.msk.f32.gmra.mrb[28].mxu1 %vm541_vm4, %v443_v32  ;;  %744 = vmatprep.mubr.f32.mxu0 %v5475_v5 }
  0x5e   : > { %905 = vmatprep.mubr.f32.mxu1 %v5475_v5  ;;  %2050 = vperm.xlu0 %3263, %v2008_v33  }
  0x5f   : > { %2065 = vperm.xlu1 %3264, %v2011_v34  }
  0x60   : > { %3030 = vmatmul.mubr.msk.f32.gmra.mrb[30].mxu0 %vm541_vm4, %v444_v35 }
  0x61   : > { %3046 = vmatmul.mubr.msk.f32.gmra.mrb[30].mxu1 %vm541_vm4, %v444_v35  ;;  %1408 = vmatprep.mubr.f32.mxu0 %v5475_v5 }
  0x62   : > { %2060 = vperm.xlu0 %3263, %v2010_v36   ;;  %1569 = vmatprep.mubr.f32.mxu1 %v5475_v5 }
  0x63   : > { %2075 = vperm.xlu1 %3264, %v2013_v37  }
  0x66   : > { %2070 = vperm.xlu0 %3263, %v2012_v38  }
  0x67   : > { %2085 = vperm.xlu1 %3264, %v2015_v39  }
  0x6a   : > { %2080 = vperm.xlu0 %3263, %v2014_v40  }
  0x6b   : > { %2095 = vperm.xlu1 %3264, %v2017_v41  }
  0x6e   : > { %2090 = vperm.xlu0 %3263, %v2016_v42  }
  0x6f   : > { %2751 = vperm.xlu1 %3264, %v2743_v43  }
  0x72   : > { %2746 = vperm.xlu0 %3263, %v2742_v44  }
  0x8e   : > { %v464_v45 = vpop.permute.xlu0 %463  ;;  %v474_v2 = vpop.permute.xlu1 %473 }
  0x92   : > { %v469_v55 = vpop.permute.xlu0 %468  ;;  %v479_v23 = vpop.permute.xlu1 %478 }
  0xf7   : > { %v656_v46 = vpop.f32.mrb[0].mxu0 }
  0xf8   : > { %v657_v47 = vadd.f32 %v656_v46, %v464_v45  ;;  %v817_v48 = vpop.f32.mrb[0].mxu1  ;;  %v658_v49 = vpop.f32.mrb[1].mxu0 }
  0xf9   : > { %v818_v50 = vadd.f32 %v817_v48, %v464_v45  ;;  %v659_v51 = vadd.f32 %v658_v49, %v464_v45  ;;  %v819_v52 = vpop.f32.mrb[1].mxu1 }
  0xfa   : > { %v976_v53 = vmul.f32 0.70710677, %v657_v47  ;;  %v820_v54 = vadd.f32 %v819_v52, %v464_v45  ;;  %v912_v15 = vmul.f32 0.5, %v657_v47 }
  0xfb   : > { %v978_v56 = vmul.f32 0.70710677, %v818_v50  ;;  %v977_v57 = vmul.f32 0.70710677, %v659_v51  ;;  %v662_v59 = vpop.f32.mrb[2].mxu0  ;;  %v914_v24 = vmul.f32 0.5, %v818_v50 }
  0xfc   : > { %3265 = verf.f32 %v976_v53  ;;  %v979_v58 = vmul.f32 0.70710677, %v820_v54  ;;  %v823_v60 = vpop.f32.mrb[2].mxu1  ;;  %v663_v61 = vadd.f32 %v662_v59, %v469_v55  ;;  %v664_v63 = vpop.f32.mrb[3].mxu0  ;;  %v3992_v25 = vmul.f32 0.5, %v659_v51 }
  0xfd   : > { %3267 = verf.f32 %v978_v56  ;;  %v824_v62 = vadd.f32 %v823_v60, %v469_v55  ;;  %v825_v0 = vpop.f32.mrb[3].mxu1  ;;  %v665_v1 = vadd.f32 %v664_v63, %v469_v55  ;;  %v3994_v29 = vmul.f32 0.5, %v820_v54  ;;  %v484_v53 = vpop.permute.xlu0 %483 }
  0xfe   : > { %3269 = verf.f32 %v977_v57  ;;  %v980_v3 = vmul.f32 0.70710677, %v663_v61  ;;  %v826_v8 = vadd.f32 %v825_v0, %v469_v55  ;;  %v916_v33 = vmul.f32 0.5, %v663_v61 }
  0xff   : > { %v668_v4 = vpop.f32.mrb[4].mxu0  ;;  %3271 = verf.f32 %v979_v58  ;;  %v982_v6 = vmul.f32 0.70710677, %v824_v62  ;;  %v981_v7 = vmul.f32 0.70710677, %v665_v1  ;;  %v918_v34 = vmul.f32 0.5, %v824_v62 }
 0x100   : > { %3273 = verf.f32 %v980_v3  ;;  %v669_v9 = vadd.f32 %v668_v4, %v474_v2  ;;  %v829_v10 = vpop.f32.mrb[4].mxu1  ;;  %v670_v11 = vpop.f32.mrb[5].mxu0  ;;  %v983_v18 = vmul.f32 0.70710677, %v826_v8  ;;  %v3996_v35 = vmul.f32 0.5, %v665_v1 }
 0x101   : > { %3275 = verf.f32 %v982_v6  ;;  %v830_v12 = vadd.f32 %v829_v10, %v474_v2  ;;  %v671_v13 = vadd.f32 %v670_v11, %v474_v2  ;;  %v831_v14 = vpop.f32.mrb[5].mxu1  ;;  %v3998_v45 = vmul.f32 0.5, %v826_v8 }
 0x102   : > { %v984_v16 = vmul.f32 0.70710677, %v669_v9  ;;  %3277 = verf.f32 %v981_v7  ;;  %v832_v20 = vadd.f32 %v831_v14, %v474_v2  ;;  %v4000_v50 = vmul.f32 0.5, %v669_v9 }
 0x103   : > { %v674_v17 = vpop.f32.mrb[6].mxu0  ;;  %v986_v19 = vmul.f32 0.70710677, %v830_v12  ;;  %v985_v26 = vmul.f32 0.70710677, %v671_v13  ;;  %v4002_v51 = vmul.f32 0.5, %v830_v12 }
 0x104   : > { %v835_v21 = vpop.f32.mrb[6].mxu1  ;;  %v676_v22 = vpop.f32.mrb[7].mxu0  ;;  %3279 = verf.f32 %v984_v16  ;;  %v675_v30 = vadd.f32 %v674_v17, %v479_v23  ;;  %v987_v38 = vmul.f32 0.70710677, %v832_v20  ;;  %v4004_v54 = vmul.f32 0.5, %v671_v13 }
 0x105   : > { %v837_v27 = vpop.f32.mrb[7].mxu1  ;;  %3281 = verf.f32 %v986_v19  ;;  %v836_v31 = vadd.f32 %v835_v21, %v479_v23  ;;  %v677_v36 = vadd.f32 %v676_v22, %v479_v23  ;;  %v4006_v55 = vmul.f32 0.5, %v832_v20 }
 0x106   : > { %v3266_v28 = vpop.eup %3265  ;;  %3283 = verf.f32 %v983_v18  ;;  %v988_v39 = vmul.f32 0.70710677, %v675_v30  ;;  %v838_v40 = vadd.f32 %v837_v27, %v479_v23  ;;  %v924_v17 = vmul.f32 0.5, %v675_v30 }
 0x107   : > { %v3268_v32 = vpop.eup %3267  ;;  %v680_v37 = vpop.f32.mrb[8].mxu0  ;;  %v1104_v44 = vadd.f32 1.0, %v3266_v28  ;;  %3285 = verf.f32 %v985_v26  ;;  %v990_v46 = vmul.f32 0.70710677, %v836_v31  ;;  %v989_v56 = vmul.f32 0.70710677, %v677_v36 }
 0x108   : > { %v841_v41 = vpop.f32.mrb[8].mxu1  ;;  %v682_v42 = vpop.f32.mrb[9].mxu0  ;;  %v1106_v49 = vadd.f32 1.0, %v3268_v32  ;;  %3287 = verf.f32 %v988_v39  ;;  %v991_v60 = vmul.f32 0.70710677, %v838_v40  ;;  %v681_v61 = vadd.f32 %v680_v37, %v484_v53 }
 0x109   : > { %v3270_v43 = vpop.eup %3269  ;;  %v843_v47 = vpop.f32.mrb[9].mxu1  ;;  %3289 = verf.f32 %v990_v46  ;;  %v4008_v0 = vmul.f32 %v1104_v44, %v912_v15  ;;  %v842_v3 = vadd.f32 %v841_v41, %v484_v53  ;;  %v4018_v13 = vadd.f32 %v682_v42, %v484_v53 }
 0x10a   : > { %v3272_v48 = vpop.eup %3271  ;;  %3291 = verf.f32 %v987_v38  ;;  %v1105_v1 = vadd.f32 1.0, %v3270_v43  ;;  %v4012_v7 = vmul.f32 %v1106_v49, %v914_v24  ;;  %v992_v12 = vmul.f32 0.70710677, %v681_v61 }
 0x10b   : > { %v3274_v52 = vpop.eup %3273  ;;  %v686_v57 = vpop.f32.mrb[10].mxu0  ;;  %v1107_v8 = vadd.f32 1.0, %v3272_v48  ;;  %3293 = verf.f32 %v989_v56  ;;  %v926_v18 = vmul.f32 0.5, %v836_v31  ;;  %v994_v19 = vmul.f32 0.70710677, %v842_v3 }
 0x10c   : > { %v3276_v58 = vpop.eup %3275  ;;  %v1108_v59 = vadd.f32 1.0, %v3274_v52  ;;  %v847_v62 = vpop.f32.mrb[10].mxu1  ;;  %3295 = verf.f32 %v991_v60  ;;  %v4029_v22 = vmul.f32 %v1105_v1, %v3992_v25  ;;  %v4033_v26 = vmul.f32 0.5, %v677_v36 }
 0x10d   : > { %v688_v63 = vpop.f32.mrb[11].mxu0  ;;  %v1110_v2 = vadd.f32 1.0, %v3276_v58  ;;  %v4010_v4 = vpop.f32.mrb[11].mxu1  ;;  %v4038_v30 = vmul.f32 %v1107_v8, %v3994_v29  ;;  %v4040_v32 = vmul.f32 0.5, %v838_v40  ;;  %3297 = verf.f32 %v992_v12 }
 0x10e   : > { %v3278_v6 = vpop.eup %3277  ;;  %v4014_v9 = vmul.f32 %v1108_v59, %v916_v33  ;;  %v4042_v37 = vmul.f32 0.5, %v681_v61  ;;  %v993_v38 = vmul.f32 0.70710677, %v4018_v13  ;;  %v844_v39 = vadd.f32 %v843_v47, %v484_v53  ;;  %v494_v12 = vpop.permute.xlu0 %493 }
 0x10f   : > { %v3280_v10 = vpop.eup %3279  ;;  %v4016_v11 = vmul.f32 %v1110_v2, %v918_v34  ;;  %v4020_v14 = vpop.f32.mrb[12].mxu0  ;;  %v1109_v24 = vadd.f32 1.0, %v3278_v6  ;;  %3299 = verf.f32 %v994_v19  ;;  %v4054_v56 = vmul.f32 0.5, %v842_v3 }
 0x110   : > { %v3282_v15 = vpop.eup %3281  ;;  %v3051_v16 = vpack.c.bf16 %v4014_v9, %v4008_v0  ;;  %v4024_v20 = vpop.f32.mrb[12].mxu1  ;;  %v1112_v31 = vadd.f32 1.0, %v3280_v10  ;;  %v995_v59 = vmul.f32 0.70710677, %v844_v39  ;;  %3301 = verf.f32 %v993_v38 }
 0x111   : > { %v4026_v21 = vpop.f32.mrb[13].mxu0  ;;  %v3083_v23 = vpack.c.bf16 %v4016_v11, %v4012_v7  ;;  %v4035_v27 = vpop.f32.mrb[13].mxu1  ;;  %v1114_v25 = vadd.f32 1.0, %v3282_v15  ;;  %v4052_v48 = vmul.f32 %v1109_v24, %v3996_v35 }
 0x112   : > { %v3284_v28 = vpop.eup %3283  ;;  %v489_v34 = vpop.permute.xlu1 %488  ;;  %v4059_v58 = vmul.f32 %v1112_v31, %v4000_v50  ;;  %3303 = verf.f32 %v995_v59 }
 0x113   : > { %v3286_v33 = vpop.eup %3285  ;;  %v4045_v36 = vpop.f32.mrb[14].mxu0  ;;  %v687_v42 = vadd.f32 %v686_v57, %v489_v34  ;;  %v848_v43 = vadd.f32 %v847_v62, %v489_v34  ;;  %v689_v29 = vadd.f32 %v688_v63, %v489_v34  ;;  %v1111_v49 = vadd.f32 1.0, %v3284_v28 }
 0x114   : > { %v3288_v41 = vpop.eup %3287  ;;  %v4047_v44 = vpop.f32.mrb[14].mxu1  ;;  %v1113_v61 = vadd.f32 1.0, %v3286_v33  ;;  %v4066_v2 = vmul.f32 %v1114_v25, %v4002_v51  ;;  %v850_v19 = vadd.f32 %v4010_v4, %v489_v34  ;;  %v693_v28 = vadd.f32 %v4020_v14, %v494_v12 }
 0x115   : > { %v4049_v40 = vpop.f32.mrb[15].mxu0  ;;  %v3290_v46 = vpop.eup %3289  ;;  %v1116_v52 = vadd.f32 1.0, %v3288_v41  ;;  %v996_v60 = vmul.f32 0.70710677, %v687_v42  ;;  %v998_v63 = vmul.f32 0.70710677, %v848_v43  ;;  %v1175_v51 = vmul.f32 %v1111_v49, %v3998_v45 }
 0x116   : > { %v4056_v47 = vpop.f32.mrb[15].mxu1  ;;  %v3292_v53 = vpop.eup %3291  ;;  %v1118_v57 = vadd.f32 1.0, %v3290_v46  ;;  %v997_v6 = vmul.f32 0.70710677, %v689_v29  ;;  %v4084_v31 = vmul.f32 %v1113_v61, %v4004_v54  ;;  %v4087_v33 = vmul.f32 0.5, %v4018_v13 }
 0x117   : > { %v4061_v62 = vmul.f32 %v1116_v52, %v924_v17  ;;  %v4063_v35 = vpop.f32.mrb[16].mxu0  ;;  %v3294_v1 = vpop.eup %3293  ;;  %v1115_v15 = vadd.f32 1.0, %v3292_v53  ;;  %3305 = verf.f32 %v996_v60  ;;  %v999_v25 = vmul.f32 0.70710677, %v850_v19 }
 0x118   : > { %v4068_v3 = vmul.f32 %v1118_v57, %v926_v18  ;;  %v4070_v50 = vpop.f32.mrb[16].mxu1  ;;  %v4072_v8 = vpop.f32.mrb[17].mxu0  ;;  %3307 = verf.f32 %v998_v63  ;;  %v1117_v34 = vadd.f32 1.0, %v3294_v1  ;;  %v1000_v45 = vmul.f32 0.70710677, %v693_v28 }
 0x119   : > { %v3296_v10 = vpop.eup %3295  ;;  %v4077_v24 = vpop.f32.mrb[17].mxu1  ;;  %3309 = verf.f32 %v997_v6  ;;  %v854_v46 = vadd.f32 %v4024_v20, %v494_v12  ;;  %v4097_v54 = vmul.f32 %v1115_v15, %v4006_v55  ;;  %v4099_v14 = vmul.f32 0.5, %v844_v39 }
 0x11a   : > { %v3298_v4 = vpop.eup %3297  ;;  %v1119_v41 = vadd.f32 1.0, %v3296_v10  ;;  %3311 = verf.f32 %v999_v25  ;;  %v695_v13 = vadd.f32 %v4026_v21, %v494_v12  ;;  %v932_v59 = vmul.f32 0.5, %v687_v42  ;;  %v499_v63 = vpop.permute.xlu1 %498 }
 0x11b   : > { %v4089_v38 = vpop.f32.mrb[18].mxu0  ;;  %v3300_v57 = vpop.eup %3299  ;;  %v934_v60 = vmul.f32 0.5, %v848_v43  ;;  %v4104_v61 = vmul.f32 0.5, %v689_v29  ;;  %v1002_v20 = vmul.f32 0.70710677, %v854_v46  ;;  %v1120_v1 = vadd.f32 1.0, %v3298_v4 }
 0x11c   : > { %v4092_v49 = vpop.f32.mrb[18].mxu1  ;;  %v4094_v52 = vpop.f32.mrb[19].mxu0  ;;  %3313 = verf.f32 %v1000_v45  ;;  %v1001_v6 = vmul.f32 0.70710677, %v695_v13  ;;  %v4107_v55 = vadd.f32 %v4035_v27, %v494_v12  ;;  %v4112_v10 = vmul.f32 %v1117_v34, %v4033_v26 }
 0x11d   : > { %v4102_v53 = vpop.f32.mrb[19].mxu1  ;;  %v4115_v21 = vmul.f32 %v1119_v41, %v4040_v32  ;;  %v4117_v42 = vmul.f32 0.5, %v850_v19  ;;  %v3049_v43 = vpack.c.bf16 %v4052_v48, %v4029_v22  ;;  %v3302_v25 = vpop.eup %3301  ;;  %v1122_v27 = vadd.f32 1.0, %v3300_v57 }
 0x11e   : > { %v3081_v12 = vpack.c.bf16 %v1175_v51, %v4038_v30  ;;  %v699_v4 = vadd.f32 %v4045_v36, %v499_v63  ;;  %v860_v26 = vadd.f32 %v4047_v44, %v499_v63  ;;  %v3304_v32 = vpop.eup %3303  ;;  %v4130_v19 = vmul.f32 0.5, %v693_v28 }
 0x11f   : > { %v4109_v39 = vpop.f32.mrb[20].mxu0  ;;  %3315 = verf.f32 %v1002_v20  ;;  %3050 = vmatprep.subr.bf16.mxu0 %v3049_v43  ;;  %v701_v22 = vadd.f32 %v4049_v40, %v499_v63  ;;  %v862_v48 = vadd.f32 %v4056_v47, %v499_v63  ;;  %v4135_v45 = vmul.f32 %v1120_v1, %v4042_v37 }
 0x120   : > { %v4121_v29 = vpop.f32.mrb[20].mxu1  ;;  %v4123_v15 = vpop.f32.mrb[21].mxu0  ;;  %3317 = verf.f32 %v1001_v6  ;;  %v1003_v30 = vmul.f32 0.70710677, %v4107_v55  ;;  %3082 = vmatprep.subr.bf16.mxu1 %v3081_v12  ;;  %v1004_v36 = vmul.f32 0.70710677, %v699_v4  ;;  %3052 = vmatpush1.bf16.msra.mxu0 %v3051_v16  ;;  %v4149_v20 = vmul.f32 %v1122_v27, %v4054_v56 }
 0x121   : > { %v4128_v34 = vpop.f32.mrb[21].mxu1  ;;  %v3306_v41 = vpop.eup %3305  ;;  %v4143_v40 = vmul.f32 0.5, %v854_v46  ;;  %v1006_v47 = vmul.f32 0.70710677, %v860_v26  ;;  %3084 = vmatpush1.bf16.msra.mxu1 %v3083_v23  ;;  %v1005_v37 = vmul.f32 0.70710677, %v701_v22 }
 0x122   : > { %v3308_v51 = vpop.eup %3307  ;;  %v1124_v28 = vadd.f32 1.0, %v3306_v41  ;;  %v4151_v1 = vmul.f32 0.5, %v695_v13  ;;  %3319 = verf.f32 %v1004_v36  ;;  %v504_v16 = vpop.permute.xlu0 %503  ;;  %v1121_v46 = vadd.f32 1.0, %v3302_v25 }
 0x123   : > { %v4141_v44 = vpop.f32.mrb[22].mxu0  ;;  %v3310_v57 = vpop.eup %3309  ;;  %v1126_v63 = vadd.f32 1.0, %v3308_v51  ;;  %3321 = verf.f32 %v1006_v47  ;;  %v1007_v7 = vmul.f32 0.70710677, %v862_v48  ;;  %v705_v56 = vadd.f32 %v4063_v35, %v504_v16 }
 0x124   : > { %v4153_v0 = vpop.f32.mrb[22].mxu1  ;;  %v4155_v9 = vpop.f32.mrb[23].mxu0  ;;  %v4157_v6 = vmul.f32 %v1124_v28, %v932_v59  ;;  %3323 = verf.f32 %v1003_v30  ;;  %v866_v13 = vadd.f32 %v4070_v50, %v504_v16  ;;  %v1123_v12 = vadd.f32 1.0, %v3304_v32 }
 0x125   : > { %v4159_v11 = vpop.f32.mrb[23].mxu1  ;;  %v3312_v23 = vpop.eup %3311  ;;  %v4161_v43 = vmul.f32 %v1126_v63, %v934_v60  ;;  %v1125_v59 = vadd.f32 1.0, %v3310_v57  ;;  %3325 = verf.f32 %v1005_v37  ;;  %v1008_v35 = vmul.f32 0.70710677, %v705_v56 }
 0x126   : > { %v3314_v51 = vpop.eup %3313  ;;  %v1127_v30 = vadd.f32 1.0, %v3312_v23  ;;  %3327 = verf.f32 %v1007_v7  ;;  %v4178_v32 = vmul.f32 %v1121_v46, %v4087_v33  ;;  %v4181_v28 = vmul.f32 0.5, %v4107_v55 }
 0x127   : > { %v4165_v27 = vpop.f32.mrb[24].mxu0  ;;  %v1010_v47 = vmul.f32 0.70710677, %v866_v13  ;;  %v707_v37 = vadd.f32 %v4072_v8, %v504_v16  ;;  %v940_v57 = vmul.f32 0.5, %v699_v4  ;;  %v942_v63 = vmul.f32 0.5, %v860_v26 }
 0x128   : > { %v4169_v41 = vpop.f32.mrb[24].mxu1  ;;  %v4171_v36 = vpop.f32.mrb[25].mxu0  ;;  %3329 = verf.f32 %v1008_v35  ;;  %v4185_v5 = vadd.f32 %v4077_v24, %v504_v16  ;;  %v4190_v60 = vmul.f32 %v1123_v12, %v4099_v14  ;;  %v1128_v33 = vadd.f32 1.0, %v3314_v51 }
 0x129   : > { %v4175_v50 = vpop.f32.mrb[25].mxu1  ;;  %v3316_v7 = vpop.eup %3315  ;;  %v4192_v46 = vmul.f32 0.5, %v701_v22  ;;  %v4194_v55 = vmul.f32 0.5, %v862_v48  ;;  %v4201_v26 = vmul.f32 %v1125_v59, %v4104_v61  ;;  %v4204_v24 = vmul.f32 %v1127_v30, %v4117_v42 }
 0x12a   : > { %v3318_v4 = vpop.eup %3317  ;;  %v4206_v16 = vmul.f32 0.5, %v705_v56  ;;  %v1009_v14 = vmul.f32 0.70710677, %v707_v37  ;;  %v509_v22 = vpop.permute.xlu1 %508  ;;  %3331 = verf.f32 %v1010_v47  ;;  %v1011_v48 = vmul.f32 0.70710677, %v4185_v5 }
 0x12b   : > { %v4187_v23 = vpop.f32.mrb[26].mxu0  ;;  %v3053_v51 = vpack.c.bf16 %v4112_v10, %v4084_v31  ;;  %v3085_v35 = vpack.c.bf16 %v4115_v21, %v4097_v54  ;;  %v1130_v59 = vadd.f32 1.0, %v3316_v7  ;;  %v4215_v18 = vmul.f32 0.5, %v866_v13 }
 0x12c   : > { %v4196_v25 = vpop.f32.mrb[26].mxu1  ;;  %v4198_v8 = vpop.f32.mrb[27].mxu0  ;;  %v711_v42 = vadd.f32 %v4089_v38, %v509_v22  ;;  %v872_v56 = vadd.f32 %v4092_v49, %v509_v22  ;;  %v4222_v47 = vmul.f32 %v1128_v33, %v4130_v19  ;;  %v713_v31 = vadd.f32 %v4094_v52, %v509_v22 }
 0x12d   : > { %5479 = vst [vmem:[#allocation2_spill] sm:$0xff] %v4198_v8  ;;  %v4208_v12 = vpop.f32.mrb[27].mxu1  ;;  %v3320_v61 = vpop.eup %3319  ;;  %3054 = vmatprep.subr.bf16.mxu0 %v3053_v51  ;;  %3086 = vmatprep.subr.bf16.mxu1 %v3085_v35  ;;  %3333 = verf.f32 %v1009_v14  ;;  %v5481_v7 = vpack.c.bf16 %v4061_v62, %v4059_v58  ;;  %v5482_v19 = vpack.c.bf16 %v4068_v3, %v4066_v2 }
 0x12e   : > { %5480 = vst [vmem:[#allocation3_spill] sm:$0xff] %v4208_v12  ;;  %v3322_v17 = vpop.eup %3321  ;;  %v1129_v12 = vadd.f32 1.0, %v3318_v4  ;;  %v1132_v8 = vadd.f32 1.0, %v3320_v61  ;;  %v514_v38 = vpop.permute.xlu0 %513  ;;  %v1012_v49 = vmul.f32 0.70710677, %v711_v42  ;;  %v874_v33 = vadd.f32 %v4102_v53, %v509_v22 }
 0x12f   : > { %v4219_v30 = vpop.f32.mrb[28].mxu0  ;;  %v3324_v21 = vpop.eup %3323  ;;  %v1134_v13 = vadd.f32 1.0, %v3322_v17  ;;  %3056 = vmatpush1.bf16.msra.mxu0 %v5481_v7  ;;  %3088 = vmatpush1.bf16.msra.mxu1 %v5482_v19  ;;  %3335 = verf.f32 %v1011_v48  ;;  %v1014_v35 = vmul.f32 0.70710677, %v872_v56  ;;  %v717_v17 = vadd.f32 %v4109_v39, %v514_v38 }
 0x130   : > { %v4225_v54 = vpop.f32.mrb[28].mxu1  ;;  %v4227_v10 = vpop.f32.mrb[29].mxu0  ;;  %v4238_v51 = vmul.f32 %v1132_v8, %v940_v57  ;;  %v4242_v61 = vmul.f32 %v1130_v59, %v4143_v40  ;;  %3337 = verf.f32 %v1012_v49  ;;  %v1013_v62 = vmul.f32 0.70710677, %v713_v31 }
 0x131   : > { %v4236_v52 = vpop.f32.mrb[29].mxu1  ;;  %v3326_v4 = vpop.eup %3325  ;;  %v4244_v58 = vmul.f32 %v1134_v13, %v942_v63  ;;  %v1131_v3 = vadd.f32 1.0, %v3324_v21  ;;  %v4250_v57 = vmul.f32 0.5, %v707_v37  ;;  %3339 = verf.f32 %v1014_v35 }
 0x132   : > { %v3328_v14 = vpop.eup %3327  ;;  %v1133_v63 = vadd.f32 1.0, %v3326_v4  ;;  %v4259_v48 = vmul.f32 0.5, %v4185_v5  ;;  %v1015_v59 = vmul.f32 0.70710677, %v874_v33  ;;  %3341 = verf.f32 %v1013_v62 }
 0x133   : > { %v4246_v2 = vpop.f32.mrb[30].mxu0  ;;  %v3330_v22 = vpop.eup %3329  ;;  %v1135_v13 = vadd.f32 1.0, %v3328_v14  ;;  %v1016_v37 = vmul.f32 0.70710677, %v717_v17  ;;  %v878_v49 = vadd.f32 %v4121_v29, %v514_v38  ;;  %v4265_v7 = vmul.f32 %v1129_v12, %v4151_v1 }
 0x134   : > { %v4252_v8 = vpop.f32.mrb[30].mxu1  ;;  %v4254_v39 = vpop.f32.mrb[31].mxu0  ;;  %3343 = verf.f32 %v1015_v59  ;;  %v719_v19 = vadd.f32 %v4123_v15, %v514_v38  ;;  %v880_v35 = vadd.f32 %v4128_v34, %v514_v38  ;;  %v4270_v5 = vmul.f32 %v1131_v3, %v4181_v28 }
 0x135   : > { %v4261_v21 = vpop.f32.mrb[31].mxu1  ;;  %v3332_v4 = vpop.eup %3331  ;;  %v1136_v40 = vadd.f32 1.0, %v3330_v22  ;;  %v948_v53 = vmul.f32 0.5, %v711_v42  ;;  %v950_v14 = vmul.f32 0.5, %v872_v56  ;;  %v4272_v62 = vmul.f32 0.5, %v713_v31 }
 0x136   : > { %5483 = vst [vmem:[#allocation4_spill] sm:$0xff] %v4261_v21  ;;  %v1018_v21 = vmul.f32 0.70710677, %v878_v49  ;;  %3345 = verf.f32 %v1016_v37  ;;  %v1017_v29 = vmul.f32 0.70710677, %v719_v19  ;;  %v4275_v1 = vmul.f32 %v1133_v63, %v4192_v46  ;;  %v519_v28 = vpop.permute.xlu1 %518 }
 0x137   : > { %v4278_v12 = vmul.f32 %v1135_v13, %v4194_v55  ;;  %v4280_v15 = vmul.f32 0.5, %v874_v33  ;;  %v1019_v34 = vmul.f32 0.70710677, %v880_v35  ;;  %v3334_v38 = vpop.eup %3333  ;;  %v1138_v3 = vadd.f32 1.0, %v3332_v4 }
 0x138   : > { %v4282_v22 = vmul.f32 0.5, %v717_v17  ;;  %v3057_v42 = vpack.c.bf16 %v4201_v26, %v4178_v32  ;;  %v3089_v56 = vpack.c.bf16 %v4204_v24, %v4190_v60  ;;  %v4289_v46 = vmul.f32 %v1136_v40, %v4206_v16  ;;  %v524_v24 = vpop.permute.xlu0 %523 }
 0x139   : > { %v3336_v31 = vpop.eup %3335  ;;  %3347 = verf.f32 %v1018_v21  ;;  %v723_v55 = vadd.f32 %v4141_v44, %v519_v28  ;;  %v884_v33 = vadd.f32 %v4153_v0, %v519_v28  ;;  %v4293_v59 = vmul.f32 0.5, %v878_v49 }
 0x13a   : > { %v3338_v63 = vpop.eup %3337  ;;  %3349 = verf.f32 %v1017_v29  ;;  %3058 = vmatprep.subr.bf16.mxu0 %v3057_v42  ;;  %3090 = vmatprep.subr.bf16.mxu1 %v3089_v56  ;;  %v725_v32 = vadd.f32 %v4155_v9, %v519_v28  ;;  %v886_v26 = vadd.f32 %v4159_v11, %v519_v28  ;;  %v1137_v17 = vadd.f32 1.0, %v3334_v38 }
 0x13b   : > { %v3340_v60 = vpop.eup %3339  ;;  %v1140_v16 = vadd.f32 1.0, %v3338_v63  ;;  %3351 = verf.f32 %v1019_v34  ;;  %v1020_v40 = vmul.f32 0.70710677, %v723_v55  ;;  %v5484_v44 = vpack.c.bf16 %v4157_v6, %v4135_v45 }
 0x13c   : > { %v5485_v0 = vpack.c.bf16 %v4161_v43, %v4149_v20  ;;  %v1142_v21 = vadd.f32 1.0, %v3340_v60  ;;  %v1022_v13 = vmul.f32 0.70710677, %v884_v33  ;;  %v1021_v37 = vmul.f32 0.70710677, %v725_v32  ;;  %v3342_v11 = vpop.eup %3341 }
 0x13d   : > { %3060 = vmatpush1.bf16.msra.mxu0 %v5484_v44  ;;  %v729_v9 = vadd.f32 %v4165_v27, %v524_v24  ;;  %v4305_v49 = vmul.f32 %v1138_v3, %v4215_v18  ;;  %v4307_v4 = vmul.f32 %v1140_v16, %v948_v53  ;;  %v4309_v29 = vmul.f32 0.5, %v719_v19 }
 0x13e   : > { %3092 = vmatpush1.bf16.msra.mxu1 %v5485_v0  ;;  %3353 = verf.f32 %v1020_v40  ;;  %v3344_v45 = vpop.eup %3343  ;;  %v1139_v6 = vadd.f32 1.0, %v3336_v31  ;;  %v4311_v34 = vmul.f32 %v1142_v21, %v950_v14  ;;  %v1023_v20 = vmul.f32 0.70710677, %v886_v26 }
 0x13f   : > { %3355 = verf.f32 %v1022_v13  ;;  %v4314_v43 = vmul.f32 %v1137_v17, %v4250_v57  ;;  %v3067_v27 = vpack.c.bf16 %v4307_v4, %v4289_v46  ;;  %v4318_v38 = vmul.f32 0.5, %v880_v35 }
 0x140   : > { %3357 = verf.f32 %v1021_v37  ;;  %v3346_v18 = vpop.eup %3345  ;;  %v3099_v53 = vpack.c.bf16 %v4311_v34, %v4305_v49  ;;  %v1141_v19 = vadd.f32 1.0, %v3342_v11  ;;  %v1024_v28 = vmul.f32 0.70710677, %v729_v9  ;;  %v5487_v37 = vld [vmem:[#allocation2_spill] sm:$0xff]  ;;  %v5488_v11 = vld [vmem:[#allocation3_spill] sm:$0xff] }
 0x141   : > { %3359 = verf.f32 %v1023_v20  ;;  %v1143_v14 = vadd.f32 1.0, %v3344_v45  ;;  %v890_v3 = vadd.f32 %v4169_v41, %v524_v24  ;;  %v731_v42 = vadd.f32 %v4171_v36, %v524_v24  ;;  %v534_v20 = vpop.permute.xlu0 %533 }
 0x142   : > { %v892_v57 = vadd.f32 %v4175_v50, %v524_v24  ;;  %v4326_v56 = vmul.f32 %v1139_v6, %v4259_v48  ;;  %v956_v35 = vmul.f32 0.5, %v723_v55  ;;  %3361 = verf.f32 %v1024_v28  ;;  %v529_v24 = vpop.permute.xlu1 %528 }
 0x143   : > { %v3061_v31 = vpack.c.bf16 %v4275_v1, %v4265_v7  ;;  %v3348_v63 = vpop.eup %3347  ;;  %v1144_v60 = vadd.f32 1.0, %v3346_v18  ;;  %v958_v17 = vmul.f32 0.5, %v884_v33  ;;  %v4330_v16 = vmul.f32 0.5, %v725_v32 }
 0x144   : > { %v1026_v40 = vmul.f32 0.70710677, %v890_v3  ;;  %v3350_v44 = vpop.eup %3349  ;;  %v4333_v41 = vmul.f32 %v1141_v19, %v4272_v62  ;;  %v4335_v36 = vmul.f32 0.5, %v886_v26  ;;  %v4337_v50 = vmul.f32 0.5, %v729_v9 }
 0x145   : > { %v1025_v48 = vmul.f32 0.70710677, %v731_v42  ;;  %3062 = vmatprep.subr.bf16.mxu0 %v3061_v31  ;;  %v3352_v55 = vpop.eup %3351  ;;  %v4340_v7 = vmul.f32 %v1143_v14, %v4280_v15  ;;  %v1027_v1 = vmul.f32 0.70710677, %v892_v57  ;;  %v3093_v33 = vpack.c.bf16 %v4278_v12, %v4270_v5 }
 0x146   : > { %3363 = verf.f32 %v1026_v40  ;;  %v5486_v62 = vpack.c.bf16 %v4238_v51, %v4222_v47  ;;  %v1146_v32 = vadd.f32 1.0, %v3348_v63  ;;  %v735_v26 = vadd.f32 %v4187_v23, %v529_v24 }
 0x147   : > { %3365 = verf.f32 %v1025_v48  ;;  %v896_v0 = vadd.f32 %v4196_v25, %v529_v24  ;;  %v4350_v13 = vmul.f32 %v1144_v60, %v4282_v22  ;;  %v1145_v15 = vadd.f32 1.0, %v3350_v44  ;;  %3094 = vmatprep.subr.bf16.mxu1 %v3093_v33  ;;  %v539_v48 = vpop.permute.xlu1 %538 }
 0x148   : > { %3064 = vmatpush1.bf16.msra.mxu0 %v5486_v62  ;;  %v3354_v21 = vpop.eup %3353  ;;  %v737_v9 = vadd.f32 %v5487_v37, %v529_v24  ;;  %v898_v5 = vadd.f32 %v5488_v11, %v529_v24  ;;  %v962_v47 = vmul.f32 0.5, %v890_v3  ;;  %v4354_v51 = vmul.f32 0.5, %v731_v42 }
 0x149   : > { %v3356_v12 = vpop.eup %3355  ;;  %v1148_v45 = vadd.f32 1.0, %v3354_v21  ;;  %v1028_v6 = vmul.f32 0.70710677, %v735_v26  ;;  %v5489_v23 = vpack.c.bf16 %v4244_v58, %v4242_v61  ;;  %3367 = verf.f32 %v1027_v1 }
 0x14a   : > { %v3358_v25 = vpop.eup %3357  ;;  %v1150_v22 = vadd.f32 1.0, %v3356_v12  ;;  %v1030_v18 = vmul.f32 0.70710677, %v896_v0  ;;  %v1029_v19 = vmul.f32 0.70710677, %v737_v9  ;;  %v4360_v14 = vmul.f32 %v1146_v32, %v4293_v59 }
 0x14b   : > { %3096 = vmatpush1.bf16.msra.mxu1 %v5489_v23  ;;  %v3360_v28 = vpop.eup %3359  ;;  %v4362_v31 = vmul.f32 %v1148_v45, %v956_v35  ;;  %3369 = verf.f32 %v1028_v6  ;;  %v4365_v3 = vadd.f32 %v4219_v30, %v534_v20  ;;  %v1147_v42 = vadd.f32 1.0, %v3352_v55 }
 0x14c   : > { %v4367_v63 = vmul.f32 %v1150_v22, %v958_v17  ;;  %3371 = verf.f32 %v1030_v18  ;;  %v1031_v61 = vmul.f32 0.70710677, %v898_v5  ;;  %v3362_v58 = vpop.eup %3361  ;;  %v1209_v60 = vmul.f32 %v1145_v15, %v4309_v29 }
 0x14d   : > { %v3071_v40 = vpack.c.bf16 %v4362_v31, %v4350_v13  ;;  %v4372_v44 = vmul.f32 0.5, %v892_v57  ;;  %3373 = verf.f32 %v1029_v19  ;;  %v1149_v35 = vadd.f32 1.0, %v3358_v25 }
 0x14e   : > { %v3103_v59 = vpack.c.bf16 %v4367_v63, %v4360_v14  ;;  %v1151_v30 = vadd.f32 1.0, %v3360_v28  ;;  %3375 = verf.f32 %v1031_v61  ;;  %v1032_v17 = vmul.f32 0.70710677, %v4365_v3 }
 0x14f   : > { %v4378_v55 = vadd.f32 %v4225_v54, %v534_v20  ;;  %v4381_v29 = vadd.f32 %v4227_v10, %v534_v20  ;;  %v4384_v24 = vadd.f32 %v4236_v52, %v534_v20  ;;  %v1152_v1 = vadd.f32 1.0, %v3362_v58 }
 0x150   : > { %v3364_v57 = vpop.eup %3363  ;;  %v3065_v33 = vpack.c.bf16 %v4333_v41, %v4314_v43  ;;  %v3097_v62 = vpack.c.bf16 %v4340_v7, %v4326_v56  ;;  %v4391_v32 = vadd.f32 %v4246_v2, %v539_v48  ;;  %v1211_v54 = vmul.f32 %v1147_v42, %v4318_v38 }
 0x151   : > { %v3366_v21 = vpop.eup %3365  ;;  %v1154_v15 = vadd.f32 1.0, %v3364_v57  ;;  %v964_v10 = vmul.f32 0.5, %v735_v26  ;;  %v1034_v37 = vmul.f32 0.70710677, %v4378_v55  ;;  %v1213_v52 = vmul.f32 %v1149_v35, %v4330_v16 }
 0x152   : > { %v966_v11 = vmul.f32 0.5, %v896_v0  ;;  %3377 = verf.f32 %v1032_v17  ;;  %v1033_v12 = vmul.f32 0.70710677, %v4381_v29  ;;  %3066 = vmatprep.subr.bf16.mxu0 %v3065_v33  ;;  %3098 = vmatprep.subr.bf16.mxu1 %v3097_v62  ;;  %v1215_v43 = vmul.f32 %v1151_v30, %v4335_v36 }
 0x153   : > { %v965_v56 = vmul.f32 0.5, %v737_v9  ;;  %v967_v2 = vmul.f32 0.5, %v898_v5  ;;  %v1035_v41 = vmul.f32 0.70710677, %v4384_v24  ;;  %3068 = vmatpush1.bf16.msra.mxu0 %v3067_v27  ;;  %3100 = vmatpush1.bf16.msra.mxu1 %v3099_v53  ;;  %v3368_v38 = vpop.eup %3367  ;;  %v1216_v16 = vmul.f32 %v1152_v1, %v4337_v50  ;;  %v5490_v27 = vld [vmem:[#allocation4_spill] sm:$0xff] }
 0x154   : > { %v1153_v7 = vadd.f32 1.0, %v3366_v21  ;;  %3379 = verf.f32 %v1034_v37  ;;  %v1036_v26 = vmul.f32 0.70710677, %v4391_v32  ;;  %v1218_v0 = vmul.f32 %v1154_v15, %v962_v47 }
 0x155   : > { %v3370_v36 = vpop.eup %3369  ;;  %3381 = verf.f32 %v1033_v12  ;;  %v908_v9 = vadd.f32 %v4252_v8, %v539_v48  ;;  %v749_v5 = vadd.f32 %v4254_v39, %v539_v48  ;;  %v910_v49 = vadd.f32 %v5490_v27, %v539_v48  ;;  %v1236_v27 = vld [vmem:[%s5468_s4 + $0x20] sm:$0xff] }
 0x156   : > { %v3372_v46 = vpop.eup %3371  ;;  %v1156_v4 = vadd.f32 1.0, %v3370_v36  ;;  %3383 = verf.f32 %v1036_v26  ;;  %v3069_v34 = vpack.c.bf16 %v1213_v52, %v1209_v60  ;;  %v1155_v45 = vadd.f32 1.0, %v3368_v38 }
 0x157   : > { %v3374_v53 = vpop.eup %3373  ;;  %v1158_v50 = vadd.f32 1.0, %v3372_v46  ;;  %3385 = verf.f32 %v1035_v41  ;;  %v1038_v6 = vmul.f32 0.70710677, %v908_v9  ;;  %v1217_v25 = vmul.f32 %v1153_v7, %v4354_v51  ;;  %v1234_v46 = vld [vmem:[%s5468_s4 + $0x10] sm:$0xff] }
 0x158   : > { %v3376_v23 = vpop.eup %3375  ;;  %v1220_v47 = vmul.f32 %v1156_v4, %v964_v10  ;;  %v1157_v20 = vadd.f32 1.0, %v3374_v53  ;;  %v1037_v22 = vmul.f32 0.70710677, %v749_v5  ;;  %3070 = vmatprep.subr.bf16.mxu0 %v3069_v34  ;;  %v1039_v18 = vmul.f32 0.70710677, %v910_v49  ;;  %v1235_v4 = vld [vmem:[%s5468_s4 + $0x18] sm:$0xff] }
 0x159   : > { %v1222_v8 = vmul.f32 %v1158_v50, %v966_v11  ;;  %v1159_v39 = vadd.f32 1.0, %v3376_v23  ;;  %3387 = verf.f32 %v1038_v6  ;;  %3072 = vmatpush1.bf16.msra.mxu0 %v3071_v40  ;;  %v3101_v42 = vpack.c.bf16 %v1215_v43, %v1211_v54  ;;  %v1238_v34 = vld [vmem:[%s5468_s4 + $0x30] sm:$0xff]  ;;  %v1239_v53 = vld [vmem:[%s5468_s4 + $0x38] sm:$0xff]  ;;  %v1241_v50 = vld [vmem:[%s5468_s4 + $0x48] sm:$0xff] }
 0x15a   : > { %v3075_v19 = vpack.c.bf16 %v1220_v47, %v1216_v16  ;;  %v1221_v28 = vmul.f32 %v1157_v20, %v965_v56  ;;  %3389 = verf.f32 %v1037_v22  ;;  %v1219_v61 = vmul.f32 %v1155_v45, %v4372_v44  ;;  %v1240_v45 = vld [vmem:[%s5468_s4 + $0x40] sm:$0xff]  ;;  %v1242_v6 = vld [vmem:[%s5468_s4 + $0x50] sm:$0xff]  ;;  %v1243_v23 = vld [vmem:[%s5468_s4 + $0x58] sm:$0xff] }
 0x15b   : > { %v3107_v58 = vpack.c.bf16 %v1222_v8, %v1218_v0  ;;  %v1223_v51 = vmul.f32 %v1159_v39, %v967_v2  ;;  %3391 = verf.f32 %v1039_v18  ;;  %3102 = vmatprep.subr.bf16.mxu1 %v3101_v42  ;;  %v968_v44 = vmul.f32 0.5, %v4365_v3  ;;  %v1245_v47 = vld [vmem:[%s5468_s4 + $0x68] sm:$0xff]  ;;  %v1246_v20 = vld [vmem:[%s5468_s4 + $0x70] sm:$0xff]  ;;  %v1247_v22 = vld [vmem:[%s5468_s4 + $0x78] sm:$0xff]  ;;  %v1267_v8 = vpop.permute.xlu0 %1266 }
 0x15c   : > { %v3378_v60 = vpop.eup %3377  ;;  %v3073_v35 = vpack.c.bf16 %v1221_v28, %v1217_v25  ;;  %3104 = vmatpush1.bf16.msra.mxu1 %v3103_v59  ;;  %v972_v57 = vmul.f32 0.5, %v4391_v32  ;;  %v970_v14 = vmul.f32 0.5, %v4378_v55  ;;  %v969_v15 = vmul.f32 0.5, %v4381_v29  ;;  %v1244_v25 = vld [vmem:[%s5468_s4 + $0x60] sm:$0xff] }
 0x15d   : > { %v3105_v30 = vpack.c.bf16 %v1223_v51, %v1219_v61  ;;  %v1160_v31 = vadd.f32 1.0, %v3378_v60  ;;  %v974_v37 = vmul.f32 0.5, %v908_v9  ;;  %v971_v3 = vmul.f32 0.5, %v4384_v24  ;;  %v1232_v24 = vld [vmem:[%s5468_s4] sm:$0xff] }
 0x15e   : > { %v3380_v48 = vpop.eup %3379  ;;  %3074 = vmatprep.subr.bf16.mxu0 %v3073_v35  ;;  %v973_v32 = vmul.f32 0.5, %v749_v5  ;;  %v975_v41 = vmul.f32 0.5, %v910_v49  ;;  %v5491_v9 = vmov 0.0   ;;  %v1233_v5 = vld [vmem:[%s5468_s4 + $0x8] sm:$0xff]  ;;  %v1272_v35 = vpop.permute.xlu1 %1271 }
 0x15f   : > { %v3382_v13 = vpop.eup %3381  ;;  %3106 = vmatprep.subr.bf16.mxu1 %v3105_v30  ;;  %3076 = vmatpush1.bf16.msra.mxu0 %v3075_v19  ;;  %v1162_v33 = vadd.f32 1.0, %v3380_v48  ;;  %v1224_v21 = vmul.f32 %v1160_v31, %v968_v44  ;;  %v1237_v49 = vld [vmem:[%s5468_s4 + $0x28] sm:$0xff] }
 0x160   : > { %v3384_v40 = vpop.eup %3383  ;;  %3108 = vmatpush1.bf16.msra.mxu1 %v3107_v58  ;;  %v1161_v63 = vadd.f32 1.0, %v3382_v13 }
 0x161   : > { %v3386_v17 = vpop.eup %3385  ;;  %v1164_v1 = vadd.f32 1.0, %v3384_v40  ;;  %v1226_v56 = vmul.f32 %v1162_v33, %v970_v14  ;;  %v1277_v14 = vpop.permute.xlu0 %1276 }
 0x162   : > { %v1163_v10 = vadd.f32 1.0, %v3386_v17  ;;  %v1225_v16 = vmul.f32 %v1161_v63, %v969_v15 }
 0x163   : > { %v3388_v62 = vpop.eup %3387  ;;  %v1228_v59 = vmul.f32 %v1164_v1, %v972_v57 }
 0x164   : > { %v3390_v54 = vpop.eup %3389  ;;  %v1166_v52 = vadd.f32 1.0, %v3388_v62  ;;  %v1227_v7 = vmul.f32 %v1163_v10, %v971_v3 }
 0x165   : > { %v3392_v11 = vpop.eup %3391  ;;  %v3079_v12 = vpack.c.bf16 %v1228_v59, %v1224_v21  ;;  %v1165_v43 = vadd.f32 1.0, %v3390_v54 }
 0x166   : > { %v1230_v2 = vmul.f32 %v1166_v52, %v974_v37  ;;  %v1167_v38 = vadd.f32 1.0, %v3392_v11 }
 0x167   : > { %v1229_v55 = vmul.f32 %v1165_v43, %v973_v32 }
 0x168   : > { %v3111_v26 = vpack.c.bf16 %v1230_v2, %v1226_v56  ;;  %v1231_v36 = vmul.f32 %v1167_v38, %v975_v41 }
 0x169   : > { %v3077_v0 = vpack.c.bf16 %v1229_v55, %v1225_v16  ;;  %v1282_v55 = vpop.permute.xlu1 %1281 }
 0x16a   : > { %v3109_v29 = vpack.c.bf16 %v1231_v36, %v1227_v7 }
 0x16b   : > { %3078 = vmatprep.subr.bf16.mxu0 %v3077_v0 }
 0x16c   : > { %3110 = vmatprep.subr.bf16.mxu1 %v3109_v29  ;;  %3080 = vmatpush1.bf16.msra.mxu0 %v3079_v12 }
 0x16d   : > { %3112 = vmatpush1.bf16.msra.mxu1 %v3111_v26 }
 0x16f   : > { %1409 = vmatmul.mubr.f32.vlgmr.msra.gmra.mrb[32].mxu0 %v1232_v24 }
 0x170   : > { %1570 = vmatmul.mubr.f32.vlgmr.msra.gmra.mrb[32].mxu1 %v1232_v24  ;;  %1414 = vmatprep.mubr.f32.mxu0 %v5491_v9 }
 0x171   : > { %1575 = vmatprep.mubr.f32.mxu1 %v5491_v9 }
 0x173   : > { %1415 = vmatmul.mubr.f32.gmra.mrb[34].mxu0 %v1233_v5 }
 0x174   : > { %1576 = vmatmul.mubr.f32.gmra.mrb[34].mxu1 %v1233_v5  ;;  %1420 = vmatprep.mubr.f32.mxu0 %v5491_v9 }
 0x175   : > { %1581 = vmatprep.mubr.f32.mxu1 %v5491_v9 }
 0x177   : > { %1421 = vmatmul.mubr.f32.gmra.mrb[36].mxu0 %v1234_v46 }
 0x178   : > { %1582 = vmatmul.mubr.f32.gmra.mrb[36].mxu1 %v1234_v46  ;;  %1426 = vmatprep.mubr.f32.mxu0 %v5491_v9 }
 0x179   : > { %1587 = vmatprep.mubr.f32.mxu1 %v5491_v9 }
 0x17b   : > { %1427 = vmatmul.mubr.f32.gmra.mrb[38].mxu0 %v1235_v4 }
 0x17c   : > { %1588 = vmatmul.mubr.f32.gmra.mrb[38].mxu1 %v1235_v4  ;;  %1432 = vmatprep.mubr.f32.mxu0 %v5491_v9 }
 0x17d   : > { %1593 = vmatprep.mubr.f32.mxu1 %v5491_v9 }
 0x17f   : > { %1433 = vmatmul.mubr.f32.gmra.mrb[40].mxu0 %v1236_v27 }
 0x180   : > { %1594 = vmatmul.mubr.f32.gmra.mrb[40].mxu1 %v1236_v27  ;;  %1438 = vmatprep.mubr.f32.mxu0 %v5491_v9 }
 0x181   : > { %1599 = vmatprep.mubr.f32.mxu1 %v5491_v9 }
 0x183   : > { %1439 = vmatmul.mubr.f32.gmra.mrb[42].mxu0 %v1237_v49 }
 0x184   : > { %1600 = vmatmul.mubr.f32.gmra.mrb[42].mxu1 %v1237_v49  ;;  %1444 = vmatprep.mubr.f32.mxu0 %v5491_v9 }
 0x185   : > { %1605 = vmatprep.mubr.f32.mxu1 %v5491_v9 }
 0x187   : > { %1445 = vmatmul.mubr.f32.gmra.mrb[44].mxu0 %v1238_v34 }
 0x188   : > { %1606 = vmatmul.mubr.f32.gmra.mrb[44].mxu1 %v1238_v34  ;;  %1450 = vmatprep.mubr.f32.mxu0 %v5491_v9 }
 0x189   : > { %1611 = vmatprep.mubr.f32.mxu1 %v5491_v9 }
 0x18b   : > { %1451 = vmatmul.mubr.f32.gmra.mrb[46].mxu0 %v1239_v53 }
 0x18c   : > { %1612 = vmatmul.mubr.f32.gmra.mrb[46].mxu1 %v1239_v53  ;;  %1456 = vmatprep.mubr.f32.mxu0 %v5491_v9 }
 0x18d   : > { %1617 = vmatprep.mubr.f32.mxu1 %v5491_v9 }
 0x18f   : > { %1457 = vmatmul.mubr.f32.gmra.mrb[48].mxu0 %v1240_v45 }
 0x190   : > { %1618 = vmatmul.mubr.f32.gmra.mrb[48].mxu1 %v1240_v45  ;;  %1462 = vmatprep.mubr.f32.mxu0 %v5491_v9 }
 0x191   : > { %1623 = vmatprep.mubr.f32.mxu1 %v5491_v9 }
 0x193   : > { %1463 = vmatmul.mubr.f32.gmra.mrb[50].mxu0 %v1241_v50 }
 0x194   : > { %1624 = vmatmul.mubr.f32.gmra.mrb[50].mxu1 %v1241_v50  ;;  %1468 = vmatprep.mubr.f32.mxu0 %v5491_v9 }
 0x195   : > { %1629 = vmatprep.mubr.f32.mxu1 %v5491_v9 }
 0x197   : > { %1469 = vmatmul.mubr.f32.gmra.mrb[52].mxu0 %v1242_v6 }
 0x198   : > { %1630 = vmatmul.mubr.f32.gmra.mrb[52].mxu1 %v1242_v6  ;;  %1474 = vmatprep.mubr.f32.mxu0 %v5491_v9 }
 0x199   : > { %1635 = vmatprep.mubr.f32.mxu1 %v5491_v9 }
 0x19b   : > { %1475 = vmatmul.mubr.f32.gmra.mrb[54].mxu0 %v1243_v23 }
 0x19c   : > { %1636 = vmatmul.mubr.f32.gmra.mrb[54].mxu1 %v1243_v23  ;;  %1480 = vmatprep.mubr.f32.mxu0 %v5491_v9 }
 0x19d   : > { %1641 = vmatprep.mubr.f32.mxu1 %v5491_v9 }
 0x19f   : > { %1481 = vmatmul.mubr.f32.gmra.mrb[56].mxu0 %v1244_v25 }
 0x1a0   : > { %1642 = vmatmul.mubr.f32.gmra.mrb[56].mxu1 %v1244_v25  ;;  %1486 = vmatprep.mubr.f32.mxu0 %v5491_v9 }
 0x1a1   : > { %1647 = vmatprep.mubr.f32.mxu1 %v5491_v9 }
 0x1a3   : > { %1487 = vmatmul.mubr.f32.gmra.mrb[58].mxu0 %v1245_v47 }
 0x1a4   : > { %1648 = vmatmul.mubr.f32.gmra.mrb[58].mxu1 %v1245_v47  ;;  %1492 = vmatprep.mubr.f32.mxu0 %v5491_v9 }
 0x1a5   : > { %1653 = vmatprep.mubr.f32.mxu1 %v5491_v9 }
 0x1a7   : > { %1493 = vmatmul.mubr.f32.gmra.mrb[60].mxu0 %v1246_v20 }
 0x1a8   : > { %1654 = vmatmul.mubr.f32.gmra.mrb[60].mxu1 %v1246_v20  ;;  %1498 = vmatprep.mubr.f32.mxu0 %v5491_v9 }
 0x1a9   : > { %1659 = vmatprep.mubr.f32.mxu1 %v5491_v9 }
 0x1ab   : > { %1499 = vmatmul.mubr.f32.gmra.mrb[62].mxu0 %v1247_v22 }
 0x1ac   : > { %1660 = vmatmul.mubr.f32.gmra.mrb[62].mxu1 %v1247_v22  ;;  %2162 = vmatprep.mubr.f32.mxu0 %v5491_v9 }
 0x1ad   : > { %2323 = vmatprep.mubr.f32.mxu1 %v5491_v9 }
 0x242   : > { %v1410_v39 = vpop.f32.mrb[32].mxu0 }
 0x243   : > { %v1411_v18 = vadd.f32 %v1410_v39, %v1267_v8  ;;  %v1571_v19 = vpop.f32.mrb[32].mxu1  ;;  %v1412_v28 = vpop.f32.mrb[33].mxu0 }
 0x244   : > { %v1572_v42 = vadd.f32 %v1571_v19, %v1267_v8  ;;  %v1413_v61 = vadd.f32 %v1412_v28, %v1267_v8  ;;  %v1573_v58 = vpop.f32.mrb[33].mxu1 }
 0x245   : > { %v1730_v51 = vmul.f32 0.70710677, %v1411_v18  ;;  %v1574_v60 = vadd.f32 %v1573_v58, %v1267_v8  ;;  %v1666_v12 = vmul.f32 0.5, %v1411_v18 }
 0x246   : > { %v1732_v30 = vmul.f32 0.70710677, %v1572_v42  ;;  %v1731_v48 = vmul.f32 0.70710677, %v1413_v61  ;;  %v1416_v31 = vpop.f32.mrb[34].mxu0  ;;  %v1668_v7 = vmul.f32 0.5, %v1572_v42 }
 0x247   : > { %3393 = verf.f32 %v1730_v51  ;;  %v1733_v13 = vmul.f32 0.70710677, %v1574_v60  ;;  %v1577_v40 = vpop.f32.mrb[34].mxu1  ;;  %v1417_v17 = vadd.f32 %v1416_v31, %v1272_v35  ;;  %v1418_v57 = vpop.f32.mrb[35].mxu0  ;;  %v4503_v26 = vmul.f32 0.5, %v1413_v61 }
 0x248   : > { %3395 = verf.f32 %v1732_v30  ;;  %v1578_v44 = vadd.f32 %v1577_v40, %v1272_v35  ;;  %v1579_v1 = vpop.f32.mrb[35].mxu1  ;;  %v1419_v33 = vadd.f32 %v1418_v57, %v1272_v35  ;;  %v4505_v24 = vmul.f32 0.5, %v1574_v60  ;;  %v1287_v51 = vpop.permute.xlu0 %1286 }
 0x249   : > { %3397 = verf.f32 %v1731_v48  ;;  %v1734_v62 = vmul.f32 0.70710677, %v1417_v17  ;;  %v1580_v54 = vadd.f32 %v1579_v1, %v1272_v35  ;;  %v1670_v27 = vmul.f32 0.5, %v1417_v17 }
 0x24a   : > { %v1422_v21 = vpop.f32.mrb[36].mxu0  ;;  %3399 = verf.f32 %v1733_v13  ;;  %v1736_v63 = vmul.f32 0.70710677, %v1578_v44  ;;  %v1735_v59 = vmul.f32 0.70710677, %v1419_v33  ;;  %v1672_v49 = vmul.f32 0.5, %v1578_v44 }
 0x24b   : > { %3401 = verf.f32 %v1734_v62  ;;  %v1423_v15 = vadd.f32 %v1422_v21, %v1277_v14  ;;  %v1583_v10 = vpop.f32.mrb[36].mxu1  ;;  %v1424_v37 = vpop.f32.mrb[37].mxu0  ;;  %v1737_v56 = vmul.f32 0.70710677, %v1580_v54  ;;  %v4507_v34 = vmul.f32 0.5, %v1419_v33 }
 0x24c   : > { %3403 = verf.f32 %v1736_v63  ;;  %v1584_v52 = vadd.f32 %v1583_v10, %v1277_v14  ;;  %v1425_v11 = vadd.f32 %v1424_v37, %v1277_v14  ;;  %v1585_v3 = vpop.f32.mrb[37].mxu1  ;;  %v4509_v8 = vmul.f32 0.5, %v1580_v54 }
 0x24d   : > { %v1738_v32 = vmul.f32 0.70710677, %v1423_v15  ;;  %3405 = verf.f32 %v1735_v59  ;;  %v1586_v41 = vadd.f32 %v1585_v3, %v1277_v14  ;;  %v4511_v42 = vmul.f32 0.5, %v1423_v15 }
 0x24e   : > { %v1428_v43 = vpop.f32.mrb[38].mxu0  ;;  %v1740_v2 = vmul.f32 0.70710677, %v1584_v52  ;;  %v1739_v36 = vmul.f32 0.70710677, %v1425_v11  ;;  %v4513_v61 = vmul.f32 0.5, %v1584_v52 }
 0x24f   : > { %v1589_v38 = vpop.f32.mrb[38].mxu1  ;;  %v1430_v16 = vpop.f32.mrb[39].mxu0  ;;  %3407 = verf.f32 %v1738_v32  ;;  %v1429_v5 = vadd.f32 %v1428_v43, %v1282_v55  ;;  %v1741_v50 = vmul.f32 0.70710677, %v1586_v41  ;;  %v4515_v60 = vmul.f32 0.5, %v1425_v11 }
 0x250   : > { %v1591_v0 = vpop.f32.mrb[39].mxu1  ;;  %3409 = verf.f32 %v1740_v2  ;;  %v1590_v46 = vadd.f32 %v1589_v38, %v1282_v55  ;;  %v1431_v53 = vadd.f32 %v1430_v16, %v1282_v55  ;;  %v4517_v35 = vmul.f32 0.5, %v1586_v41 }
 0x251   : > { %v3394_v29 = vpop.eup %3393  ;;  %3411 = verf.f32 %v1737_v56  ;;  %v1742_v6 = vmul.f32 0.70710677, %v1429_v5  ;;  %v1592_v23 = vadd.f32 %v1591_v0, %v1282_v55  ;;  %v1678_v43 = vmul.f32 0.5, %v1429_v5 }
 0x252   : > { %v3396_v4 = vpop.eup %3395  ;;  %v1434_v45 = vpop.f32.mrb[40].mxu0  ;;  %v1858_v22 = vadd.f32 1.0, %v3394_v29  ;;  %3413 = verf.f32 %v1739_v36  ;;  %v1744_v39 = vmul.f32 0.70710677, %v1590_v46  ;;  %v1743_v30 = vmul.f32 0.70710677, %v1431_v53 }
 0x253   : > { %v1595_v25 = vpop.f32.mrb[40].mxu1  ;;  %v1436_v47 = vpop.f32.mrb[41].mxu0  ;;  %v1860_v28 = vadd.f32 1.0, %v3396_v4  ;;  %3415 = verf.f32 %v1742_v6  ;;  %v1745_v40 = vmul.f32 0.70710677, %v1592_v23  ;;  %v1435_v17 = vadd.f32 %v1434_v45, %v1287_v51 }
 0x254   : > { %v3398_v20 = vpop.eup %3397  ;;  %v1597_v18 = vpop.f32.mrb[41].mxu1  ;;  %3417 = verf.f32 %v1744_v39  ;;  %v4519_v1 = vmul.f32 %v1858_v22, %v1666_v12  ;;  %v1596_v21 = vadd.f32 %v1595_v25, %v1287_v51  ;;  %v4529_v11 = vadd.f32 %v1436_v47, %v1287_v51 }
 0x255   : > { %v3400_v19 = vpop.eup %3399  ;;  %3419 = verf.f32 %v1741_v50  ;;  %v1859_v33 = vadd.f32 1.0, %v3398_v20  ;;  %v4523_v59 = vmul.f32 %v1860_v28, %v1668_v7  ;;  %v1746_v52 = vmul.f32 0.70710677, %v1435_v17 }
 0x256   : > { %v3402_v58 = vpop.eup %3401  ;;  %v1440_v48 = vpop.f32.mrb[42].mxu0  ;;  %v1861_v54 = vadd.f32 1.0, %v3400_v19  ;;  %3421 = verf.f32 %v1743_v30  ;;  %v1680_v56 = vmul.f32 0.5, %v1590_v46  ;;  %v1748_v2 = vmul.f32 0.70710677, %v1596_v21 }
 0x257   : > { %v3404_v13 = vpop.eup %3403  ;;  %v1862_v31 = vadd.f32 1.0, %v3402_v58  ;;  %v1601_v44 = vpop.f32.mrb[42].mxu1  ;;  %3423 = verf.f32 %v1745_v40  ;;  %v4540_v16 = vmul.f32 %v1859_v33, %v4503_v26  ;;  %v4544_v36 = vmul.f32 0.5, %v1431_v53 }
 0x258   : > { %v1442_v57 = vpop.f32.mrb[43].mxu0  ;;  %v1864_v62 = vadd.f32 1.0, %v3404_v13  ;;  %v4521_v14 = vpop.f32.mrb[43].mxu1  ;;  %v4549_v5 = vmul.f32 %v1861_v54, %v4505_v24  ;;  %v4551_v4 = vmul.f32 0.5, %v1592_v23  ;;  %3425 = verf.f32 %v1746_v52 }
 0x259   : > { %v3406_v63 = vpop.eup %3405  ;;  %v4525_v15 = vmul.f32 %v1862_v31, %v1670_v27  ;;  %v4553_v45 = vmul.f32 0.5, %v1435_v17  ;;  %v1747_v50 = vmul.f32 0.70710677, %v4529_v11  ;;  %v1598_v6 = vadd.f32 %v1597_v18, %v1287_v51  ;;  %v1297_v52 = vpop.permute.xlu0 %1296 }
 0x25a   : > { %v3408_v10 = vpop.eup %3407  ;;  %v4527_v37 = vmul.f32 %v1864_v62, %v1672_v49  ;;  %v4531_v3 = vpop.f32.mrb[44].mxu0  ;;  %v1863_v7 = vadd.f32 1.0, %v3406_v63  ;;  %3427 = verf.f32 %v1748_v2  ;;  %v4565_v30 = vmul.f32 0.5, %v1596_v21 }
 0x25b   : > { %v3410_v12 = vpop.eup %3409  ;;  %v3115_v32 = vpack.c.bf16 %v4525_v15, %v4519_v1  ;;  %v4535_v41 = vpop.f32.mrb[44].mxu1  ;;  %v1866_v46 = vadd.f32 1.0, %v3408_v10  ;;  %v1749_v31 = vmul.f32 0.70710677, %v1598_v6  ;;  %3429 = verf.f32 %v1747_v50 }
 0x25c   : > { %v4537_v38 = vpop.f32.mrb[45].mxu0  ;;  %v3147_v55 = vpack.c.bf16 %v4527_v37, %v4523_v59  ;;  %v4546_v0 = vpop.f32.mrb[45].mxu1  ;;  %v1868_v26 = vadd.f32 1.0, %v3410_v12  ;;  %v4563_v19 = vmul.f32 %v1863_v7, %v4507_v34 }
 0x25d   : > { %v3412_v29 = vpop.eup %3411  ;;  %v1292_v49 = vpop.permute.xlu1 %1291  ;;  %v4570_v13 = vmul.f32 %v1866_v46, %v4511_v42  ;;  %3431 = verf.f32 %v1749_v31 }
 0x25e   : > { %v3414_v27 = vpop.eup %3413  ;;  %v4556_v53 = vpop.f32.mrb[46].mxu0  ;;  %v1441_v47 = vadd.f32 %v1440_v48, %v1292_v49  ;;  %v1602_v20 = vadd.f32 %v1601_v44, %v1292_v49  ;;  %v1443_v24 = vadd.f32 %v1442_v57, %v1292_v49  ;;  %v1865_v28 = vadd.f32 1.0, %v3412_v29 }
 0x25f   : > { %v3416_v25 = vpop.eup %3415  ;;  %v4558_v22 = vpop.f32.mrb[46].mxu1  ;;  %v1867_v17 = vadd.f32 1.0, %v3414_v27  ;;  %v4577_v62 = vmul.f32 %v1868_v26, %v4513_v61  ;;  %v1604_v2 = vadd.f32 %v4521_v14, %v1292_v49  ;;  %v1447_v29 = vadd.f32 %v4531_v3, %v1297_v52 }
 0x260   : > { %v4560_v23 = vpop.f32.mrb[47].mxu0  ;;  %v3418_v39 = vpop.eup %3417  ;;  %v1870_v58 = vadd.f32 1.0, %v3416_v25  ;;  %v1750_v40 = vmul.f32 0.70710677, %v1441_v47  ;;  %v1752_v57 = vmul.f32 0.70710677, %v1602_v20  ;;  %v1929_v61 = vmul.f32 %v1865_v28, %v4509_v8 }
 0x261   : > { %v4567_v18 = vpop.f32.mrb[47].mxu1  ;;  %v3420_v51 = vpop.eup %3419  ;;  %v1872_v48 = vadd.f32 1.0, %v3418_v39  ;;  %v1751_v63 = vmul.f32 0.70710677, %v1443_v24  ;;  %v4595_v46 = vmul.f32 %v1867_v17, %v4515_v60  ;;  %v4598_v27 = vmul.f32 0.5, %v4529_v11 }
 0x262   : > { %v4572_v44 = vmul.f32 %v1870_v58, %v1678_v43  ;;  %v4574_v34 = vpop.f32.mrb[48].mxu0  ;;  %v3422_v33 = vpop.eup %3421  ;;  %v1869_v12 = vadd.f32 1.0, %v3420_v51  ;;  %3433 = verf.f32 %v1750_v40  ;;  %v1753_v26 = vmul.f32 0.70710677, %v1604_v2 }
 0x263   : > { %v4579_v21 = vmul.f32 %v1872_v48, %v1680_v56  ;;  %v4581_v42 = vpop.f32.mrb[48].mxu1  ;;  %v4583_v54 = vpop.f32.mrb[49].mxu0  ;;  %3435 = verf.f32 %v1752_v57  ;;  %v1871_v49 = vadd.f32 1.0, %v3422_v33  ;;  %v1754_v8 = vmul.f32 0.70710677, %v1447_v29 }
 0x264   : > { %v3424_v10 = vpop.eup %3423  ;;  %v4588_v7 = vpop.f32.mrb[49].mxu1  ;;  %3437 = verf.f32 %v1751_v63  ;;  %v1608_v39 = vadd.f32 %v4535_v41, %v1297_v52  ;;  %v4608_v60 = vmul.f32 %v1869_v12, %v4517_v35  ;;  %v4610_v3 = vmul.f32 0.5, %v1598_v6 }
 0x265   : > { %v3426_v14 = vpop.eup %3425  ;;  %v1873_v25 = vadd.f32 1.0, %v3424_v10  ;;  %3439 = verf.f32 %v1753_v26  ;;  %v1449_v11 = vadd.f32 %v4537_v38, %v1297_v52  ;;  %v1686_v31 = vmul.f32 0.5, %v1441_v47  ;;  %v1302_v57 = vpop.permute.xlu1 %1301 }
 0x266   : > { %v4600_v50 = vpop.f32.mrb[50].mxu0  ;;  %v3428_v48 = vpop.eup %3427  ;;  %v1688_v40 = vmul.f32 0.5, %v1602_v20  ;;  %v4615_v17 = vmul.f32 0.5, %v1443_v24  ;;  %v1756_v41 = vmul.f32 0.70710677, %v1608_v39  ;;  %v1874_v33 = vadd.f32 1.0, %v3426_v14 }
 0x267   : > { %v4603_v28 = vpop.f32.mrb[50].mxu1  ;;  %v4605_v58 = vpop.f32.mrb[51].mxu0  ;;  %3441 = verf.f32 %v1754_v8  ;;  %v1755_v63 = vmul.f32 0.70710677, %v1449_v11  ;;  %v4618_v35 = vadd.f32 %v4546_v0, %v1297_v52  ;;  %v4623_v10 = vmul.f32 %v1871_v49, %v4544_v36 }
 0x268   : > { %v4613_v51 = vpop.f32.mrb[51].mxu1  ;;  %v4626_v38 = vmul.f32 %v1873_v25, %v4551_v4  ;;  %v4628_v47 = vmul.f32 0.5, %v1604_v2  ;;  %v3113_v20 = vpack.c.bf16 %v4563_v19, %v4540_v16  ;;  %v3430_v26 = vpop.eup %3429  ;;  %v1876_v0 = vadd.f32 1.0, %v3428_v48 }
 0x269   : > { %v3145_v52 = vpack.c.bf16 %v1929_v61, %v4549_v5  ;;  %v1453_v14 = vadd.f32 %v4556_v53, %v1302_v57  ;;  %v1614_v36 = vadd.f32 %v4558_v22, %v1302_v57  ;;  %v3432_v4 = vpop.eup %3431  ;;  %v4641_v2 = vmul.f32 0.5, %v1447_v29 }
 0x26a   : > { %v4620_v6 = vpop.f32.mrb[52].mxu0  ;;  %3443 = verf.f32 %v1756_v41  ;;  %3114 = vmatprep.subr.bf16.mxu0 %v3113_v20  ;;  %v1455_v16 = vadd.f32 %v4560_v23, %v1302_v57  ;;  %v1616_v19 = vadd.f32 %v4567_v18, %v1302_v57  ;;  %v4646_v8 = vmul.f32 %v1874_v33, %v4553_v45 }
 0x26b   : > { %v4632_v24 = vpop.f32.mrb[52].mxu1  ;;  %v4634_v12 = vpop.f32.mrb[53].mxu0  ;;  %3445 = verf.f32 %v1755_v63  ;;  %v1757_v5 = vmul.f32 0.70710677, %v4618_v35  ;;  %3146 = vmatprep.subr.bf16.mxu1 %v3145_v52  ;;  %v1758_v53 = vmul.f32 0.70710677, %v1453_v14  ;;  %3116 = vmatpush1.bf16.msra.mxu0 %v3115_v32  ;;  %v4660_v41 = vmul.f32 %v1876_v0, %v4565_v30 }
 0x26c   : > { %v4639_v49 = vpop.f32.mrb[53].mxu1  ;;  %v3434_v25 = vpop.eup %3433  ;;  %v4654_v23 = vmul.f32 0.5, %v1608_v39  ;;  %v1760_v18 = vmul.f32 0.70710677, %v1614_v36  ;;  %3148 = vmatpush1.bf16.msra.mxu1 %v3147_v55  ;;  %v1759_v45 = vmul.f32 0.70710677, %v1455_v16 }
 0x26d   : > { %v3436_v61 = vpop.eup %3435  ;;  %v1878_v29 = vadd.f32 1.0, %v3434_v25  ;;  %v4662_v33 = vmul.f32 0.5, %v1449_v11  ;;  %3447 = verf.f32 %v1758_v53  ;;  %v1307_v32 = vpop.permute.xlu0 %1306  ;;  %v1875_v39 = vadd.f32 1.0, %v3430_v26 }
 0x26e   : > { %v4652_v22 = vpop.f32.mrb[54].mxu0  ;;  %v3438_v48 = vpop.eup %3437  ;;  %v1880_v57 = vadd.f32 1.0, %v3436_v61  ;;  %3449 = verf.f32 %v1760_v18  ;;  %v1761_v59 = vmul.f32 0.70710677, %v1616_v19  ;;  %v1459_v30 = vadd.f32 %v4574_v34, %v1307_v32 }
 0x26f   : > { %v4664_v1 = vpop.f32.mrb[54].mxu1  ;;  %v4666_v15 = vpop.f32.mrb[55].mxu0  ;;  %v4668_v63 = vmul.f32 %v1878_v29, %v1686_v31  ;;  %3451 = verf.f32 %v1757_v5  ;;  %v1620_v11 = vadd.f32 %v4581_v42, %v1307_v32  ;;  %v1877_v52 = vadd.f32 1.0, %v3432_v4 }
 0x270   : > { %v4670_v37 = vpop.f32.mrb[55].mxu1  ;;  %v3440_v55 = vpop.eup %3439  ;;  %v4672_v20 = vmul.f32 %v1880_v57, %v1688_v40  ;;  %v1879_v31 = vadd.f32 1.0, %v3438_v48  ;;  %3453 = verf.f32 %v1759_v45  ;;  %v1762_v34 = vmul.f32 0.70710677, %v1459_v30 }
 0x271   : > { %v3442_v61 = vpop.eup %3441  ;;  %v1881_v5 = vadd.f32 1.0, %v3440_v55  ;;  %3455 = verf.f32 %v1761_v59  ;;  %v4689_v4 = vmul.f32 %v1875_v39, %v4598_v27  ;;  %v4692_v29 = vmul.f32 0.5, %v4618_v35 }
 0x272   : > { %v4676_v0 = vpop.f32.mrb[56].mxu0  ;;  %v1764_v18 = vmul.f32 0.70710677, %v1620_v11  ;;  %v1461_v45 = vadd.f32 %v4583_v54, %v1307_v32  ;;  %v1694_v48 = vmul.f32 0.5, %v1453_v14  ;;  %v1696_v57 = vmul.f32 0.5, %v1614_v36 }
 0x273   : > { %v4680_v25 = vpop.f32.mrb[56].mxu1  ;;  %v4682_v53 = vpop.f32.mrb[57].mxu0  ;;  %3457 = verf.f32 %v1762_v34  ;;  %v4696_v26 = vadd.f32 %v4588_v7, %v1307_v32  ;;  %v4701_v40 = vmul.f32 %v1877_v52, %v4610_v3  ;;  %v1882_v27 = vadd.f32 1.0, %v3442_v61 }
 0x274   : > { %v4686_v42 = vpop.f32.mrb[57].mxu1  ;;  %v3444_v59 = vpop.eup %3443  ;;  %v4703_v39 = vmul.f32 0.5, %v1455_v16  ;;  %v4705_v35 = vmul.f32 0.5, %v1616_v19  ;;  %v4712_v36 = vmul.f32 %v1879_v31, %v4615_v17  ;;  %v4715_v7 = vmul.f32 %v1881_v5, %v4628_v47 }
 0x275   : > { %v3446_v14 = vpop.eup %3445  ;;  %v4717_v32 = vmul.f32 0.5, %v1459_v30  ;;  %v1763_v3 = vmul.f32 0.70710677, %v1461_v45  ;;  %v1312_v16 = vpop.permute.xlu1 %1311  ;;  %3459 = verf.f32 %v1764_v18  ;;  %v1765_v19 = vmul.f32 0.70710677, %v4696_v26 }
 0x276   : > { %v4698_v55 = vpop.f32.mrb[58].mxu0  ;;  %v3117_v61 = vpack.c.bf16 %v4623_v10, %v4595_v46  ;;  %v3149_v34 = vpack.c.bf16 %v4626_v38, %v4608_v60  ;;  %v1884_v31 = vadd.f32 1.0, %v3444_v59  ;;  %v4726_v43 = vmul.f32 0.5, %v1620_v11 }
 0x277   : > { %v4707_v56 = vpop.f32.mrb[58].mxu1  ;;  %v4709_v54 = vpop.f32.mrb[59].mxu0  ;;  %v1465_v47 = vadd.f32 %v4600_v50, %v1312_v16  ;;  %v1626_v30 = vadd.f32 %v4603_v28, %v1312_v16  ;;  %v4733_v18 = vmul.f32 %v1882_v27, %v4641_v2  ;;  %v1467_v46 = vadd.f32 %v4605_v58, %v1312_v16 }
 0x278   : > { %5492 = vst [vmem:[#allocation2_spill] sm:$0xff] %v4709_v54  ;;  %v4719_v52 = vpop.f32.mrb[59].mxu1  ;;  %v3448_v17 = vpop.eup %3447  ;;  %3118 = vmatprep.subr.bf16.mxu0 %v3117_v61  ;;  %3150 = vmatprep.subr.bf16.mxu1 %v3149_v34  ;;  %3461 = verf.f32 %v1763_v3  ;;  %v5494_v59 = vpack.c.bf16 %v4572_v44, %v4570_v13  ;;  %v5495_v2 = vpack.c.bf16 %v4579_v21, %v4577_v62 }
 0x279   : > { %5493 = vst [vmem:[#allocation3_spill] sm:$0xff] %v4719_v52  ;;  %v3450_v9 = vpop.eup %3449  ;;  %v1883_v52 = vadd.f32 1.0, %v3446_v14  ;;  %v1886_v54 = vadd.f32 1.0, %v3448_v17  ;;  %v1317_v50 = vpop.permute.xlu0 %1316  ;;  %v1766_v28 = vmul.f32 0.70710677, %v1465_v47  ;;  %v1628_v27 = vadd.f32 %v4613_v51, %v1312_v16 }
 0x27a   : > { %v4730_v5 = vpop.f32.mrb[60].mxu0  ;;  %v3452_v38 = vpop.eup %3451  ;;  %v1888_v11 = vadd.f32 1.0, %v3450_v9  ;;  %3120 = vmatpush1.bf16.msra.mxu0 %v5494_v59  ;;  %3152 = vmatpush1.bf16.msra.mxu1 %v5495_v2  ;;  %3463 = verf.f32 %v1765_v19  ;;  %v1768_v34 = vmul.f32 0.70710677, %v1626_v30  ;;  %v1471_v9 = vadd.f32 %v4620_v6, %v1317_v50 }
 0x27b   : > { %v4736_v60 = vpop.f32.mrb[60].mxu1  ;;  %v4738_v10 = vpop.f32.mrb[61].mxu0  ;;  %v4749_v61 = vmul.f32 %v1886_v54, %v1694_v48  ;;  %v4753_v17 = vmul.f32 %v1884_v31, %v4654_v23  ;;  %3465 = verf.f32 %v1766_v28  ;;  %v1767_v44 = vmul.f32 0.70710677, %v1467_v46 }
 0x27c   : > { %v4747_v58 = vpop.f32.mrb[61].mxu1  ;;  %v3454_v14 = vpop.eup %3453  ;;  %v4755_v13 = vmul.f32 %v1888_v11, %v1696_v57  ;;  %v1885_v21 = vadd.f32 1.0, %v3452_v38  ;;  %v4761_v48 = vmul.f32 0.5, %v1461_v45  ;;  %3467 = verf.f32 %v1768_v34 }
 0x27d   : > { %v3456_v3 = vpop.eup %3455  ;;  %v1887_v57 = vadd.f32 1.0, %v3454_v14  ;;  %v4770_v19 = vmul.f32 0.5, %v4696_v26  ;;  %v1769_v31 = vmul.f32 0.70710677, %v1628_v27  ;;  %3469 = verf.f32 %v1767_v44 }
 0x27e   : > { %v4757_v62 = vpop.f32.mrb[62].mxu0  ;;  %v3458_v16 = vpop.eup %3457  ;;  %v1889_v11 = vadd.f32 1.0, %v3456_v3  ;;  %v1770_v45 = vmul.f32 0.70710677, %v1471_v9  ;;  %v1632_v28 = vadd.f32 %v4632_v24, %v1317_v50  ;;  %v4776_v59 = vmul.f32 %v1883_v52, %v4662_v33 }
 0x27f   : > { %v4763_v54 = vpop.f32.mrb[62].mxu1  ;;  %v4765_v6 = vpop.f32.mrb[63].mxu0  ;;  %3471 = verf.f32 %v1769_v31  ;;  %v1473_v2 = vadd.f32 %v4634_v12, %v1317_v50  ;;  %v1634_v34 = vadd.f32 %v4639_v49, %v1317_v50  ;;  %v4781_v26 = vmul.f32 %v1885_v21, %v4692_v29 }
 0x280   : > { %v4772_v38 = vpop.f32.mrb[63].mxu1  ;;  %v3460_v14 = vpop.eup %3459  ;;  %v1890_v23 = vadd.f32 1.0, %v3458_v16  ;;  %v1702_v51 = vmul.f32 0.5, %v1465_v47  ;;  %v1704_v3 = vmul.f32 0.5, %v1626_v30  ;;  %v4783_v44 = vmul.f32 0.5, %v1467_v46 }
 0x281   : > { %5496 = vst [vmem:[#allocation4_spill] sm:$0xff] %v4772_v38  ;;  %v1772_v38 = vmul.f32 0.70710677, %v1632_v28  ;;  %3473 = verf.f32 %v1770_v45  ;;  %v1771_v24 = vmul.f32 0.70710677, %v1473_v2  ;;  %v4786_v33 = vmul.f32 %v1887_v57, %v4703_v39  ;;  %v1322_v29 = vpop.permute.xlu1 %1321 }
 0x282   : > { %v4789_v52 = vmul.f32 %v1889_v11, %v4705_v35  ;;  %v4791_v12 = vmul.f32 0.5, %v1628_v27  ;;  %v1773_v49 = vmul.f32 0.70710677, %v1634_v34  ;;  %v3462_v50 = vpop.eup %3461  ;;  %v1892_v21 = vadd.f32 1.0, %v3460_v14 }
 0x283   : > { %v4793_v16 = vmul.f32 0.5, %v1471_v9  ;;  %v3121_v47 = vpack.c.bf16 %v4712_v36, %v4689_v4  ;;  %v3153_v30 = vpack.c.bf16 %v4715_v7, %v4701_v40  ;;  %v4800_v39 = vmul.f32 %v1890_v23, %v4717_v32  ;;  %v1327_v7 = vpop.permute.xlu0 %1326 }
 0x284   : > { %v3464_v46 = vpop.eup %3463  ;;  %3475 = verf.f32 %v1772_v38  ;;  %v1477_v35 = vadd.f32 %v4652_v22, %v1322_v29  ;;  %v1638_v27 = vadd.f32 %v4664_v1, %v1322_v29  ;;  %v4804_v31 = vmul.f32 0.5, %v1632_v28 }
 0x285   : > { %v3466_v57 = vpop.eup %3465  ;;  %3477 = verf.f32 %v1771_v24  ;;  %3122 = vmatprep.subr.bf16.mxu0 %v3121_v47  ;;  %3154 = vmatprep.subr.bf16.mxu1 %v3153_v30  ;;  %v1479_v4 = vadd.f32 %v4666_v15, %v1322_v29  ;;  %v1640_v36 = vadd.f32 %v4670_v37, %v1322_v29  ;;  %v1891_v9 = vadd.f32 1.0, %v3462_v50 }
 0x286   : > { %v3468_v40 = vpop.eup %3467  ;;  %v1894_v32 = vadd.f32 1.0, %v3466_v57  ;;  %3479 = verf.f32 %v1773_v49  ;;  %v1774_v23 = vmul.f32 0.70710677, %v1477_v35  ;;  %v5497_v22 = vpack.c.bf16 %v4668_v63, %v4646_v8 }
 0x287   : > { %v5498_v1 = vpack.c.bf16 %v4672_v20, %v4660_v41  ;;  %v1896_v38 = vadd.f32 1.0, %v3468_v40  ;;  %v1776_v11 = vmul.f32 0.70710677, %v1638_v27  ;;  %v1775_v45 = vmul.f32 0.70710677, %v1479_v4  ;;  %v3470_v37 = vpop.eup %3469 }
 0x288   : > { %3124 = vmatpush1.bf16.msra.mxu0 %v5497_v22  ;;  %v1483_v15 = vadd.f32 %v4676_v0, %v1327_v7  ;;  %v4816_v28 = vmul.f32 %v1892_v21, %v4726_v43  ;;  %v4818_v14 = vmul.f32 %v1894_v32, %v1702_v51  ;;  %v4820_v24 = vmul.f32 0.5, %v1473_v2 }
 0x289   : > { %3156 = vmatpush1.bf16.msra.mxu1 %v5498_v1  ;;  %3481 = verf.f32 %v1774_v23  ;;  %v3472_v8 = vpop.eup %3471  ;;  %v1893_v63 = vadd.f32 1.0, %v3464_v46  ;;  %v4822_v49 = vmul.f32 %v1896_v38, %v1704_v3  ;;  %v1777_v41 = vmul.f32 0.70710677, %v1640_v36 }
 0x28a   : > { %3483 = verf.f32 %v1776_v11  ;;  %v4825_v20 = vmul.f32 %v1891_v9, %v4761_v48  ;;  %v3131_v0 = vpack.c.bf16 %v4818_v14, %v4800_v39  ;;  %v4829_v50 = vmul.f32 0.5, %v1634_v34 }
 0x28b   : > { %3485 = verf.f32 %v1775_v45  ;;  %v3474_v43 = vpop.eup %3473  ;;  %v3163_v51 = vpack.c.bf16 %v4822_v49, %v4816_v28  ;;  %v1895_v2 = vadd.f32 1.0, %v3470_v37  ;;  %v1778_v29 = vmul.f32 0.70710677, %v1483_v15  ;;  %v5500_v45 = vld [vmem:[#allocation2_spill] sm:$0xff]  ;;  %v5501_v37 = vld [vmem:[#allocation3_spill] sm:$0xff] }
 0x28c   : > { %3487 = verf.f32 %v1777_v41  ;;  %v1897_v3 = vadd.f32 1.0, %v3472_v8  ;;  %v1644_v21 = vadd.f32 %v4680_v25, %v1327_v7  ;;  %v1485_v47 = vadd.f32 %v4682_v53, %v1327_v7  ;;  %v1337_v41 = vpop.permute.xlu0 %1336 }
 0x28d   : > { %v1646_v48 = vadd.f32 %v4686_v42, %v1327_v7  ;;  %v4837_v30 = vmul.f32 %v1893_v63, %v4770_v19  ;;  %v1710_v34 = vmul.f32 0.5, %v1477_v35  ;;  %3489 = verf.f32 %v1778_v29  ;;  %v1332_v7 = vpop.permute.xlu1 %1331 }
 0x28e   : > { %v3125_v46 = vpack.c.bf16 %v4786_v33, %v4776_v59  ;;  %v3476_v57 = vpop.eup %3475  ;;  %v1898_v40 = vadd.f32 1.0, %v3474_v43  ;;  %v1712_v9 = vmul.f32 0.5, %v1638_v27  ;;  %v4841_v32 = vmul.f32 0.5, %v1479_v4 }
 0x28f   : > { %v1780_v23 = vmul.f32 0.70710677, %v1644_v21  ;;  %v3478_v22 = vpop.eup %3477  ;;  %v4844_v25 = vmul.f32 %v1895_v2, %v4783_v44  ;;  %v4846_v53 = vmul.f32 0.5, %v1640_v36  ;;  %v4848_v42 = vmul.f32 0.5, %v1483_v15 }
 0x290   : > { %v1779_v19 = vmul.f32 0.70710677, %v1485_v47  ;;  %3126 = vmatprep.subr.bf16.mxu0 %v3125_v46  ;;  %v3480_v35 = vpop.eup %3479  ;;  %v4851_v59 = vmul.f32 %v1897_v3, %v4791_v12  ;;  %v1781_v33 = vmul.f32 0.70710677, %v1646_v48  ;;  %v3157_v27 = vpack.c.bf16 %v4789_v52, %v4781_v26 }
 0x291   : > { %3491 = verf.f32 %v1780_v23  ;;  %v5499_v44 = vpack.c.bf16 %v4749_v61, %v4733_v18  ;;  %v1900_v4 = vadd.f32 1.0, %v3476_v57  ;;  %v1489_v36 = vadd.f32 %v4698_v55, %v1332_v7 }
 0x292   : > { %3493 = verf.f32 %v1779_v19  ;;  %v1650_v1 = vadd.f32 %v4707_v56, %v1332_v7  ;;  %v4861_v11 = vmul.f32 %v1898_v40, %v4793_v16  ;;  %v1899_v12 = vadd.f32 1.0, %v3478_v22  ;;  %3158 = vmatprep.subr.bf16.mxu1 %v3157_v27  ;;  %v1342_v19 = vpop.permute.xlu1 %1341 }
 0x293   : > { %3128 = vmatpush1.bf16.msra.mxu0 %v5499_v44  ;;  %v3482_v38 = vpop.eup %3481  ;;  %v1491_v15 = vadd.f32 %v5500_v45, %v1332_v7  ;;  %v1652_v26 = vadd.f32 %v5501_v37, %v1332_v7  ;;  %v1716_v18 = vmul.f32 0.5, %v1644_v21  ;;  %v4865_v61 = vmul.f32 0.5, %v1485_v47 }
 0x294   : > { %v3484_v52 = vpop.eup %3483  ;;  %v1902_v8 = vadd.f32 1.0, %v3482_v38  ;;  %v1782_v63 = vmul.f32 0.70710677, %v1489_v36  ;;  %v5502_v55 = vpack.c.bf16 %v4755_v13, %v4753_v17  ;;  %3495 = verf.f32 %v1781_v33 }
 0x295   : > { %v3486_v56 = vpop.eup %3485  ;;  %v1904_v16 = vadd.f32 1.0, %v3484_v52  ;;  %v1784_v43 = vmul.f32 0.70710677, %v1650_v1  ;;  %v1783_v2 = vmul.f32 0.70710677, %v1491_v15  ;;  %v4871_v3 = vmul.f32 %v1900_v4, %v4804_v31 }
 0x296   : > { %3160 = vmatpush1.bf16.msra.mxu1 %v5502_v55  ;;  %v3488_v29 = vpop.eup %3487  ;;  %v4873_v46 = vmul.f32 %v1902_v8, %v1710_v34  ;;  %3497 = verf.f32 %v1782_v63  ;;  %v4876_v21 = vadd.f32 %v4730_v5, %v1337_v41  ;;  %v1901_v47 = vadd.f32 1.0, %v3480_v35 }
 0x297   : > { %v4878_v57 = vmul.f32 %v1904_v16, %v1712_v9  ;;  %3499 = verf.f32 %v1784_v43  ;;  %v1785_v17 = vmul.f32 0.70710677, %v1652_v26  ;;  %v3490_v13 = vpop.eup %3489  ;;  %v1963_v40 = vmul.f32 %v1899_v12, %v4820_v24 }
 0x298   : > { %v3135_v23 = vpack.c.bf16 %v4873_v46, %v4861_v11  ;;  %v4883_v22 = vmul.f32 0.5, %v1646_v48  ;;  %3501 = verf.f32 %v1783_v2  ;;  %v1903_v34 = vadd.f32 1.0, %v3486_v56 }
 0x299   : > { %v3167_v31 = vpack.c.bf16 %v4878_v57, %v4871_v3  ;;  %v1905_v5 = vadd.f32 1.0, %v3488_v29  ;;  %3503 = verf.f32 %v1785_v17  ;;  %v1786_v9 = vmul.f32 0.70710677, %v4876_v21 }
 0x29a   : > { %v4889_v35 = vadd.f32 %v4736_v60, %v1337_v41  ;;  %v4892_v24 = vadd.f32 %v4738_v10, %v1337_v41  ;;  %v4895_v7 = vadd.f32 %v4747_v58, %v1337_v41  ;;  %v1906_v33 = vadd.f32 1.0, %v3490_v13 }
 0x29b   : > { %v3492_v48 = vpop.eup %3491  ;;  %v3129_v27 = vpack.c.bf16 %v4844_v25, %v4825_v20  ;;  %v3161_v44 = vpack.c.bf16 %v4851_v59, %v4837_v30  ;;  %v4902_v4 = vadd.f32 %v4757_v62, %v1342_v19  ;;  %v1965_v60 = vmul.f32 %v1901_v47, %v4829_v50 }
 0x29c   : > { %v3494_v38 = vpop.eup %3493  ;;  %v1908_v12 = vadd.f32 1.0, %v3492_v48  ;;  %v1718_v10 = vmul.f32 0.5, %v1489_v36  ;;  %v1788_v45 = vmul.f32 0.70710677, %v4889_v35  ;;  %v1967_v58 = vmul.f32 %v1903_v34, %v4841_v32 }
 0x29d   : > { %v1720_v37 = vmul.f32 0.5, %v1650_v1  ;;  %3505 = verf.f32 %v1786_v9  ;;  %v1787_v52 = vmul.f32 0.70710677, %v4892_v24  ;;  %3130 = vmatprep.subr.bf16.mxu0 %v3129_v27  ;;  %3162 = vmatprep.subr.bf16.mxu1 %v3161_v44  ;;  %v1969_v20 = vmul.f32 %v1905_v5, %v4846_v53 }
 0x29e   : > { %v1719_v30 = vmul.f32 0.5, %v1491_v15  ;;  %v1721_v62 = vmul.f32 0.5, %v1652_v26  ;;  %v1789_v25 = vmul.f32 0.70710677, %v4895_v7  ;;  %3132 = vmatpush1.bf16.msra.mxu0 %v3131_v0  ;;  %3164 = vmatpush1.bf16.msra.mxu1 %v3163_v51  ;;  %v3496_v50 = vpop.eup %3495  ;;  %v1970_v32 = vmul.f32 %v1906_v33, %v4848_v42  ;;  %v5503_v0 = vld [vmem:[#allocation4_spill] sm:$0xff] }
 0x29f   : > { %v1907_v59 = vadd.f32 1.0, %v3494_v38  ;;  %3507 = verf.f32 %v1788_v45  ;;  %v1790_v36 = vmul.f32 0.70710677, %v4902_v4  ;;  %v1972_v1 = vmul.f32 %v1908_v12, %v1716_v18 }
 0x2a0   : > { %v3498_v53 = vpop.eup %3497  ;;  %3509 = verf.f32 %v1787_v52  ;;  %v1662_v15 = vadd.f32 %v4763_v54, %v1342_v19  ;;  %v1503_v26 = vadd.f32 %v4765_v6, %v1342_v19  ;;  %v1664_v28 = vadd.f32 %v5503_v0, %v1342_v19  ;;  %v1990_v0 = vld [vmem:[%s5470_s6 + $0x20] sm:$0xff] }
 0x2a1   : > { %v3500_v39 = vpop.eup %3499  ;;  %v1910_v14 = vadd.f32 1.0, %v3498_v53  ;;  %3511 = verf.f32 %v1790_v36  ;;  %v3133_v49 = vpack.c.bf16 %v1967_v58, %v1963_v40  ;;  %v1909_v8 = vadd.f32 1.0, %v3496_v50 }
 0x2a2   : > { %v3502_v51 = vpop.eup %3501  ;;  %v1912_v42 = vadd.f32 1.0, %v3500_v39  ;;  %3513 = verf.f32 %v1789_v25  ;;  %v1792_v63 = vmul.f32 0.70710677, %v1662_v15  ;;  %v1971_v56 = vmul.f32 %v1907_v59, %v4865_v61  ;;  %v1988_v39 = vld [vmem:[%s5470_s6 + $0x10] sm:$0xff] }
 0x2a3   : > { %v3504_v55 = vpop.eup %3503  ;;  %v1974_v18 = vmul.f32 %v1910_v14, %v1718_v10  ;;  %v1911_v41 = vadd.f32 1.0, %v3502_v51  ;;  %v1791_v16 = vmul.f32 0.70710677, %v1503_v26  ;;  %3134 = vmatprep.subr.bf16.mxu0 %v3133_v49  ;;  %v1793_v43 = vmul.f32 0.70710677, %v1664_v28  ;;  %v1989_v14 = vld [vmem:[%s5470_s6 + $0x18] sm:$0xff] }
 0x2a4   : > { %v1976_v54 = vmul.f32 %v1912_v42, %v1720_v37  ;;  %v1913_v6 = vadd.f32 1.0, %v3504_v55  ;;  %3515 = verf.f32 %v1792_v63  ;;  %3136 = vmatpush1.bf16.msra.mxu0 %v3135_v23  ;;  %v3165_v47 = vpack.c.bf16 %v1969_v20, %v1965_v60  ;;  %v1992_v49 = vld [vmem:[%s5470_s6 + $0x30] sm:$0xff]  ;;  %v1993_v51 = vld [vmem:[%s5470_s6 + $0x38] sm:$0xff]  ;;  %v1995_v42 = vld [vmem:[%s5470_s6 + $0x48] sm:$0xff] }
 0x2a5   : > { %v3139_v2 = vpack.c.bf16 %v1974_v18, %v1970_v32  ;;  %v1975_v29 = vmul.f32 %v1911_v41, %v1719_v30  ;;  %3517 = verf.f32 %v1791_v16  ;;  %v1973_v17 = vmul.f32 %v1909_v8, %v4883_v22  ;;  %v1994_v8 = vld [vmem:[%s5470_s6 + $0x40] sm:$0xff]  ;;  %v1996_v63 = vld [vmem:[%s5470_s6 + $0x50] sm:$0xff]  ;;  %v1997_v55 = vld [vmem:[%s5470_s6 + $0x58] sm:$0xff] }
 0x2a6   : > { %v3171_v13 = vpack.c.bf16 %v1976_v54, %v1972_v1  ;;  %v1977_v61 = vmul.f32 %v1913_v6, %v1721_v62  ;;  %3519 = verf.f32 %v1793_v43  ;;  %3166 = vmatprep.subr.bf16.mxu1 %v3165_v47  ;;  %v1722_v22 = vmul.f32 0.5, %v4876_v21  ;;  %v1999_v18 = vld [vmem:[%s5470_s6 + $0x68] sm:$0xff]  ;;  %v2000_v41 = vld [vmem:[%s5470_s6 + $0x70] sm:$0xff]  ;;  %v2001_v16 = vld [vmem:[%s5470_s6 + $0x78] sm:$0xff]  ;;  %v2021_v54 = vpop.permute.xlu0 %2020 }
 0x2a7   : > { %v3506_v40 = vpop.eup %3505  ;;  %v3137_v34 = vpack.c.bf16 %v1975_v29, %v1971_v56  ;;  %3168 = vmatpush1.bf16.msra.mxu1 %v3167_v31  ;;  %v1726_v48 = vmul.f32 0.5, %v4902_v4  ;;  %v1724_v3 = vmul.f32 0.5, %v4889_v35  ;;  %v1723_v12 = vmul.f32 0.5, %v4892_v24  ;;  %v1998_v56 = vld [vmem:[%s5470_s6 + $0x60] sm:$0xff] }
 0x2a8   : > { %v3169_v5 = vpack.c.bf16 %v1977_v61, %v1973_v17  ;;  %v1914_v46 = vadd.f32 1.0, %v3506_v40  ;;  %v1728_v45 = vmul.f32 0.5, %v1662_v15  ;;  %v1725_v21 = vmul.f32 0.5, %v4895_v7  ;;  %v1986_v7 = vld [vmem:[%s5470_s6] sm:$0xff] }
 0x2a9   : > { %v3508_v19 = vpop.eup %3507  ;;  %3138 = vmatprep.subr.bf16.mxu0 %v3137_v34  ;;  %v1727_v4 = vmul.f32 0.5, %v1503_v26  ;;  %v1729_v25 = vmul.f32 0.5, %v1664_v28  ;;  %v5504_v15 = vmov 0.0   ;;  %v1987_v26 = vld [vmem:[%s5470_s6 + $0x8] sm:$0xff]  ;;  %v2026_v34 = vpop.permute.xlu1 %2025 }
 0x2aa   : > { %v3510_v11 = vpop.eup %3509  ;;  %3170 = vmatprep.subr.bf16.mxu1 %v3169_v5  ;;  %3140 = vmatpush1.bf16.msra.mxu0 %v3139_v2  ;;  %v1916_v27 = vadd.f32 1.0, %v3508_v19  ;;  %v1978_v38 = vmul.f32 %v1914_v46, %v1722_v22  ;;  %v1991_v28 = vld [vmem:[%s5470_s6 + $0x28] sm:$0xff] }
 0x2ab   : > { %v3512_v23 = vpop.eup %3511  ;;  %3172 = vmatpush1.bf16.msra.mxu1 %v3171_v13  ;;  %v1915_v57 = vadd.f32 1.0, %v3510_v11 }
 0x2ac   : > { %v3514_v9 = vpop.eup %3513  ;;  %v1918_v33 = vadd.f32 1.0, %v3512_v23  ;;  %v1980_v30 = vmul.f32 %v1916_v27, %v1724_v3  ;;  %v2031_v3 = vpop.permute.xlu0 %2030 }
 0x2ad   : > { %v1917_v10 = vadd.f32 1.0, %v3514_v9  ;;  %v1979_v32 = vmul.f32 %v1915_v57, %v1723_v12 }
 0x2ae   : > { %v3516_v44 = vpop.eup %3515  ;;  %v1982_v31 = vmul.f32 %v1918_v33, %v1726_v48 }
 0x2af   : > { %v3518_v60 = vpop.eup %3517  ;;  %v1920_v58 = vadd.f32 1.0, %v3516_v44  ;;  %v1981_v59 = vmul.f32 %v1917_v10, %v1725_v21 }
 0x2b0   : > { %v3520_v37 = vpop.eup %3519  ;;  %v3143_v52 = vpack.c.bf16 %v1982_v31, %v1978_v38  ;;  %v1919_v20 = vadd.f32 1.0, %v3518_v60 }
 0x2b1   : > { %v1984_v62 = vmul.f32 %v1920_v58, %v1728_v45  ;;  %v1921_v50 = vadd.f32 1.0, %v3520_v37 }
 0x2b2   : > { %v1983_v35 = vmul.f32 %v1919_v20, %v1727_v4 }
 0x2b3   : > { %v3175_v36 = vpack.c.bf16 %v1984_v62, %v1980_v30  ;;  %v1985_v53 = vmul.f32 %v1921_v50, %v1729_v25 }
 0x2b4   : > { %v3141_v1 = vpack.c.bf16 %v1983_v35, %v1979_v32  ;;  %v2036_v35 = vpop.permute.xlu1 %2035 }
 0x2b5   : > { %v3173_v24 = vpack.c.bf16 %v1985_v53, %v1981_v59 }
 0x2b6   : > { %3142 = vmatprep.subr.bf16.mxu0 %v3141_v1 }
 0x2b7   : > { %3174 = vmatprep.subr.bf16.mxu1 %v3173_v24  ;;  %3144 = vmatpush1.bf16.msra.mxu0 %v3143_v52 }
 0x2b8   : > { %3176 = vmatpush1.bf16.msra.mxu1 %v3175_v36 }
 0x2ba   : > { %2163 = vmatmul.mubr.f32.vlgmr.msra.gmra.mrb[64].mxu0 %v1986_v7 }
 0x2bb   : > { %2324 = vmatmul.mubr.f32.vlgmr.msra.gmra.mrb[64].mxu1 %v1986_v7  ;;  %2168 = vmatprep.mubr.f32.mxu0 %v5504_v15 }
 0x2bc   : > { %2329 = vmatprep.mubr.f32.mxu1 %v5504_v15 }
 0x2be   : > { %2169 = vmatmul.mubr.f32.gmra.mrb[66].mxu0 %v1987_v26 }
 0x2bf   : > { %2330 = vmatmul.mubr.f32.gmra.mrb[66].mxu1 %v1987_v26  ;;  %2174 = vmatprep.mubr.f32.mxu0 %v5504_v15 }
 0x2c0   : > { %2335 = vmatprep.mubr.f32.mxu1 %v5504_v15 }
 0x2c2   : > { %2175 = vmatmul.mubr.f32.gmra.mrb[68].mxu0 %v1988_v39 }
 0x2c3   : > { %2336 = vmatmul.mubr.f32.gmra.mrb[68].mxu1 %v1988_v39  ;;  %2180 = vmatprep.mubr.f32.mxu0 %v5504_v15 }
 0x2c4   : > { %2341 = vmatprep.mubr.f32.mxu1 %v5504_v15 }
 0x2c6   : > { %2181 = vmatmul.mubr.f32.gmra.mrb[70].mxu0 %v1989_v14 }
 0x2c7   : > { %2342 = vmatmul.mubr.f32.gmra.mrb[70].mxu1 %v1989_v14  ;;  %2186 = vmatprep.mubr.f32.mxu0 %v5504_v15 }
 0x2c8   : > { %2347 = vmatprep.mubr.f32.mxu1 %v5504_v15 }
 0x2ca   : > { %2187 = vmatmul.mubr.f32.gmra.mrb[72].mxu0 %v1990_v0 }
 0x2cb   : > { %2348 = vmatmul.mubr.f32.gmra.mrb[72].mxu1 %v1990_v0  ;;  %2192 = vmatprep.mubr.f32.mxu0 %v5504_v15 }
 0x2cc   : > { %2353 = vmatprep.mubr.f32.mxu1 %v5504_v15 }
 0x2ce   : > { %2193 = vmatmul.mubr.f32.gmra.mrb[74].mxu0 %v1991_v28 }
 0x2cf   : > { %2354 = vmatmul.mubr.f32.gmra.mrb[74].mxu1 %v1991_v28  ;;  %2198 = vmatprep.mubr.f32.mxu0 %v5504_v15 }
 0x2d0   : > { %2359 = vmatprep.mubr.f32.mxu1 %v5504_v15 }
 0x2d2   : > { %2199 = vmatmul.mubr.f32.gmra.mrb[76].mxu0 %v1992_v49 }
 0x2d3   : > { %2360 = vmatmul.mubr.f32.gmra.mrb[76].mxu1 %v1992_v49  ;;  %2204 = vmatprep.mubr.f32.mxu0 %v5504_v15 }
 0x2d4   : > { %2365 = vmatprep.mubr.f32.mxu1 %v5504_v15 }
 0x2d6   : > { %2205 = vmatmul.mubr.f32.gmra.mrb[78].mxu0 %v1993_v51 }
 0x2d7   : > { %2366 = vmatmul.mubr.f32.gmra.mrb[78].mxu1 %v1993_v51  ;;  %2210 = vmatprep.mubr.f32.mxu0 %v5504_v15 }
 0x2d8   : > { %2371 = vmatprep.mubr.f32.mxu1 %v5504_v15 }
 0x2da   : > { %2211 = vmatmul.mubr.f32.gmra.mrb[80].mxu0 %v1994_v8 }
 0x2db   : > { %2372 = vmatmul.mubr.f32.gmra.mrb[80].mxu1 %v1994_v8  ;;  %2216 = vmatprep.mubr.f32.mxu0 %v5504_v15 }
 0x2dc   : > { %2377 = vmatprep.mubr.f32.mxu1 %v5504_v15 }
 0x2de   : > { %2217 = vmatmul.mubr.f32.gmra.mrb[82].mxu0 %v1995_v42 }
 0x2df   : > { %2378 = vmatmul.mubr.f32.gmra.mrb[82].mxu1 %v1995_v42  ;;  %2222 = vmatprep.mubr.f32.mxu0 %v5504_v15 }
 0x2e0   : > { %2383 = vmatprep.mubr.f32.mxu1 %v5504_v15 }
 0x2e2   : > { %2223 = vmatmul.mubr.f32.gmra.mrb[84].mxu0 %v1996_v63 }
 0x2e3   : > { %2384 = vmatmul.mubr.f32.gmra.mrb[84].mxu1 %v1996_v63  ;;  %2228 = vmatprep.mubr.f32.mxu0 %v5504_v15 }
 0x2e4   : > { %2389 = vmatprep.mubr.f32.mxu1 %v5504_v15 }
 0x2e6   : > { %2229 = vmatmul.mubr.f32.gmra.mrb[86].mxu0 %v1997_v55 }
 0x2e7   : > { %2390 = vmatmul.mubr.f32.gmra.mrb[86].mxu1 %v1997_v55  ;;  %2234 = vmatprep.mubr.f32.mxu0 %v5504_v15 }
 0x2e8   : > { %2395 = vmatprep.mubr.f32.mxu1 %v5504_v15 }
 0x2ea   : > { %2235 = vmatmul.mubr.f32.gmra.mrb[88].mxu0 %v1998_v56 }
 0x2eb   : > { %2396 = vmatmul.mubr.f32.gmra.mrb[88].mxu1 %v1998_v56  ;;  %2240 = vmatprep.mubr.f32.mxu0 %v5504_v15 }
 0x2ec   : > { %2401 = vmatprep.mubr.f32.mxu1 %v5504_v15 }
 0x2ee   : > { %2241 = vmatmul.mubr.f32.gmra.mrb[90].mxu0 %v1999_v18 }
 0x2ef   : > { %2402 = vmatmul.mubr.f32.gmra.mrb[90].mxu1 %v1999_v18  ;;  %2246 = vmatprep.mubr.f32.mxu0 %v5504_v15 }
 0x2f0   : > { %2407 = vmatprep.mubr.f32.mxu1 %v5504_v15 }
 0x2f2   : > { %2247 = vmatmul.mubr.f32.gmra.mrb[92].mxu0 %v2000_v41 }
 0x2f3   : > { %2408 = vmatmul.mubr.f32.gmra.mrb[92].mxu1 %v2000_v41  ;;  %2252 = vmatprep.mubr.f32.mxu0 %v5504_v15 }
 0x2f4   : > { %2413 = vmatprep.mubr.f32.mxu1 %v5504_v15 }
 0x2f6   : > { %2253 = vmatmul.mubr.f32.gmra.mrb[94].mxu0 %v2001_v16 }
 0x2f7   : > { %2414 = vmatmul.mubr.f32.gmra.mrb[94].mxu1 %v2001_v16  ;;  %2818 = vmatprep.mubr.f32.mxu0 %v5504_v15 }
 0x2f8   : > { %2895 = vmatprep.mubr.f32.mxu1 %v5504_v15 }
 0x38d   : > { %v2164_v6 = vpop.f32.mrb[64].mxu0 }
 0x38e   : > { %v2165_v43 = vadd.f32 %v2164_v6, %v2021_v54  ;;  %v2325_v2 = vpop.f32.mrb[64].mxu1  ;;  %v2166_v29 = vpop.f32.mrb[65].mxu0 }
 0x38f   : > { %v2326_v47 = vadd.f32 %v2325_v2, %v2021_v54  ;;  %v2167_v17 = vadd.f32 %v2166_v29, %v2021_v54  ;;  %v2327_v13 = vpop.f32.mrb[65].mxu1 }
 0x390   : > { %v2484_v61 = vmul.f32 0.70710677, %v2165_v43  ;;  %v2328_v40 = vadd.f32 %v2327_v13, %v2021_v54  ;;  %v2420_v52 = vmul.f32 0.5, %v2165_v43 }
 0x391   : > { %v2486_v5 = vmul.f32 0.70710677, %v2326_v47  ;;  %v2485_v19 = vmul.f32 0.70710677, %v2167_v17  ;;  %v2170_v46 = vpop.f32.mrb[66].mxu0  ;;  %v2422_v59 = vmul.f32 0.5, %v2326_v47 }
 0x392   : > { %3521 = verf.f32 %v2484_v61  ;;  %v2487_v11 = vmul.f32 0.70710677, %v2328_v40  ;;  %v2331_v23 = vpop.f32.mrb[66].mxu1  ;;  %v2171_v9 = vadd.f32 %v2170_v46, %v2026_v34  ;;  %v2172_v48 = vpop.f32.mrb[67].mxu0  ;;  %v5014_v36 = vmul.f32 0.5, %v2167_v17 }
 0x393   : > { %3523 = verf.f32 %v2486_v5  ;;  %v2332_v22 = vadd.f32 %v2331_v23, %v2026_v34  ;;  %v2333_v33 = vpop.f32.mrb[67].mxu1  ;;  %v2173_v27 = vadd.f32 %v2172_v48, %v2026_v34  ;;  %v5016_v7 = vmul.f32 0.5, %v2328_v40  ;;  %v2041_v61 = vpop.permute.xlu0 %2040 }
 0x394   : > { %3525 = verf.f32 %v2485_v19  ;;  %v2488_v44 = vmul.f32 0.70710677, %v2171_v9  ;;  %v2334_v60 = vadd.f32 %v2333_v33, %v2026_v34  ;;  %v2424_v0 = vmul.f32 0.5, %v2171_v9 }
 0x395   : > { %v2176_v38 = vpop.f32.mrb[68].mxu0  ;;  %3527 = verf.f32 %v2487_v11  ;;  %v2490_v57 = vmul.f32 0.70710677, %v2332_v22  ;;  %v2489_v31 = vmul.f32 0.70710677, %v2173_v27  ;;  %v2426_v28 = vmul.f32 0.5, %v2332_v22 }
 0x396   : > { %3529 = verf.f32 %v2488_v44  ;;  %v2177_v12 = vadd.f32 %v2176_v38, %v2031_v3  ;;  %v2337_v10 = vpop.f32.mrb[68].mxu1  ;;  %v2178_v45 = vpop.f32.mrb[69].mxu0  ;;  %v2491_v30 = vmul.f32 0.70710677, %v2334_v60  ;;  %v5018_v49 = vmul.f32 0.5, %v2173_v27 }
 0x397   : > { %3531 = verf.f32 %v2490_v57  ;;  %v2338_v58 = vadd.f32 %v2337_v10, %v2031_v3  ;;  %v2179_v37 = vadd.f32 %v2178_v45, %v2031_v3  ;;  %v2339_v21 = vpop.f32.mrb[69].mxu1  ;;  %v5020_v54 = vmul.f32 0.5, %v2334_v60 }
 0x398   : > { %v2492_v4 = vmul.f32 0.70710677, %v2177_v12  ;;  %3533 = verf.f32 %v2489_v31  ;;  %v2340_v25 = vadd.f32 %v2339_v21, %v2031_v3  ;;  %v5022_v47 = vmul.f32 0.5, %v2177_v12 }
 0x399   : > { %v2182_v20 = vpop.f32.mrb[70].mxu0  ;;  %v2494_v62 = vmul.f32 0.70710677, %v2338_v58  ;;  %v2493_v53 = vmul.f32 0.70710677, %v2179_v37  ;;  %v5024_v17 = vmul.f32 0.5, %v2338_v58 }
 0x39a   : > { %v2343_v50 = vpop.f32.mrb[70].mxu1  ;;  %v2184_v32 = vpop.f32.mrb[71].mxu0  ;;  %3535 = verf.f32 %v2492_v4  ;;  %v2183_v26 = vadd.f32 %v2182_v20, %v2036_v35  ;;  %v2495_v42 = vmul.f32 0.70710677, %v2340_v25  ;;  %v5026_v40 = vmul.f32 0.5, %v2179_v37 }
 0x39b   : > { %v2345_v1 = vpop.f32.mrb[71].mxu1  ;;  %3537 = verf.f32 %v2494_v62  ;;  %v2344_v39 = vadd.f32 %v2343_v50, %v2036_v35  ;;  %v2185_v51 = vadd.f32 %v2184_v32, %v2036_v35  ;;  %v5028_v34 = vmul.f32 0.5, %v2340_v25 }
 0x39c   : > { %v3522_v24 = vpop.eup %3521  ;;  %3539 = verf.f32 %v2491_v30  ;;  %v2496_v63 = vmul.f32 0.70710677, %v2183_v26  ;;  %v2346_v55 = vadd.f32 %v2345_v1, %v2036_v35  ;;  %v2432_v20 = vmul.f32 0.5, %v2183_v26 }
 0x39d   : > { %v3524_v14 = vpop.eup %3523  ;;  %v2188_v8 = vpop.f32.mrb[72].mxu0  ;;  %v2612_v16 = vadd.f32 1.0, %v3522_v24  ;;  %3541 = verf.f32 %v2493_v53  ;;  %v2498_v6 = vmul.f32 0.70710677, %v2344_v39  ;;  %v2497_v5 = vmul.f32 0.70710677, %v2185_v51 }
 0x39e   : > { %v2349_v56 = vpop.f32.mrb[72].mxu1  ;;  %v2190_v18 = vpop.f32.mrb[73].mxu0  ;;  %v2614_v29 = vadd.f32 1.0, %v3524_v14  ;;  %3543 = verf.f32 %v2496_v63  ;;  %v2499_v23 = vmul.f32 0.70710677, %v2346_v55  ;;  %v2189_v9 = vadd.f32 %v2188_v8, %v2041_v61 }
 0x39f   : > { %v3526_v41 = vpop.eup %3525  ;;  %v2351_v43 = vpop.f32.mrb[73].mxu1  ;;  %3545 = verf.f32 %v2498_v6  ;;  %v5030_v33 = vmul.f32 %v2612_v16, %v2420_v52  ;;  %v2350_v38 = vadd.f32 %v2349_v56, %v2041_v61  ;;  %v5040_v37 = vadd.f32 %v2190_v18, %v2041_v61 }
 0x3a0   : > { %v3528_v2 = vpop.eup %3527  ;;  %3547 = verf.f32 %v2495_v42  ;;  %v2613_v27 = vadd.f32 1.0, %v3526_v41  ;;  %v5034_v31 = vmul.f32 %v2614_v29, %v2422_v59  ;;  %v2500_v58 = vmul.f32 0.70710677, %v2189_v9 }
 0x3a1   : > { %v3530_v13 = vpop.eup %3529  ;;  %v2194_v19 = vpop.f32.mrb[74].mxu0  ;;  %v2615_v60 = vadd.f32 1.0, %v3528_v2  ;;  %3549 = verf.f32 %v2497_v5  ;;  %v2434_v30 = vmul.f32 0.5, %v2344_v39  ;;  %v2502_v62 = vmul.f32 0.70710677, %v2350_v38 }
 0x3a2   : > { %v3532_v11 = vpop.eup %3531  ;;  %v2616_v46 = vadd.f32 1.0, %v3530_v13  ;;  %v2355_v22 = vpop.f32.mrb[74].mxu1  ;;  %3551 = verf.f32 %v2499_v23  ;;  %v5051_v32 = vmul.f32 %v2613_v27, %v5014_v36  ;;  %v5055_v53 = vmul.f32 0.5, %v2185_v51 }
 0x3a3   : > { %v2196_v48 = vpop.f32.mrb[75].mxu0  ;;  %v2618_v44 = vadd.f32 1.0, %v3532_v11  ;;  %v5032_v3 = vpop.f32.mrb[75].mxu1  ;;  %v5060_v26 = vmul.f32 %v2615_v60, %v5016_v7  ;;  %v5062_v14 = vmul.f32 0.5, %v2346_v55  ;;  %3553 = verf.f32 %v2500_v58 }
 0x3a4   : > { %v3534_v57 = vpop.eup %3533  ;;  %v5036_v12 = vmul.f32 %v2616_v46, %v2424_v0  ;;  %v5064_v8 = vmul.f32 0.5, %v2189_v9  ;;  %v2501_v42 = vmul.f32 0.70710677, %v5040_v37  ;;  %v2352_v63 = vadd.f32 %v2351_v43, %v2041_v61  ;;  %v2051_v58 = vpop.permute.xlu0 %2050 }
 0x3a5   : > { %v3536_v10 = vpop.eup %3535  ;;  %v5038_v45 = vmul.f32 %v2618_v44, %v2426_v28  ;;  %v5042_v21 = vpop.f32.mrb[76].mxu0  ;;  %v2617_v59 = vadd.f32 1.0, %v3534_v57  ;;  %3555 = verf.f32 %v2502_v62  ;;  %v5076_v5 = vmul.f32 0.5, %v2350_v38 }
 0x3a6   : > { %v3538_v52 = vpop.eup %3537  ;;  %v3179_v4 = vpack.c.bf16 %v5036_v12, %v5030_v33  ;;  %v5046_v25 = vpop.f32.mrb[76].mxu1  ;;  %v2620_v39 = vadd.f32 1.0, %v3536_v10  ;;  %v2503_v46 = vmul.f32 0.70710677, %v2352_v63  ;;  %3557 = verf.f32 %v2501_v42 }
 0x3a7   : > { %v5048_v50 = vpop.f32.mrb[77].mxu0  ;;  %v3211_v35 = vpack.c.bf16 %v5038_v45, %v5034_v31  ;;  %v5057_v1 = vpop.f32.mrb[77].mxu1  ;;  %v2622_v36 = vadd.f32 1.0, %v3538_v52  ;;  %v5074_v2 = vmul.f32 %v2617_v59, %v5018_v49 }
 0x3a8   : > { %v3540_v24 = vpop.eup %3539  ;;  %v2046_v28 = vpop.permute.xlu1 %2045  ;;  %v5081_v11 = vmul.f32 %v2620_v39, %v5022_v47  ;;  %3559 = verf.f32 %v2503_v46 }
 0x3a9   : > { %v3542_v0 = vpop.eup %3541  ;;  %v5067_v51 = vpop.f32.mrb[78].mxu0  ;;  %v2195_v18 = vadd.f32 %v2194_v19, %v2046_v28  ;;  %v2356_v41 = vadd.f32 %v2355_v22, %v2046_v28  ;;  %v2197_v7 = vadd.f32 %v2196_v48, %v2046_v28  ;;  %v2619_v29 = vadd.f32 1.0, %v3540_v24 }
 0x3aa   : > { %v3544_v56 = vpop.eup %3543  ;;  %v5069_v16 = vpop.f32.mrb[78].mxu1  ;;  %v2621_v9 = vadd.f32 1.0, %v3542_v0  ;;  %v5088_v44 = vmul.f32 %v2622_v36, %v5024_v17  ;;  %v2358_v62 = vadd.f32 %v5032_v3, %v2046_v28  ;;  %v2201_v24 = vadd.f32 %v5042_v21, %v2051_v58 }
 0x3ab   : > { %v5071_v55 = vpop.f32.mrb[79].mxu0  ;;  %v3546_v6 = vpop.eup %3545  ;;  %v2624_v13 = vadd.f32 1.0, %v3544_v56  ;;  %v2504_v23 = vmul.f32 0.70710677, %v2195_v18  ;;  %v2506_v48 = vmul.f32 0.70710677, %v2356_v41  ;;  %v2683_v17 = vmul.f32 %v2619_v29, %v5020_v54 }
 0x3ac   : > { %v5078_v43 = vpop.f32.mrb[79].mxu1  ;;  %v3548_v61 = vpop.eup %3547  ;;  %v2626_v19 = vadd.f32 1.0, %v3546_v6  ;;  %v2505_v57 = vmul.f32 0.70710677, %v2197_v7  ;;  %v5106_v39 = vmul.f32 %v2621_v9, %v5026_v40  ;;  %v5109_v0 = vmul.f32 0.5, %v5040_v37 }
 0x3ad   : > { %v5083_v22 = vmul.f32 %v2624_v13, %v2432_v20  ;;  %v5085_v49 = vpop.f32.mrb[80].mxu0  ;;  %v3550_v27 = vpop.eup %3549  ;;  %v2623_v52 = vadd.f32 1.0, %v3548_v61  ;;  %3561 = verf.f32 %v2504_v23  ;;  %v2507_v36 = vmul.f32 0.70710677, %v2358_v62 }
 0x3ae   : > { %v5090_v38 = vmul.f32 %v2626_v19, %v2434_v30  ;;  %v5092_v47 = vpop.f32.mrb[80].mxu1  ;;  %v5094_v60 = vpop.f32.mrb[81].mxu0  ;;  %3563 = verf.f32 %v2506_v48  ;;  %v2625_v28 = vadd.f32 1.0, %v3550_v27  ;;  %v2508_v54 = vmul.f32 0.70710677, %v2201_v24 }
 0x3af   : > { %v3552_v10 = vpop.eup %3551  ;;  %v5099_v59 = vpop.f32.mrb[81].mxu1  ;;  %3565 = verf.f32 %v2505_v57  ;;  %v2362_v6 = vadd.f32 %v5046_v25, %v2051_v58  ;;  %v5119_v40 = vmul.f32 %v2623_v52, %v5028_v34  ;;  %v5121_v21 = vmul.f32 0.5, %v2352_v63 }
 0x3b0   : > { %v3554_v3 = vpop.eup %3553  ;;  %v2627_v56 = vadd.f32 1.0, %v3552_v10  ;;  %3567 = verf.f32 %v2507_v36  ;;  %v2203_v37 = vadd.f32 %v5048_v50, %v2051_v58  ;;  %v2440_v46 = vmul.f32 0.5, %v2195_v18  ;;  %v2056_v48 = vpop.permute.xlu1 %2055 }
 0x3b1   : > { %v5111_v42 = vpop.f32.mrb[82].mxu0  ;;  %v3556_v19 = vpop.eup %3555  ;;  %v2442_v23 = vmul.f32 0.5, %v2356_v41  ;;  %v5126_v9 = vmul.f32 0.5, %v2197_v7  ;;  %v2510_v25 = vmul.f32 0.70710677, %v2362_v6  ;;  %v2628_v27 = vadd.f32 1.0, %v3554_v3 }
 0x3b2   : > { %v5114_v29 = vpop.f32.mrb[82].mxu1  ;;  %v5116_v13 = vpop.f32.mrb[83].mxu0  ;;  %3569 = verf.f32 %v2508_v54  ;;  %v2509_v57 = vmul.f32 0.70710677, %v2203_v37  ;;  %v5129_v34 = vadd.f32 %v5057_v1, %v2051_v58  ;;  %v5134_v10 = vmul.f32 %v2625_v28, %v5055_v53 }
 0x3b3   : > { %v5124_v61 = vpop.f32.mrb[83].mxu1  ;;  %v5137_v50 = vmul.f32 %v2627_v56, %v5062_v14  ;;  %v5139_v18 = vmul.f32 0.5, %v2358_v62  ;;  %v3177_v41 = vpack.c.bf16 %v5074_v2, %v5051_v32  ;;  %v3558_v36 = vpop.eup %3557  ;;  %v2630_v1 = vadd.f32 1.0, %v3556_v19 }
 0x3b4   : > { %v3209_v58 = vpack.c.bf16 %v2683_v17, %v5060_v26  ;;  %v2207_v3 = vadd.f32 %v5067_v51, %v2056_v48  ;;  %v2368_v53 = vadd.f32 %v5069_v16, %v2056_v48  ;;  %v3560_v14 = vpop.eup %3559  ;;  %v5152_v62 = vmul.f32 0.5, %v2201_v24 }
 0x3b5   : > { %v5131_v63 = vpop.f32.mrb[84].mxu0  ;;  %3571 = verf.f32 %v2510_v25  ;;  %3178 = vmatprep.subr.bf16.mxu0 %v3177_v41  ;;  %v2209_v32 = vadd.f32 %v5071_v55, %v2056_v48  ;;  %v2370_v2 = vadd.f32 %v5078_v43, %v2056_v48  ;;  %v5157_v54 = vmul.f32 %v2628_v27, %v5064_v8 }
 0x3b6   : > { %v5143_v7 = vpop.f32.mrb[84].mxu1  ;;  %v5145_v52 = vpop.f32.mrb[85].mxu0  ;;  %3573 = verf.f32 %v2509_v57  ;;  %v2511_v26 = vmul.f32 0.70710677, %v5129_v34  ;;  %3210 = vmatprep.subr.bf16.mxu1 %v3209_v58  ;;  %v2512_v51 = vmul.f32 0.70710677, %v2207_v3  ;;  %3180 = vmatpush1.bf16.msra.mxu0 %v3179_v4  ;;  %v5171_v25 = vmul.f32 %v2630_v1, %v5076_v5 }
 0x3b7   : > { %v5150_v28 = vpop.f32.mrb[85].mxu1  ;;  %v3562_v56 = vpop.eup %3561  ;;  %v5165_v55 = vmul.f32 0.5, %v2362_v6  ;;  %v2514_v43 = vmul.f32 0.70710677, %v2368_v53  ;;  %3212 = vmatpush1.bf16.msra.mxu1 %v3211_v35  ;;  %v2513_v8 = vmul.f32 0.70710677, %v2209_v32 }
 0x3b8   : > { %v3564_v17 = vpop.eup %3563  ;;  %v2632_v24 = vadd.f32 1.0, %v3562_v56  ;;  %v5173_v27 = vmul.f32 0.5, %v2203_v37  ;;  %3575 = verf.f32 %v2512_v51  ;;  %v2061_v4 = vpop.permute.xlu0 %2060  ;;  %v2629_v6 = vadd.f32 1.0, %v3558_v36 }
 0x3b9   : > { %v5163_v16 = vpop.f32.mrb[86].mxu0  ;;  %v3566_v19 = vpop.eup %3565  ;;  %v2634_v48 = vadd.f32 1.0, %v3564_v17  ;;  %3577 = verf.f32 %v2514_v43  ;;  %v2515_v31 = vmul.f32 0.70710677, %v2370_v2  ;;  %v2213_v5 = vadd.f32 %v5085_v49, %v2061_v4 }
 0x3ba   : > { %v5175_v33 = vpop.f32.mrb[86].mxu1  ;;  %v5177_v12 = vpop.f32.mrb[87].mxu0  ;;  %v5179_v57 = vmul.f32 %v2632_v24, %v2440_v46  ;;  %3579 = verf.f32 %v2511_v26  ;;  %v2374_v37 = vadd.f32 %v5092_v47, %v2061_v4  ;;  %v2631_v58 = vadd.f32 1.0, %v3560_v14 }
 0x3bb   : > { %v5181_v45 = vpop.f32.mrb[87].mxu1  ;;  %v3568_v35 = vpop.eup %3567  ;;  %v5183_v41 = vmul.f32 %v2634_v48, %v2442_v23  ;;  %v2633_v46 = vadd.f32 1.0, %v3566_v19  ;;  %3581 = verf.f32 %v2513_v8  ;;  %v2516_v49 = vmul.f32 0.70710677, %v2213_v5 }
 0x3bc   : > { %v3570_v17 = vpop.eup %3569  ;;  %v2635_v26 = vadd.f32 1.0, %v3568_v35  ;;  %3583 = verf.f32 %v2515_v31  ;;  %v5200_v14 = vmul.f32 %v2629_v6, %v5109_v0  ;;  %v5203_v24 = vmul.f32 0.5, %v5129_v34 }
 0x3bd   : > { %v5187_v1 = vpop.f32.mrb[88].mxu0  ;;  %v2518_v43 = vmul.f32 0.70710677, %v2374_v37  ;;  %v2215_v8 = vadd.f32 %v5094_v60, %v2061_v4  ;;  %v2448_v19 = vmul.f32 0.5, %v2207_v3  ;;  %v2450_v48 = vmul.f32 0.5, %v2368_v53 }
 0x3be   : > { %v5191_v56 = vpop.f32.mrb[88].mxu1  ;;  %v5193_v51 = vpop.f32.mrb[89].mxu0  ;;  %3585 = verf.f32 %v2516_v49  ;;  %v5207_v36 = vadd.f32 %v5099_v59, %v2061_v4  ;;  %v5212_v23 = vmul.f32 %v2631_v58, %v5121_v21  ;;  %v2636_v0 = vadd.f32 1.0, %v3570_v17 }
 0x3bf   : > { %v5197_v47 = vpop.f32.mrb[89].mxu1  ;;  %v3572_v31 = vpop.eup %3571  ;;  %v5214_v6 = vmul.f32 0.5, %v2209_v32  ;;  %v5216_v34 = vmul.f32 0.5, %v2370_v2  ;;  %v5223_v53 = vmul.f32 %v2633_v46, %v5126_v9  ;;  %v5226_v59 = vmul.f32 %v2635_v26, %v5139_v18 }
 0x3c0   : > { %v3574_v3 = vpop.eup %3573  ;;  %v5228_v4 = vmul.f32 0.5, %v2213_v5  ;;  %v2517_v21 = vmul.f32 0.70710677, %v2215_v8  ;;  %v2066_v32 = vpop.permute.xlu1 %2065  ;;  %3587 = verf.f32 %v2518_v43  ;;  %v2519_v2 = vmul.f32 0.70710677, %v5207_v36 }
 0x3c1   : > { %v5209_v35 = vpop.f32.mrb[90].mxu0  ;;  %v3181_v17 = vpack.c.bf16 %v5134_v10, %v5106_v39  ;;  %v3213_v49 = vpack.c.bf16 %v5137_v50, %v5119_v40  ;;  %v2638_v46 = vadd.f32 1.0, %v3572_v31  ;;  %v5237_v20 = vmul.f32 0.5, %v2374_v37 }
 0x3c2   : > { %v5218_v30 = vpop.f32.mrb[90].mxu1  ;;  %v5220_v60 = vpop.f32.mrb[91].mxu0  ;;  %v2219_v18 = vadd.f32 %v5111_v42, %v2066_v32  ;;  %v2380_v5 = vadd.f32 %v5114_v29, %v2066_v32  ;;  %v5244_v43 = vmul.f32 %v2636_v0, %v5152_v62  ;;  %v2221_v39 = vadd.f32 %v5116_v13, %v2066_v32 }
 0x3c3   : > { %5505 = vst [vmem:[#allocation2_spill] sm:$0xff] %v5220_v60  ;;  %v5230_v58 = vpop.f32.mrb[91].mxu1  ;;  %v3576_v9 = vpop.eup %3575  ;;  %3182 = vmatprep.subr.bf16.mxu0 %v3181_v17  ;;  %3214 = vmatprep.subr.bf16.mxu1 %v3213_v49  ;;  %3589 = verf.f32 %v2517_v21  ;;  %v5507_v31 = vpack.c.bf16 %v5083_v22, %v5081_v11  ;;  %v5508_v62 = vpack.c.bf16 %v5090_v38, %v5088_v44 }
 0x3c4   : > { %5506 = vst [vmem:[#allocation3_spill] sm:$0xff] %v5230_v58  ;;  %v3578_v15 = vpop.eup %3577  ;;  %v2637_v58 = vadd.f32 1.0, %v3574_v3  ;;  %v2640_v60 = vadd.f32 1.0, %v3576_v9  ;;  %v2071_v42 = vpop.permute.xlu0 %2070  ;;  %v2520_v29 = vmul.f32 0.70710677, %v2219_v18  ;;  %v2382_v0 = vadd.f32 %v5124_v61, %v2066_v32 }
 0x3c5   : > { %v5241_v26 = vpop.f32.mrb[92].mxu0  ;;  %v3580_v50 = vpop.eup %3579  ;;  %v2642_v37 = vadd.f32 1.0, %v3578_v15  ;;  %3184 = vmatpush1.bf16.msra.mxu0 %v5507_v31  ;;  %3216 = vmatpush1.bf16.msra.mxu1 %v5508_v62  ;;  %3591 = verf.f32 %v2519_v2  ;;  %v2522_v49 = vmul.f32 0.70710677, %v2380_v5  ;;  %v2225_v15 = vadd.f32 %v5131_v63, %v2071_v42 }
 0x3c6   : > { %v5247_v40 = vpop.f32.mrb[92].mxu1  ;;  %v5249_v10 = vpop.f32.mrb[93].mxu0  ;;  %v5260_v17 = vmul.f32 %v2640_v60, %v2448_v19  ;;  %v5264_v9 = vmul.f32 %v2638_v46, %v5165_v55  ;;  %3593 = verf.f32 %v2520_v29  ;;  %v2521_v22 = vmul.f32 0.70710677, %v2221_v39 }
 0x3c7   : > { %v5258_v13 = vpop.f32.mrb[93].mxu1  ;;  %v3582_v3 = vpop.eup %3581  ;;  %v5266_v11 = vmul.f32 %v2642_v37, %v2450_v48  ;;  %v2639_v38 = vadd.f32 1.0, %v3580_v50  ;;  %v5272_v19 = vmul.f32 0.5, %v2215_v8  ;;  %3595 = verf.f32 %v2522_v49 }
 0x3c8   : > { %v3584_v21 = vpop.eup %3583  ;;  %v2641_v48 = vadd.f32 1.0, %v3582_v3  ;;  %v5281_v2 = vmul.f32 0.5, %v5207_v36  ;;  %v2523_v46 = vmul.f32 0.70710677, %v2382_v0  ;;  %3597 = verf.f32 %v2521_v22 }
 0x3c9   : > { %v5268_v44 = vpop.f32.mrb[94].mxu0  ;;  %v3586_v32 = vpop.eup %3585  ;;  %v2643_v37 = vadd.f32 1.0, %v3584_v21  ;;  %v2524_v8 = vmul.f32 0.70710677, %v2225_v15  ;;  %v2386_v29 = vadd.f32 %v5143_v7, %v2071_v42  ;;  %v5287_v31 = vmul.f32 %v2637_v58, %v5173_v27 }
 0x3ca   : > { %v5274_v60 = vpop.f32.mrb[94].mxu1  ;;  %v5276_v63 = vpop.f32.mrb[95].mxu0  ;;  %3599 = verf.f32 %v2523_v46  ;;  %v2227_v62 = vadd.f32 %v5145_v52, %v2071_v42  ;;  %v2388_v49 = vadd.f32 %v5150_v28, %v2071_v42  ;;  %v5292_v36 = vmul.f32 %v2639_v38, %v5203_v24 }
 0x3cb   : > { %v5283_v50 = vpop.f32.mrb[95].mxu1  ;;  %v3588_v3 = vpop.eup %3587  ;;  %v2644_v55 = vadd.f32 1.0, %v3586_v32  ;;  %v2456_v61 = vmul.f32 0.5, %v2219_v18  ;;  %v2458_v21 = vmul.f32 0.5, %v2380_v5  ;;  %v5294_v22 = vmul.f32 0.5, %v2221_v39 }
 0x3cc   : > { %5509 = vst [vmem:[#allocation4_spill] sm:$0xff] %v5283_v50  ;;  %v2526_v50 = vmul.f32 0.70710677, %v2386_v29  ;;  %3601 = verf.f32 %v2524_v8  ;;  %v2525_v7 = vmul.f32 0.70710677, %v2227_v62  ;;  %v5297_v27 = vmul.f32 %v2641_v48, %v5214_v6  ;;  %v2076_v24 = vpop.permute.xlu1 %2075 }
 0x3cd   : > { %v5300_v58 = vmul.f32 %v2643_v37, %v5216_v34  ;;  %v5302_v52 = vmul.f32 0.5, %v2382_v0  ;;  %v2527_v28 = vmul.f32 0.70710677, %v2388_v49  ;;  %v3590_v42 = vpop.eup %3589  ;;  %v2646_v38 = vadd.f32 1.0, %v3588_v3 }
 0x3ce   : > { %v5304_v32 = vmul.f32 0.5, %v2225_v15  ;;  %v3185_v18 = vpack.c.bf16 %v5223_v53, %v5200_v14  ;;  %v3217_v5 = vpack.c.bf16 %v5226_v59, %v5212_v23  ;;  %v5311_v6 = vmul.f32 %v2644_v55, %v5228_v4  ;;  %v2081_v59 = vpop.permute.xlu0 %2080 }
 0x3cf   : > { %v3592_v39 = vpop.eup %3591  ;;  %3603 = verf.f32 %v2526_v50  ;;  %v2231_v34 = vadd.f32 %v5163_v16, %v2076_v24  ;;  %v2392_v0 = vadd.f32 %v5175_v33, %v2076_v24  ;;  %v5315_v46 = vmul.f32 0.5, %v2386_v29 }
 0x3d0   : > { %v3594_v48 = vpop.eup %3593  ;;  %3605 = verf.f32 %v2525_v7  ;;  %3186 = vmatprep.subr.bf16.mxu0 %v3185_v18  ;;  %3218 = vmatprep.subr.bf16.mxu1 %v3217_v5  ;;  %v2233_v14 = vadd.f32 %v5177_v12, %v2076_v24  ;;  %v2394_v53 = vadd.f32 %v5181_v45, %v2076_v24  ;;  %v2645_v15 = vadd.f32 1.0, %v3590_v42 }
 0x3d1   : > { %v3596_v23 = vpop.eup %3595  ;;  %v2648_v4 = vadd.f32 1.0, %v3594_v48  ;;  %3607 = verf.f32 %v2527_v28  ;;  %v2528_v55 = vmul.f32 0.70710677, %v2231_v34  ;;  %v5510_v16 = vpack.c.bf16 %v5179_v57, %v5157_v54 }
 0x3d2   : > { %v5511_v33 = vpack.c.bf16 %v5183_v41, %v5171_v25  ;;  %v2650_v50 = vadd.f32 1.0, %v3596_v23  ;;  %v2530_v37 = vmul.f32 0.70710677, %v2392_v0  ;;  %v2529_v8 = vmul.f32 0.70710677, %v2233_v14  ;;  %v3598_v45 = vpop.eup %3597 }
 0x3d3   : > { %3188 = vmatpush1.bf16.msra.mxu0 %v5510_v16  ;;  %v2237_v12 = vadd.f32 %v5187_v1, %v2081_v59  ;;  %v5327_v29 = vmul.f32 %v2646_v38, %v5237_v20  ;;  %v5329_v3 = vmul.f32 %v2648_v4, %v2456_v61  ;;  %v5331_v7 = vmul.f32 0.5, %v2227_v62 }
 0x3d4   : > { %3220 = vmatpush1.bf16.msra.mxu1 %v5511_v33  ;;  %3609 = verf.f32 %v2528_v55  ;;  %v3600_v54 = vpop.eup %3599  ;;  %v2647_v57 = vadd.f32 1.0, %v3592_v39  ;;  %v5333_v28 = vmul.f32 %v2650_v50, %v2458_v21  ;;  %v2531_v25 = vmul.f32 0.70710677, %v2394_v53 }
 0x3d5   : > { %3611 = verf.f32 %v2530_v37  ;;  %v5336_v41 = vmul.f32 %v2645_v15, %v5272_v19  ;;  %v3195_v1 = vpack.c.bf16 %v5329_v3, %v5311_v6  ;;  %v5340_v42 = vmul.f32 0.5, %v2388_v49 }
 0x3d6   : > { %3613 = verf.f32 %v2529_v8  ;;  %v3602_v20 = vpop.eup %3601  ;;  %v3227_v61 = vpack.c.bf16 %v5333_v28, %v5327_v29  ;;  %v2649_v62 = vadd.f32 1.0, %v3598_v45  ;;  %v2532_v24 = vmul.f32 0.70710677, %v2237_v12  ;;  %v5513_v8 = vld [vmem:[#allocation2_spill] sm:$0xff]  ;;  %v5514_v45 = vld [vmem:[#allocation3_spill] sm:$0xff] }
 0x3d7   : > { %3615 = verf.f32 %v2531_v25  ;;  %v2651_v21 = vadd.f32 1.0, %v3600_v54  ;;  %v2398_v38 = vadd.f32 %v5191_v56, %v2081_v59  ;;  %v2239_v18 = vadd.f32 %v5193_v51, %v2081_v59  ;;  %v2091_v25 = vpop.permute.xlu0 %2090 }
 0x3d8   : > { %v2400_v19 = vadd.f32 %v5197_v47, %v2081_v59  ;;  %v5348_v5 = vmul.f32 %v2647_v57, %v5281_v2  ;;  %v2464_v49 = vmul.f32 0.5, %v2231_v34  ;;  %3617 = verf.f32 %v2532_v24  ;;  %v2086_v59 = vpop.permute.xlu1 %2085 }
 0x3d9   : > { %v3189_v39 = vpack.c.bf16 %v5297_v27, %v5287_v31  ;;  %v3604_v48 = vpop.eup %3603  ;;  %v2652_v23 = vadd.f32 1.0, %v3602_v20  ;;  %v2466_v15 = vmul.f32 0.5, %v2392_v0  ;;  %v5352_v4 = vmul.f32 0.5, %v2233_v14 }
 0x3da   : > { %v2534_v55 = vmul.f32 0.70710677, %v2398_v38  ;;  %v3606_v16 = vpop.eup %3605  ;;  %v5355_v56 = vmul.f32 %v2649_v62, %v5294_v22  ;;  %v5357_v51 = vmul.f32 0.5, %v2394_v53  ;;  %v5359_v47 = vmul.f32 0.5, %v2237_v12 }
 0x3db   : > { %v2533_v2 = vmul.f32 0.70710677, %v2239_v18  ;;  %3190 = vmatprep.subr.bf16.mxu0 %v3189_v39  ;;  %v3608_v34 = vpop.eup %3607  ;;  %v5362_v31 = vmul.f32 %v2651_v21, %v5302_v52  ;;  %v2535_v27 = vmul.f32 0.70710677, %v2400_v19  ;;  %v3221_v0 = vpack.c.bf16 %v5300_v58, %v5292_v36 }
 0x3dc   : > { %3619 = verf.f32 %v2534_v55  ;;  %v5512_v22 = vpack.c.bf16 %v5260_v17, %v5244_v43  ;;  %v2654_v14 = vadd.f32 1.0, %v3604_v48  ;;  %v2243_v53 = vadd.f32 %v5209_v35, %v2086_v59 }
 0x3dd   : > { %3621 = verf.f32 %v2533_v2  ;;  %v2404_v33 = vadd.f32 %v5218_v30, %v2086_v59  ;;  %v5372_v37 = vmul.f32 %v2652_v23, %v5304_v32  ;;  %v2653_v52 = vadd.f32 1.0, %v3606_v16  ;;  %3222 = vmatprep.subr.bf16.mxu1 %v3221_v0  ;;  %v2096_v2 = vpop.permute.xlu1 %2095 }
 0x3de   : > { %3192 = vmatpush1.bf16.msra.mxu0 %v5512_v22  ;;  %v3610_v50 = vpop.eup %3609  ;;  %v2245_v12 = vadd.f32 %v5513_v8, %v2086_v59  ;;  %v2406_v36 = vadd.f32 %v5514_v45, %v2086_v59  ;;  %v2470_v43 = vmul.f32 0.5, %v2398_v38  ;;  %v5376_v17 = vmul.f32 0.5, %v2239_v18 }
 0x3df   : > { %v3612_v58 = vpop.eup %3611  ;;  %v2656_v54 = vadd.f32 1.0, %v3610_v50  ;;  %v2536_v57 = vmul.f32 0.70710677, %v2243_v53  ;;  %v5515_v35 = vpack.c.bf16 %v5266_v11, %v5264_v9  ;;  %3623 = verf.f32 %v2535_v27 }
 0x3e0   : > { %v3614_v30 = vpop.eup %3613  ;;  %v2658_v32 = vadd.f32 1.0, %v3612_v58  ;;  %v2538_v20 = vmul.f32 0.70710677, %v2404_v33  ;;  %v2537_v62 = vmul.f32 0.70710677, %v2245_v12  ;;  %v5382_v21 = vmul.f32 %v2654_v14, %v5315_v46 }
 0x3e1   : > { %3224 = vmatpush1.bf16.msra.mxu1 %v5515_v35  ;;  %v3616_v24 = vpop.eup %3615  ;;  %v5384_v39 = vmul.f32 %v2656_v54, %v2464_v49  ;;  %3625 = verf.f32 %v2536_v57  ;;  %v5387_v38 = vadd.f32 %v5241_v26, %v2091_v25  ;;  %v2655_v18 = vadd.f32 1.0, %v3608_v34 }
 0x3e2   : > { %v5389_v48 = vmul.f32 %v2658_v32, %v2466_v15  ;;  %3627 = verf.f32 %v2538_v20  ;;  %v2539_v9 = vmul.f32 0.70710677, %v2406_v36  ;;  %v3618_v11 = vpop.eup %3617  ;;  %v2717_v23 = vmul.f32 %v2653_v52, %v5331_v7 }
 0x3e3   : > { %v3199_v55 = vpack.c.bf16 %v5384_v39, %v5372_v37  ;;  %v5394_v16 = vmul.f32 0.5, %v2400_v19  ;;  %3629 = verf.f32 %v2537_v62  ;;  %v2657_v49 = vadd.f32 1.0, %v3614_v30 }
 0x3e4   : > { %v3231_v46 = vpack.c.bf16 %v5389_v48, %v5382_v21  ;;  %v2659_v26 = vadd.f32 1.0, %v3616_v24  ;;  %3631 = verf.f32 %v2539_v9  ;;  %v2540_v15 = vmul.f32 0.70710677, %v5387_v38 }
 0x3e5   : > { %v5400_v34 = vadd.f32 %v5247_v40, %v2091_v25  ;;  %v5403_v7 = vadd.f32 %v5249_v10, %v2091_v25  ;;  %v5406_v59 = vadd.f32 %v5258_v13, %v2091_v25  ;;  %v2660_v27 = vadd.f32 1.0, %v3618_v11 }
 0x3e6   : > { %v3620_v19 = vpop.eup %3619  ;;  %v3193_v0 = vpack.c.bf16 %v5355_v56, %v5336_v41  ;;  %v3225_v22 = vpack.c.bf16 %v5362_v31, %v5348_v5  ;;  %v5413_v14 = vadd.f32 %v5268_v44, %v2096_v2  ;;  %v2719_v40 = vmul.f32 %v2655_v18, %v5340_v42 }
 0x3e7   : > { %v3622_v50 = vpop.eup %3621  ;;  %v2662_v52 = vadd.f32 1.0, %v3620_v19  ;;  %v2472_v10 = vmul.f32 0.5, %v2243_v53  ;;  %v2542_v8 = vmul.f32 0.70710677, %v5400_v34  ;;  %v2721_v13 = vmul.f32 %v2657_v49, %v5352_v4 }
 0x3e8   : > { %v2474_v45 = vmul.f32 0.5, %v2404_v33  ;;  %3633 = verf.f32 %v2540_v15  ;;  %v2541_v58 = vmul.f32 0.70710677, %v5403_v7  ;;  %3194 = vmatprep.subr.bf16.mxu0 %v3193_v0  ;;  %3226 = vmatprep.subr.bf16.mxu1 %v3225_v22  ;;  %v2723_v41 = vmul.f32 %v2659_v26, %v5357_v51 }
 0x3e9   : > { %v2473_v5 = vmul.f32 0.5, %v2245_v12  ;;  %v2475_v44 = vmul.f32 0.5, %v2406_v36  ;;  %v2543_v56 = vmul.f32 0.70710677, %v5406_v59  ;;  %3196 = vmatpush1.bf16.msra.mxu0 %v3195_v1  ;;  %3228 = vmatpush1.bf16.msra.mxu1 %v3227_v61  ;;  %v3624_v42 = vpop.eup %3623  ;;  %v2724_v4 = vmul.f32 %v2660_v27, %v5359_v47  ;;  %v5516_v1 = vld [vmem:[#allocation4_spill] sm:$0xff] }
 0x3ea   : > { %v2661_v31 = vadd.f32 1.0, %v3622_v50  ;;  %3635 = verf.f32 %v2542_v8  ;;  %v2544_v53 = vmul.f32 0.70710677, %v5413_v14  ;;  %v2726_v33 = vmul.f32 %v2662_v52, %v2470_v43 }
 0x3eb   : > { %v3626_v51 = vpop.eup %3625  ;;  %3637 = verf.f32 %v2541_v58  ;;  %v2416_v12 = vadd.f32 %v5274_v60, %v2096_v2  ;;  %v2257_v36 = vadd.f32 %v5276_v63, %v2096_v2  ;;  %v2418_v29 = vadd.f32 %v5516_v1, %v2096_v2 }
 0x3ec   : > { %v3628_v6 = vpop.eup %3627  ;;  %v2664_v3 = vadd.f32 1.0, %v3626_v51  ;;  %3639 = verf.f32 %v2544_v53  ;;  %v3197_v28 = vpack.c.bf16 %v2721_v13, %v2717_v23  ;;  %v2663_v54 = vadd.f32 1.0, %v3624_v42 }
 0x3ed   : > { %v3630_v61 = vpop.eup %3629  ;;  %v2666_v47 = vadd.f32 1.0, %v3628_v6  ;;  %3641 = verf.f32 %v2543_v56  ;;  %v2546_v57 = vmul.f32 0.70710677, %v2416_v12  ;;  %v2725_v30 = vmul.f32 %v2661_v31, %v5376_v17  ;;  %v2752_v6 = vpop.permute.xlu1 %2751 }
 0x3ee   : > { %v3632_v35 = vpop.eup %3631  ;;  %v2728_v43 = vmul.f32 %v2664_v3, %v2472_v10  ;;  %v2665_v25 = vadd.f32 1.0, %v3630_v61  ;;  %v2545_v32 = vmul.f32 0.70710677, %v2257_v36  ;;  %3198 = vmatprep.subr.bf16.mxu0 %v3197_v28  ;;  %v2547_v20 = vmul.f32 0.70710677, %v2418_v29  ;;  %v2747_v3 = vpop.permute.xlu0 %2746 }
 0x3ef   : > { %v2730_v60 = vmul.f32 %v2666_v47, %v2474_v45  ;;  %v2667_v63 = vadd.f32 1.0, %v3632_v35  ;;  %3643 = verf.f32 %v2546_v57  ;;  %3200 = vmatpush1.bf16.msra.mxu0 %v3199_v55  ;;  %v3229_v18 = vpack.c.bf16 %v2723_v41, %v2719_v40  ;;  %v2916_v47 = vld [vmem:[%s377_s23] sm:$0xff] }
 0x3f0   : > { %v3203_v62 = vpack.c.bf16 %v2728_v43, %v2724_v4  ;;  %v2729_v24 = vmul.f32 %v2665_v25, %v2473_v5  ;;  %3645 = verf.f32 %v2545_v32  ;;  %v2727_v9 = vmul.f32 %v2663_v54, %v5394_v16  ;;  %v2918_v25 = vld [vmem:[%s377_s23 + $0x10] sm:$0xff]  ;;  %v2917_v32 = vld [vmem:[%s377_s23 + $0x8] sm:$0xff] }
 0x3f1   : > { %v3235_v11 = vpack.c.bf16 %v2730_v60, %v2726_v33  ;;  %v2731_v17 = vmul.f32 %v2667_v63, %v2475_v44  ;;  %3647 = verf.f32 %v2547_v20  ;;  %3230 = vmatprep.subr.bf16.mxu1 %v3229_v18  ;;  %v2476_v16 = vmul.f32 0.5, %v5387_v38 }
 0x3f2   : > { %v3634_v23 = vpop.eup %3633  ;;  %v3201_v49 = vpack.c.bf16 %v2729_v24, %v2725_v30  ;;  %3232 = vmatpush1.bf16.msra.mxu1 %v3231_v46  ;;  %v2480_v19 = vmul.f32 0.5, %v5413_v14  ;;  %v2478_v21 = vmul.f32 0.5, %v5400_v34  ;;  %v2477_v52 = vmul.f32 0.5, %v5403_v7 }
 0x3f3   : > { %v3233_v26 = vpack.c.bf16 %v2731_v17, %v2727_v9  ;;  %v2668_v39 = vadd.f32 1.0, %v3634_v23  ;;  %v2482_v8 = vmul.f32 0.5, %v2416_v12  ;;  %v2479_v38 = vmul.f32 0.5, %v5406_v59  ;;  %v2740_v59 = vld [vmem:[%s5472_s8] sm:$0xff] }
 0x3f4   : > { %v3636_v2 = vpop.eup %3635  ;;  %3202 = vmatprep.subr.bf16.mxu0 %v3201_v49  ;;  %v2481_v14 = vmul.f32 0.5, %v2257_v36  ;;  %v2483_v56 = vmul.f32 0.5, %v2418_v29  ;;  %v5517_v12 = vmov 0.0   ;;  %v2741_v36 = vld [vmem:[%s5472_s8 + $0x8] sm:$0xff]  ;;  %v3241_v1 = vadd.f32 %v2752_v6, %v2747_v3 }
 0x3f5   : > { %v3638_v37 = vpop.eup %3637  ;;  %3234 = vmatprep.subr.bf16.mxu1 %v3233_v26  ;;  %3204 = vmatpush1.bf16.msra.mxu0 %v3203_v62  ;;  %v2670_v0 = vadd.f32 1.0, %v3636_v2  ;;  %v2732_v50 = vmul.f32 %v2668_v39, %v2476_v16  ;;  %v2919_v62 = vld [vmem:[%s377_s23 + $0x18] sm:$0xff] }
 0x3f6   : > { %v3640_v55 = vpop.eup %3639  ;;  %3236 = vmatpush1.bf16.msra.mxu1 %v3235_v11  ;;  %v2669_v48 = vadd.f32 1.0, %v3638_v37 }
 0x3f7   : > { %v3642_v15 = vpop.eup %3641  ;;  %v2672_v27 = vadd.f32 1.0, %v3640_v55  ;;  %v2734_v5 = vmul.f32 %v2670_v0, %v2478_v21 }
 0x3f8   : > { %v2671_v10 = vadd.f32 1.0, %v3642_v15  ;;  %v2733_v4 = vmul.f32 %v2669_v48, %v2477_v52 }
 0x3f9   : > { %v3644_v22 = vpop.eup %3643  ;;  %v2736_v46 = vmul.f32 %v2672_v27, %v2480_v19 }
 0x3fa   : > { %v3646_v40 = vpop.eup %3645  ;;  %v2674_v13 = vadd.f32 1.0, %v3644_v22  ;;  %v2735_v31 = vmul.f32 %v2671_v10, %v2479_v38 }
 0x3fb   : > { %v3648_v45 = vpop.eup %3647  ;;  %v3207_v58 = vpack.c.bf16 %v2736_v46, %v2732_v50  ;;  %v2673_v41 = vadd.f32 1.0, %v3646_v40 }
 0x3fc   : > { %v2738_v44 = vmul.f32 %v2674_v13, %v2482_v8  ;;  %v2675_v42 = vadd.f32 1.0, %v3648_v45 }
 0x3fd   : > { %v2737_v34 = vmul.f32 %v2673_v41, %v2481_v14 }
 0x3fe   : > { %v3239_v53 = vpack.c.bf16 %v2738_v44, %v2734_v5  ;;  %v2739_v51 = vmul.f32 %v2675_v42, %v2483_v56 }
 0x3ff   : > { %v3205_v33 = vpack.c.bf16 %v2737_v34, %v2733_v4 }
 0x400   : > { %v3237_v7 = vpack.c.bf16 %v2739_v51, %v2735_v31 }
 0x401   : > { %3206 = vmatprep.subr.bf16.mxu0 %v3205_v33 }
 0x402   : > { %3238 = vmatprep.subr.bf16.mxu1 %v3237_v7  ;;  %3208 = vmatpush1.bf16.msra.mxu0 %v3207_v58 }
 0x403   : > { %3240 = vmatpush1.bf16.msra.mxu1 %v3239_v53 }
 0x405   : > { %2819 = vmatmul.mubr.f32.vlgmr.msra.gmra.mrb[96].mxu0 %v2740_v59 }
 0x406   : > { %2896 = vmatmul.mubr.f32.vlgmr.msra.gmra.mrb[96].mxu1 %v2740_v59  ;;  %2824 = vmatprep.mubr.f32.mxu0 %v5517_v12 }
 0x407   : > { %2901 = vmatprep.mubr.f32.mxu1 %v5517_v12 }
 0x40d   : > { %2825 = vmatmul.mubr.f32.gmra.mrb[96].mxu0 %v2741_v36 }
 0x40e   : > { %2902 = vmatmul.mubr.f32.gmra.mrb[96].mxu1 %v2741_v36 }
 0x4e0   : > { %v2826_v29 = vpop.f32.mrb[96].mxu0 }
 0x4e1   : > { %v3242_v28 = vadd.f32 %v3241_v1, %v2826_v29  ;;  %v2903_v61 = vpop.f32.mrb[96].mxu1  ;;  %v2828_v54 = vpop.f32.mrb[97].mxu0 }
 0x4e2   : > { %v3246_v57 = vadd.f32 %v3241_v1, %v2903_v61  ;;  %v3244_v35 = vadd.f32 %v3241_v1, %v2828_v54  ;;  %v2905_v30 = vpop.f32.mrb[97].mxu1 }
 0x4e3   : > { %v2912_v43 = vmul.f32 0.5, %v3242_v28  ;;  %v3248_v60 = vadd.f32 %v3241_v1, %v2905_v30 }
 0x4e4   : > { %v2914_v63 = vmul.f32 0.5, %v3246_v57  ;;  %v2913_v20 = vmul.f32 0.5, %v3244_v35 }
 0x4e5   : > { %v2920_v24 = vadd.f32 %v2916_v47, %v2912_v43  ;;  %v2915_v18 = vmul.f32 0.5, %v3248_v60 }
 0x4e6   : > { %v2922_v9 = vadd.f32 %v2918_v25, %v2914_v63  ;;  %v2921_v11 = vadd.f32 %v2917_v32, %v2913_v20 }
 0x4e7   : > { %2924 = vst [vmem:[%s383_s27] sm:$0xff] %v2920_v24  ;;  %v2923_v17 = vadd.f32 %v2919_v62, %v2915_v18 }
 0x4e8   : > { %2926 = vst [vmem:[%s383_s27 + $0x10] sm:$0xff] %v2922_v9  ;;  %2925 = vst [vmem:[%s383_s27 + $0x8] sm:$0xff] %v2921_v11 }
 0x4e9   : > { %2927 = vst [vmem:[%s383_s27 + $0x18] sm:$0xff] %v2923_v17 }
 0x4ea PF: > { %s20_s13 = sadd.s32 1, %s3655_s13  }
 0x4eb   : > { %p17_p4 = scmp.ge.s32.totalorder %s20_s13, 6  }
 0x4ed   :  { %19 = sbr.rel (!%p17_p4) target bundleno = 1 (0x1), region = 93 }

// kernel: srnet_forward.5
= control target key start
LH: loop header
LB: loop body
LE: loop exit
PB: predicated region body
PF: predicated region fallthrough
CT: control target
= control target key end

     0   :  { %s3855_s13 = smov 0   ;;  %s3857_s14 = smov 0   ;;  %s5671_s0 = inlined_call_operand.vmem [shape: f32[8,2048], index: 0, kind: input, shape index: {}]   ;;  %s5672_s1 = inlined_call_operand.vmem [shape: f32[1,2048], index: 1, kind: input, shape index: {}]   ;;  %s5673_s2 = inlined_call_operand.vmem [shape: f32[128,8], index: 2, kind: input, shape index: {}]   ;;  %s5674_s3 = inlined_call_operand.vmem [shape: f32[128,1], index: 3, kind: input, shape index: {}]   ;;  %s5675_s4 = inlined_call_operand.vmem [shape: f32[128,128], index: 4, kind: input, shape index: {}]   ;;  %s5676_s5 = inlined_call_operand.vmem [shape: f32[128,1], index: 5, kind: input, shape index: {}]   ;;  %s5677_s6 = inlined_call_operand.vmem [shape: f32[128,128], index: 6, kind: input, shape index: {}]   ;;  %s5678_s7 = inlined_call_operand.vmem [shape: f32[128,1], index: 7, kind: input, shape index: {}]   ;;  %s5679_s8 = inlined_call_operand.vmem [shape: f32[32,128], index: 8, kind: input, shape index: {}]   ;;  %s5680_s9 = inlined_call_operand.vmem [shape: f32[32,1], index: 9, kind: input, shape index: {}]   ;;  %s5681_s10 = inlined_call_operand.vmem [shape: f32[16,2048], index: 10, kind: output, shape index: {}]  }
   0x1   :  { %s3859_s15 = smov 0  }
   0x2 LB: > { %s3868_s16 = sadd.s32 4294967295, %s3796_s15   ;;  %s3870_s17 = sadd.s32 1, %s3796_s15   ;;  %s3796_s15 = sphi %s3859_s15, %s5728_s15   ;;  %s3792_s14 = sphi %s3857_s14, %s5727_s14   ;;  %s3788_s13 = sphi %s3855_s13, %s5726_s13  }
   0x3   : > { %s244_s18 = ssub.s32 %s3796_s15, %s3870_s17  ;;  %s247_s19 = sadd.s32 1, %s3792_s14 }
   0x4   : > { %p245_p0 = scmp.eq.s32.totalorder %s244_s18, 0  ;;  %p257_p1 = scmp.ne.s32.totalorder %s3792_s14, %s3788_s13 }
   0x5   : > { %p258_p2 = scmp.eq.s32.totalorder %s3868_s16, 3  ;;  %p3095_p3 = scmp.ge.s32.totalorder %s3796_s15, 1 }
   0x6   : > { %s3878_s20 = scalar_select %p245_p0, %s3792_s14, %s247_s19  }
   0x7   : > { %p3880_p4 = por %p258_p2, %p257_p1  ;;  %p323_p5 = scmp.lt.s32.totalorder %s3796_s15, 5 }
   0x9   : > { %p324_p6 = pnand %p3095_p3, %p323_p5 }
   0xb   : > { %327 = sbr.rel (%p324_p6) target bundleno = 1275 (0x4fb), region = 60 }
  0x12   : > { %v436_v0 = vld [vmem:[%s5674_s3] sm:$0xff]  ;;  %v438_v1 = vld [vmem:[%s5674_s3 + $0x10] sm:$0xff]  ;;  %s3097_s26 = sshll.u32 %s3868_s16, 2  ;;  %v3798_v2 = vmov 0   ;;  %v437_v3 = vld [vmem:[%s5674_s3 + $0x8] sm:$0xff]  ;;  %v5682_v5 = vmov 0.0  }
  0x13   : > { %3388 = vset.pattern.permute.xlu0 %v3798_v2  ;;  %3389 = vset.pattern.permute.xlu1 %v3798_v2  ;;  %p365_p7 = scmp.lt.s32.totalorder %s3097_s26, 15  ;;  %v439_v4 = vld [vmem:[%s5674_s3 + $0x18] sm:$0xff]  ;;  %v440_v6 = vld [vmem:[%s5674_s3 + $0x20] sm:$0xff]  ;;  %v441_v7 = vld [vmem:[%s5674_s3 + $0x28] sm:$0xff]  ;;  %vm532_vm4 = vcmask 64512   ;;  %s361_s30 = sand.u32 1, %s3788_s13  }
  0x14   : > { %454 = vperm.xlu0 %3388, %v436_v0   ;;  %464 = vperm.xlu1 %3389, %v438_v1   ;;  %v442_v16 = vld [vmem:[%s5674_s3 + $0x30] sm:$0xff]  ;;  %v443_v21 = vld [vmem:[%s5674_s3 + $0x38] sm:$0xff]  ;;  %v444_v38 = vld [vmem:[%s5674_s3 + $0x40] sm:$0xff] }
  0x15   : > { %s5730_s26 = smov (!%p365_p7, %s3097_s26), 15  ;;  %645 = vmatprep.mubr.f32.mxu0 %v5682_v5  ;;  %806 = vmatprep.mubr.f32.mxu1 %v5682_v5  ;;  %v445_v39 = vld [vmem:[%s5674_s3 + $0x48] sm:$0xff]  ;;  %v446_v49 = vld [vmem:[%s5674_s3 + $0x50] sm:$0xff]  ;;  %v420_v52 = vld [vmem:[%s5673_s2] sm:$0xff] }
  0x16   : > { %s3098_s11 = sshll.u32 %s5730_s26, 3  ;;  %v447_v54 = vld [vmem:[%s5674_s3 + $0x58] sm:$0xff]  ;;  %v448_v55 = vld [vmem:[%s5674_s3 + $0x60] sm:$0xff]  ;;  %v421_v56 = vld [vmem:[%s5673_s2 + $0x8] sm:$0xff]  ;;  %s373_s29 = scalar_lea.vmem %s5672_s1, %s5730_s26 }
  0x17   : > { %s368_s22 = scalar_lea.vmem %s5671_s0, %s3098_s11  ;;  %v449_v57 = vld [vmem:[%s5674_s3 + $0x68] sm:$0xff]  ;;  %v450_v58 = vld [vmem:[%s5674_s3 + $0x70] sm:$0xff]  ;;  %v451_v60 = vld [vmem:[%s5674_s3 + $0x78] sm:$0xff]  ;;  %s3096_s11 = sshll.u32 %s361_s30, 6 }
  0x18   : > { %459 = vperm.xlu0 %3388, %v437_v3   ;;  %469 = vperm.xlu1 %3389, %v439_v4   ;;  %v377_v8 = vld [vmem:[%s368_s22 + $0x8] sm:$0xff]  ;;  %v379_v9 = vld [vmem:[%s368_s22 + $0x18] sm:$0xff]  ;;  %v376_v10 = vld [vmem:[%s368_s22] sm:$0xff]  ;;  %s5637_s13 = scalar_lea.vmem [#allocation2], %s3096_s11  ;;  %s3145_s26 = sshll.u32 (%p3880_p4), %s3868_s16, 5 }
  0x19   : > { %v381_v11 = vsub.f32 0.0, %v377_v8  ;;  %v3105_v12 = vadd.f32 -8.0, %v377_v8  ;;  %v383_v13 = vsub.f32 0.0, %v379_v9  ;;  %v3107_v14 = vadd.f32 -8.0, %v379_v9  ;;  %v378_v15 = vld [vmem:[%s368_s22 + $0x10] sm:$0xff]  ;;  %v1239_v61 = vld [vmem:[%s5676_s5] sm:$0xff]  ;;  %s3000_s18 = scalar_lea.vmem (%p3880_p4), %s5681_s10, %s3145_s26 }
  0x1a   : > { %v380_v17 = vsub.f32 0.0, %v376_v10  ;;  %v3104_v18 = vadd.f32 -8.0, %v376_v10  ;;  %v382_v19 = vsub.f32 0.0, %v378_v15  ;;  %v3106_v20 = vadd.f32 -8.0, %v378_v15  ;;  %v422_v59 = vld [vmem:[%s5673_s2 + $0x10] sm:$0xff]  ;;  %v423_v62 = vld [vmem:[%s5673_s2 + $0x18] sm:$0xff] }
  0x1b   : > { %v3101_v22 = vadd.f32 -8.0, %v381_v11  ;;  %v397_v23 = vand.u32 2147483647, %v3105_v12  ;;  %v3103_v24 = vadd.f32 -8.0, %v383_v13  ;;  %v399_v25 = vand.u32 2147483647, %v3107_v14 }
  0x1c   : > { %474 = vperm.xlu0 %3388, %v440_v6   ;;  %479 = vperm.xlu1 %3389, %v441_v7   ;;  %v3100_v26 = vadd.f32 -8.0, %v380_v17  ;;  %v396_v27 = vand.u32 2147483647, %v3104_v18  ;;  %v3102_v28 = vadd.f32 -8.0, %v382_v19  ;;  %v398_v29 = vand.u32 2147483647, %v3106_v20 }
  0x1d   : > { %v389_v30 = vand.u32 2147483647, %v3101_v22  ;;  %v391_v31 = vand.u32 2147483647, %v3103_v24  ;;  %v1240_v63 = vld [vmem:[%s5676_s5 + $0x8] sm:$0xff]  ;;  %v1241_v0 = vld [vmem:[%s5676_s5 + $0x10] sm:$0xff] }
  0x1e   : > { %v388_v32 = vand.u32 2147483647, %v3100_v26  ;;  %v390_v33 = vand.u32 2147483647, %v3102_v28  ;;  %v424_v1 = vld [vmem:[%s5673_s2 + $0x20] sm:$0xff]  ;;  %v1242_v2 = vld [vmem:[%s5676_s5 + $0x18] sm:$0xff] }
  0x1f   : > { %v401_v34 = vsub.f32 %v389_v30, %v397_v23  ;;  %v403_v35 = vsub.f32 %v391_v31, %v399_v25  ;;  %v1243_v3 = vld [vmem:[%s5676_s5 + $0x20] sm:$0xff]  ;;  %v425_v4 = vld [vmem:[%s5673_s2 + $0x28] sm:$0xff]  ;;  %v1245_v7 = vld [vmem:[%s5676_s5 + $0x30] sm:$0xff] }
  0x20   : > { %484 = vperm.xlu0 %3388, %v442_v16   ;;  %489 = vperm.xlu1 %3389, %v443_v21   ;;  %v400_v36 = vsub.f32 %v388_v32, %v396_v27  ;;  %v402_v37 = vsub.f32 %v390_v33, %v398_v29  ;;  %v1244_v6 = vld [vmem:[%s5676_s5 + $0x28] sm:$0xff]  ;;  %v426_v8 = vld [vmem:[%s5673_s2 + $0x30] sm:$0xff]  ;;  %v1246_v9 = vld [vmem:[%s5676_s5 + $0x38] sm:$0xff] }
  0x21   : > { %v405_v40 = vmul.f32 0.5, %v401_v34  ;;  %v407_v41 = vmul.f32 0.5, %v403_v35  ;;  %v1247_v10 = vld [vmem:[%s5676_s5 + $0x40] sm:$0xff]  ;;  %v427_v11 = vld [vmem:[%s5673_s2 + $0x38] sm:$0xff]  ;;  %v1248_v12 = vld [vmem:[%s5676_s5 + $0x48] sm:$0xff] }
  0x22   : > { %v404_v42 = vmul.f32 0.5, %v400_v36  ;;  %v406_v43 = vmul.f32 0.5, %v402_v37  ;;  %v1249_v13 = vld [vmem:[%s5676_s5 + $0x50] sm:$0xff]  ;;  %v428_v14 = vld [vmem:[%s5673_s2 + $0x40] sm:$0xff]  ;;  %v1250_v15 = vld [vmem:[%s5676_s5 + $0x58] sm:$0xff] }
  0x23   : > { %vm409_vm0 = vcmp.gt.f32.partialorder %v405_v40, 7.9  ;;  %vm411_vm1 = vcmp.gt.f32.partialorder %v407_v41, 7.9  ;;  %v1251_v16 = vld [vmem:[%s5676_s5 + $0x60] sm:$0xff]  ;;  %v429_v17 = vld [vmem:[%s5673_s2 + $0x48] sm:$0xff] }
  0x24   : > { %494 = vperm.xlu0 %3388, %v444_v38   ;;  %499 = vperm.xlu1 %3389, %v445_v39   ;;  %v413_v44 = vsel %vm409_vm0, 7.9, %v405_v40  ;;  %v415_v45 = vsel %vm411_vm1, 7.9, %v407_v41  ;;  %vm408_vm2 = vcmp.gt.f32.partialorder %v404_v42, 7.9 }
  0x25   : > { %v417_v46 = vfloor.f32 %v413_v44  ;;  %v419_v47 = vfloor.f32 %v415_v45  ;;  %v412_v48 = vsel %vm408_vm2, 7.9, %v404_v42  ;;  %vm410_vm3 = vcmp.gt.f32.partialorder %v406_v43, 7.9  ;;  %v1252_v18 = vld [vmem:[%s5676_s5 + $0x68] sm:$0xff]  ;;  %v1253_v19 = vld [vmem:[%s5676_s5 + $0x70] sm:$0xff] }
  0x26   : > { %v416_v50 = vfloor.f32 %v412_v48  ;;  %v414_v51 = vsel %vm410_vm3, 7.9, %v406_v43  ;;  %v430_v20 = vld [vmem:[%s5673_s2 + $0x50] sm:$0xff]  ;;  %v1254_v21 = vld [vmem:[%s5676_s5 + $0x78] sm:$0xff]  ;;  %v1993_v22 = vld [vmem:[%s5678_s7] sm:$0xff] }
  0x27   : > { %581 = vmatprep.subr.mxu0 %v417_v46  ;;  %742 = vmatprep.subr.mxu1 %v419_v47  ;;  %v418_v53 = vfloor.f32 %v414_v51  ;;  %v431_v23 = vld [vmem:[%s5673_s2 + $0x58] sm:$0xff]  ;;  %v1994_v24 = vld [vmem:[%s5678_s7 + $0x8] sm:$0xff]  ;;  %v1995_v25 = vld [vmem:[%s5678_s7 + $0x10] sm:$0xff] }
  0x28   : > { %582 = vmatpush1.msra.mxu0 %v416_v50  ;;  %504 = vperm.xlu0 %3388, %v446_v49   ;;  %v432_v26 = vld [vmem:[%s5673_s2 + $0x60] sm:$0xff]  ;;  %v1996_v27 = vld [vmem:[%s5678_s7 + $0x18] sm:$0xff]  ;;  %v433_v29 = vld [vmem:[%s5673_s2 + $0x68] sm:$0xff] }
  0x29   : > { %743 = vmatpush1.msra.mxu1 %v418_v53  ;;  %3108 = vmatmul.mubr.msk.f32.vlgmr.msra.gmra.mrb[0].mxu0 %vm532_vm4, %v420_v52  ;;  %v1997_v28 = vld [vmem:[%s5678_s7 + $0x20] sm:$0xff]  ;;  %v1998_v30 = vld [vmem:[%s5678_s7 + $0x28] sm:$0xff]  ;;  %v1999_v31 = vld [vmem:[%s5678_s7 + $0x30] sm:$0xff] }
  0x2a   : > { %3124 = vmatmul.mubr.msk.f32.vlgmr.msra.gmra.mrb[0].mxu1 %vm532_vm4, %v420_v52  ;;  %651 = vmatprep.mubr.f32.mxu0 %v5682_v5  ;;  %v434_v32 = vld [vmem:[%s5673_s2 + $0x70] sm:$0xff]  ;;  %v2000_v33 = vld [vmem:[%s5678_s7 + $0x38] sm:$0xff]  ;;  %v2001_v34 = vld [vmem:[%s5678_s7 + $0x40] sm:$0xff] }
  0x2b   : > { %812 = vmatprep.mubr.f32.mxu1 %v5682_v5  ;;  %509 = vperm.xlu1 %3389, %v447_v54   ;;  %v435_v35 = vld [vmem:[%s5673_s2 + $0x78] sm:$0xff]  ;;  %v2002_v36 = vld [vmem:[%s5678_s7 + $0x48] sm:$0xff]  ;;  %v2003_v37 = vld [vmem:[%s5678_s7 + $0x50] sm:$0xff] }
  0x2c   : > { %514 = vperm.xlu0 %3388, %v448_v55   ;;  %v2004_v38 = vld [vmem:[%s5678_s7 + $0x58] sm:$0xff]  ;;  %v2005_v39 = vld [vmem:[%s5678_s7 + $0x60] sm:$0xff]  ;;  %v2006_v40 = vld [vmem:[%s5678_s7 + $0x68] sm:$0xff] }
  0x2d   : > { %3109 = vmatmul.mubr.msk.f32.gmra.mrb[2].mxu0 %vm532_vm4, %v421_v56  ;;  %v2007_v41 = vld [vmem:[%s5678_s7 + $0x70] sm:$0xff]  ;;  %v2008_v42 = vld [vmem:[%s5678_s7 + $0x78] sm:$0xff]  ;;  %v2735_v43 = vld [vmem:[%s5680_s9] sm:$0xff] }
  0x2e   : > { %3125 = vmatmul.mubr.msk.f32.gmra.mrb[2].mxu1 %vm532_vm4, %v421_v56  ;;  %657 = vmatprep.mubr.f32.mxu0 %v5682_v5  ;;  %v2736_v44 = vld [vmem:[%s5680_s9 + $0x8] sm:$0xff]  ;;  %v2737_v45 = vld [vmem:[%s5680_s9 + $0x10] sm:$0xff]  ;;  %v2738_v46 = vld [vmem:[%s5680_s9 + $0x18] sm:$0xff] }
  0x2f   : > { %818 = vmatprep.mubr.f32.mxu1 %v5682_v5  ;;  %519 = vperm.xlu1 %3389, %v449_v57  }
  0x30   : > { %524 = vperm.xlu0 %3388, %v450_v58  }
  0x31   : > { %3110 = vmatmul.mubr.msk.f32.gmra.mrb[4].mxu0 %vm532_vm4, %v422_v59 }
  0x32   : > { %3126 = vmatmul.mubr.msk.f32.gmra.mrb[4].mxu1 %vm532_vm4, %v422_v59  ;;  %663 = vmatprep.mubr.f32.mxu0 %v5682_v5 }
  0x33   : > { %824 = vmatprep.mubr.f32.mxu1 %v5682_v5  ;;  %529 = vperm.xlu1 %3389, %v451_v60  }
  0x34   : > { %1257 = vperm.xlu0 %3388, %v1239_v61  }
  0x35   : > { %3111 = vmatmul.mubr.msk.f32.gmra.mrb[6].mxu0 %vm532_vm4, %v423_v62 }
  0x36   : > { %3127 = vmatmul.mubr.msk.f32.gmra.mrb[6].mxu1 %vm532_vm4, %v423_v62  ;;  %669 = vmatprep.mubr.f32.mxu0 %v5682_v5 }
  0x37   : > { %830 = vmatprep.mubr.f32.mxu1 %v5682_v5  ;;  %1262 = vperm.xlu1 %3389, %v1240_v63  }
  0x38   : > { %1267 = vperm.xlu0 %3388, %v1241_v0  }
  0x39   : > { %3112 = vmatmul.mubr.msk.f32.gmra.mrb[8].mxu0 %vm532_vm4, %v424_v1 }
  0x3a   : > { %3128 = vmatmul.mubr.msk.f32.gmra.mrb[8].mxu1 %vm532_vm4, %v424_v1  ;;  %675 = vmatprep.mubr.f32.mxu0 %v5682_v5 }
  0x3b   : > { %836 = vmatprep.mubr.f32.mxu1 %v5682_v5  ;;  %1272 = vperm.xlu1 %3389, %v1242_v2  }
  0x3c   : > { %1277 = vperm.xlu0 %3388, %v1243_v3  }
  0x3d   : > { %3113 = vmatmul.mubr.msk.f32.gmra.mrb[10].mxu0 %vm532_vm4, %v425_v4 }
  0x3e   : > { %3129 = vmatmul.mubr.msk.f32.gmra.mrb[10].mxu1 %vm532_vm4, %v425_v4  ;;  %681 = vmatprep.mubr.f32.mxu0 %v5682_v5 }
  0x3f   : > { %842 = vmatprep.mubr.f32.mxu1 %v5682_v5  ;;  %1282 = vperm.xlu1 %3389, %v1244_v6  }
  0x40   : > { %1287 = vperm.xlu0 %3388, %v1245_v7  }
  0x41   : > { %3114 = vmatmul.mubr.msk.f32.gmra.mrb[12].mxu0 %vm532_vm4, %v426_v8 }
  0x42   : > { %3130 = vmatmul.mubr.msk.f32.gmra.mrb[12].mxu1 %vm532_vm4, %v426_v8  ;;  %687 = vmatprep.mubr.f32.mxu0 %v5682_v5 }
  0x43   : > { %848 = vmatprep.mubr.f32.mxu1 %v5682_v5  ;;  %1292 = vperm.xlu1 %3389, %v1246_v9  }
  0x44   : > { %1297 = vperm.xlu0 %3388, %v1247_v10  }
  0x45   : > { %3115 = vmatmul.mubr.msk.f32.gmra.mrb[14].mxu0 %vm532_vm4, %v427_v11 }
  0x46   : > { %3131 = vmatmul.mubr.msk.f32.gmra.mrb[14].mxu1 %vm532_vm4, %v427_v11  ;;  %693 = vmatprep.mubr.f32.mxu0 %v5682_v5 }
  0x47   : > { %854 = vmatprep.mubr.f32.mxu1 %v5682_v5  ;;  %1302 = vperm.xlu1 %3389, %v1248_v12  }
  0x48   : > { %1307 = vperm.xlu0 %3388, %v1249_v13  }
  0x49   : > { %3116 = vmatmul.mubr.msk.f32.gmra.mrb[16].mxu0 %vm532_vm4, %v428_v14 }
  0x4a   : > { %3132 = vmatmul.mubr.msk.f32.gmra.mrb[16].mxu1 %vm532_vm4, %v428_v14  ;;  %699 = vmatprep.mubr.f32.mxu0 %v5682_v5 }
  0x4b   : > { %860 = vmatprep.mubr.f32.mxu1 %v5682_v5  ;;  %1312 = vperm.xlu1 %3389, %v1250_v15  }
  0x4c   : > { %1317 = vperm.xlu0 %3388, %v1251_v16  }
  0x4d   : > { %3117 = vmatmul.mubr.msk.f32.gmra.mrb[18].mxu0 %vm532_vm4, %v429_v17 }
  0x4e   : > { %3133 = vmatmul.mubr.msk.f32.gmra.mrb[18].mxu1 %vm532_vm4, %v429_v17  ;;  %705 = vmatprep.mubr.f32.mxu0 %v5682_v5 }
  0x4f   : > { %866 = vmatprep.mubr.f32.mxu1 %v5682_v5  ;;  %1322 = vperm.xlu1 %3389, %v1252_v18  }
  0x50   : > { %1327 = vperm.xlu0 %3388, %v1253_v19  }
  0x51   : > { %3118 = vmatmul.mubr.msk.f32.gmra.mrb[20].mxu0 %vm532_vm4, %v430_v20 }
  0x52   : > { %3134 = vmatmul.mubr.msk.f32.gmra.mrb[20].mxu1 %vm532_vm4, %v430_v20  ;;  %711 = vmatprep.mubr.f32.mxu0 %v5682_v5 }
  0x53   : > { %872 = vmatprep.mubr.f32.mxu1 %v5682_v5  ;;  %1332 = vperm.xlu1 %3389, %v1254_v21  }
  0x54   : > { %2011 = vperm.xlu0 %3388, %v1993_v22  }
  0x55   : > { %3119 = vmatmul.mubr.msk.f32.gmra.mrb[22].mxu0 %vm532_vm4, %v431_v23 }
  0x56   : > { %3135 = vmatmul.mubr.msk.f32.gmra.mrb[22].mxu1 %vm532_vm4, %v431_v23  ;;  %717 = vmatprep.mubr.f32.mxu0 %v5682_v5 }
  0x57   : > { %878 = vmatprep.mubr.f32.mxu1 %v5682_v5  ;;  %2016 = vperm.xlu1 %3389, %v1994_v24  }
  0x58   : > { %2021 = vperm.xlu0 %3388, %v1995_v25  }
  0x59   : > { %3120 = vmatmul.mubr.msk.f32.gmra.mrb[24].mxu0 %vm532_vm4, %v432_v26 }
  0x5a   : > { %3136 = vmatmul.mubr.msk.f32.gmra.mrb[24].mxu1 %vm532_vm4, %v432_v26  ;;  %723 = vmatprep.mubr.f32.mxu0 %v5682_v5 }
  0x5b   : > { %884 = vmatprep.mubr.f32.mxu1 %v5682_v5  ;;  %2026 = vperm.xlu1 %3389, %v1996_v27  }
  0x5c   : > { %2031 = vperm.xlu0 %3388, %v1997_v28  }
  0x5d   : > { %3121 = vmatmul.mubr.msk.f32.gmra.mrb[26].mxu0 %vm532_vm4, %v433_v29 }
  0x5e   : > { %3137 = vmatmul.mubr.msk.f32.gmra.mrb[26].mxu1 %vm532_vm4, %v433_v29  ;;  %729 = vmatprep.mubr.f32.mxu0 %v5682_v5 }
  0x5f   : > { %890 = vmatprep.mubr.f32.mxu1 %v5682_v5  ;;  %2036 = vperm.xlu1 %3389, %v1998_v30  }
  0x60   : > { %2041 = vperm.xlu0 %3388, %v1999_v31  }
  0x61   : > { %3122 = vmatmul.mubr.msk.f32.gmra.mrb[28].mxu0 %vm532_vm4, %v434_v32 }
  0x62   : > { %3138 = vmatmul.mubr.msk.f32.gmra.mrb[28].mxu1 %vm532_vm4, %v434_v32  ;;  %735 = vmatprep.mubr.f32.mxu0 %v5682_v5 }
  0x63   : > { %896 = vmatprep.mubr.f32.mxu1 %v5682_v5  ;;  %2046 = vperm.xlu1 %3389, %v2000_v33  }
  0x64   : > { %2051 = vperm.xlu0 %3388, %v2001_v34  }
  0x65   : > { %3123 = vmatmul.mubr.msk.f32.gmra.mrb[30].mxu0 %vm532_vm4, %v435_v35 }
  0x66   : > { %3139 = vmatmul.mubr.msk.f32.gmra.mrb[30].mxu1 %vm532_vm4, %v435_v35  ;;  %1399 = vmatprep.mubr.f32.mxu0 %v5682_v5 }
  0x67   : > { %2056 = vperm.xlu1 %3389, %v2002_v36   ;;  %1560 = vmatprep.mubr.f32.mxu1 %v5682_v5 }
  0x68   : > { %2061 = vperm.xlu0 %3388, %v2003_v37  }
  0x6b   : > { %2066 = vperm.xlu1 %3389, %v2004_v38  }
  0x6c   : > { %2071 = vperm.xlu0 %3388, %v2005_v39  }
  0x6f   : > { %2076 = vperm.xlu1 %3389, %v2006_v40  }
  0x70   : > { %2081 = vperm.xlu0 %3388, %v2007_v41  }
  0x73   : > { %2086 = vperm.xlu1 %3389, %v2008_v42  }
  0x74   : > { %2741 = vperm.xlu0 %3388, %v2735_v43  }
  0x77   : > { %2746 = vperm.xlu1 %3389, %v2736_v44  }
  0x78   : > { %2751 = vperm.xlu0 %3388, %v2737_v45  }
  0x7b   : > { %2756 = vperm.xlu1 %3389, %v2738_v46  }
  0x93   : > { %v455_v47 = vpop.permute.xlu0 %454  ;;  %v465_v4 = vpop.permute.xlu1 %464 }
  0x97   : > { %v460_v57 = vpop.permute.xlu0 %459  ;;  %v470_v25 = vpop.permute.xlu1 %469 }
  0xfc   : > { %v647_v48 = vpop.f32.mrb[0].mxu0 }
  0xfd   : > { %v648_v49 = vadd.f32 %v647_v48, %v455_v47  ;;  %v808_v50 = vpop.f32.mrb[0].mxu1  ;;  %v649_v51 = vpop.f32.mrb[1].mxu0 }
  0xfe   : > { %v809_v52 = vadd.f32 %v808_v50, %v455_v47  ;;  %v650_v53 = vadd.f32 %v649_v51, %v455_v47  ;;  %v810_v54 = vpop.f32.mrb[1].mxu1 }
  0xff   : > { %v967_v55 = vmul.f32 0.70710677, %v648_v49  ;;  %v811_v56 = vadd.f32 %v810_v54, %v455_v47  ;;  %v903_v17 = vmul.f32 0.5, %v648_v49 }
 0x100   : > { %v969_v58 = vmul.f32 0.70710677, %v809_v52  ;;  %v968_v59 = vmul.f32 0.70710677, %v650_v53  ;;  %v653_v61 = vpop.f32.mrb[2].mxu0  ;;  %v905_v26 = vmul.f32 0.5, %v809_v52 }
 0x101   : > { %3390 = verf.f32 %v967_v55  ;;  %v970_v60 = vmul.f32 0.70710677, %v811_v56  ;;  %v814_v62 = vpop.f32.mrb[2].mxu1  ;;  %v654_v63 = vadd.f32 %v653_v61, %v460_v57  ;;  %v655_v1 = vpop.f32.mrb[3].mxu0  ;;  %v4161_v27 = vmul.f32 0.5, %v650_v53 }
 0x102   : > { %3392 = verf.f32 %v969_v58  ;;  %v815_v0 = vadd.f32 %v814_v62, %v460_v57  ;;  %v816_v2 = vpop.f32.mrb[3].mxu1  ;;  %v656_v3 = vadd.f32 %v655_v1, %v460_v57  ;;  %v4163_v31 = vmul.f32 0.5, %v811_v56  ;;  %v475_v55 = vpop.permute.xlu0 %474 }
 0x103   : > { %3394 = verf.f32 %v968_v59  ;;  %v971_v6 = vmul.f32 0.70710677, %v654_v63  ;;  %v817_v10 = vadd.f32 %v816_v2, %v460_v57  ;;  %v907_v35 = vmul.f32 0.5, %v654_v63 }
 0x104   : > { %v659_v7 = vpop.f32.mrb[4].mxu0  ;;  %3396 = verf.f32 %v970_v60  ;;  %v973_v8 = vmul.f32 0.70710677, %v815_v0  ;;  %v972_v9 = vmul.f32 0.70710677, %v656_v3  ;;  %v909_v36 = vmul.f32 0.5, %v815_v0 }
 0x105   : > { %3398 = verf.f32 %v971_v6  ;;  %v660_v11 = vadd.f32 %v659_v7, %v465_v4  ;;  %v820_v12 = vpop.f32.mrb[4].mxu1  ;;  %v661_v13 = vpop.f32.mrb[5].mxu0  ;;  %v974_v20 = vmul.f32 0.70710677, %v817_v10  ;;  %v4165_v37 = vmul.f32 0.5, %v656_v3 }
 0x106   : > { %3400 = verf.f32 %v973_v8  ;;  %v821_v14 = vadd.f32 %v820_v12, %v465_v4  ;;  %v662_v15 = vadd.f32 %v661_v13, %v465_v4  ;;  %v822_v16 = vpop.f32.mrb[5].mxu1  ;;  %v4167_v47 = vmul.f32 0.5, %v817_v10 }
 0x107   : > { %v975_v18 = vmul.f32 0.70710677, %v660_v11  ;;  %3402 = verf.f32 %v972_v9  ;;  %v823_v22 = vadd.f32 %v822_v16, %v465_v4  ;;  %v4169_v52 = vmul.f32 0.5, %v660_v11 }
 0x108   : > { %v665_v19 = vpop.f32.mrb[6].mxu0  ;;  %v977_v21 = vmul.f32 0.70710677, %v821_v14  ;;  %v976_v28 = vmul.f32 0.70710677, %v662_v15  ;;  %v4171_v53 = vmul.f32 0.5, %v821_v14 }
 0x109   : > { %v826_v23 = vpop.f32.mrb[6].mxu1  ;;  %v667_v24 = vpop.f32.mrb[7].mxu0  ;;  %3404 = verf.f32 %v975_v18  ;;  %v666_v32 = vadd.f32 %v665_v19, %v470_v25  ;;  %v978_v40 = vmul.f32 0.70710677, %v823_v22  ;;  %v4173_v56 = vmul.f32 0.5, %v662_v15 }
 0x10a   : > { %v828_v29 = vpop.f32.mrb[7].mxu1  ;;  %3406 = verf.f32 %v977_v21  ;;  %v827_v33 = vadd.f32 %v826_v23, %v470_v25  ;;  %v668_v38 = vadd.f32 %v667_v24, %v470_v25  ;;  %v4175_v57 = vmul.f32 0.5, %v823_v22 }
 0x10b   : > { %v3391_v30 = vpop.eup %3390  ;;  %3408 = verf.f32 %v974_v20  ;;  %v979_v41 = vmul.f32 0.70710677, %v666_v32  ;;  %v829_v42 = vadd.f32 %v828_v29, %v470_v25  ;;  %v915_v19 = vmul.f32 0.5, %v666_v32 }
 0x10c   : > { %v3393_v34 = vpop.eup %3392  ;;  %v671_v39 = vpop.f32.mrb[8].mxu0  ;;  %v1095_v46 = vadd.f32 1.0, %v3391_v30  ;;  %3410 = verf.f32 %v976_v28  ;;  %v981_v48 = vmul.f32 0.70710677, %v827_v33  ;;  %v980_v58 = vmul.f32 0.70710677, %v668_v38 }
 0x10d   : > { %v832_v43 = vpop.f32.mrb[8].mxu1  ;;  %v673_v44 = vpop.f32.mrb[9].mxu0  ;;  %v1097_v51 = vadd.f32 1.0, %v3393_v34  ;;  %3412 = verf.f32 %v979_v41  ;;  %v982_v62 = vmul.f32 0.70710677, %v829_v42  ;;  %v672_v63 = vadd.f32 %v671_v39, %v475_v55 }
 0x10e   : > { %v3395_v45 = vpop.eup %3394  ;;  %v834_v49 = vpop.f32.mrb[9].mxu1  ;;  %3414 = verf.f32 %v981_v48  ;;  %v4177_v2 = vmul.f32 %v1095_v46, %v903_v17  ;;  %v833_v6 = vadd.f32 %v832_v43, %v475_v55  ;;  %v4187_v15 = vadd.f32 %v673_v44, %v475_v55 }
 0x10f   : > { %v3397_v50 = vpop.eup %3396  ;;  %3416 = verf.f32 %v978_v40  ;;  %v1096_v3 = vadd.f32 1.0, %v3395_v45  ;;  %v4181_v9 = vmul.f32 %v1097_v51, %v905_v26  ;;  %v983_v14 = vmul.f32 0.70710677, %v672_v63 }
 0x110   : > { %v3399_v54 = vpop.eup %3398  ;;  %v677_v59 = vpop.f32.mrb[10].mxu0  ;;  %v1098_v10 = vadd.f32 1.0, %v3397_v50  ;;  %3418 = verf.f32 %v980_v58  ;;  %v917_v20 = vmul.f32 0.5, %v827_v33  ;;  %v985_v21 = vmul.f32 0.70710677, %v833_v6 }
 0x111   : > { %v3401_v60 = vpop.eup %3400  ;;  %v1099_v61 = vadd.f32 1.0, %v3399_v54  ;;  %v838_v0 = vpop.f32.mrb[10].mxu1  ;;  %3420 = verf.f32 %v982_v62  ;;  %v4198_v24 = vmul.f32 %v1096_v3, %v4161_v27  ;;  %v4202_v28 = vmul.f32 0.5, %v668_v38 }
 0x112   : > { %v679_v1 = vpop.f32.mrb[11].mxu0  ;;  %v1101_v4 = vadd.f32 1.0, %v3401_v60  ;;  %v4179_v7 = vpop.f32.mrb[11].mxu1  ;;  %v4207_v32 = vmul.f32 %v1098_v10, %v4163_v31  ;;  %v4209_v34 = vmul.f32 0.5, %v829_v42  ;;  %3422 = verf.f32 %v983_v14 }
 0x113   : > { %v3403_v8 = vpop.eup %3402  ;;  %v4183_v11 = vmul.f32 %v1099_v61, %v907_v35  ;;  %v4211_v39 = vmul.f32 0.5, %v672_v63  ;;  %v984_v40 = vmul.f32 0.70710677, %v4187_v15  ;;  %v835_v41 = vadd.f32 %v834_v49, %v475_v55  ;;  %v485_v14 = vpop.permute.xlu0 %484 }
 0x114   : > { %v3405_v12 = vpop.eup %3404  ;;  %v4185_v13 = vmul.f32 %v1101_v4, %v909_v36  ;;  %v4189_v16 = vpop.f32.mrb[12].mxu0  ;;  %v1100_v26 = vadd.f32 1.0, %v3403_v8  ;;  %3424 = verf.f32 %v985_v21  ;;  %v4223_v58 = vmul.f32 0.5, %v833_v6 }
 0x115   : > { %v3407_v17 = vpop.eup %3406  ;;  %v3148_v18 = vpack.c.bf16 %v4183_v11, %v4177_v2  ;;  %v4193_v22 = vpop.f32.mrb[12].mxu1  ;;  %v1103_v33 = vadd.f32 1.0, %v3405_v12  ;;  %v986_v61 = vmul.f32 0.70710677, %v835_v41  ;;  %3426 = verf.f32 %v984_v40 }
 0x116   : > { %v4195_v23 = vpop.f32.mrb[13].mxu0  ;;  %v3180_v25 = vpack.c.bf16 %v4185_v13, %v4181_v9  ;;  %v4204_v29 = vpop.f32.mrb[13].mxu1  ;;  %v1105_v27 = vadd.f32 1.0, %v3407_v17  ;;  %v4221_v50 = vmul.f32 %v1100_v26, %v4165_v37 }
 0x117   : > { %v3409_v30 = vpop.eup %3408  ;;  %v480_v36 = vpop.permute.xlu1 %479  ;;  %v4228_v60 = vmul.f32 %v1103_v33, %v4169_v52  ;;  %3428 = verf.f32 %v986_v61 }
 0x118   : > { %v3411_v35 = vpop.eup %3410  ;;  %v4214_v38 = vpop.f32.mrb[14].mxu0  ;;  %v678_v44 = vadd.f32 %v677_v59, %v480_v36  ;;  %v839_v45 = vadd.f32 %v838_v0, %v480_v36  ;;  %v680_v31 = vadd.f32 %v679_v1, %v480_v36  ;;  %v1102_v51 = vadd.f32 1.0, %v3409_v30 }
 0x119   : > { %v3413_v43 = vpop.eup %3412  ;;  %v4216_v46 = vpop.f32.mrb[14].mxu1  ;;  %v1104_v63 = vadd.f32 1.0, %v3411_v35  ;;  %v4235_v4 = vmul.f32 %v1105_v27, %v4171_v53  ;;  %v841_v21 = vadd.f32 %v4179_v7, %v480_v36  ;;  %v684_v30 = vadd.f32 %v4189_v16, %v485_v14 }
 0x11a   : > { %v4218_v42 = vpop.f32.mrb[15].mxu0  ;;  %v3415_v48 = vpop.eup %3414  ;;  %v1107_v54 = vadd.f32 1.0, %v3413_v43  ;;  %v987_v62 = vmul.f32 0.70710677, %v678_v44  ;;  %v989_v1 = vmul.f32 0.70710677, %v839_v45  ;;  %v1166_v53 = vmul.f32 %v1102_v51, %v4167_v47 }
 0x11b   : > { %v4225_v49 = vpop.f32.mrb[15].mxu1  ;;  %v3417_v55 = vpop.eup %3416  ;;  %v1109_v59 = vadd.f32 1.0, %v3415_v48  ;;  %v988_v8 = vmul.f32 0.70710677, %v680_v31  ;;  %v4253_v33 = vmul.f32 %v1104_v63, %v4173_v56  ;;  %v4256_v35 = vmul.f32 0.5, %v4187_v15 }
 0x11c   : > { %v4230_v0 = vmul.f32 %v1107_v54, %v915_v19  ;;  %v4232_v37 = vpop.f32.mrb[16].mxu0  ;;  %v3419_v3 = vpop.eup %3418  ;;  %v1106_v17 = vadd.f32 1.0, %v3417_v55  ;;  %3430 = verf.f32 %v987_v62  ;;  %v990_v27 = vmul.f32 0.70710677, %v841_v21 }
 0x11d   : > { %v4237_v6 = vmul.f32 %v1109_v59, %v917_v20  ;;  %v4239_v52 = vpop.f32.mrb[16].mxu1  ;;  %v4241_v10 = vpop.f32.mrb[17].mxu0  ;;  %3432 = verf.f32 %v989_v1  ;;  %v1108_v36 = vadd.f32 1.0, %v3419_v3  ;;  %v991_v47 = vmul.f32 0.70710677, %v684_v30 }
 0x11e   : > { %v3421_v12 = vpop.eup %3420  ;;  %v4246_v26 = vpop.f32.mrb[17].mxu1  ;;  %3434 = verf.f32 %v988_v8  ;;  %v845_v48 = vadd.f32 %v4193_v22, %v485_v14  ;;  %v4266_v56 = vmul.f32 %v1106_v17, %v4175_v57  ;;  %v4268_v16 = vmul.f32 0.5, %v835_v41 }
 0x11f   : > { %v3423_v7 = vpop.eup %3422  ;;  %v1110_v43 = vadd.f32 1.0, %v3421_v12  ;;  %3436 = verf.f32 %v990_v27  ;;  %v686_v15 = vadd.f32 %v4195_v23, %v485_v14  ;;  %v923_v61 = vmul.f32 0.5, %v678_v44  ;;  %v490_v1 = vpop.permute.xlu1 %489 }
 0x120   : > { %v4258_v40 = vpop.f32.mrb[18].mxu0  ;;  %v3425_v59 = vpop.eup %3424  ;;  %v925_v62 = vmul.f32 0.5, %v839_v45  ;;  %v4273_v63 = vmul.f32 0.5, %v680_v31  ;;  %v993_v22 = vmul.f32 0.70710677, %v845_v48  ;;  %v1111_v3 = vadd.f32 1.0, %v3423_v7 }
 0x121   : > { %v4261_v51 = vpop.f32.mrb[18].mxu1  ;;  %v4263_v54 = vpop.f32.mrb[19].mxu0  ;;  %3438 = verf.f32 %v991_v47  ;;  %v992_v8 = vmul.f32 0.70710677, %v686_v15  ;;  %v4276_v57 = vadd.f32 %v4204_v29, %v485_v14  ;;  %v4281_v12 = vmul.f32 %v1108_v36, %v4202_v28 }
 0x122   : > { %v4271_v55 = vpop.f32.mrb[19].mxu1  ;;  %v4284_v23 = vmul.f32 %v1110_v43, %v4209_v34  ;;  %v4286_v44 = vmul.f32 0.5, %v841_v21  ;;  %v3146_v45 = vpack.c.bf16 %v4221_v50, %v4198_v24  ;;  %v3427_v27 = vpop.eup %3426  ;;  %v1113_v29 = vadd.f32 1.0, %v3425_v59 }
 0x123   : > { %v3178_v14 = vpack.c.bf16 %v1166_v53, %v4207_v32  ;;  %v690_v7 = vadd.f32 %v4214_v38, %v490_v1  ;;  %v851_v28 = vadd.f32 %v4216_v46, %v490_v1  ;;  %v3429_v34 = vpop.eup %3428  ;;  %v4299_v21 = vmul.f32 0.5, %v684_v30 }
 0x124   : > { %v4278_v41 = vpop.f32.mrb[20].mxu0  ;;  %3440 = verf.f32 %v993_v22  ;;  %3147 = vmatprep.subr.bf16.mxu0 %v3146_v45  ;;  %v692_v24 = vadd.f32 %v4218_v42, %v490_v1  ;;  %v853_v50 = vadd.f32 %v4225_v49, %v490_v1  ;;  %v4304_v47 = vmul.f32 %v1111_v3, %v4211_v39 }
 0x125   : > { %v4290_v31 = vpop.f32.mrb[20].mxu1  ;;  %v4292_v17 = vpop.f32.mrb[21].mxu0  ;;  %3442 = verf.f32 %v992_v8  ;;  %v994_v32 = vmul.f32 0.70710677, %v4276_v57  ;;  %3179 = vmatprep.subr.bf16.mxu1 %v3178_v14  ;;  %v995_v38 = vmul.f32 0.70710677, %v690_v7  ;;  %3149 = vmatpush1.bf16.msra.mxu0 %v3148_v18  ;;  %v4318_v22 = vmul.f32 %v1113_v29, %v4223_v58 }
 0x126   : > { %v4297_v36 = vpop.f32.mrb[21].mxu1  ;;  %v3431_v43 = vpop.eup %3430  ;;  %v4312_v42 = vmul.f32 0.5, %v845_v48  ;;  %v997_v49 = vmul.f32 0.70710677, %v851_v28  ;;  %3181 = vmatpush1.bf16.msra.mxu1 %v3180_v25  ;;  %v996_v39 = vmul.f32 0.70710677, %v692_v24 }
 0x127   : > { %v3433_v53 = vpop.eup %3432  ;;  %v1115_v30 = vadd.f32 1.0, %v3431_v43  ;;  %v4320_v3 = vmul.f32 0.5, %v686_v15  ;;  %3444 = verf.f32 %v995_v38  ;;  %v495_v18 = vpop.permute.xlu0 %494  ;;  %v1112_v48 = vadd.f32 1.0, %v3427_v27 }
 0x128   : > { %v4310_v46 = vpop.f32.mrb[22].mxu0  ;;  %v3435_v59 = vpop.eup %3434  ;;  %v1117_v1 = vadd.f32 1.0, %v3433_v53  ;;  %3446 = verf.f32 %v997_v49  ;;  %v998_v9 = vmul.f32 0.70710677, %v853_v50  ;;  %v696_v58 = vadd.f32 %v4232_v37, %v495_v18 }
 0x129   : > { %v4322_v2 = vpop.f32.mrb[22].mxu1  ;;  %v4324_v11 = vpop.f32.mrb[23].mxu0  ;;  %v4326_v8 = vmul.f32 %v1115_v30, %v923_v61  ;;  %3448 = verf.f32 %v994_v32  ;;  %v857_v15 = vadd.f32 %v4239_v52, %v495_v18  ;;  %v1114_v14 = vadd.f32 1.0, %v3429_v34 }
 0x12a   : > { %v4328_v13 = vpop.f32.mrb[23].mxu1  ;;  %v3437_v25 = vpop.eup %3436  ;;  %v4330_v45 = vmul.f32 %v1117_v1, %v925_v62  ;;  %v1116_v61 = vadd.f32 1.0, %v3435_v59  ;;  %3450 = verf.f32 %v996_v39  ;;  %v999_v37 = vmul.f32 0.70710677, %v696_v58 }
 0x12b   : > { %v3439_v53 = vpop.eup %3438  ;;  %v1118_v32 = vadd.f32 1.0, %v3437_v25  ;;  %3452 = verf.f32 %v998_v9  ;;  %v4347_v34 = vmul.f32 %v1112_v48, %v4256_v35  ;;  %v4350_v30 = vmul.f32 0.5, %v4276_v57 }
 0x12c   : > { %v4334_v29 = vpop.f32.mrb[24].mxu0  ;;  %v1001_v49 = vmul.f32 0.70710677, %v857_v15  ;;  %v698_v39 = vadd.f32 %v4241_v10, %v495_v18  ;;  %v931_v59 = vmul.f32 0.5, %v690_v7  ;;  %v933_v1 = vmul.f32 0.5, %v851_v28 }
 0x12d   : > { %v4338_v43 = vpop.f32.mrb[24].mxu1  ;;  %v4340_v38 = vpop.f32.mrb[25].mxu0  ;;  %3454 = verf.f32 %v999_v37  ;;  %v4354_v5 = vadd.f32 %v4246_v26, %v495_v18  ;;  %v4359_v62 = vmul.f32 %v1114_v14, %v4268_v16  ;;  %v1119_v35 = vadd.f32 1.0, %v3439_v53 }
 0x12e   : > { %v4344_v52 = vpop.f32.mrb[25].mxu1  ;;  %v3441_v9 = vpop.eup %3440  ;;  %v4361_v48 = vmul.f32 0.5, %v692_v24  ;;  %v4363_v57 = vmul.f32 0.5, %v853_v50  ;;  %v4370_v28 = vmul.f32 %v1116_v61, %v4273_v63  ;;  %v4373_v26 = vmul.f32 %v1118_v32, %v4286_v44 }
 0x12f   : > { %v3443_v7 = vpop.eup %3442  ;;  %v4375_v18 = vmul.f32 0.5, %v696_v58  ;;  %v1000_v16 = vmul.f32 0.70710677, %v698_v39  ;;  %v500_v24 = vpop.permute.xlu1 %499  ;;  %3456 = verf.f32 %v1001_v49  ;;  %v1002_v50 = vmul.f32 0.70710677, %v4354_v5 }
 0x130   : > { %v4356_v25 = vpop.f32.mrb[26].mxu0  ;;  %v3150_v53 = vpack.c.bf16 %v4281_v12, %v4253_v33  ;;  %v3182_v37 = vpack.c.bf16 %v4284_v23, %v4266_v56  ;;  %v1121_v61 = vadd.f32 1.0, %v3441_v9  ;;  %v4384_v20 = vmul.f32 0.5, %v857_v15 }
 0x131   : > { %v4365_v27 = vpop.f32.mrb[26].mxu1  ;;  %v4367_v10 = vpop.f32.mrb[27].mxu0  ;;  %v702_v44 = vadd.f32 %v4258_v40, %v500_v24  ;;  %v863_v58 = vadd.f32 %v4261_v51, %v500_v24  ;;  %v4391_v49 = vmul.f32 %v1119_v35, %v4299_v21  ;;  %v704_v33 = vadd.f32 %v4263_v54, %v500_v24 }
 0x132   : > { %5687 = vst [vmem:[#allocation3_spill] sm:$0xff] %v4367_v10  ;;  %v4377_v14 = vpop.f32.mrb[27].mxu1  ;;  %v3445_v63 = vpop.eup %3444  ;;  %3151 = vmatprep.subr.bf16.mxu0 %v3150_v53  ;;  %3183 = vmatprep.subr.bf16.mxu1 %v3182_v37  ;;  %3458 = verf.f32 %v1000_v16  ;;  %v5689_v9 = vpack.c.bf16 %v4230_v0, %v4228_v60  ;;  %v5690_v21 = vpack.c.bf16 %v4237_v6, %v4235_v4 }
 0x133   : > { %5688 = vst [vmem:[#allocation4_spill] sm:$0xff] %v4377_v14  ;;  %v3447_v19 = vpop.eup %3446  ;;  %v1120_v14 = vadd.f32 1.0, %v3443_v7  ;;  %v1123_v10 = vadd.f32 1.0, %v3445_v63  ;;  %v505_v40 = vpop.permute.xlu0 %504  ;;  %v1003_v51 = vmul.f32 0.70710677, %v702_v44  ;;  %v865_v35 = vadd.f32 %v4271_v55, %v500_v24 }
 0x134   : > { %v4388_v32 = vpop.f32.mrb[28].mxu0  ;;  %v3449_v23 = vpop.eup %3448  ;;  %v1125_v15 = vadd.f32 1.0, %v3447_v19  ;;  %3153 = vmatpush1.bf16.msra.mxu0 %v5689_v9  ;;  %3185 = vmatpush1.bf16.msra.mxu1 %v5690_v21  ;;  %3460 = verf.f32 %v1002_v50  ;;  %v1005_v37 = vmul.f32 0.70710677, %v863_v58  ;;  %v708_v19 = vadd.f32 %v4278_v41, %v505_v40 }
 0x135   : > { %v4394_v56 = vpop.f32.mrb[28].mxu1  ;;  %v4396_v12 = vpop.f32.mrb[29].mxu0  ;;  %v4407_v53 = vmul.f32 %v1123_v10, %v931_v59  ;;  %v4411_v63 = vmul.f32 %v1121_v61, %v4312_v42  ;;  %3462 = verf.f32 %v1003_v51  ;;  %v1004_v0 = vmul.f32 0.70710677, %v704_v33 }
 0x136   : > { %v4405_v54 = vpop.f32.mrb[29].mxu1  ;;  %v3451_v7 = vpop.eup %3450  ;;  %v4413_v60 = vmul.f32 %v1125_v15, %v933_v1  ;;  %v1122_v6 = vadd.f32 1.0, %v3449_v23  ;;  %v4419_v59 = vmul.f32 0.5, %v698_v39  ;;  %3464 = verf.f32 %v1005_v37 }
 0x137   : > { %v3453_v16 = vpop.eup %3452  ;;  %v1124_v1 = vadd.f32 1.0, %v3451_v7  ;;  %v4428_v50 = vmul.f32 0.5, %v4354_v5  ;;  %v1006_v61 = vmul.f32 0.70710677, %v865_v35  ;;  %3466 = verf.f32 %v1004_v0 }
 0x138   : > { %v4415_v4 = vpop.f32.mrb[30].mxu0  ;;  %v3455_v24 = vpop.eup %3454  ;;  %v1126_v15 = vadd.f32 1.0, %v3453_v16  ;;  %v1007_v39 = vmul.f32 0.70710677, %v708_v19  ;;  %v869_v51 = vadd.f32 %v4290_v31, %v505_v40  ;;  %v4434_v9 = vmul.f32 %v1120_v14, %v4320_v3 }
 0x139   : > { %v4421_v10 = vpop.f32.mrb[30].mxu1  ;;  %v4423_v41 = vpop.f32.mrb[31].mxu0  ;;  %3468 = verf.f32 %v1006_v61  ;;  %v710_v21 = vadd.f32 %v4292_v17, %v505_v40  ;;  %v871_v37 = vadd.f32 %v4297_v36, %v505_v40  ;;  %v4439_v5 = vmul.f32 %v1122_v6, %v4350_v30 }
 0x13a   : > { %v4430_v23 = vpop.f32.mrb[31].mxu1  ;;  %v3457_v7 = vpop.eup %3456  ;;  %v1127_v42 = vadd.f32 1.0, %v3455_v24  ;;  %v939_v55 = vmul.f32 0.5, %v702_v44  ;;  %v941_v16 = vmul.f32 0.5, %v863_v58  ;;  %v4441_v0 = vmul.f32 0.5, %v704_v33 }
 0x13b   : > { %5691 = vst [vmem:[#allocation5_spill] sm:$0xff] %v4430_v23  ;;  %v1009_v23 = vmul.f32 0.70710677, %v869_v51  ;;  %3470 = verf.f32 %v1007_v39  ;;  %v1008_v31 = vmul.f32 0.70710677, %v710_v21  ;;  %v4444_v3 = vmul.f32 %v1124_v1, %v4361_v48  ;;  %v510_v30 = vpop.permute.xlu1 %509 }
 0x13c   : > { %v4447_v14 = vmul.f32 %v1126_v15, %v4363_v57  ;;  %v4449_v17 = vmul.f32 0.5, %v865_v35  ;;  %v1010_v36 = vmul.f32 0.70710677, %v871_v37  ;;  %v3459_v40 = vpop.eup %3458  ;;  %v1129_v6 = vadd.f32 1.0, %v3457_v7 }
 0x13d   : > { %v4451_v24 = vmul.f32 0.5, %v708_v19  ;;  %v3154_v44 = vpack.c.bf16 %v4370_v28, %v4347_v34  ;;  %v3186_v58 = vpack.c.bf16 %v4373_v26, %v4359_v62  ;;  %v4458_v48 = vmul.f32 %v1127_v42, %v4375_v18  ;;  %v515_v26 = vpop.permute.xlu0 %514 }
 0x13e   : > { %v3461_v33 = vpop.eup %3460  ;;  %3472 = verf.f32 %v1009_v23  ;;  %v714_v57 = vadd.f32 %v4310_v46, %v510_v30  ;;  %v875_v35 = vadd.f32 %v4322_v2, %v510_v30  ;;  %v4462_v61 = vmul.f32 0.5, %v869_v51 }
 0x13f   : > { %v3463_v1 = vpop.eup %3462  ;;  %3474 = verf.f32 %v1008_v31  ;;  %3155 = vmatprep.subr.bf16.mxu0 %v3154_v44  ;;  %3187 = vmatprep.subr.bf16.mxu1 %v3186_v58  ;;  %v716_v34 = vadd.f32 %v4324_v11, %v510_v30  ;;  %v877_v28 = vadd.f32 %v4328_v13, %v510_v30  ;;  %v1128_v19 = vadd.f32 1.0, %v3459_v40 }
 0x140   : > { %v3465_v62 = vpop.eup %3464  ;;  %v1131_v18 = vadd.f32 1.0, %v3463_v1  ;;  %3476 = verf.f32 %v1010_v36  ;;  %v1011_v42 = vmul.f32 0.70710677, %v714_v57  ;;  %v5692_v46 = vpack.c.bf16 %v4326_v8, %v4304_v47 }
 0x141   : > { %v5693_v2 = vpack.c.bf16 %v4330_v45, %v4318_v22  ;;  %v1133_v23 = vadd.f32 1.0, %v3465_v62  ;;  %v1013_v15 = vmul.f32 0.70710677, %v875_v35  ;;  %v1012_v39 = vmul.f32 0.70710677, %v716_v34  ;;  %v3467_v13 = vpop.eup %3466 }
 0x142   : > { %3157 = vmatpush1.bf16.msra.mxu0 %v5692_v46  ;;  %v720_v11 = vadd.f32 %v4334_v29, %v515_v26  ;;  %v4474_v51 = vmul.f32 %v1129_v6, %v4384_v20  ;;  %v4476_v7 = vmul.f32 %v1131_v18, %v939_v55  ;;  %v4478_v31 = vmul.f32 0.5, %v710_v21 }
 0x143   : > { %3189 = vmatpush1.bf16.msra.mxu1 %v5693_v2  ;;  %3478 = verf.f32 %v1011_v42  ;;  %v3469_v47 = vpop.eup %3468  ;;  %v1130_v8 = vadd.f32 1.0, %v3461_v33  ;;  %v4480_v36 = vmul.f32 %v1133_v23, %v941_v16  ;;  %v1014_v22 = vmul.f32 0.70710677, %v877_v28 }
 0x144   : > { %3480 = verf.f32 %v1013_v15  ;;  %v4483_v45 = vmul.f32 %v1128_v19, %v4419_v59  ;;  %v3164_v29 = vpack.c.bf16 %v4476_v7, %v4458_v48  ;;  %v4487_v40 = vmul.f32 0.5, %v871_v37 }
 0x145   : > { %3482 = verf.f32 %v1012_v39  ;;  %v3471_v20 = vpop.eup %3470  ;;  %v3196_v55 = vpack.c.bf16 %v4480_v36, %v4474_v51  ;;  %v1132_v21 = vadd.f32 1.0, %v3467_v13  ;;  %v1015_v30 = vmul.f32 0.70710677, %v720_v11  ;;  %v5695_v39 = vld [vmem:[#allocation3_spill] sm:$0xff]  ;;  %v5696_v13 = vld [vmem:[#allocation4_spill] sm:$0xff] }
 0x146   : > { %3484 = verf.f32 %v1014_v22  ;;  %v1134_v16 = vadd.f32 1.0, %v3469_v47  ;;  %v881_v6 = vadd.f32 %v4338_v43, %v515_v26  ;;  %v722_v44 = vadd.f32 %v4340_v38, %v515_v26  ;;  %v525_v22 = vpop.permute.xlu0 %524 }
 0x147   : > { %v883_v59 = vadd.f32 %v4344_v52, %v515_v26  ;;  %v4495_v58 = vmul.f32 %v1130_v8, %v4428_v50  ;;  %v947_v37 = vmul.f32 0.5, %v714_v57  ;;  %3486 = verf.f32 %v1015_v30  ;;  %v520_v26 = vpop.permute.xlu1 %519 }
 0x148   : > { %v3158_v33 = vpack.c.bf16 %v4444_v3, %v4434_v9  ;;  %v3473_v1 = vpop.eup %3472  ;;  %v1135_v62 = vadd.f32 1.0, %v3471_v20  ;;  %v949_v19 = vmul.f32 0.5, %v875_v35  ;;  %v4499_v18 = vmul.f32 0.5, %v716_v34 }
 0x149   : > { %v1017_v42 = vmul.f32 0.70710677, %v881_v6  ;;  %v3475_v46 = vpop.eup %3474  ;;  %v4502_v43 = vmul.f32 %v1132_v21, %v4441_v0  ;;  %v4504_v38 = vmul.f32 0.5, %v877_v28  ;;  %v4506_v52 = vmul.f32 0.5, %v720_v11 }
 0x14a   : > { %v1016_v50 = vmul.f32 0.70710677, %v722_v44  ;;  %3159 = vmatprep.subr.bf16.mxu0 %v3158_v33  ;;  %v3477_v57 = vpop.eup %3476  ;;  %v4509_v9 = vmul.f32 %v1134_v16, %v4449_v17  ;;  %v1018_v3 = vmul.f32 0.70710677, %v883_v59  ;;  %v3190_v35 = vpack.c.bf16 %v4447_v14, %v4439_v5 }
 0x14b   : > { %3488 = verf.f32 %v1017_v42  ;;  %v5694_v0 = vpack.c.bf16 %v4407_v53, %v4391_v49  ;;  %v1137_v34 = vadd.f32 1.0, %v3473_v1  ;;  %v726_v28 = vadd.f32 %v4356_v25, %v520_v26 }
 0x14c   : > { %3490 = verf.f32 %v1016_v50  ;;  %v887_v2 = vadd.f32 %v4365_v27, %v520_v26  ;;  %v4519_v15 = vmul.f32 %v1135_v62, %v4451_v24  ;;  %v1136_v17 = vadd.f32 1.0, %v3475_v46  ;;  %3191 = vmatprep.subr.bf16.mxu1 %v3190_v35  ;;  %v530_v50 = vpop.permute.xlu1 %529 }
 0x14d   : > { %3161 = vmatpush1.bf16.msra.mxu0 %v5694_v0  ;;  %v3479_v23 = vpop.eup %3478  ;;  %v728_v11 = vadd.f32 %v5695_v39, %v520_v26  ;;  %v889_v5 = vadd.f32 %v5696_v13, %v520_v26  ;;  %v953_v49 = vmul.f32 0.5, %v881_v6  ;;  %v4523_v53 = vmul.f32 0.5, %v722_v44 }
 0x14e   : > { %v3481_v14 = vpop.eup %3480  ;;  %v1139_v47 = vadd.f32 1.0, %v3479_v23  ;;  %v1019_v8 = vmul.f32 0.70710677, %v726_v28  ;;  %v5697_v25 = vpack.c.bf16 %v4413_v60, %v4411_v63  ;;  %3492 = verf.f32 %v1018_v3 }
 0x14f   : > { %v3483_v27 = vpop.eup %3482  ;;  %v1141_v24 = vadd.f32 1.0, %v3481_v14  ;;  %v1021_v20 = vmul.f32 0.70710677, %v887_v2  ;;  %v1020_v21 = vmul.f32 0.70710677, %v728_v11  ;;  %v4529_v16 = vmul.f32 %v1137_v34, %v4462_v61 }
 0x150   : > { %3193 = vmatpush1.bf16.msra.mxu1 %v5697_v25  ;;  %v3485_v30 = vpop.eup %3484  ;;  %v4531_v33 = vmul.f32 %v1139_v47, %v947_v37  ;;  %3494 = verf.f32 %v1019_v8  ;;  %v4534_v6 = vadd.f32 %v4388_v32, %v525_v22  ;;  %v1138_v44 = vadd.f32 1.0, %v3477_v57 }
 0x151   : > { %v4536_v1 = vmul.f32 %v1141_v24, %v949_v19  ;;  %3496 = verf.f32 %v1021_v20  ;;  %v1022_v63 = vmul.f32 0.70710677, %v889_v5  ;;  %v3487_v60 = vpop.eup %3486  ;;  %v1200_v62 = vmul.f32 %v1136_v17, %v4478_v31 }
 0x152   : > { %v3168_v42 = vpack.c.bf16 %v4531_v33, %v4519_v15  ;;  %v4541_v46 = vmul.f32 0.5, %v883_v59  ;;  %3498 = verf.f32 %v1020_v21  ;;  %v1140_v37 = vadd.f32 1.0, %v3483_v27 }
 0x153   : > { %v3200_v61 = vpack.c.bf16 %v4536_v1, %v4529_v16  ;;  %v1142_v32 = vadd.f32 1.0, %v3485_v30  ;;  %3500 = verf.f32 %v1022_v63  ;;  %v1023_v19 = vmul.f32 0.70710677, %v4534_v6 }
 0x154   : > { %v4547_v57 = vadd.f32 %v4394_v56, %v525_v22  ;;  %v4550_v31 = vadd.f32 %v4396_v12, %v525_v22  ;;  %v4553_v26 = vadd.f32 %v4405_v54, %v525_v22  ;;  %v1143_v3 = vadd.f32 1.0, %v3487_v60 }
 0x155   : > { %v3489_v59 = vpop.eup %3488  ;;  %v3162_v35 = vpack.c.bf16 %v4502_v43, %v4483_v45  ;;  %v3194_v0 = vpack.c.bf16 %v4509_v9, %v4495_v58  ;;  %v4560_v34 = vadd.f32 %v4415_v4, %v530_v50  ;;  %v1202_v56 = vmul.f32 %v1138_v44, %v4487_v40 }
 0x156   : > { %v3491_v23 = vpop.eup %3490  ;;  %v1145_v17 = vadd.f32 1.0, %v3489_v59  ;;  %v955_v12 = vmul.f32 0.5, %v726_v28  ;;  %v1025_v39 = vmul.f32 0.70710677, %v4547_v57  ;;  %v1204_v54 = vmul.f32 %v1140_v37, %v4499_v18 }
 0x157   : > { %v957_v13 = vmul.f32 0.5, %v887_v2  ;;  %3502 = verf.f32 %v1023_v19  ;;  %v1024_v14 = vmul.f32 0.70710677, %v4550_v31  ;;  %3163 = vmatprep.subr.bf16.mxu0 %v3162_v35  ;;  %3195 = vmatprep.subr.bf16.mxu1 %v3194_v0  ;;  %v1206_v45 = vmul.f32 %v1142_v32, %v4504_v38 }
 0x158   : > { %v956_v58 = vmul.f32 0.5, %v728_v11  ;;  %v958_v4 = vmul.f32 0.5, %v889_v5  ;;  %v1026_v43 = vmul.f32 0.70710677, %v4553_v26  ;;  %3165 = vmatpush1.bf16.msra.mxu0 %v3164_v29  ;;  %3197 = vmatpush1.bf16.msra.mxu1 %v3196_v55  ;;  %v3493_v40 = vpop.eup %3492  ;;  %v1207_v18 = vmul.f32 %v1143_v3, %v4506_v52  ;;  %v5698_v29 = vld [vmem:[#allocation5_spill] sm:$0xff] }
 0x159   : > { %v1144_v9 = vadd.f32 1.0, %v3491_v23  ;;  %3504 = verf.f32 %v1025_v39  ;;  %v1027_v28 = vmul.f32 0.70710677, %v4560_v34  ;;  %v1209_v2 = vmul.f32 %v1145_v17, %v953_v49 }
 0x15a   : > { %v3495_v38 = vpop.eup %3494  ;;  %3506 = verf.f32 %v1024_v14  ;;  %v899_v11 = vadd.f32 %v4421_v10, %v530_v50  ;;  %v740_v5 = vadd.f32 %v4423_v41, %v530_v50  ;;  %v901_v51 = vadd.f32 %v5698_v29, %v530_v50  ;;  %v1227_v29 = vld [vmem:[%s5675_s4 + $0x20] sm:$0xff] }
 0x15b   : > { %v3497_v48 = vpop.eup %3496  ;;  %v1147_v7 = vadd.f32 1.0, %v3495_v38  ;;  %3508 = verf.f32 %v1027_v28  ;;  %v3166_v36 = vpack.c.bf16 %v1204_v54, %v1200_v62  ;;  %v1146_v47 = vadd.f32 1.0, %v3493_v40 }
 0x15c   : > { %v3499_v55 = vpop.eup %3498  ;;  %v1149_v52 = vadd.f32 1.0, %v3497_v48  ;;  %3510 = verf.f32 %v1026_v43  ;;  %v1029_v8 = vmul.f32 0.70710677, %v899_v11  ;;  %v1208_v27 = vmul.f32 %v1144_v9, %v4523_v53  ;;  %v1225_v48 = vld [vmem:[%s5675_s4 + $0x10] sm:$0xff] }
 0x15d   : > { %v3501_v25 = vpop.eup %3500  ;;  %v1211_v49 = vmul.f32 %v1147_v7, %v955_v12  ;;  %v1148_v22 = vadd.f32 1.0, %v3499_v55  ;;  %v1028_v24 = vmul.f32 0.70710677, %v740_v5  ;;  %3167 = vmatprep.subr.bf16.mxu0 %v3166_v36  ;;  %v1030_v20 = vmul.f32 0.70710677, %v901_v51  ;;  %v1226_v7 = vld [vmem:[%s5675_s4 + $0x18] sm:$0xff] }
 0x15e   : > { %v1213_v10 = vmul.f32 %v1149_v52, %v957_v13  ;;  %v1150_v41 = vadd.f32 1.0, %v3501_v25  ;;  %3512 = verf.f32 %v1029_v8  ;;  %3169 = vmatpush1.bf16.msra.mxu0 %v3168_v42  ;;  %v3198_v44 = vpack.c.bf16 %v1206_v45, %v1202_v56  ;;  %v1229_v36 = vld [vmem:[%s5675_s4 + $0x30] sm:$0xff]  ;;  %v1230_v55 = vld [vmem:[%s5675_s4 + $0x38] sm:$0xff]  ;;  %v1232_v52 = vld [vmem:[%s5675_s4 + $0x48] sm:$0xff] }
 0x15f   : > { %v3172_v21 = vpack.c.bf16 %v1211_v49, %v1207_v18  ;;  %v1212_v30 = vmul.f32 %v1148_v22, %v956_v58  ;;  %3514 = verf.f32 %v1028_v24  ;;  %v1210_v63 = vmul.f32 %v1146_v47, %v4541_v46  ;;  %v1231_v47 = vld [vmem:[%s5675_s4 + $0x40] sm:$0xff]  ;;  %v1233_v8 = vld [vmem:[%s5675_s4 + $0x50] sm:$0xff]  ;;  %v1234_v25 = vld [vmem:[%s5675_s4 + $0x58] sm:$0xff] }
 0x160   : > { %v3204_v60 = vpack.c.bf16 %v1213_v10, %v1209_v2  ;;  %v1214_v53 = vmul.f32 %v1150_v41, %v958_v4  ;;  %3516 = verf.f32 %v1030_v20  ;;  %3199 = vmatprep.subr.bf16.mxu1 %v3198_v44  ;;  %v959_v46 = vmul.f32 0.5, %v4534_v6  ;;  %v1236_v49 = vld [vmem:[%s5675_s4 + $0x68] sm:$0xff]  ;;  %v1237_v22 = vld [vmem:[%s5675_s4 + $0x70] sm:$0xff]  ;;  %v1238_v24 = vld [vmem:[%s5675_s4 + $0x78] sm:$0xff]  ;;  %v1258_v10 = vpop.permute.xlu0 %1257 }
 0x161   : > { %v3503_v62 = vpop.eup %3502  ;;  %v3170_v37 = vpack.c.bf16 %v1212_v30, %v1208_v27  ;;  %3201 = vmatpush1.bf16.msra.mxu1 %v3200_v61  ;;  %v963_v59 = vmul.f32 0.5, %v4560_v34  ;;  %v961_v16 = vmul.f32 0.5, %v4547_v57  ;;  %v960_v17 = vmul.f32 0.5, %v4550_v31  ;;  %v1235_v27 = vld [vmem:[%s5675_s4 + $0x60] sm:$0xff] }
 0x162   : > { %v3202_v32 = vpack.c.bf16 %v1214_v53, %v1210_v63  ;;  %v1151_v33 = vadd.f32 1.0, %v3503_v62  ;;  %v965_v39 = vmul.f32 0.5, %v899_v11  ;;  %v962_v6 = vmul.f32 0.5, %v4553_v26  ;;  %v1223_v26 = vld [vmem:[%s5675_s4] sm:$0xff] }
 0x163   : > { %v3505_v50 = vpop.eup %3504  ;;  %3171 = vmatprep.subr.bf16.mxu0 %v3170_v37  ;;  %v964_v34 = vmul.f32 0.5, %v740_v5  ;;  %v966_v43 = vmul.f32 0.5, %v901_v51  ;;  %v5699_v11 = vmov 0.0   ;;  %v1224_v5 = vld [vmem:[%s5675_s4 + $0x8] sm:$0xff]  ;;  %v1263_v37 = vpop.permute.xlu1 %1262 }
 0x164   : > { %v3507_v15 = vpop.eup %3506  ;;  %3203 = vmatprep.subr.bf16.mxu1 %v3202_v32  ;;  %3173 = vmatpush1.bf16.msra.mxu0 %v3172_v21  ;;  %v1153_v35 = vadd.f32 1.0, %v3505_v50  ;;  %v1215_v23 = vmul.f32 %v1151_v33, %v959_v46  ;;  %v1228_v51 = vld [vmem:[%s5675_s4 + $0x28] sm:$0xff] }
 0x165   : > { %v3509_v42 = vpop.eup %3508  ;;  %3205 = vmatpush1.bf16.msra.mxu1 %v3204_v60  ;;  %v1152_v1 = vadd.f32 1.0, %v3507_v15 }
 0x166   : > { %v3511_v19 = vpop.eup %3510  ;;  %v1155_v3 = vadd.f32 1.0, %v3509_v42  ;;  %v1217_v58 = vmul.f32 %v1153_v35, %v961_v16  ;;  %v1268_v16 = vpop.permute.xlu0 %1267 }
 0x167   : > { %v1154_v12 = vadd.f32 1.0, %v3511_v19  ;;  %v1216_v18 = vmul.f32 %v1152_v1, %v960_v17 }
 0x168   : > { %v3513_v0 = vpop.eup %3512  ;;  %v1219_v61 = vmul.f32 %v1155_v3, %v963_v59 }
 0x169   : > { %v3515_v56 = vpop.eup %3514  ;;  %v1157_v54 = vadd.f32 1.0, %v3513_v0  ;;  %v1218_v9 = vmul.f32 %v1154_v12, %v962_v6 }
 0x16a   : > { %v3517_v13 = vpop.eup %3516  ;;  %v3176_v14 = vpack.c.bf16 %v1219_v61, %v1215_v23  ;;  %v1156_v45 = vadd.f32 1.0, %v3515_v56 }
 0x16b   : > { %v1221_v4 = vmul.f32 %v1157_v54, %v965_v39  ;;  %v1158_v40 = vadd.f32 1.0, %v3517_v13 }
 0x16c   : > { %v1220_v57 = vmul.f32 %v1156_v45, %v964_v34 }
 0x16d   : > { %v3208_v28 = vpack.c.bf16 %v1221_v4, %v1217_v58  ;;  %v1222_v38 = vmul.f32 %v1158_v40, %v966_v43 }
 0x16e   : > { %v3174_v2 = vpack.c.bf16 %v1220_v57, %v1216_v18  ;;  %v1273_v57 = vpop.permute.xlu1 %1272 }
 0x16f   : > { %v3206_v31 = vpack.c.bf16 %v1222_v38, %v1218_v9 }
 0x170   : > { %3175 = vmatprep.subr.bf16.mxu0 %v3174_v2 }
 0x171   : > { %3207 = vmatprep.subr.bf16.mxu1 %v3206_v31  ;;  %3177 = vmatpush1.bf16.msra.mxu0 %v3176_v14 }
 0x172   : > { %3209 = vmatpush1.bf16.msra.mxu1 %v3208_v28 }
 0x174   : > { %1400 = vmatmul.mubr.f32.vlgmr.msra.gmra.mrb[32].mxu0 %v1223_v26 }
 0x175   : > { %1561 = vmatmul.mubr.f32.vlgmr.msra.gmra.mrb[32].mxu1 %v1223_v26  ;;  %1405 = vmatprep.mubr.f32.mxu0 %v5699_v11 }
 0x176   : > { %1566 = vmatprep.mubr.f32.mxu1 %v5699_v11 }
 0x178   : > { %1406 = vmatmul.mubr.f32.gmra.mrb[34].mxu0 %v1224_v5 }
 0x179   : > { %1567 = vmatmul.mubr.f32.gmra.mrb[34].mxu1 %v1224_v5  ;;  %1411 = vmatprep.mubr.f32.mxu0 %v5699_v11 }
 0x17a   : > { %1572 = vmatprep.mubr.f32.mxu1 %v5699_v11 }
 0x17c   : > { %1412 = vmatmul.mubr.f32.gmra.mrb[36].mxu0 %v1225_v48 }
 0x17d   : > { %1573 = vmatmul.mubr.f32.gmra.mrb[36].mxu1 %v1225_v48  ;;  %1417 = vmatprep.mubr.f32.mxu0 %v5699_v11 }
 0x17e   : > { %1578 = vmatprep.mubr.f32.mxu1 %v5699_v11 }
 0x180   : > { %1418 = vmatmul.mubr.f32.gmra.mrb[38].mxu0 %v1226_v7 }
 0x181   : > { %1579 = vmatmul.mubr.f32.gmra.mrb[38].mxu1 %v1226_v7  ;;  %1423 = vmatprep.mubr.f32.mxu0 %v5699_v11 }
 0x182   : > { %1584 = vmatprep.mubr.f32.mxu1 %v5699_v11 }
 0x184   : > { %1424 = vmatmul.mubr.f32.gmra.mrb[40].mxu0 %v1227_v29 }
 0x185   : > { %1585 = vmatmul.mubr.f32.gmra.mrb[40].mxu1 %v1227_v29  ;;  %1429 = vmatprep.mubr.f32.mxu0 %v5699_v11 }
 0x186   : > { %1590 = vmatprep.mubr.f32.mxu1 %v5699_v11 }
 0x188   : > { %1430 = vmatmul.mubr.f32.gmra.mrb[42].mxu0 %v1228_v51 }
 0x189   : > { %1591 = vmatmul.mubr.f32.gmra.mrb[42].mxu1 %v1228_v51  ;;  %1435 = vmatprep.mubr.f32.mxu0 %v5699_v11 }
 0x18a   : > { %1596 = vmatprep.mubr.f32.mxu1 %v5699_v11 }
 0x18c   : > { %1436 = vmatmul.mubr.f32.gmra.mrb[44].mxu0 %v1229_v36 }
 0x18d   : > { %1597 = vmatmul.mubr.f32.gmra.mrb[44].mxu1 %v1229_v36  ;;  %1441 = vmatprep.mubr.f32.mxu0 %v5699_v11 }
 0x18e   : > { %1602 = vmatprep.mubr.f32.mxu1 %v5699_v11 }
 0x190   : > { %1442 = vmatmul.mubr.f32.gmra.mrb[46].mxu0 %v1230_v55 }
 0x191   : > { %1603 = vmatmul.mubr.f32.gmra.mrb[46].mxu1 %v1230_v55  ;;  %1447 = vmatprep.mubr.f32.mxu0 %v5699_v11 }
 0x192   : > { %1608 = vmatprep.mubr.f32.mxu1 %v5699_v11 }
 0x194   : > { %1448 = vmatmul.mubr.f32.gmra.mrb[48].mxu0 %v1231_v47 }
 0x195   : > { %1609 = vmatmul.mubr.f32.gmra.mrb[48].mxu1 %v1231_v47  ;;  %1453 = vmatprep.mubr.f32.mxu0 %v5699_v11 }
 0x196   : > { %1614 = vmatprep.mubr.f32.mxu1 %v5699_v11 }
 0x198   : > { %1454 = vmatmul.mubr.f32.gmra.mrb[50].mxu0 %v1232_v52 }
 0x199   : > { %1615 = vmatmul.mubr.f32.gmra.mrb[50].mxu1 %v1232_v52  ;;  %1459 = vmatprep.mubr.f32.mxu0 %v5699_v11 }
 0x19a   : > { %1620 = vmatprep.mubr.f32.mxu1 %v5699_v11 }
 0x19c   : > { %1460 = vmatmul.mubr.f32.gmra.mrb[52].mxu0 %v1233_v8 }
 0x19d   : > { %1621 = vmatmul.mubr.f32.gmra.mrb[52].mxu1 %v1233_v8  ;;  %1465 = vmatprep.mubr.f32.mxu0 %v5699_v11 }
 0x19e   : > { %1626 = vmatprep.mubr.f32.mxu1 %v5699_v11 }
 0x1a0   : > { %1466 = vmatmul.mubr.f32.gmra.mrb[54].mxu0 %v1234_v25 }
 0x1a1   : > { %1627 = vmatmul.mubr.f32.gmra.mrb[54].mxu1 %v1234_v25  ;;  %1471 = vmatprep.mubr.f32.mxu0 %v5699_v11 }
 0x1a2   : > { %1632 = vmatprep.mubr.f32.mxu1 %v5699_v11 }
 0x1a4   : > { %1472 = vmatmul.mubr.f32.gmra.mrb[56].mxu0 %v1235_v27 }
 0x1a5   : > { %1633 = vmatmul.mubr.f32.gmra.mrb[56].mxu1 %v1235_v27  ;;  %1477 = vmatprep.mubr.f32.mxu0 %v5699_v11 }
 0x1a6   : > { %1638 = vmatprep.mubr.f32.mxu1 %v5699_v11 }
 0x1a8   : > { %1478 = vmatmul.mubr.f32.gmra.mrb[58].mxu0 %v1236_v49 }
 0x1a9   : > { %1639 = vmatmul.mubr.f32.gmra.mrb[58].mxu1 %v1236_v49  ;;  %1483 = vmatprep.mubr.f32.mxu0 %v5699_v11 }
 0x1aa   : > { %1644 = vmatprep.mubr.f32.mxu1 %v5699_v11 }
 0x1ac   : > { %1484 = vmatmul.mubr.f32.gmra.mrb[60].mxu0 %v1237_v22 }
 0x1ad   : > { %1645 = vmatmul.mubr.f32.gmra.mrb[60].mxu1 %v1237_v22  ;;  %1489 = vmatprep.mubr.f32.mxu0 %v5699_v11 }
 0x1ae   : > { %1650 = vmatprep.mubr.f32.mxu1 %v5699_v11 }
 0x1b0   : > { %1490 = vmatmul.mubr.f32.gmra.mrb[62].mxu0 %v1238_v24 }
 0x1b1   : > { %1651 = vmatmul.mubr.f32.gmra.mrb[62].mxu1 %v1238_v24  ;;  %2153 = vmatprep.mubr.f32.mxu0 %v5699_v11 }
 0x1b2   : > { %2314 = vmatprep.mubr.f32.mxu1 %v5699_v11 }
 0x247   : > { %v1401_v41 = vpop.f32.mrb[32].mxu0 }
 0x248   : > { %v1402_v20 = vadd.f32 %v1401_v41, %v1258_v10  ;;  %v1562_v21 = vpop.f32.mrb[32].mxu1  ;;  %v1403_v30 = vpop.f32.mrb[33].mxu0 }
 0x249   : > { %v1563_v44 = vadd.f32 %v1562_v21, %v1258_v10  ;;  %v1404_v63 = vadd.f32 %v1403_v30, %v1258_v10  ;;  %v1564_v60 = vpop.f32.mrb[33].mxu1 }
 0x24a   : > { %v1721_v53 = vmul.f32 0.70710677, %v1402_v20  ;;  %v1565_v62 = vadd.f32 %v1564_v60, %v1258_v10  ;;  %v1657_v14 = vmul.f32 0.5, %v1402_v20 }
 0x24b   : > { %v1723_v32 = vmul.f32 0.70710677, %v1563_v44  ;;  %v1722_v50 = vmul.f32 0.70710677, %v1404_v63  ;;  %v1407_v33 = vpop.f32.mrb[34].mxu0  ;;  %v1659_v9 = vmul.f32 0.5, %v1563_v44 }
 0x24c   : > { %3518 = verf.f32 %v1721_v53  ;;  %v1724_v15 = vmul.f32 0.70710677, %v1565_v62  ;;  %v1568_v42 = vpop.f32.mrb[34].mxu1  ;;  %v1408_v19 = vadd.f32 %v1407_v33, %v1263_v37  ;;  %v1409_v59 = vpop.f32.mrb[35].mxu0  ;;  %v4672_v28 = vmul.f32 0.5, %v1404_v63 }
 0x24d   : > { %3520 = verf.f32 %v1723_v32  ;;  %v1569_v46 = vadd.f32 %v1568_v42, %v1263_v37  ;;  %v1570_v3 = vpop.f32.mrb[35].mxu1  ;;  %v1410_v35 = vadd.f32 %v1409_v59, %v1263_v37  ;;  %v4674_v26 = vmul.f32 0.5, %v1565_v62  ;;  %v1278_v53 = vpop.permute.xlu0 %1277 }
 0x24e   : > { %3522 = verf.f32 %v1722_v50  ;;  %v1725_v0 = vmul.f32 0.70710677, %v1408_v19  ;;  %v1571_v56 = vadd.f32 %v1570_v3, %v1263_v37  ;;  %v1661_v29 = vmul.f32 0.5, %v1408_v19 }
 0x24f   : > { %v1413_v23 = vpop.f32.mrb[36].mxu0  ;;  %3524 = verf.f32 %v1724_v15  ;;  %v1727_v1 = vmul.f32 0.70710677, %v1569_v46  ;;  %v1726_v61 = vmul.f32 0.70710677, %v1410_v35  ;;  %v1663_v51 = vmul.f32 0.5, %v1569_v46 }
 0x250   : > { %3526 = verf.f32 %v1725_v0  ;;  %v1414_v17 = vadd.f32 %v1413_v23, %v1268_v16  ;;  %v1574_v12 = vpop.f32.mrb[36].mxu1  ;;  %v1415_v39 = vpop.f32.mrb[37].mxu0  ;;  %v1728_v58 = vmul.f32 0.70710677, %v1571_v56  ;;  %v4676_v36 = vmul.f32 0.5, %v1410_v35 }
 0x251   : > { %3528 = verf.f32 %v1727_v1  ;;  %v1575_v54 = vadd.f32 %v1574_v12, %v1268_v16  ;;  %v1416_v13 = vadd.f32 %v1415_v39, %v1268_v16  ;;  %v1576_v6 = vpop.f32.mrb[37].mxu1  ;;  %v4678_v10 = vmul.f32 0.5, %v1571_v56 }
 0x252   : > { %v1729_v34 = vmul.f32 0.70710677, %v1414_v17  ;;  %3530 = verf.f32 %v1726_v61  ;;  %v1577_v43 = vadd.f32 %v1576_v6, %v1268_v16  ;;  %v4680_v44 = vmul.f32 0.5, %v1414_v17 }
 0x253   : > { %v1419_v45 = vpop.f32.mrb[38].mxu0  ;;  %v1731_v4 = vmul.f32 0.70710677, %v1575_v54  ;;  %v1730_v38 = vmul.f32 0.70710677, %v1416_v13  ;;  %v4682_v63 = vmul.f32 0.5, %v1575_v54 }
 0x254   : > { %v1580_v40 = vpop.f32.mrb[38].mxu1  ;;  %v1421_v18 = vpop.f32.mrb[39].mxu0  ;;  %3532 = verf.f32 %v1729_v34  ;;  %v1420_v5 = vadd.f32 %v1419_v45, %v1273_v57  ;;  %v1732_v52 = vmul.f32 0.70710677, %v1577_v43  ;;  %v4684_v62 = vmul.f32 0.5, %v1416_v13 }
 0x255   : > { %v1582_v2 = vpop.f32.mrb[39].mxu1  ;;  %3534 = verf.f32 %v1731_v4  ;;  %v1581_v48 = vadd.f32 %v1580_v40, %v1273_v57  ;;  %v1422_v55 = vadd.f32 %v1421_v18, %v1273_v57  ;;  %v4686_v37 = vmul.f32 0.5, %v1577_v43 }
 0x256   : > { %v3519_v31 = vpop.eup %3518  ;;  %3536 = verf.f32 %v1728_v58  ;;  %v1733_v8 = vmul.f32 0.70710677, %v1420_v5  ;;  %v1583_v25 = vadd.f32 %v1582_v2, %v1273_v57  ;;  %v1669_v45 = vmul.f32 0.5, %v1420_v5 }
 0x257   : > { %v3521_v7 = vpop.eup %3520  ;;  %v1425_v47 = vpop.f32.mrb[40].mxu0  ;;  %v1849_v24 = vadd.f32 1.0, %v3519_v31  ;;  %3538 = verf.f32 %v1730_v38  ;;  %v1735_v41 = vmul.f32 0.70710677, %v1581_v48  ;;  %v1734_v32 = vmul.f32 0.70710677, %v1422_v55 }
 0x258   : > { %v1586_v27 = vpop.f32.mrb[40].mxu1  ;;  %v1427_v49 = vpop.f32.mrb[41].mxu0  ;;  %v1851_v30 = vadd.f32 1.0, %v3521_v7  ;;  %3540 = verf.f32 %v1733_v8  ;;  %v1736_v42 = vmul.f32 0.70710677, %v1583_v25  ;;  %v1426_v19 = vadd.f32 %v1425_v47, %v1278_v53 }
 0x259   : > { %v3523_v22 = vpop.eup %3522  ;;  %v1588_v20 = vpop.f32.mrb[41].mxu1  ;;  %3542 = verf.f32 %v1735_v41  ;;  %v4688_v3 = vmul.f32 %v1849_v24, %v1657_v14  ;;  %v1587_v23 = vadd.f32 %v1586_v27, %v1278_v53  ;;  %v4698_v13 = vadd.f32 %v1427_v49, %v1278_v53 }
 0x25a   : > { %v3525_v21 = vpop.eup %3524  ;;  %3544 = verf.f32 %v1732_v52  ;;  %v1850_v35 = vadd.f32 1.0, %v3523_v22  ;;  %v4692_v61 = vmul.f32 %v1851_v30, %v1659_v9  ;;  %v1737_v54 = vmul.f32 0.70710677, %v1426_v19 }
 0x25b   : > { %v3527_v60 = vpop.eup %3526  ;;  %v1431_v50 = vpop.f32.mrb[42].mxu0  ;;  %v1852_v56 = vadd.f32 1.0, %v3525_v21  ;;  %3546 = verf.f32 %v1734_v32  ;;  %v1671_v58 = vmul.f32 0.5, %v1581_v48  ;;  %v1739_v4 = vmul.f32 0.70710677, %v1587_v23 }
 0x25c   : > { %v3529_v15 = vpop.eup %3528  ;;  %v1853_v33 = vadd.f32 1.0, %v3527_v60  ;;  %v1592_v46 = vpop.f32.mrb[42].mxu1  ;;  %3548 = verf.f32 %v1736_v42  ;;  %v4709_v18 = vmul.f32 %v1850_v35, %v4672_v28  ;;  %v4713_v38 = vmul.f32 0.5, %v1422_v55 }
 0x25d   : > { %v1433_v59 = vpop.f32.mrb[43].mxu0  ;;  %v1855_v0 = vadd.f32 1.0, %v3529_v15  ;;  %v4690_v16 = vpop.f32.mrb[43].mxu1  ;;  %v4718_v5 = vmul.f32 %v1852_v56, %v4674_v26  ;;  %v4720_v7 = vmul.f32 0.5, %v1583_v25  ;;  %3550 = verf.f32 %v1737_v54 }
 0x25e   : > { %v3531_v1 = vpop.eup %3530  ;;  %v4694_v17 = vmul.f32 %v1853_v33, %v1661_v29  ;;  %v4722_v47 = vmul.f32 0.5, %v1426_v19  ;;  %v1738_v52 = vmul.f32 0.70710677, %v4698_v13  ;;  %v1589_v8 = vadd.f32 %v1588_v20, %v1278_v53  ;;  %v1288_v54 = vpop.permute.xlu0 %1287 }
 0x25f   : > { %v3533_v12 = vpop.eup %3532  ;;  %v4696_v39 = vmul.f32 %v1855_v0, %v1663_v51  ;;  %v4700_v6 = vpop.f32.mrb[44].mxu0  ;;  %v1854_v9 = vadd.f32 1.0, %v3531_v1  ;;  %3552 = verf.f32 %v1739_v4  ;;  %v4734_v32 = vmul.f32 0.5, %v1587_v23 }
 0x260   : > { %v3535_v14 = vpop.eup %3534  ;;  %v3212_v34 = vpack.c.bf16 %v4694_v17, %v4688_v3  ;;  %v4704_v43 = vpop.f32.mrb[44].mxu1  ;;  %v1857_v48 = vadd.f32 1.0, %v3533_v12  ;;  %v1740_v33 = vmul.f32 0.70710677, %v1589_v8  ;;  %3554 = verf.f32 %v1738_v52 }
 0x261   : > { %v4706_v40 = vpop.f32.mrb[45].mxu0  ;;  %v3244_v57 = vpack.c.bf16 %v4696_v39, %v4692_v61  ;;  %v4715_v2 = vpop.f32.mrb[45].mxu1  ;;  %v1859_v28 = vadd.f32 1.0, %v3535_v14  ;;  %v4732_v21 = vmul.f32 %v1854_v9, %v4676_v36 }
 0x262   : > { %v3537_v31 = vpop.eup %3536  ;;  %v1283_v51 = vpop.permute.xlu1 %1282  ;;  %v4739_v15 = vmul.f32 %v1857_v48, %v4680_v44  ;;  %3556 = verf.f32 %v1740_v33 }
 0x263   : > { %v3539_v29 = vpop.eup %3538  ;;  %v4725_v55 = vpop.f32.mrb[46].mxu0  ;;  %v1432_v49 = vadd.f32 %v1431_v50, %v1283_v51  ;;  %v1593_v22 = vadd.f32 %v1592_v46, %v1283_v51  ;;  %v1434_v26 = vadd.f32 %v1433_v59, %v1283_v51  ;;  %v1856_v30 = vadd.f32 1.0, %v3537_v31 }
 0x264   : > { %v3541_v27 = vpop.eup %3540  ;;  %v4727_v24 = vpop.f32.mrb[46].mxu1  ;;  %v1858_v19 = vadd.f32 1.0, %v3539_v29  ;;  %v4746_v0 = vmul.f32 %v1859_v28, %v4682_v63  ;;  %v1595_v4 = vadd.f32 %v4690_v16, %v1283_v51  ;;  %v1438_v31 = vadd.f32 %v4700_v6, %v1288_v54 }
 0x265   : > { %v4729_v25 = vpop.f32.mrb[47].mxu0  ;;  %v3543_v41 = vpop.eup %3542  ;;  %v1861_v60 = vadd.f32 1.0, %v3541_v27  ;;  %v1741_v42 = vmul.f32 0.70710677, %v1432_v49  ;;  %v1743_v59 = vmul.f32 0.70710677, %v1593_v22  ;;  %v1920_v63 = vmul.f32 %v1856_v30, %v4678_v10 }
 0x266   : > { %v4736_v20 = vpop.f32.mrb[47].mxu1  ;;  %v3545_v53 = vpop.eup %3544  ;;  %v1863_v50 = vadd.f32 1.0, %v3543_v41  ;;  %v1742_v1 = vmul.f32 0.70710677, %v1434_v26  ;;  %v4764_v48 = vmul.f32 %v1858_v19, %v4684_v62  ;;  %v4767_v29 = vmul.f32 0.5, %v4698_v13 }
 0x267   : > { %v4741_v46 = vmul.f32 %v1861_v60, %v1669_v45  ;;  %v4743_v36 = vpop.f32.mrb[48].mxu0  ;;  %v3547_v35 = vpop.eup %3546  ;;  %v1860_v14 = vadd.f32 1.0, %v3545_v53  ;;  %3558 = verf.f32 %v1741_v42  ;;  %v1744_v28 = vmul.f32 0.70710677, %v1595_v4 }
 0x268   : > { %v4748_v23 = vmul.f32 %v1863_v50, %v1671_v58  ;;  %v4750_v44 = vpop.f32.mrb[48].mxu1  ;;  %v4752_v56 = vpop.f32.mrb[49].mxu0  ;;  %3560 = verf.f32 %v1743_v59  ;;  %v1862_v51 = vadd.f32 1.0, %v3547_v35  ;;  %v1745_v10 = vmul.f32 0.70710677, %v1438_v31 }
 0x269   : > { %v3549_v12 = vpop.eup %3548  ;;  %v4757_v9 = vpop.f32.mrb[49].mxu1  ;;  %3562 = verf.f32 %v1742_v1  ;;  %v1599_v41 = vadd.f32 %v4704_v43, %v1288_v54  ;;  %v4777_v62 = vmul.f32 %v1860_v14, %v4686_v37  ;;  %v4779_v6 = vmul.f32 0.5, %v1589_v8 }
 0x26a   : > { %v3551_v16 = vpop.eup %3550  ;;  %v1864_v27 = vadd.f32 1.0, %v3549_v12  ;;  %3564 = verf.f32 %v1744_v28  ;;  %v1440_v13 = vadd.f32 %v4706_v40, %v1288_v54  ;;  %v1677_v33 = vmul.f32 0.5, %v1432_v49  ;;  %v1293_v59 = vpop.permute.xlu1 %1292 }
 0x26b   : > { %v4769_v52 = vpop.f32.mrb[50].mxu0  ;;  %v3553_v50 = vpop.eup %3552  ;;  %v1679_v42 = vmul.f32 0.5, %v1593_v22  ;;  %v4784_v19 = vmul.f32 0.5, %v1434_v26  ;;  %v1747_v43 = vmul.f32 0.70710677, %v1599_v41  ;;  %v1865_v35 = vadd.f32 1.0, %v3551_v16 }
 0x26c   : > { %v4772_v30 = vpop.f32.mrb[50].mxu1  ;;  %v4774_v60 = vpop.f32.mrb[51].mxu0  ;;  %3566 = verf.f32 %v1745_v10  ;;  %v1746_v1 = vmul.f32 0.70710677, %v1440_v13  ;;  %v4787_v37 = vadd.f32 %v4715_v2, %v1288_v54  ;;  %v4792_v12 = vmul.f32 %v1862_v51, %v4713_v38 }
 0x26d   : > { %v4782_v53 = vpop.f32.mrb[51].mxu1  ;;  %v4795_v40 = vmul.f32 %v1864_v27, %v4720_v7  ;;  %v4797_v49 = vmul.f32 0.5, %v1595_v4  ;;  %v3210_v22 = vpack.c.bf16 %v4732_v21, %v4709_v18  ;;  %v3555_v28 = vpop.eup %3554  ;;  %v1867_v2 = vadd.f32 1.0, %v3553_v50 }
 0x26e   : > { %v3242_v54 = vpack.c.bf16 %v1920_v63, %v4718_v5  ;;  %v1444_v16 = vadd.f32 %v4725_v55, %v1293_v59  ;;  %v1605_v38 = vadd.f32 %v4727_v24, %v1293_v59  ;;  %v3557_v7 = vpop.eup %3556  ;;  %v4810_v4 = vmul.f32 0.5, %v1438_v31 }
 0x26f   : > { %v4789_v8 = vpop.f32.mrb[52].mxu0  ;;  %3568 = verf.f32 %v1747_v43  ;;  %3211 = vmatprep.subr.bf16.mxu0 %v3210_v22  ;;  %v1446_v18 = vadd.f32 %v4729_v25, %v1293_v59  ;;  %v1607_v21 = vadd.f32 %v4736_v20, %v1293_v59  ;;  %v4815_v10 = vmul.f32 %v1865_v35, %v4722_v47 }
 0x270   : > { %v4801_v26 = vpop.f32.mrb[52].mxu1  ;;  %v4803_v14 = vpop.f32.mrb[53].mxu0  ;;  %3570 = verf.f32 %v1746_v1  ;;  %v1748_v5 = vmul.f32 0.70710677, %v4787_v37  ;;  %3243 = vmatprep.subr.bf16.mxu1 %v3242_v54  ;;  %v1749_v55 = vmul.f32 0.70710677, %v1444_v16  ;;  %3213 = vmatpush1.bf16.msra.mxu0 %v3212_v34  ;;  %v4829_v43 = vmul.f32 %v1867_v2, %v4734_v32 }
 0x271   : > { %v4808_v51 = vpop.f32.mrb[53].mxu1  ;;  %v3559_v27 = vpop.eup %3558  ;;  %v4823_v25 = vmul.f32 0.5, %v1599_v41  ;;  %v1751_v20 = vmul.f32 0.70710677, %v1605_v38  ;;  %3245 = vmatpush1.bf16.msra.mxu1 %v3244_v57  ;;  %v1750_v47 = vmul.f32 0.70710677, %v1446_v18 }
 0x272   : > { %v3561_v63 = vpop.eup %3560  ;;  %v1869_v31 = vadd.f32 1.0, %v3559_v27  ;;  %v4831_v35 = vmul.f32 0.5, %v1440_v13  ;;  %3572 = verf.f32 %v1749_v55  ;;  %v1298_v34 = vpop.permute.xlu0 %1297  ;;  %v1866_v41 = vadd.f32 1.0, %v3555_v28 }
 0x273   : > { %v4821_v24 = vpop.f32.mrb[54].mxu0  ;;  %v3563_v50 = vpop.eup %3562  ;;  %v1871_v59 = vadd.f32 1.0, %v3561_v63  ;;  %3574 = verf.f32 %v1751_v20  ;;  %v1752_v61 = vmul.f32 0.70710677, %v1607_v21  ;;  %v1450_v32 = vadd.f32 %v4743_v36, %v1298_v34 }
 0x274   : > { %v4833_v3 = vpop.f32.mrb[54].mxu1  ;;  %v4835_v17 = vpop.f32.mrb[55].mxu0  ;;  %v4837_v1 = vmul.f32 %v1869_v31, %v1677_v33  ;;  %3576 = verf.f32 %v1748_v5  ;;  %v1611_v13 = vadd.f32 %v4750_v44, %v1298_v34  ;;  %v1868_v54 = vadd.f32 1.0, %v3557_v7 }
 0x275   : > { %v4839_v39 = vpop.f32.mrb[55].mxu1  ;;  %v3565_v57 = vpop.eup %3564  ;;  %v4841_v22 = vmul.f32 %v1871_v59, %v1679_v42  ;;  %v1870_v33 = vadd.f32 1.0, %v3563_v50  ;;  %3578 = verf.f32 %v1750_v47  ;;  %v1753_v36 = vmul.f32 0.70710677, %v1450_v32 }
 0x276   : > { %v3567_v63 = vpop.eup %3566  ;;  %v1872_v5 = vadd.f32 1.0, %v3565_v57  ;;  %3580 = verf.f32 %v1752_v61  ;;  %v4858_v7 = vmul.f32 %v1866_v41, %v4767_v29  ;;  %v4861_v31 = vmul.f32 0.5, %v4787_v37 }
 0x277   : > { %v4845_v2 = vpop.f32.mrb[56].mxu0  ;;  %v1755_v20 = vmul.f32 0.70710677, %v1611_v13  ;;  %v1452_v47 = vadd.f32 %v4752_v56, %v1298_v34  ;;  %v1685_v50 = vmul.f32 0.5, %v1444_v16  ;;  %v1687_v59 = vmul.f32 0.5, %v1605_v38 }
 0x278   : > { %v4849_v27 = vpop.f32.mrb[56].mxu1  ;;  %v4851_v55 = vpop.f32.mrb[57].mxu0  ;;  %3582 = verf.f32 %v1753_v36  ;;  %v4865_v28 = vadd.f32 %v4757_v9, %v1298_v34  ;;  %v4870_v42 = vmul.f32 %v1868_v54, %v4779_v6  ;;  %v1873_v29 = vadd.f32 1.0, %v3567_v63 }
 0x279   : > { %v4855_v44 = vpop.f32.mrb[57].mxu1  ;;  %v3569_v61 = vpop.eup %3568  ;;  %v4872_v41 = vmul.f32 0.5, %v1446_v18  ;;  %v4874_v37 = vmul.f32 0.5, %v1607_v21  ;;  %v4881_v38 = vmul.f32 %v1870_v33, %v4784_v19  ;;  %v4884_v9 = vmul.f32 %v1872_v5, %v4797_v49 }
 0x27a   : > { %v3571_v16 = vpop.eup %3570  ;;  %v4886_v34 = vmul.f32 0.5, %v1450_v32  ;;  %v1754_v6 = vmul.f32 0.70710677, %v1452_v47  ;;  %v1303_v18 = vpop.permute.xlu1 %1302  ;;  %3584 = verf.f32 %v1755_v20  ;;  %v1756_v21 = vmul.f32 0.70710677, %v4865_v28 }
 0x27b   : > { %v4867_v57 = vpop.f32.mrb[58].mxu0  ;;  %v3214_v63 = vpack.c.bf16 %v4792_v12, %v4764_v48  ;;  %v3246_v36 = vpack.c.bf16 %v4795_v40, %v4777_v62  ;;  %v1875_v33 = vadd.f32 1.0, %v3569_v61  ;;  %v4895_v45 = vmul.f32 0.5, %v1611_v13 }
 0x27c   : > { %v4876_v58 = vpop.f32.mrb[58].mxu1  ;;  %v4878_v56 = vpop.f32.mrb[59].mxu0  ;;  %v1456_v49 = vadd.f32 %v4769_v52, %v1303_v18  ;;  %v1617_v32 = vadd.f32 %v4772_v30, %v1303_v18  ;;  %v4902_v20 = vmul.f32 %v1873_v29, %v4810_v4  ;;  %v1458_v48 = vadd.f32 %v4774_v60, %v1303_v18 }
 0x27d   : > { %5700 = vst [vmem:[#allocation3_spill] sm:$0xff] %v4878_v56  ;;  %v4888_v54 = vpop.f32.mrb[59].mxu1  ;;  %v3573_v19 = vpop.eup %3572  ;;  %3215 = vmatprep.subr.bf16.mxu0 %v3214_v63  ;;  %3247 = vmatprep.subr.bf16.mxu1 %v3246_v36  ;;  %3586 = verf.f32 %v1754_v6  ;;  %v5702_v61 = vpack.c.bf16 %v4741_v46, %v4739_v15  ;;  %v5703_v4 = vpack.c.bf16 %v4748_v23, %v4746_v0 }
 0x27e   : > { %5701 = vst [vmem:[#allocation4_spill] sm:$0xff] %v4888_v54  ;;  %v3575_v11 = vpop.eup %3574  ;;  %v1874_v54 = vadd.f32 1.0, %v3571_v16  ;;  %v1877_v56 = vadd.f32 1.0, %v3573_v19  ;;  %v1308_v52 = vpop.permute.xlu0 %1307  ;;  %v1757_v30 = vmul.f32 0.70710677, %v1456_v49  ;;  %v1619_v29 = vadd.f32 %v4782_v53, %v1303_v18 }
 0x27f   : > { %v4899_v5 = vpop.f32.mrb[60].mxu0  ;;  %v3577_v40 = vpop.eup %3576  ;;  %v1879_v13 = vadd.f32 1.0, %v3575_v11  ;;  %3217 = vmatpush1.bf16.msra.mxu0 %v5702_v61  ;;  %3249 = vmatpush1.bf16.msra.mxu1 %v5703_v4  ;;  %3588 = verf.f32 %v1756_v21  ;;  %v1759_v36 = vmul.f32 0.70710677, %v1617_v32  ;;  %v1462_v11 = vadd.f32 %v4789_v8, %v1308_v52 }
 0x280   : > { %v4905_v62 = vpop.f32.mrb[60].mxu1  ;;  %v4907_v12 = vpop.f32.mrb[61].mxu0  ;;  %v4918_v63 = vmul.f32 %v1877_v56, %v1685_v50  ;;  %v4922_v19 = vmul.f32 %v1875_v33, %v4823_v25  ;;  %3590 = verf.f32 %v1757_v30  ;;  %v1758_v46 = vmul.f32 0.70710677, %v1458_v48 }
 0x281   : > { %v4916_v60 = vpop.f32.mrb[61].mxu1  ;;  %v3579_v16 = vpop.eup %3578  ;;  %v4924_v15 = vmul.f32 %v1879_v13, %v1687_v59  ;;  %v1876_v23 = vadd.f32 1.0, %v3577_v40  ;;  %v4930_v50 = vmul.f32 0.5, %v1452_v47  ;;  %3592 = verf.f32 %v1759_v36 }
 0x282   : > { %v3581_v6 = vpop.eup %3580  ;;  %v1878_v59 = vadd.f32 1.0, %v3579_v16  ;;  %v4939_v21 = vmul.f32 0.5, %v4865_v28  ;;  %v1760_v33 = vmul.f32 0.70710677, %v1619_v29  ;;  %3594 = verf.f32 %v1758_v46 }
 0x283   : > { %v4926_v0 = vpop.f32.mrb[62].mxu0  ;;  %v3583_v18 = vpop.eup %3582  ;;  %v1880_v13 = vadd.f32 1.0, %v3581_v6  ;;  %v1761_v47 = vmul.f32 0.70710677, %v1462_v11  ;;  %v1623_v30 = vadd.f32 %v4801_v26, %v1308_v52  ;;  %v4945_v61 = vmul.f32 %v1874_v54, %v4831_v35 }
 0x284   : > { %v4932_v56 = vpop.f32.mrb[62].mxu1  ;;  %v4934_v8 = vpop.f32.mrb[63].mxu0  ;;  %3596 = verf.f32 %v1760_v33  ;;  %v1464_v4 = vadd.f32 %v4803_v14, %v1308_v52  ;;  %v1625_v36 = vadd.f32 %v4808_v51, %v1308_v52  ;;  %v4950_v28 = vmul.f32 %v1876_v23, %v4861_v31 }
 0x285   : > { %v4941_v40 = vpop.f32.mrb[63].mxu1  ;;  %v3585_v16 = vpop.eup %3584  ;;  %v1881_v25 = vadd.f32 1.0, %v3583_v18  ;;  %v1693_v53 = vmul.f32 0.5, %v1456_v49  ;;  %v1695_v6 = vmul.f32 0.5, %v1617_v32  ;;  %v4952_v46 = vmul.f32 0.5, %v1458_v48 }
 0x286   : > { %5704 = vst [vmem:[#allocation5_spill] sm:$0xff] %v4941_v40  ;;  %v1763_v40 = vmul.f32 0.70710677, %v1623_v30  ;;  %3598 = verf.f32 %v1761_v47  ;;  %v1762_v26 = vmul.f32 0.70710677, %v1464_v4  ;;  %v4955_v35 = vmul.f32 %v1878_v59, %v4872_v41  ;;  %v1313_v31 = vpop.permute.xlu1 %1312 }
 0x287   : > { %v4958_v54 = vmul.f32 %v1880_v13, %v4874_v37  ;;  %v4960_v14 = vmul.f32 0.5, %v1619_v29  ;;  %v1764_v51 = vmul.f32 0.70710677, %v1625_v36  ;;  %v3587_v52 = vpop.eup %3586  ;;  %v1883_v23 = vadd.f32 1.0, %v3585_v16 }
 0x288   : > { %v4962_v18 = vmul.f32 0.5, %v1462_v11  ;;  %v3218_v49 = vpack.c.bf16 %v4881_v38, %v4858_v7  ;;  %v3250_v32 = vpack.c.bf16 %v4884_v9, %v4870_v42  ;;  %v4969_v41 = vmul.f32 %v1881_v25, %v4886_v34  ;;  %v1318_v9 = vpop.permute.xlu0 %1317 }
 0x289   : > { %v3589_v48 = vpop.eup %3588  ;;  %3600 = verf.f32 %v1763_v40  ;;  %v1468_v37 = vadd.f32 %v4821_v24, %v1313_v31  ;;  %v1629_v29 = vadd.f32 %v4833_v3, %v1313_v31  ;;  %v4973_v33 = vmul.f32 0.5, %v1623_v30 }
 0x28a   : > { %v3591_v59 = vpop.eup %3590  ;;  %3602 = verf.f32 %v1762_v26  ;;  %3219 = vmatprep.subr.bf16.mxu0 %v3218_v49  ;;  %3251 = vmatprep.subr.bf16.mxu1 %v3250_v32  ;;  %v1470_v7 = vadd.f32 %v4835_v17, %v1313_v31  ;;  %v1631_v38 = vadd.f32 %v4839_v39, %v1313_v31  ;;  %v1882_v11 = vadd.f32 1.0, %v3587_v52 }
 0x28b   : > { %v3593_v42 = vpop.eup %3592  ;;  %v1885_v34 = vadd.f32 1.0, %v3591_v59  ;;  %3604 = verf.f32 %v1764_v51  ;;  %v1765_v25 = vmul.f32 0.70710677, %v1468_v37  ;;  %v5705_v24 = vpack.c.bf16 %v4837_v1, %v4815_v10 }
 0x28c   : > { %v5706_v3 = vpack.c.bf16 %v4841_v22, %v4829_v43  ;;  %v1887_v40 = vadd.f32 1.0, %v3593_v42  ;;  %v1767_v13 = vmul.f32 0.70710677, %v1629_v29  ;;  %v1766_v47 = vmul.f32 0.70710677, %v1470_v7  ;;  %v3595_v39 = vpop.eup %3594 }
 0x28d   : > { %3221 = vmatpush1.bf16.msra.mxu0 %v5705_v24  ;;  %v1474_v17 = vadd.f32 %v4845_v2, %v1318_v9  ;;  %v4985_v30 = vmul.f32 %v1883_v23, %v4895_v45  ;;  %v4987_v16 = vmul.f32 %v1885_v34, %v1693_v53  ;;  %v4989_v26 = vmul.f32 0.5, %v1464_v4 }
 0x28e   : > { %3253 = vmatpush1.bf16.msra.mxu1 %v5706_v3  ;;  %3606 = verf.f32 %v1765_v25  ;;  %v3597_v10 = vpop.eup %3596  ;;  %v1884_v1 = vadd.f32 1.0, %v3589_v48  ;;  %v4991_v51 = vmul.f32 %v1887_v40, %v1695_v6  ;;  %v1768_v43 = vmul.f32 0.70710677, %v1631_v38 }
 0x28f   : > { %3608 = verf.f32 %v1767_v13  ;;  %v4994_v22 = vmul.f32 %v1882_v11, %v4930_v50  ;;  %v3228_v2 = vpack.c.bf16 %v4987_v16, %v4969_v41  ;;  %v4998_v52 = vmul.f32 0.5, %v1625_v36 }
 0x290   : > { %3610 = verf.f32 %v1766_v47  ;;  %v3599_v45 = vpop.eup %3598  ;;  %v3260_v53 = vpack.c.bf16 %v4991_v51, %v4985_v30  ;;  %v1886_v4 = vadd.f32 1.0, %v3595_v39  ;;  %v1769_v31 = vmul.f32 0.70710677, %v1474_v17  ;;  %v5708_v47 = vld [vmem:[#allocation3_spill] sm:$0xff]  ;;  %v5709_v39 = vld [vmem:[#allocation4_spill] sm:$0xff] }
 0x291   : > { %3612 = verf.f32 %v1768_v43  ;;  %v1888_v6 = vadd.f32 1.0, %v3597_v10  ;;  %v1635_v23 = vadd.f32 %v4849_v27, %v1318_v9  ;;  %v1476_v49 = vadd.f32 %v4851_v55, %v1318_v9  ;;  %v1328_v43 = vpop.permute.xlu0 %1327 }
 0x292   : > { %v1637_v50 = vadd.f32 %v4855_v44, %v1318_v9  ;;  %v5006_v32 = vmul.f32 %v1884_v1, %v4939_v21  ;;  %v1701_v36 = vmul.f32 0.5, %v1468_v37  ;;  %3614 = verf.f32 %v1769_v31  ;;  %v1323_v9 = vpop.permute.xlu1 %1322 }
 0x293   : > { %v3222_v48 = vpack.c.bf16 %v4955_v35, %v4945_v61  ;;  %v3601_v59 = vpop.eup %3600  ;;  %v1889_v42 = vadd.f32 1.0, %v3599_v45  ;;  %v1703_v11 = vmul.f32 0.5, %v1629_v29  ;;  %v5010_v34 = vmul.f32 0.5, %v1470_v7 }
 0x294   : > { %v1771_v25 = vmul.f32 0.70710677, %v1635_v23  ;;  %v3603_v24 = vpop.eup %3602  ;;  %v5013_v27 = vmul.f32 %v1886_v4, %v4952_v46  ;;  %v5015_v55 = vmul.f32 0.5, %v1631_v38  ;;  %v5017_v44 = vmul.f32 0.5, %v1474_v17 }
 0x295   : > { %v1770_v21 = vmul.f32 0.70710677, %v1476_v49  ;;  %3223 = vmatprep.subr.bf16.mxu0 %v3222_v48  ;;  %v3605_v37 = vpop.eup %3604  ;;  %v5020_v61 = vmul.f32 %v1888_v6, %v4960_v14  ;;  %v1772_v35 = vmul.f32 0.70710677, %v1637_v50  ;;  %v3254_v29 = vpack.c.bf16 %v4958_v54, %v4950_v28 }
 0x296   : > { %3616 = verf.f32 %v1771_v25  ;;  %v5707_v46 = vpack.c.bf16 %v4918_v63, %v4902_v20  ;;  %v1891_v7 = vadd.f32 1.0, %v3601_v59  ;;  %v1480_v38 = vadd.f32 %v4867_v57, %v1323_v9 }
 0x297   : > { %3618 = verf.f32 %v1770_v21  ;;  %v1641_v3 = vadd.f32 %v4876_v58, %v1323_v9  ;;  %v5030_v13 = vmul.f32 %v1889_v42, %v4962_v18  ;;  %v1890_v14 = vadd.f32 1.0, %v3603_v24  ;;  %3255 = vmatprep.subr.bf16.mxu1 %v3254_v29  ;;  %v1333_v21 = vpop.permute.xlu1 %1332 }
 0x298   : > { %3225 = vmatpush1.bf16.msra.mxu0 %v5707_v46  ;;  %v3607_v40 = vpop.eup %3606  ;;  %v1482_v17 = vadd.f32 %v5708_v47, %v1323_v9  ;;  %v1643_v28 = vadd.f32 %v5709_v39, %v1323_v9  ;;  %v1707_v20 = vmul.f32 0.5, %v1635_v23  ;;  %v5034_v63 = vmul.f32 0.5, %v1476_v49 }
 0x299   : > { %v3609_v54 = vpop.eup %3608  ;;  %v1893_v10 = vadd.f32 1.0, %v3607_v40  ;;  %v1773_v1 = vmul.f32 0.70710677, %v1480_v38  ;;  %v5710_v57 = vpack.c.bf16 %v4924_v15, %v4922_v19  ;;  %3620 = verf.f32 %v1772_v35 }
 0x29a   : > { %v3611_v58 = vpop.eup %3610  ;;  %v1895_v18 = vadd.f32 1.0, %v3609_v54  ;;  %v1775_v45 = vmul.f32 0.70710677, %v1641_v3  ;;  %v1774_v4 = vmul.f32 0.70710677, %v1482_v17  ;;  %v5040_v6 = vmul.f32 %v1891_v7, %v4973_v33 }
 0x29b   : > { %3257 = vmatpush1.bf16.msra.mxu1 %v5710_v57  ;;  %v3613_v31 = vpop.eup %3612  ;;  %v5042_v48 = vmul.f32 %v1893_v10, %v1701_v36  ;;  %3622 = verf.f32 %v1773_v1  ;;  %v5045_v23 = vadd.f32 %v4899_v5, %v1328_v43  ;;  %v1892_v49 = vadd.f32 1.0, %v3605_v37 }
 0x29c   : > { %v5047_v59 = vmul.f32 %v1895_v18, %v1703_v11  ;;  %3624 = verf.f32 %v1775_v45  ;;  %v1776_v19 = vmul.f32 0.70710677, %v1643_v28  ;;  %v3615_v15 = vpop.eup %3614  ;;  %v1954_v42 = vmul.f32 %v1890_v14, %v4989_v26 }
 0x29d   : > { %v3232_v25 = vpack.c.bf16 %v5042_v48, %v5030_v13  ;;  %v5052_v24 = vmul.f32 0.5, %v1637_v50  ;;  %3626 = verf.f32 %v1774_v4  ;;  %v1894_v36 = vadd.f32 1.0, %v3611_v58 }
 0x29e   : > { %v3264_v33 = vpack.c.bf16 %v5047_v59, %v5040_v6  ;;  %v1896_v5 = vadd.f32 1.0, %v3613_v31  ;;  %3628 = verf.f32 %v1776_v19  ;;  %v1777_v11 = vmul.f32 0.70710677, %v5045_v23 }
 0x29f   : > { %v5058_v37 = vadd.f32 %v4905_v62, %v1328_v43  ;;  %v5061_v26 = vadd.f32 %v4907_v12, %v1328_v43  ;;  %v5064_v9 = vadd.f32 %v4916_v60, %v1328_v43  ;;  %v1897_v35 = vadd.f32 1.0, %v3615_v15 }
 0x2a0   : > { %v3617_v50 = vpop.eup %3616  ;;  %v3226_v29 = vpack.c.bf16 %v5013_v27, %v4994_v22  ;;  %v3258_v46 = vpack.c.bf16 %v5020_v61, %v5006_v32  ;;  %v5071_v7 = vadd.f32 %v4926_v0, %v1333_v21  ;;  %v1956_v62 = vmul.f32 %v1892_v49, %v4998_v52 }
 0x2a1   : > { %v3619_v40 = vpop.eup %3618  ;;  %v1899_v14 = vadd.f32 1.0, %v3617_v50  ;;  %v1709_v12 = vmul.f32 0.5, %v1480_v38  ;;  %v1779_v47 = vmul.f32 0.70710677, %v5058_v37  ;;  %v1958_v60 = vmul.f32 %v1894_v36, %v5010_v34 }
 0x2a2   : > { %v1711_v39 = vmul.f32 0.5, %v1641_v3  ;;  %3630 = verf.f32 %v1777_v11  ;;  %v1778_v54 = vmul.f32 0.70710677, %v5061_v26  ;;  %3227 = vmatprep.subr.bf16.mxu0 %v3226_v29  ;;  %3259 = vmatprep.subr.bf16.mxu1 %v3258_v46  ;;  %v1960_v22 = vmul.f32 %v1896_v5, %v5015_v55 }
 0x2a3   : > { %v1710_v32 = vmul.f32 0.5, %v1482_v17  ;;  %v1712_v0 = vmul.f32 0.5, %v1643_v28  ;;  %v1780_v27 = vmul.f32 0.70710677, %v5064_v9  ;;  %3229 = vmatpush1.bf16.msra.mxu0 %v3228_v2  ;;  %3261 = vmatpush1.bf16.msra.mxu1 %v3260_v53  ;;  %v3621_v52 = vpop.eup %3620  ;;  %v1961_v34 = vmul.f32 %v1897_v35, %v5017_v44  ;;  %v5711_v2 = vld [vmem:[#allocation5_spill] sm:$0xff] }
 0x2a4   : > { %v1898_v61 = vadd.f32 1.0, %v3619_v40  ;;  %3632 = verf.f32 %v1779_v47  ;;  %v1781_v38 = vmul.f32 0.70710677, %v5071_v7  ;;  %v1963_v3 = vmul.f32 %v1899_v14, %v1707_v20 }
 0x2a5   : > { %v3623_v55 = vpop.eup %3622  ;;  %3634 = verf.f32 %v1778_v54  ;;  %v1653_v17 = vadd.f32 %v4932_v56, %v1333_v21  ;;  %v1494_v28 = vadd.f32 %v4934_v8, %v1333_v21  ;;  %v1655_v30 = vadd.f32 %v5711_v2, %v1333_v21  ;;  %v1981_v2 = vld [vmem:[%s5677_s6 + $0x20] sm:$0xff] }
 0x2a6   : > { %v3625_v41 = vpop.eup %3624  ;;  %v1901_v16 = vadd.f32 1.0, %v3623_v55  ;;  %3636 = verf.f32 %v1781_v38  ;;  %v3230_v51 = vpack.c.bf16 %v1958_v60, %v1954_v42  ;;  %v1900_v10 = vadd.f32 1.0, %v3621_v52 }
 0x2a7   : > { %v3627_v53 = vpop.eup %3626  ;;  %v1903_v44 = vadd.f32 1.0, %v3625_v41  ;;  %3638 = verf.f32 %v1780_v27  ;;  %v1783_v1 = vmul.f32 0.70710677, %v1653_v17  ;;  %v1962_v58 = vmul.f32 %v1898_v61, %v5034_v63  ;;  %v1979_v41 = vld [vmem:[%s5677_s6 + $0x10] sm:$0xff] }
 0x2a8   : > { %v3629_v57 = vpop.eup %3628  ;;  %v1965_v20 = vmul.f32 %v1901_v16, %v1709_v12  ;;  %v1902_v43 = vadd.f32 1.0, %v3627_v53  ;;  %v1782_v18 = vmul.f32 0.70710677, %v1494_v28  ;;  %3231 = vmatprep.subr.bf16.mxu0 %v3230_v51  ;;  %v1784_v45 = vmul.f32 0.70710677, %v1655_v30  ;;  %v1980_v16 = vld [vmem:[%s5677_s6 + $0x18] sm:$0xff] }
 0x2a9   : > { %v1967_v56 = vmul.f32 %v1903_v44, %v1711_v39  ;;  %v1904_v8 = vadd.f32 1.0, %v3629_v57  ;;  %3640 = verf.f32 %v1783_v1  ;;  %3233 = vmatpush1.bf16.msra.mxu0 %v3232_v25  ;;  %v3262_v49 = vpack.c.bf16 %v1960_v22, %v1956_v62  ;;  %v1983_v51 = vld [vmem:[%s5677_s6 + $0x30] sm:$0xff]  ;;  %v1984_v53 = vld [vmem:[%s5677_s6 + $0x38] sm:$0xff]  ;;  %v1986_v44 = vld [vmem:[%s5677_s6 + $0x48] sm:$0xff] }
 0x2aa   : > { %v3236_v4 = vpack.c.bf16 %v1965_v20, %v1961_v34  ;;  %v1966_v31 = vmul.f32 %v1902_v43, %v1710_v32  ;;  %3642 = verf.f32 %v1782_v18  ;;  %v1964_v19 = vmul.f32 %v1900_v10, %v5052_v24  ;;  %v1985_v10 = vld [vmem:[%s5677_s6 + $0x40] sm:$0xff]  ;;  %v1987_v1 = vld [vmem:[%s5677_s6 + $0x50] sm:$0xff]  ;;  %v1988_v57 = vld [vmem:[%s5677_s6 + $0x58] sm:$0xff] }
 0x2ab   : > { %v3268_v15 = vpack.c.bf16 %v1967_v56, %v1963_v3  ;;  %v1968_v63 = vmul.f32 %v1904_v8, %v1712_v0  ;;  %3644 = verf.f32 %v1784_v45  ;;  %3263 = vmatprep.subr.bf16.mxu1 %v3262_v49  ;;  %v1713_v24 = vmul.f32 0.5, %v5045_v23  ;;  %v1990_v20 = vld [vmem:[%s5677_s6 + $0x68] sm:$0xff]  ;;  %v1991_v43 = vld [vmem:[%s5677_s6 + $0x70] sm:$0xff]  ;;  %v1992_v18 = vld [vmem:[%s5677_s6 + $0x78] sm:$0xff]  ;;  %v2012_v56 = vpop.permute.xlu0 %2011 }
 0x2ac   : > { %v3631_v42 = vpop.eup %3630  ;;  %v3234_v36 = vpack.c.bf16 %v1966_v31, %v1962_v58  ;;  %3265 = vmatpush1.bf16.msra.mxu1 %v3264_v33  ;;  %v1717_v50 = vmul.f32 0.5, %v5071_v7  ;;  %v1715_v6 = vmul.f32 0.5, %v5058_v37  ;;  %v1714_v14 = vmul.f32 0.5, %v5061_v26  ;;  %v1989_v58 = vld [vmem:[%s5677_s6 + $0x60] sm:$0xff] }
 0x2ad   : > { %v3266_v5 = vpack.c.bf16 %v1968_v63, %v1964_v19  ;;  %v1905_v48 = vadd.f32 1.0, %v3631_v42  ;;  %v1719_v47 = vmul.f32 0.5, %v1653_v17  ;;  %v1716_v23 = vmul.f32 0.5, %v5064_v9  ;;  %v1977_v9 = vld [vmem:[%s5677_s6] sm:$0xff] }
 0x2ae   : > { %v3633_v21 = vpop.eup %3632  ;;  %3235 = vmatprep.subr.bf16.mxu0 %v3234_v36  ;;  %v1718_v7 = vmul.f32 0.5, %v1494_v28  ;;  %v1720_v27 = vmul.f32 0.5, %v1655_v30  ;;  %v5712_v17 = vmov 0.0   ;;  %v1978_v28 = vld [vmem:[%s5677_s6 + $0x8] sm:$0xff]  ;;  %v2017_v36 = vpop.permute.xlu1 %2016 }
 0x2af   : > { %v3635_v13 = vpop.eup %3634  ;;  %3267 = vmatprep.subr.bf16.mxu1 %v3266_v5  ;;  %3237 = vmatpush1.bf16.msra.mxu0 %v3236_v4  ;;  %v1907_v29 = vadd.f32 1.0, %v3633_v21  ;;  %v1969_v40 = vmul.f32 %v1905_v48, %v1713_v24  ;;  %v1982_v30 = vld [vmem:[%s5677_s6 + $0x28] sm:$0xff] }
 0x2b0   : > { %v3637_v25 = vpop.eup %3636  ;;  %3269 = vmatpush1.bf16.msra.mxu1 %v3268_v15  ;;  %v1906_v59 = vadd.f32 1.0, %v3635_v13 }
 0x2b1   : > { %v3639_v11 = vpop.eup %3638  ;;  %v1909_v35 = vadd.f32 1.0, %v3637_v25  ;;  %v1971_v32 = vmul.f32 %v1907_v29, %v1715_v6  ;;  %v2022_v6 = vpop.permute.xlu0 %2021 }
 0x2b2   : > { %v1908_v12 = vadd.f32 1.0, %v3639_v11  ;;  %v1970_v34 = vmul.f32 %v1906_v59, %v1714_v14 }
 0x2b3   : > { %v3641_v46 = vpop.eup %3640  ;;  %v1973_v33 = vmul.f32 %v1909_v35, %v1717_v50 }
 0x2b4   : > { %v3643_v62 = vpop.eup %3642  ;;  %v1911_v60 = vadd.f32 1.0, %v3641_v46  ;;  %v1972_v61 = vmul.f32 %v1908_v12, %v1716_v23 }
 0x2b5   : > { %v3645_v39 = vpop.eup %3644  ;;  %v3240_v54 = vpack.c.bf16 %v1973_v33, %v1969_v40  ;;  %v1910_v22 = vadd.f32 1.0, %v3643_v62 }
 0x2b6   : > { %v1975_v0 = vmul.f32 %v1911_v60, %v1719_v47  ;;  %v1912_v52 = vadd.f32 1.0, %v3645_v39 }
 0x2b7   : > { %v1974_v37 = vmul.f32 %v1910_v22, %v1718_v7 }
 0x2b8   : > { %v3272_v38 = vpack.c.bf16 %v1975_v0, %v1971_v32  ;;  %v1976_v55 = vmul.f32 %v1912_v52, %v1720_v27 }
 0x2b9   : > { %v3238_v3 = vpack.c.bf16 %v1974_v37, %v1970_v34  ;;  %v2027_v37 = vpop.permute.xlu1 %2026 }
 0x2ba   : > { %v3270_v26 = vpack.c.bf16 %v1976_v55, %v1972_v61 }
 0x2bb   : > { %3239 = vmatprep.subr.bf16.mxu0 %v3238_v3 }
 0x2bc   : > { %3271 = vmatprep.subr.bf16.mxu1 %v3270_v26  ;;  %3241 = vmatpush1.bf16.msra.mxu0 %v3240_v54 }
 0x2bd   : > { %3273 = vmatpush1.bf16.msra.mxu1 %v3272_v38 }
 0x2bf   : > { %2154 = vmatmul.mubr.f32.vlgmr.msra.gmra.mrb[64].mxu0 %v1977_v9 }
 0x2c0   : > { %2315 = vmatmul.mubr.f32.vlgmr.msra.gmra.mrb[64].mxu1 %v1977_v9  ;;  %2159 = vmatprep.mubr.f32.mxu0 %v5712_v17 }
 0x2c1   : > { %2320 = vmatprep.mubr.f32.mxu1 %v5712_v17 }
 0x2c3   : > { %2160 = vmatmul.mubr.f32.gmra.mrb[66].mxu0 %v1978_v28 }
 0x2c4   : > { %2321 = vmatmul.mubr.f32.gmra.mrb[66].mxu1 %v1978_v28  ;;  %2165 = vmatprep.mubr.f32.mxu0 %v5712_v17 }
 0x2c5   : > { %2326 = vmatprep.mubr.f32.mxu1 %v5712_v17 }
 0x2c7   : > { %2166 = vmatmul.mubr.f32.gmra.mrb[68].mxu0 %v1979_v41 }
 0x2c8   : > { %2327 = vmatmul.mubr.f32.gmra.mrb[68].mxu1 %v1979_v41  ;;  %2171 = vmatprep.mubr.f32.mxu0 %v5712_v17 }
 0x2c9   : > { %2332 = vmatprep.mubr.f32.mxu1 %v5712_v17 }
 0x2cb   : > { %2172 = vmatmul.mubr.f32.gmra.mrb[70].mxu0 %v1980_v16 }
 0x2cc   : > { %2333 = vmatmul.mubr.f32.gmra.mrb[70].mxu1 %v1980_v16  ;;  %2177 = vmatprep.mubr.f32.mxu0 %v5712_v17 }
 0x2cd   : > { %2338 = vmatprep.mubr.f32.mxu1 %v5712_v17 }
 0x2cf   : > { %2178 = vmatmul.mubr.f32.gmra.mrb[72].mxu0 %v1981_v2 }
 0x2d0   : > { %2339 = vmatmul.mubr.f32.gmra.mrb[72].mxu1 %v1981_v2  ;;  %2183 = vmatprep.mubr.f32.mxu0 %v5712_v17 }
 0x2d1   : > { %2344 = vmatprep.mubr.f32.mxu1 %v5712_v17 }
 0x2d3   : > { %2184 = vmatmul.mubr.f32.gmra.mrb[74].mxu0 %v1982_v30 }
 0x2d4   : > { %2345 = vmatmul.mubr.f32.gmra.mrb[74].mxu1 %v1982_v30  ;;  %2189 = vmatprep.mubr.f32.mxu0 %v5712_v17 }
 0x2d5   : > { %2350 = vmatprep.mubr.f32.mxu1 %v5712_v17 }
 0x2d7   : > { %2190 = vmatmul.mubr.f32.gmra.mrb[76].mxu0 %v1983_v51 }
 0x2d8   : > { %2351 = vmatmul.mubr.f32.gmra.mrb[76].mxu1 %v1983_v51  ;;  %2195 = vmatprep.mubr.f32.mxu0 %v5712_v17 }
 0x2d9   : > { %2356 = vmatprep.mubr.f32.mxu1 %v5712_v17 }
 0x2db   : > { %2196 = vmatmul.mubr.f32.gmra.mrb[78].mxu0 %v1984_v53 }
 0x2dc   : > { %2357 = vmatmul.mubr.f32.gmra.mrb[78].mxu1 %v1984_v53  ;;  %2201 = vmatprep.mubr.f32.mxu0 %v5712_v17 }
 0x2dd   : > { %2362 = vmatprep.mubr.f32.mxu1 %v5712_v17 }
 0x2df   : > { %2202 = vmatmul.mubr.f32.gmra.mrb[80].mxu0 %v1985_v10 }
 0x2e0   : > { %2363 = vmatmul.mubr.f32.gmra.mrb[80].mxu1 %v1985_v10  ;;  %2207 = vmatprep.mubr.f32.mxu0 %v5712_v17 }
 0x2e1   : > { %2368 = vmatprep.mubr.f32.mxu1 %v5712_v17 }
 0x2e3   : > { %2208 = vmatmul.mubr.f32.gmra.mrb[82].mxu0 %v1986_v44 }
 0x2e4   : > { %2369 = vmatmul.mubr.f32.gmra.mrb[82].mxu1 %v1986_v44  ;;  %2213 = vmatprep.mubr.f32.mxu0 %v5712_v17 }
 0x2e5   : > { %2374 = vmatprep.mubr.f32.mxu1 %v5712_v17 }
 0x2e7   : > { %2214 = vmatmul.mubr.f32.gmra.mrb[84].mxu0 %v1987_v1 }
 0x2e8   : > { %2375 = vmatmul.mubr.f32.gmra.mrb[84].mxu1 %v1987_v1  ;;  %2219 = vmatprep.mubr.f32.mxu0 %v5712_v17 }
 0x2e9   : > { %2380 = vmatprep.mubr.f32.mxu1 %v5712_v17 }
 0x2eb   : > { %2220 = vmatmul.mubr.f32.gmra.mrb[86].mxu0 %v1988_v57 }
 0x2ec   : > { %2381 = vmatmul.mubr.f32.gmra.mrb[86].mxu1 %v1988_v57  ;;  %2225 = vmatprep.mubr.f32.mxu0 %v5712_v17 }
 0x2ed   : > { %2386 = vmatprep.mubr.f32.mxu1 %v5712_v17 }
 0x2ef   : > { %2226 = vmatmul.mubr.f32.gmra.mrb[88].mxu0 %v1989_v58 }
 0x2f0   : > { %2387 = vmatmul.mubr.f32.gmra.mrb[88].mxu1 %v1989_v58  ;;  %2231 = vmatprep.mubr.f32.mxu0 %v5712_v17 }
 0x2f1   : > { %2392 = vmatprep.mubr.f32.mxu1 %v5712_v17 }
 0x2f3   : > { %2232 = vmatmul.mubr.f32.gmra.mrb[90].mxu0 %v1990_v20 }
 0x2f4   : > { %2393 = vmatmul.mubr.f32.gmra.mrb[90].mxu1 %v1990_v20  ;;  %2237 = vmatprep.mubr.f32.mxu0 %v5712_v17 }
 0x2f5   : > { %2398 = vmatprep.mubr.f32.mxu1 %v5712_v17 }
 0x2f7   : > { %2238 = vmatmul.mubr.f32.gmra.mrb[92].mxu0 %v1991_v43 }
 0x2f8   : > { %2399 = vmatmul.mubr.f32.gmra.mrb[92].mxu1 %v1991_v43  ;;  %2243 = vmatprep.mubr.f32.mxu0 %v5712_v17 }
 0x2f9   : > { %2404 = vmatprep.mubr.f32.mxu1 %v5712_v17 }
 0x2fb   : > { %2244 = vmatmul.mubr.f32.gmra.mrb[94].mxu0 %v1992_v18 }
 0x2fc   : > { %2405 = vmatmul.mubr.f32.gmra.mrb[94].mxu1 %v1992_v18  ;;  %2823 = vmatprep.mubr.f32.mxu0 %v5712_v17 }
 0x2fd   : > { %2912 = vmatprep.mubr.f32.mxu1 %v5712_v17 }
 0x392   : > { %v2155_v8 = vpop.f32.mrb[64].mxu0 }
 0x393   : > { %v2156_v45 = vadd.f32 %v2155_v8, %v2012_v56  ;;  %v2316_v4 = vpop.f32.mrb[64].mxu1  ;;  %v2157_v31 = vpop.f32.mrb[65].mxu0 }
 0x394   : > { %v2317_v49 = vadd.f32 %v2316_v4, %v2012_v56  ;;  %v2158_v19 = vadd.f32 %v2157_v31, %v2012_v56  ;;  %v2318_v15 = vpop.f32.mrb[65].mxu1 }
 0x395   : > { %v2475_v63 = vmul.f32 0.70710677, %v2156_v45  ;;  %v2319_v42 = vadd.f32 %v2318_v15, %v2012_v56  ;;  %v2411_v54 = vmul.f32 0.5, %v2156_v45 }
 0x396   : > { %v2477_v5 = vmul.f32 0.70710677, %v2317_v49  ;;  %v2476_v21 = vmul.f32 0.70710677, %v2158_v19  ;;  %v2161_v48 = vpop.f32.mrb[66].mxu0  ;;  %v2413_v61 = vmul.f32 0.5, %v2317_v49 }
 0x397   : > { %3646 = verf.f32 %v2475_v63  ;;  %v2478_v13 = vmul.f32 0.70710677, %v2319_v42  ;;  %v2322_v25 = vpop.f32.mrb[66].mxu1  ;;  %v2162_v11 = vadd.f32 %v2161_v48, %v2017_v36  ;;  %v2163_v50 = vpop.f32.mrb[67].mxu0  ;;  %v5183_v38 = vmul.f32 0.5, %v2158_v19 }
 0x398   : > { %3648 = verf.f32 %v2477_v5  ;;  %v2323_v24 = vadd.f32 %v2322_v25, %v2017_v36  ;;  %v2324_v35 = vpop.f32.mrb[67].mxu1  ;;  %v2164_v29 = vadd.f32 %v2163_v50, %v2017_v36  ;;  %v5185_v9 = vmul.f32 0.5, %v2319_v42  ;;  %v2032_v63 = vpop.permute.xlu0 %2031 }
 0x399   : > { %3650 = verf.f32 %v2476_v21  ;;  %v2479_v46 = vmul.f32 0.70710677, %v2162_v11  ;;  %v2325_v62 = vadd.f32 %v2324_v35, %v2017_v36  ;;  %v2415_v2 = vmul.f32 0.5, %v2162_v11 }
 0x39a   : > { %v2167_v40 = vpop.f32.mrb[68].mxu0  ;;  %3652 = verf.f32 %v2478_v13  ;;  %v2481_v59 = vmul.f32 0.70710677, %v2323_v24  ;;  %v2480_v33 = vmul.f32 0.70710677, %v2164_v29  ;;  %v2417_v30 = vmul.f32 0.5, %v2323_v24 }
 0x39b   : > { %3654 = verf.f32 %v2479_v46  ;;  %v2168_v14 = vadd.f32 %v2167_v40, %v2022_v6  ;;  %v2328_v12 = vpop.f32.mrb[68].mxu1  ;;  %v2169_v47 = vpop.f32.mrb[69].mxu0  ;;  %v2482_v32 = vmul.f32 0.70710677, %v2325_v62  ;;  %v5187_v51 = vmul.f32 0.5, %v2164_v29 }
 0x39c   : > { %3656 = verf.f32 %v2481_v59  ;;  %v2329_v60 = vadd.f32 %v2328_v12, %v2022_v6  ;;  %v2170_v39 = vadd.f32 %v2169_v47, %v2022_v6  ;;  %v2330_v23 = vpop.f32.mrb[69].mxu1  ;;  %v5189_v56 = vmul.f32 0.5, %v2325_v62 }
 0x39d   : > { %v2483_v7 = vmul.f32 0.70710677, %v2168_v14  ;;  %3658 = verf.f32 %v2480_v33  ;;  %v2331_v27 = vadd.f32 %v2330_v23, %v2022_v6  ;;  %v5191_v49 = vmul.f32 0.5, %v2168_v14 }
 0x39e   : > { %v2173_v22 = vpop.f32.mrb[70].mxu0  ;;  %v2485_v0 = vmul.f32 0.70710677, %v2329_v60  ;;  %v2484_v55 = vmul.f32 0.70710677, %v2170_v39  ;;  %v5193_v19 = vmul.f32 0.5, %v2329_v60 }
 0x39f   : > { %v2334_v52 = vpop.f32.mrb[70].mxu1  ;;  %v2175_v34 = vpop.f32.mrb[71].mxu0  ;;  %3660 = verf.f32 %v2483_v7  ;;  %v2174_v28 = vadd.f32 %v2173_v22, %v2027_v37  ;;  %v2486_v44 = vmul.f32 0.70710677, %v2331_v27  ;;  %v5195_v42 = vmul.f32 0.5, %v2170_v39 }
 0x3a0   : > { %v2336_v3 = vpop.f32.mrb[71].mxu1  ;;  %3662 = verf.f32 %v2485_v0  ;;  %v2335_v41 = vadd.f32 %v2334_v52, %v2027_v37  ;;  %v2176_v53 = vadd.f32 %v2175_v34, %v2027_v37  ;;  %v5197_v36 = vmul.f32 0.5, %v2331_v27 }
 0x3a1   : > { %v3647_v26 = vpop.eup %3646  ;;  %3664 = verf.f32 %v2482_v32  ;;  %v2487_v1 = vmul.f32 0.70710677, %v2174_v28  ;;  %v2337_v57 = vadd.f32 %v2336_v3, %v2027_v37  ;;  %v2423_v22 = vmul.f32 0.5, %v2174_v28 }
 0x3a2   : > { %v3649_v16 = vpop.eup %3648  ;;  %v2179_v10 = vpop.f32.mrb[72].mxu0  ;;  %v2603_v18 = vadd.f32 1.0, %v3647_v26  ;;  %3666 = verf.f32 %v2484_v55  ;;  %v2489_v8 = vmul.f32 0.70710677, %v2335_v41  ;;  %v2488_v5 = vmul.f32 0.70710677, %v2176_v53 }
 0x3a3   : > { %v2340_v58 = vpop.f32.mrb[72].mxu1  ;;  %v2181_v20 = vpop.f32.mrb[73].mxu0  ;;  %v2605_v31 = vadd.f32 1.0, %v3649_v16  ;;  %3668 = verf.f32 %v2487_v1  ;;  %v2490_v25 = vmul.f32 0.70710677, %v2337_v57  ;;  %v2180_v11 = vadd.f32 %v2179_v10, %v2032_v63 }
 0x3a4   : > { %v3651_v43 = vpop.eup %3650  ;;  %v2342_v45 = vpop.f32.mrb[73].mxu1  ;;  %3670 = verf.f32 %v2489_v8  ;;  %v5199_v35 = vmul.f32 %v2603_v18, %v2411_v54  ;;  %v2341_v40 = vadd.f32 %v2340_v58, %v2032_v63  ;;  %v5209_v39 = vadd.f32 %v2181_v20, %v2032_v63 }
 0x3a5   : > { %v3653_v4 = vpop.eup %3652  ;;  %3672 = verf.f32 %v2486_v44  ;;  %v2604_v29 = vadd.f32 1.0, %v3651_v43  ;;  %v5203_v33 = vmul.f32 %v2605_v31, %v2413_v61  ;;  %v2491_v60 = vmul.f32 0.70710677, %v2180_v11 }
 0x3a6   : > { %v3655_v15 = vpop.eup %3654  ;;  %v2185_v21 = vpop.f32.mrb[74].mxu0  ;;  %v2606_v62 = vadd.f32 1.0, %v3653_v4  ;;  %3674 = verf.f32 %v2488_v5  ;;  %v2425_v32 = vmul.f32 0.5, %v2335_v41  ;;  %v2493_v0 = vmul.f32 0.70710677, %v2341_v40 }
 0x3a7   : > { %v3657_v13 = vpop.eup %3656  ;;  %v2607_v48 = vadd.f32 1.0, %v3655_v15  ;;  %v2346_v24 = vpop.f32.mrb[74].mxu1  ;;  %3676 = verf.f32 %v2490_v25  ;;  %v5220_v34 = vmul.f32 %v2604_v29, %v5183_v38  ;;  %v5224_v55 = vmul.f32 0.5, %v2176_v53 }
 0x3a8   : > { %v2187_v50 = vpop.f32.mrb[75].mxu0  ;;  %v2609_v46 = vadd.f32 1.0, %v3657_v13  ;;  %v5201_v6 = vpop.f32.mrb[75].mxu1  ;;  %v5229_v28 = vmul.f32 %v2606_v62, %v5185_v9  ;;  %v5231_v16 = vmul.f32 0.5, %v2337_v57  ;;  %3678 = verf.f32 %v2491_v60 }
 0x3a9   : > { %v3659_v59 = vpop.eup %3658  ;;  %v5205_v14 = vmul.f32 %v2607_v48, %v2415_v2  ;;  %v5233_v10 = vmul.f32 0.5, %v2180_v11  ;;  %v2492_v44 = vmul.f32 0.70710677, %v5209_v39  ;;  %v2343_v1 = vadd.f32 %v2342_v45, %v2032_v63  ;;  %v2042_v60 = vpop.permute.xlu0 %2041 }
 0x3aa   : > { %v3661_v12 = vpop.eup %3660  ;;  %v5207_v47 = vmul.f32 %v2609_v46, %v2417_v30  ;;  %v5211_v23 = vpop.f32.mrb[76].mxu0  ;;  %v2608_v61 = vadd.f32 1.0, %v3659_v59  ;;  %3680 = verf.f32 %v2493_v0  ;;  %v5245_v5 = vmul.f32 0.5, %v2341_v40 }
 0x3ab   : > { %v3663_v54 = vpop.eup %3662  ;;  %v3276_v7 = vpack.c.bf16 %v5205_v14, %v5199_v35  ;;  %v5215_v27 = vpop.f32.mrb[76].mxu1  ;;  %v2611_v41 = vadd.f32 1.0, %v3661_v12  ;;  %v2494_v48 = vmul.f32 0.70710677, %v2343_v1  ;;  %3682 = verf.f32 %v2492_v44 }
 0x3ac   : > { %v5217_v52 = vpop.f32.mrb[77].mxu0  ;;  %v3308_v37 = vpack.c.bf16 %v5207_v47, %v5203_v33  ;;  %v5226_v3 = vpop.f32.mrb[77].mxu1  ;;  %v2613_v38 = vadd.f32 1.0, %v3663_v54  ;;  %v5243_v4 = vmul.f32 %v2608_v61, %v5187_v51 }
 0x3ad   : > { %v3665_v26 = vpop.eup %3664  ;;  %v2037_v30 = vpop.permute.xlu1 %2036  ;;  %v5250_v13 = vmul.f32 %v2611_v41, %v5191_v49  ;;  %3684 = verf.f32 %v2494_v48 }
 0x3ae   : > { %v3667_v2 = vpop.eup %3666  ;;  %v5236_v53 = vpop.f32.mrb[78].mxu0  ;;  %v2186_v20 = vadd.f32 %v2185_v21, %v2037_v30  ;;  %v2347_v43 = vadd.f32 %v2346_v24, %v2037_v30  ;;  %v2188_v9 = vadd.f32 %v2187_v50, %v2037_v30  ;;  %v2610_v31 = vadd.f32 1.0, %v3665_v26 }
 0x3af   : > { %v3669_v58 = vpop.eup %3668  ;;  %v5238_v18 = vpop.f32.mrb[78].mxu1  ;;  %v2612_v11 = vadd.f32 1.0, %v3667_v2  ;;  %v5257_v46 = vmul.f32 %v2613_v38, %v5193_v19  ;;  %v2349_v0 = vadd.f32 %v5201_v6, %v2037_v30  ;;  %v2192_v26 = vadd.f32 %v5211_v23, %v2042_v60 }
 0x3b0   : > { %v5240_v57 = vpop.f32.mrb[79].mxu0  ;;  %v3671_v8 = vpop.eup %3670  ;;  %v2615_v15 = vadd.f32 1.0, %v3669_v58  ;;  %v2495_v25 = vmul.f32 0.70710677, %v2186_v20  ;;  %v2497_v50 = vmul.f32 0.70710677, %v2347_v43  ;;  %v2674_v19 = vmul.f32 %v2610_v31, %v5189_v56 }
 0x3b1   : > { %v5247_v45 = vpop.f32.mrb[79].mxu1  ;;  %v3673_v63 = vpop.eup %3672  ;;  %v2617_v21 = vadd.f32 1.0, %v3671_v8  ;;  %v2496_v59 = vmul.f32 0.70710677, %v2188_v9  ;;  %v5275_v41 = vmul.f32 %v2612_v11, %v5195_v42  ;;  %v5278_v2 = vmul.f32 0.5, %v5209_v39 }
 0x3b2   : > { %v5252_v24 = vmul.f32 %v2615_v15, %v2423_v22  ;;  %v5254_v51 = vpop.f32.mrb[80].mxu0  ;;  %v3675_v29 = vpop.eup %3674  ;;  %v2614_v54 = vadd.f32 1.0, %v3673_v63  ;;  %3686 = verf.f32 %v2495_v25  ;;  %v2498_v38 = vmul.f32 0.70710677, %v2349_v0 }
 0x3b3   : > { %v5259_v40 = vmul.f32 %v2617_v21, %v2425_v32  ;;  %v5261_v49 = vpop.f32.mrb[80].mxu1  ;;  %v5263_v62 = vpop.f32.mrb[81].mxu0  ;;  %3688 = verf.f32 %v2497_v50  ;;  %v2616_v30 = vadd.f32 1.0, %v3675_v29  ;;  %v2499_v56 = vmul.f32 0.70710677, %v2192_v26 }
 0x3b4   : > { %v3677_v12 = vpop.eup %3676  ;;  %v5268_v61 = vpop.f32.mrb[81].mxu1  ;;  %3690 = verf.f32 %v2496_v59  ;;  %v2353_v8 = vadd.f32 %v5215_v27, %v2042_v60  ;;  %v5288_v42 = vmul.f32 %v2614_v54, %v5197_v36  ;;  %v5290_v23 = vmul.f32 0.5, %v2343_v1 }
 0x3b5   : > { %v3679_v6 = vpop.eup %3678  ;;  %v2618_v58 = vadd.f32 1.0, %v3677_v12  ;;  %3692 = verf.f32 %v2498_v38  ;;  %v2194_v39 = vadd.f32 %v5217_v52, %v2042_v60  ;;  %v2431_v48 = vmul.f32 0.5, %v2186_v20  ;;  %v2047_v50 = vpop.permute.xlu1 %2046 }
 0x3b6   : > { %v5280_v44 = vpop.f32.mrb[82].mxu0  ;;  %v3681_v21 = vpop.eup %3680  ;;  %v2433_v25 = vmul.f32 0.5, %v2347_v43  ;;  %v5295_v11 = vmul.f32 0.5, %v2188_v9  ;;  %v2501_v27 = vmul.f32 0.70710677, %v2353_v8  ;;  %v2619_v29 = vadd.f32 1.0, %v3679_v6 }
 0x3b7   : > { %v5283_v31 = vpop.f32.mrb[82].mxu1  ;;  %v5285_v15 = vpop.f32.mrb[83].mxu0  ;;  %3694 = verf.f32 %v2499_v56  ;;  %v2500_v59 = vmul.f32 0.70710677, %v2194_v39  ;;  %v5298_v36 = vadd.f32 %v5226_v3, %v2042_v60  ;;  %v5303_v12 = vmul.f32 %v2616_v30, %v5224_v55 }
 0x3b8   : > { %v5293_v63 = vpop.f32.mrb[83].mxu1  ;;  %v5306_v52 = vmul.f32 %v2618_v58, %v5231_v16  ;;  %v5308_v20 = vmul.f32 0.5, %v2349_v0  ;;  %v3274_v43 = vpack.c.bf16 %v5243_v4, %v5220_v34  ;;  %v3683_v38 = vpop.eup %3682  ;;  %v2621_v3 = vadd.f32 1.0, %v3681_v21 }
 0x3b9   : > { %v3306_v60 = vpack.c.bf16 %v2674_v19, %v5229_v28  ;;  %v2198_v6 = vadd.f32 %v5236_v53, %v2047_v50  ;;  %v2359_v55 = vadd.f32 %v5238_v18, %v2047_v50  ;;  %v3685_v16 = vpop.eup %3684  ;;  %v5321_v0 = vmul.f32 0.5, %v2192_v26 }
 0x3ba   : > { %v5300_v1 = vpop.f32.mrb[84].mxu0  ;;  %3696 = verf.f32 %v2501_v27  ;;  %3275 = vmatprep.subr.bf16.mxu0 %v3274_v43  ;;  %v2200_v34 = vadd.f32 %v5240_v57, %v2047_v50  ;;  %v2361_v4 = vadd.f32 %v5247_v45, %v2047_v50  ;;  %v5326_v56 = vmul.f32 %v2619_v29, %v5233_v10 }
 0x3bb   : > { %v5312_v9 = vpop.f32.mrb[84].mxu1  ;;  %v5314_v54 = vpop.f32.mrb[85].mxu0  ;;  %3698 = verf.f32 %v2500_v59  ;;  %v2502_v28 = vmul.f32 0.70710677, %v5298_v36  ;;  %3307 = vmatprep.subr.bf16.mxu1 %v3306_v60  ;;  %v2503_v53 = vmul.f32 0.70710677, %v2198_v6  ;;  %3277 = vmatpush1.bf16.msra.mxu0 %v3276_v7  ;;  %v5340_v27 = vmul.f32 %v2621_v3, %v5245_v5 }
 0x3bc   : > { %v5319_v30 = vpop.f32.mrb[85].mxu1  ;;  %v3687_v58 = vpop.eup %3686  ;;  %v5334_v57 = vmul.f32 0.5, %v2353_v8  ;;  %v2505_v45 = vmul.f32 0.70710677, %v2359_v55  ;;  %3309 = vmatpush1.bf16.msra.mxu1 %v3308_v37  ;;  %v2504_v10 = vmul.f32 0.70710677, %v2200_v34 }
 0x3bd   : > { %v3689_v19 = vpop.eup %3688  ;;  %v2623_v26 = vadd.f32 1.0, %v3687_v58  ;;  %v5342_v29 = vmul.f32 0.5, %v2194_v39  ;;  %3700 = verf.f32 %v2503_v53  ;;  %v2052_v7 = vpop.permute.xlu0 %2051  ;;  %v2620_v8 = vadd.f32 1.0, %v3683_v38 }
 0x3be   : > { %v5332_v18 = vpop.f32.mrb[86].mxu0  ;;  %v3691_v21 = vpop.eup %3690  ;;  %v2625_v50 = vadd.f32 1.0, %v3689_v19  ;;  %3702 = verf.f32 %v2505_v45  ;;  %v2506_v33 = vmul.f32 0.70710677, %v2361_v4  ;;  %v2204_v5 = vadd.f32 %v5254_v51, %v2052_v7 }
 0x3bf   : > { %v5344_v35 = vpop.f32.mrb[86].mxu1  ;;  %v5346_v14 = vpop.f32.mrb[87].mxu0  ;;  %v5348_v59 = vmul.f32 %v2623_v26, %v2431_v48  ;;  %3704 = verf.f32 %v2502_v28  ;;  %v2365_v39 = vadd.f32 %v5261_v49, %v2052_v7  ;;  %v2622_v60 = vadd.f32 1.0, %v3685_v16 }
 0x3c0   : > { %v5350_v47 = vpop.f32.mrb[87].mxu1  ;;  %v3693_v37 = vpop.eup %3692  ;;  %v5352_v43 = vmul.f32 %v2625_v50, %v2433_v25  ;;  %v2624_v48 = vadd.f32 1.0, %v3691_v21  ;;  %3706 = verf.f32 %v2504_v10  ;;  %v2507_v51 = vmul.f32 0.70710677, %v2204_v5 }
 0x3c1   : > { %v3695_v19 = vpop.eup %3694  ;;  %v2626_v28 = vadd.f32 1.0, %v3693_v37  ;;  %3708 = verf.f32 %v2506_v33  ;;  %v5369_v16 = vmul.f32 %v2620_v8, %v5278_v2  ;;  %v5372_v26 = vmul.f32 0.5, %v5298_v36 }
 0x3c2   : > { %v5356_v3 = vpop.f32.mrb[88].mxu0  ;;  %v2509_v45 = vmul.f32 0.70710677, %v2365_v39  ;;  %v2206_v10 = vadd.f32 %v5263_v62, %v2052_v7  ;;  %v2439_v21 = vmul.f32 0.5, %v2198_v6  ;;  %v2441_v50 = vmul.f32 0.5, %v2359_v55 }
 0x3c3   : > { %v5360_v58 = vpop.f32.mrb[88].mxu1  ;;  %v5362_v53 = vpop.f32.mrb[89].mxu0  ;;  %3710 = verf.f32 %v2507_v51  ;;  %v5376_v38 = vadd.f32 %v5268_v61, %v2052_v7  ;;  %v5381_v25 = vmul.f32 %v2622_v60, %v5290_v23  ;;  %v2627_v2 = vadd.f32 1.0, %v3695_v19 }
 0x3c4   : > { %v5366_v49 = vpop.f32.mrb[89].mxu1  ;;  %v3697_v33 = vpop.eup %3696  ;;  %v5383_v8 = vmul.f32 0.5, %v2200_v34  ;;  %v5385_v36 = vmul.f32 0.5, %v2361_v4  ;;  %v5392_v55 = vmul.f32 %v2624_v48, %v5295_v11  ;;  %v5395_v61 = vmul.f32 %v2626_v28, %v5308_v20 }
 0x3c5   : > { %v3699_v6 = vpop.eup %3698  ;;  %v5397_v7 = vmul.f32 0.5, %v2204_v5  ;;  %v2508_v23 = vmul.f32 0.70710677, %v2206_v10  ;;  %v2057_v34 = vpop.permute.xlu1 %2056  ;;  %3712 = verf.f32 %v2509_v45  ;;  %v2510_v4 = vmul.f32 0.70710677, %v5376_v38 }
 0x3c6   : > { %v5378_v37 = vpop.f32.mrb[90].mxu0  ;;  %v3278_v19 = vpack.c.bf16 %v5303_v12, %v5275_v41  ;;  %v3310_v51 = vpack.c.bf16 %v5306_v52, %v5288_v42  ;;  %v2629_v48 = vadd.f32 1.0, %v3697_v33  ;;  %v5406_v22 = vmul.f32 0.5, %v2365_v39 }
 0x3c7   : > { %v5387_v32 = vpop.f32.mrb[90].mxu1  ;;  %v5389_v62 = vpop.f32.mrb[91].mxu0  ;;  %v2210_v20 = vadd.f32 %v5280_v44, %v2057_v34  ;;  %v2371_v5 = vadd.f32 %v5283_v31, %v2057_v34  ;;  %v5413_v45 = vmul.f32 %v2627_v2, %v5321_v0  ;;  %v2212_v41 = vadd.f32 %v5285_v15, %v2057_v34 }
 0x3c8   : > { %5713 = vst [vmem:[#allocation3_spill] sm:$0xff] %v5389_v62  ;;  %v5399_v60 = vpop.f32.mrb[91].mxu1  ;;  %v3701_v11 = vpop.eup %3700  ;;  %3279 = vmatprep.subr.bf16.mxu0 %v3278_v19  ;;  %3311 = vmatprep.subr.bf16.mxu1 %v3310_v51  ;;  %3714 = verf.f32 %v2508_v23  ;;  %v5715_v33 = vpack.c.bf16 %v5252_v24, %v5250_v13  ;;  %v5716_v0 = vpack.c.bf16 %v5259_v40, %v5257_v46 }
 0x3c9   : > { %5714 = vst [vmem:[#allocation4_spill] sm:$0xff] %v5399_v60  ;;  %v3703_v17 = vpop.eup %3702  ;;  %v2628_v60 = vadd.f32 1.0, %v3699_v6  ;;  %v2631_v62 = vadd.f32 1.0, %v3701_v11  ;;  %v2062_v44 = vpop.permute.xlu0 %2061  ;;  %v2511_v31 = vmul.f32 0.70710677, %v2210_v20  ;;  %v2373_v2 = vadd.f32 %v5293_v63, %v2057_v34 }
 0x3ca   : > { %v5410_v28 = vpop.f32.mrb[92].mxu0  ;;  %v3705_v52 = vpop.eup %3704  ;;  %v2633_v39 = vadd.f32 1.0, %v3703_v17  ;;  %3281 = vmatpush1.bf16.msra.mxu0 %v5715_v33  ;;  %3313 = vmatpush1.bf16.msra.mxu1 %v5716_v0  ;;  %3716 = verf.f32 %v2510_v4  ;;  %v2513_v51 = vmul.f32 0.70710677, %v2371_v5  ;;  %v2216_v17 = vadd.f32 %v5300_v1, %v2062_v44 }
 0x3cb   : > { %v5416_v42 = vpop.f32.mrb[92].mxu1  ;;  %v5418_v12 = vpop.f32.mrb[93].mxu0  ;;  %v5429_v19 = vmul.f32 %v2631_v62, %v2439_v21  ;;  %v5433_v11 = vmul.f32 %v2629_v48, %v5334_v57  ;;  %3718 = verf.f32 %v2511_v31  ;;  %v2512_v24 = vmul.f32 0.70710677, %v2212_v41 }
 0x3cc   : > { %v5427_v15 = vpop.f32.mrb[93].mxu1  ;;  %v3707_v6 = vpop.eup %3706  ;;  %v5435_v13 = vmul.f32 %v2633_v39, %v2441_v50  ;;  %v2630_v40 = vadd.f32 1.0, %v3705_v52  ;;  %v5441_v21 = vmul.f32 0.5, %v2206_v10  ;;  %3720 = verf.f32 %v2513_v51 }
 0x3cd   : > { %v3709_v23 = vpop.eup %3708  ;;  %v2632_v50 = vadd.f32 1.0, %v3707_v6  ;;  %v5450_v4 = vmul.f32 0.5, %v5376_v38  ;;  %v2514_v48 = vmul.f32 0.70710677, %v2373_v2  ;;  %3722 = verf.f32 %v2512_v24 }
 0x3ce   : > { %v5437_v46 = vpop.f32.mrb[94].mxu0  ;;  %v3711_v34 = vpop.eup %3710  ;;  %v2634_v39 = vadd.f32 1.0, %v3709_v23  ;;  %v2515_v10 = vmul.f32 0.70710677, %v2216_v17  ;;  %v2377_v31 = vadd.f32 %v5312_v9, %v2062_v44  ;;  %v5456_v33 = vmul.f32 %v2628_v60, %v5342_v29 }
 0x3cf   : > { %v5443_v62 = vpop.f32.mrb[94].mxu1  ;;  %v5445_v1 = vpop.f32.mrb[95].mxu0  ;;  %3724 = verf.f32 %v2514_v48  ;;  %v2218_v0 = vadd.f32 %v5314_v54, %v2062_v44  ;;  %v2379_v51 = vadd.f32 %v5319_v30, %v2062_v44  ;;  %v5461_v38 = vmul.f32 %v2630_v40, %v5372_v26 }
 0x3d0   : > { %v5452_v52 = vpop.f32.mrb[95].mxu1  ;;  %v3713_v6 = vpop.eup %3712  ;;  %v2635_v57 = vadd.f32 1.0, %v3711_v34  ;;  %v2447_v63 = vmul.f32 0.5, %v2210_v20  ;;  %v2449_v23 = vmul.f32 0.5, %v2371_v5  ;;  %v5463_v24 = vmul.f32 0.5, %v2212_v41 }
 0x3d1   : > { %5717 = vst [vmem:[#allocation5_spill] sm:$0xff] %v5452_v52  ;;  %v2517_v52 = vmul.f32 0.70710677, %v2377_v31  ;;  %3726 = verf.f32 %v2515_v10  ;;  %v2516_v9 = vmul.f32 0.70710677, %v2218_v0  ;;  %v5466_v29 = vmul.f32 %v2632_v50, %v5383_v8  ;;  %v2067_v26 = vpop.permute.xlu1 %2066 }
 0x3d2   : > { %v5469_v60 = vmul.f32 %v2634_v39, %v5385_v36  ;;  %v5471_v54 = vmul.f32 0.5, %v2373_v2  ;;  %v2518_v30 = vmul.f32 0.70710677, %v2379_v51  ;;  %v3715_v44 = vpop.eup %3714  ;;  %v2637_v40 = vadd.f32 1.0, %v3713_v6 }
 0x3d3   : > { %v5473_v34 = vmul.f32 0.5, %v2216_v17  ;;  %v3282_v20 = vpack.c.bf16 %v5392_v55, %v5369_v16  ;;  %v3314_v5 = vpack.c.bf16 %v5395_v61, %v5381_v25  ;;  %v5480_v8 = vmul.f32 %v2635_v57, %v5397_v7  ;;  %v2072_v61 = vpop.permute.xlu0 %2071 }
 0x3d4   : > { %v3717_v41 = vpop.eup %3716  ;;  %3728 = verf.f32 %v2517_v52  ;;  %v2222_v36 = vadd.f32 %v5332_v18, %v2067_v26  ;;  %v2383_v2 = vadd.f32 %v5344_v35, %v2067_v26  ;;  %v5484_v48 = vmul.f32 0.5, %v2377_v31 }
 0x3d5   : > { %v3719_v50 = vpop.eup %3718  ;;  %3730 = verf.f32 %v2516_v9  ;;  %3283 = vmatprep.subr.bf16.mxu0 %v3282_v20  ;;  %3315 = vmatprep.subr.bf16.mxu1 %v3314_v5  ;;  %v2224_v16 = vadd.f32 %v5346_v14, %v2067_v26  ;;  %v2385_v55 = vadd.f32 %v5350_v47, %v2067_v26  ;;  %v2636_v17 = vadd.f32 1.0, %v3715_v44 }
 0x3d6   : > { %v3721_v25 = vpop.eup %3720  ;;  %v2639_v7 = vadd.f32 1.0, %v3719_v50  ;;  %3732 = verf.f32 %v2518_v30  ;;  %v2519_v57 = vmul.f32 0.70710677, %v2222_v36  ;;  %v5718_v18 = vpack.c.bf16 %v5348_v59, %v5326_v56 }
 0x3d7   : > { %v5719_v35 = vpack.c.bf16 %v5352_v43, %v5340_v27  ;;  %v2641_v52 = vadd.f32 1.0, %v3721_v25  ;;  %v2521_v39 = vmul.f32 0.70710677, %v2383_v2  ;;  %v2520_v10 = vmul.f32 0.70710677, %v2224_v16  ;;  %v3723_v47 = vpop.eup %3722 }
 0x3d8   : > { %3285 = vmatpush1.bf16.msra.mxu0 %v5718_v18  ;;  %v2228_v14 = vadd.f32 %v5356_v3, %v2072_v61  ;;  %v5496_v31 = vmul.f32 %v2637_v40, %v5406_v22  ;;  %v5498_v6 = vmul.f32 %v2639_v7, %v2447_v63  ;;  %v5500_v9 = vmul.f32 0.5, %v2218_v0 }
 0x3d9   : > { %3317 = vmatpush1.bf16.msra.mxu1 %v5719_v35  ;;  %3734 = verf.f32 %v2519_v57  ;;  %v3725_v56 = vpop.eup %3724  ;;  %v2638_v59 = vadd.f32 1.0, %v3717_v41  ;;  %v5502_v30 = vmul.f32 %v2641_v52, %v2449_v23  ;;  %v2522_v27 = vmul.f32 0.70710677, %v2385_v55 }
 0x3da   : > { %3736 = verf.f32 %v2521_v39  ;;  %v5505_v43 = vmul.f32 %v2636_v17, %v5441_v21  ;;  %v3292_v3 = vpack.c.bf16 %v5498_v6, %v5480_v8  ;;  %v5509_v44 = vmul.f32 0.5, %v2379_v51 }
 0x3db   : > { %3738 = verf.f32 %v2520_v10  ;;  %v3727_v22 = vpop.eup %3726  ;;  %v3324_v63 = vpack.c.bf16 %v5502_v30, %v5496_v31  ;;  %v2640_v0 = vadd.f32 1.0, %v3723_v47  ;;  %v2523_v26 = vmul.f32 0.70710677, %v2228_v14  ;;  %v5721_v10 = vld [vmem:[#allocation3_spill] sm:$0xff]  ;;  %v5722_v47 = vld [vmem:[#allocation4_spill] sm:$0xff] }
 0x3dc   : > { %3740 = verf.f32 %v2522_v27  ;;  %v2642_v23 = vadd.f32 1.0, %v3725_v56  ;;  %v2389_v40 = vadd.f32 %v5360_v58, %v2072_v61  ;;  %v2230_v20 = vadd.f32 %v5362_v53, %v2072_v61  ;;  %v2082_v27 = vpop.permute.xlu0 %2081 }
 0x3dd   : > { %v2391_v21 = vadd.f32 %v5366_v49, %v2072_v61  ;;  %v5517_v5 = vmul.f32 %v2638_v59, %v5450_v4  ;;  %v2455_v51 = vmul.f32 0.5, %v2222_v36  ;;  %3742 = verf.f32 %v2523_v26  ;;  %v2077_v61 = vpop.permute.xlu1 %2076 }
 0x3de   : > { %v3286_v41 = vpack.c.bf16 %v5466_v29, %v5456_v33  ;;  %v3729_v50 = vpop.eup %3728  ;;  %v2643_v25 = vadd.f32 1.0, %v3727_v22  ;;  %v2457_v17 = vmul.f32 0.5, %v2383_v2  ;;  %v5521_v7 = vmul.f32 0.5, %v2224_v16 }
 0x3df   : > { %v2525_v57 = vmul.f32 0.70710677, %v2389_v40  ;;  %v3731_v18 = vpop.eup %3730  ;;  %v5524_v58 = vmul.f32 %v2640_v0, %v5463_v24  ;;  %v5526_v53 = vmul.f32 0.5, %v2385_v55  ;;  %v5528_v49 = vmul.f32 0.5, %v2228_v14 }
 0x3e0   : > { %v2524_v4 = vmul.f32 0.70710677, %v2230_v20  ;;  %3287 = vmatprep.subr.bf16.mxu0 %v3286_v41  ;;  %v3733_v36 = vpop.eup %3732  ;;  %v5531_v33 = vmul.f32 %v2642_v23, %v5471_v54  ;;  %v2526_v29 = vmul.f32 0.70710677, %v2391_v21  ;;  %v3318_v2 = vpack.c.bf16 %v5469_v60, %v5461_v38 }
 0x3e1   : > { %3744 = verf.f32 %v2525_v57  ;;  %v5720_v24 = vpack.c.bf16 %v5429_v19, %v5413_v45  ;;  %v2645_v16 = vadd.f32 1.0, %v3729_v50  ;;  %v2234_v55 = vadd.f32 %v5378_v37, %v2077_v61 }
 0x3e2   : > { %3746 = verf.f32 %v2524_v4  ;;  %v2395_v35 = vadd.f32 %v5387_v32, %v2077_v61  ;;  %v5541_v39 = vmul.f32 %v2643_v25, %v5473_v34  ;;  %v2644_v54 = vadd.f32 1.0, %v3731_v18  ;;  %3319 = vmatprep.subr.bf16.mxu1 %v3318_v2  ;;  %v2087_v4 = vpop.permute.xlu1 %2086 }
 0x3e3   : > { %3289 = vmatpush1.bf16.msra.mxu0 %v5720_v24  ;;  %v3735_v52 = vpop.eup %3734  ;;  %v2236_v14 = vadd.f32 %v5721_v10, %v2077_v61  ;;  %v2397_v38 = vadd.f32 %v5722_v47, %v2077_v61  ;;  %v2461_v45 = vmul.f32 0.5, %v2389_v40  ;;  %v5545_v19 = vmul.f32 0.5, %v2230_v20 }
 0x3e4   : > { %v3737_v60 = vpop.eup %3736  ;;  %v2647_v56 = vadd.f32 1.0, %v3735_v52  ;;  %v2527_v59 = vmul.f32 0.70710677, %v2234_v55  ;;  %v5723_v37 = vpack.c.bf16 %v5435_v13, %v5433_v11  ;;  %3748 = verf.f32 %v2526_v29 }
 0x3e5   : > { %v3739_v32 = vpop.eup %3738  ;;  %v2649_v34 = vadd.f32 1.0, %v3737_v60  ;;  %v2529_v22 = vmul.f32 0.70710677, %v2395_v35  ;;  %v2528_v0 = vmul.f32 0.70710677, %v2236_v14  ;;  %v5551_v23 = vmul.f32 %v2645_v16, %v5484_v48 }
 0x3e6   : > { %3321 = vmatpush1.bf16.msra.mxu1 %v5723_v37  ;;  %v3741_v26 = vpop.eup %3740  ;;  %v5553_v41 = vmul.f32 %v2647_v56, %v2455_v51  ;;  %3750 = verf.f32 %v2527_v59  ;;  %v5556_v40 = vadd.f32 %v5410_v28, %v2082_v27  ;;  %v2646_v20 = vadd.f32 1.0, %v3733_v36 }
 0x3e7   : > { %v5558_v50 = vmul.f32 %v2649_v34, %v2457_v17  ;;  %3752 = verf.f32 %v2529_v22  ;;  %v2530_v11 = vmul.f32 0.70710677, %v2397_v38  ;;  %v3743_v13 = vpop.eup %3742  ;;  %v2708_v25 = vmul.f32 %v2644_v54, %v5500_v9 }
 0x3e8   : > { %v3296_v57 = vpack.c.bf16 %v5553_v41, %v5541_v39  ;;  %v5563_v18 = vmul.f32 0.5, %v2391_v21  ;;  %3754 = verf.f32 %v2528_v0  ;;  %v2648_v51 = vadd.f32 1.0, %v3739_v32 }
 0x3e9   : > { %v3328_v48 = vpack.c.bf16 %v5558_v50, %v5551_v23  ;;  %v2650_v28 = vadd.f32 1.0, %v3741_v26  ;;  %3756 = verf.f32 %v2530_v11  ;;  %v2531_v17 = vmul.f32 0.70710677, %v5556_v40 }
 0x3ea   : > { %v5569_v36 = vadd.f32 %v5416_v42, %v2082_v27  ;;  %v5572_v9 = vadd.f32 %v5418_v12, %v2082_v27  ;;  %v5575_v61 = vadd.f32 %v5427_v15, %v2082_v27  ;;  %v2651_v29 = vadd.f32 1.0, %v3743_v13 }
 0x3eb   : > { %v3745_v21 = vpop.eup %3744  ;;  %v3290_v2 = vpack.c.bf16 %v5524_v58, %v5505_v43  ;;  %v3322_v24 = vpack.c.bf16 %v5531_v33, %v5517_v5  ;;  %v5582_v16 = vadd.f32 %v5437_v46, %v2087_v4  ;;  %v2710_v42 = vmul.f32 %v2646_v20, %v5509_v44 }
 0x3ec   : > { %v3747_v52 = vpop.eup %3746  ;;  %v2653_v54 = vadd.f32 1.0, %v3745_v21  ;;  %v2463_v12 = vmul.f32 0.5, %v2234_v55  ;;  %v2533_v10 = vmul.f32 0.70710677, %v5569_v36  ;;  %v2712_v15 = vmul.f32 %v2648_v51, %v5521_v7 }
 0x3ed   : > { %v2465_v47 = vmul.f32 0.5, %v2395_v35  ;;  %3758 = verf.f32 %v2531_v17  ;;  %v2532_v60 = vmul.f32 0.70710677, %v5572_v9  ;;  %3291 = vmatprep.subr.bf16.mxu0 %v3290_v2  ;;  %3323 = vmatprep.subr.bf16.mxu1 %v3322_v24  ;;  %v2714_v43 = vmul.f32 %v2650_v28, %v5526_v53 }
 0x3ee   : > { %v2464_v5 = vmul.f32 0.5, %v2236_v14  ;;  %v2466_v46 = vmul.f32 0.5, %v2397_v38  ;;  %v2534_v58 = vmul.f32 0.70710677, %v5575_v61  ;;  %3293 = vmatpush1.bf16.msra.mxu0 %v3292_v3  ;;  %3325 = vmatpush1.bf16.msra.mxu1 %v3324_v63  ;;  %v3749_v44 = vpop.eup %3748  ;;  %v2715_v7 = vmul.f32 %v2651_v29, %v5528_v49  ;;  %v5724_v3 = vld [vmem:[#allocation5_spill] sm:$0xff] }
 0x3ef   : > { %v2652_v33 = vadd.f32 1.0, %v3747_v52  ;;  %3760 = verf.f32 %v2533_v10  ;;  %v2535_v55 = vmul.f32 0.70710677, %v5582_v16  ;;  %v2717_v35 = vmul.f32 %v2653_v54, %v2461_v45 }
 0x3f0   : > { %v3751_v53 = vpop.eup %3750  ;;  %3762 = verf.f32 %v2532_v60  ;;  %v2407_v14 = vadd.f32 %v5443_v62, %v2087_v4  ;;  %v2248_v38 = vadd.f32 %v5445_v1, %v2087_v4  ;;  %v2409_v31 = vadd.f32 %v5724_v3, %v2087_v4 }
 0x3f1   : > { %v3753_v8 = vpop.eup %3752  ;;  %v2655_v6 = vadd.f32 1.0, %v3751_v53  ;;  %3764 = verf.f32 %v2535_v55  ;;  %v3294_v30 = vpack.c.bf16 %v2712_v15, %v2708_v25  ;;  %v2654_v56 = vadd.f32 1.0, %v3749_v44 }
 0x3f2   : > { %v3755_v63 = vpop.eup %3754  ;;  %v2657_v49 = vadd.f32 1.0, %v3753_v8  ;;  %3766 = verf.f32 %v2534_v58  ;;  %v2537_v59 = vmul.f32 0.70710677, %v2407_v14  ;;  %v2716_v32 = vmul.f32 %v2652_v33, %v5545_v19  ;;  %v2733_v8 = vld [vmem:[%s5679_s8 + $0x10] sm:$0xff] }
 0x3f3   : > { %v3757_v37 = vpop.eup %3756  ;;  %v2719_v45 = vmul.f32 %v2655_v6, %v2463_v12  ;;  %v2656_v27 = vadd.f32 1.0, %v3755_v63  ;;  %v2536_v34 = vmul.f32 0.70710677, %v2248_v38  ;;  %3295 = vmatprep.subr.bf16.mxu0 %v3294_v30  ;;  %v2538_v22 = vmul.f32 0.70710677, %v2409_v31  ;;  %v2734_v6 = vld [vmem:[%s5679_s8 + $0x18] sm:$0xff]  ;;  %v2747_v63 = vpop.permute.xlu1 %2746 }
 0x3f4   : > { %v2721_v62 = vmul.f32 %v2657_v49, %v2465_v47  ;;  %v2658_v1 = vadd.f32 1.0, %v3757_v37  ;;  %3768 = verf.f32 %v2537_v59  ;;  %3297 = vmatpush1.bf16.msra.mxu0 %v3296_v57  ;;  %v3326_v20 = vpack.c.bf16 %v2714_v43, %v2710_v42  ;;  %v2953_v59 = vld [vmem:[%s373_s29] sm:$0xf] }
 0x3f5   : > { %v3300_v0 = vpack.c.bf16 %v2719_v45, %v2715_v7  ;;  %v2720_v26 = vmul.f32 %v2656_v27, %v2464_v5  ;;  %3770 = verf.f32 %v2536_v34  ;;  %v2718_v11 = vmul.f32 %v2654_v56, %v5563_v18 }
 0x3f6   : > { %v3332_v13 = vpack.c.bf16 %v2721_v62, %v2717_v35  ;;  %v2722_v19 = vmul.f32 %v2658_v1, %v2466_v46  ;;  %3772 = verf.f32 %v2538_v22  ;;  %3327 = vmatprep.subr.bf16.mxu1 %v3326_v20  ;;  %v2467_v18 = vmul.f32 0.5, %v5556_v40 }
 0x3f7   : > { %v3759_v25 = vpop.eup %3758  ;;  %v3298_v51 = vpack.c.bf16 %v2720_v26, %v2716_v32  ;;  %3329 = vmatpush1.bf16.msra.mxu1 %v3328_v48  ;;  %v2471_v21 = vmul.f32 0.5, %v5582_v16  ;;  %v2469_v23 = vmul.f32 0.5, %v5569_v36  ;;  %v2468_v54 = vmul.f32 0.5, %v5572_v9  ;;  %v2757_v34 = vpop.permute.xlu1 %2756 }
 0x3f8   : > { %v3330_v28 = vpack.c.bf16 %v2722_v19, %v2718_v11  ;;  %v2659_v41 = vadd.f32 1.0, %v3759_v25  ;;  %v2473_v10 = vmul.f32 0.5, %v2407_v14  ;;  %v2470_v40 = vmul.f32 0.5, %v5575_v61  ;;  %v2731_v61 = vld [vmem:[%s5679_s8] sm:$0xff] }
 0x3f9   : > { %v3761_v4 = vpop.eup %3760  ;;  %3299 = vmatprep.subr.bf16.mxu0 %v3298_v51  ;;  %v2472_v16 = vmul.f32 0.5, %v2248_v38  ;;  %v2474_v58 = vmul.f32 0.5, %v2409_v31  ;;  %v5725_v14 = vmov 0.0   ;;  %v2732_v38 = vld [vmem:[%s5679_s8 + $0x8] sm:$0xff]  ;;  %v2955_v3 = vlaneseq  ;;  %v2742_v31 = vpop.permute.xlu0 %2741 }
 0x3fa   : > { %v3763_v39 = vpop.eup %3762  ;;  %3331 = vmatprep.subr.bf16.mxu1 %v3330_v28  ;;  %3301 = vmatpush1.bf16.msra.mxu0 %v3300_v0  ;;  %v2661_v2 = vadd.f32 1.0, %v3761_v4  ;;  %v2723_v52 = vmul.f32 %v2659_v41, %v2467_v18  ;;  %v3342_v51 = vadd.f32 %v2757_v34, %v2747_v63 }
 0x3fb   : > { %v3765_v57 = vpop.eup %3764  ;;  %3333 = vmatpush1.bf16.msra.mxu1 %v3332_v13  ;;  %v2660_v50 = vadd.f32 1.0, %v3763_v39  ;;  %v2956_v30 = vshrl.u32 %v2955_v3, 7 }
 0x3fc   : > { %v3767_v17 = vpop.eup %3766  ;;  %v2663_v29 = vadd.f32 1.0, %v3765_v57  ;;  %v2725_v5 = vmul.f32 %v2661_v2, %v2469_v23 }
 0x3fd   : > { %v2662_v12 = vadd.f32 1.0, %v3767_v17  ;;  %v2724_v7 = vmul.f32 %v2660_v50, %v2468_v54  ;;  %v2752_v56 = vpop.permute.xlu0 %2751  ;;  %v2957_v49 = vsub.s32 0, %v2956_v30  ;;  %v2965_v37 = vsub.s32 2, %v2956_v30 }
 0x3fe   : > { %v3769_v24 = vpop.eup %3768  ;;  %v2727_v48 = vmul.f32 %v2663_v29, %v2471_v21  ;;  %v2961_v32 = vsub.s32 1, %v2956_v30  ;;  %v3338_v45 = vadd.f32 %v2752_v56, %v2742_v31  ;;  %v2969_v27 = vsub.s32 3, %v2956_v30 }
 0x3ff   : > { %v3771_v42 = vpop.eup %3770  ;;  %v2665_v15 = vadd.f32 1.0, %v3769_v24  ;;  %v2726_v33 = vmul.f32 %v2662_v12, %v2470_v40  ;;  %v2958_v22 = vrot.slane %v2953_v59, %v2957_v49  ;;  %v2966_v11 = vrot.slane %v2953_v59, %v2965_v37 }
 0x400   : > { %v3773_v47 = vpop.eup %3772  ;;  %v3304_v60 = vpack.c.bf16 %v2727_v48, %v2723_v52  ;;  %v2664_v43 = vadd.f32 1.0, %v3771_v42  ;;  %v2962_v19 = vrot.slane %v2953_v59, %v2961_v32  ;;  %v2970_v39 = vrot.slane %v2953_v59, %v2969_v27 }
 0x401   : > { %v2729_v46 = vmul.f32 %v2665_v15, %v2473_v10  ;;  %v2666_v44 = vadd.f32 1.0, %v3773_v47 }
 0x402   : > { %v2728_v36 = vmul.f32 %v2664_v43, %v2472_v16 }
 0x403   : > { %v3336_v55 = vpack.c.bf16 %v2729_v46, %v2725_v5  ;;  %v2730_v53 = vmul.f32 %v2666_v44, %v2474_v58 }
 0x404   : > { %v3302_v35 = vpack.c.bf16 %v2728_v36, %v2724_v7 }
 0x405   : > { %v3334_v9 = vpack.c.bf16 %v2730_v53, %v2726_v33 }
 0x406   : > { %3303 = vmatprep.subr.bf16.mxu0 %v3302_v35 }
 0x407   : > { %3335 = vmatprep.subr.bf16.mxu1 %v3334_v9  ;;  %3305 = vmatpush1.bf16.msra.mxu0 %v3304_v60 }
 0x408   : > { %3337 = vmatpush1.bf16.msra.mxu1 %v3336_v55 }
 0x40a   : > { %2824 = vmatmul.mubr.f32.vlgmr.msra.gmra.mrb[96].mxu0 %v2731_v61 }
 0x40b   : > { %2913 = vmatmul.mubr.f32.vlgmr.msra.gmra.mrb[96].mxu1 %v2731_v61  ;;  %2829 = vmatprep.mubr.f32.mxu0 %v5725_v14 }
 0x40c   : > { %2918 = vmatprep.mubr.f32.mxu1 %v5725_v14 }
 0x40e   : > { %2830 = vmatmul.mubr.f32.gmra.mrb[98].mxu0 %v2732_v38 }
 0x40f   : > { %2919 = vmatmul.mubr.f32.gmra.mrb[98].mxu1 %v2732_v38  ;;  %2835 = vmatprep.mubr.f32.mxu0 %v5725_v14 }
 0x410   : > { %2924 = vmatprep.mubr.f32.mxu1 %v5725_v14 }
 0x412   : > { %2836 = vmatmul.mubr.f32.gmra.mrb[96].mxu0 %v2733_v8 }
 0x413   : > { %2925 = vmatmul.mubr.f32.gmra.mrb[96].mxu1 %v2733_v8  ;;  %2841 = vmatprep.mubr.f32.mxu0 %v5725_v14 }
 0x414   : > { %2930 = vmatprep.mubr.f32.mxu1 %v5725_v14 }
 0x416   : > { %2842 = vmatmul.mubr.f32.gmra.mrb[98].mxu0 %v2734_v6 }
 0x417   : > { %2931 = vmatmul.mubr.f32.gmra.mrb[98].mxu1 %v2734_v6 }
 0x4e5   : > { %v2837_v62 = vpop.f32.mrb[96].mxu0 }
 0x4e6   : > { %v3339_v1 = vadd.f32 %v3338_v45, %v2837_v62  ;;  %v2926_v0 = vpop.f32.mrb[96].mxu1  ;;  %v2839_v26 = vpop.f32.mrb[97].mxu0 }
 0x4e7   : > { %v3347_v20 = vadd.f32 %v3338_v45, %v2926_v0  ;;  %v3341_v13 = vadd.f32 %v3338_v45, %v2839_v26  ;;  %v2928_v25 = vpop.f32.mrb[97].mxu1 }
 0x4e8   : > { %v2945_v28 = vmul.f32 0.5, %v3339_v1  ;;  %v3349_v4 = vadd.f32 %v3338_v45, %v2928_v25 }
 0x4e9   : > { %v2947_v41 = vmul.f32 0.5, %v3347_v20  ;;  %v2946_v57 = vmul.f32 0.5, %v3341_v13  ;;  %v2843_v17 = vpop.f32.mrb[98].mxu0 }
 0x4ea   : > { %v2975_v18 = vadd.f32 %v2958_v22, %v2945_v28  ;;  %v2948_v21 = vmul.f32 0.5, %v3349_v4  ;;  %v3343_v29 = vadd.f32 %v3342_v51, %v2843_v17  ;;  %v2932_v2 = vpop.f32.mrb[98].mxu1  ;;  %v2845_v24 = vpop.f32.mrb[99].mxu0 }
 0x4eb   : > { %v2977_v52 = vadd.f32 %v2966_v11, %v2947_v41  ;;  %v2976_v23 = vadd.f32 %v2962_v19, %v2946_v57  ;;  %v3351_v50 = vadd.f32 %v3342_v51, %v2932_v2  ;;  %v3345_v48 = vadd.f32 %v3342_v51, %v2845_v24  ;;  %v2934_v42 = vpop.f32.mrb[99].mxu1 }
 0x4ec   : > { %2983 = vst [vmem:[%s5637_s13] sm:$0xff] %v2975_v18  ;;  %v2978_v54 = vadd.f32 %v2970_v39, %v2948_v21  ;;  %v2949_v12 = vmul.f32 0.5, %v3343_v29  ;;  %v3353_v10 = vadd.f32 %v3342_v51, %v2934_v42  ;;  %2997 = sbr.rel (!%p3880_p4) target bundleno = 1275 (0x4fb), region = 64 }
 0x4ed   : > { %2985 = vst [vmem:[%s5637_s13 + $0x10] sm:$0xff] %v2977_v52  ;;  %2984 = vst [vmem:[%s5637_s13 + $0x8] sm:$0xff] %v2976_v23  ;;  %v2951_v15 = vmul.f32 0.5, %v3351_v50  ;;  %v2950_v47 = vmul.f32 0.5, %v3345_v48 }
 0x4ee   : > { %2986 = vst [vmem:[%s5637_s13 + $0x18] sm:$0xff] %v2978_v54  ;;  %v2979_v40 = vadd.f32 %v2958_v22, %v2949_v12  ;;  %v2952_v60 = vmul.f32 0.5, %v3353_v10 }
 0x4ef   : > { %v2981_v16 = vadd.f32 %v2966_v11, %v2951_v15  ;;  %v2980_v43 = vadd.f32 %v2962_v19, %v2950_v47 }
 0x4f0   : > { %2987 = vst [vmem:[%s5637_s13 + $0x20] sm:$0xff] %v2979_v40  ;;  %v2982_v5 = vadd.f32 %v2970_v39, %v2952_v60 }
 0x4f1   : > { %2989 = vst [vmem:[%s5637_s13 + $0x30] sm:$0xff] %v2981_v16  ;;  %2988 = vst [vmem:[%s5637_s13 + $0x28] sm:$0xff] %v2980_v43 }
 0x4f2   : > { %2990 = vst [vmem:[%s5637_s13 + $0x38] sm:$0xff] %v2982_v5 }
 0x4f3   : > { %v3013_v46 = vld [vmem:[%s5637_s13] sm:$0xff] }
 0x4f4   : > { %v3015_v58 = vld [vmem:[%s5637_s13 + $0x8] sm:$0xff]  ;;  %v3017_v44 = vld [vmem:[%s5637_s13 + $0x10] sm:$0xff]  ;;  %3014 = vst [vmem:[%s3000_s18] sm:$0xff] %v3013_v46 }
 0x4f5   : > { %v3019_v7 = vld [vmem:[%s5637_s13 + $0x18] sm:$0xff]  ;;  %3016 = vst [vmem:[%s3000_s18 + $0x8] sm:$0xff] %v3015_v58  ;;  %3018 = vst [vmem:[%s3000_s18 + $0x10] sm:$0xff] %v3017_v44 }
 0x4f6   : > { %3020 = vst [vmem:[%s3000_s18 + $0x18] sm:$0xff] %v3019_v7 }
 0x4f7   : > { %v3021_v36 = vld [vmem:[%s5637_s13 + $0x20] sm:$0xff] }
 0x4f8   : > { %v3023_v33 = vld [vmem:[%s5637_s13 + $0x28] sm:$0xff]  ;;  %3022 = vst [vmem:[%s3000_s18 + $0x80] sm:$0xff] %v3021_v36  ;;  %v3025_v55 = vld [vmem:[%s5637_s13 + $0x30] sm:$0xff] }
 0x4f9   : > { %3024 = vst [vmem:[%s3000_s18 + $0x88] sm:$0xff] %v3023_v33  ;;  %v3027_v53 = vld [vmem:[%s5637_s13 + $0x38] sm:$0xff]  ;;  %3026 = vst [vmem:[%s3000_s18 + $0x90] sm:$0xff] %v3025_v55 }
 0x4fa   : > { %3028 = vst [vmem:[%s3000_s18 + $0x98] sm:$0xff] %v3027_v53 }
 0x4fb PF: > { %p17_p8 = scmp.ge.s32.totalorder %s3870_s17, 6   ;;  %s5726_s13 = smov %s3792_s14 }
 0x4fc   : > { %s5727_s14 = smov %s3878_s20  ;;  %s5728_s15 = smov %s3870_s17 }
 0x4fd   :  { %19 = sbr.rel (!%p17_p8) target bundleno = 2 (0x2), region = 116 }

</bundles_post_ra>
